<compile_context>
chip_gen: v5e
topology: v5e:2x2
jax: 0.10.0
libtpu: 0.0.40
codegen_flags: <defaults>
</compile_context>

<pallas_src>
import math
import functools

import jax
import jax.numpy as jnp
from jax.experimental import pallas as pl
from jax.experimental.pallas import tpu as pltpu


# ---------------------------------------------------------------------------
# Fused kernel: grid = (depth,), "arbitrary".
#   step 0        : embed  acc <- |rDFT(frames)| @ Wp + bias    (bias holds
#                   b_proj + channel token + positional encoding per token)
#   every step d  : acc <- one LinearAttentionTransformer layer applied to acc
#   last step     : out[b, :] <- mean over that batch's tokens of acc
# acc / attn scratch are (B*N, E) so every projection runs with M = B*N.
# ---------------------------------------------------------------------------
def _biot_kernel(frames_ref, dft_ref, wp_ref, bias_ref,
                 wqkv_ref, wo_ref, w1_ref, w2_ref, vec_ref,
                 out_ref,
                 acc_ref, attn_ref,
                 *, heads, batch, n_tokens, n_freq_pad):
    d = pl.program_id(0)

    # ---- embedding prologue (runs only on the first grid step) ----
    @pl.when(d == 0)
    def _():
        f = frames_ref[...]                                              # (B*N, n_fft)
        # single wide matmul against [cos | -sin]  -> (B*N, 2*n_freq_pad)
        y = jnp.dot(f, dft_ref[...], preferred_element_type=jnp.float32)
        re = y[:, :n_freq_pad]
        im = y[:, n_freq_pad:]
        mag = jnp.sqrt(re * re + im * im)                                # |STFT|
        acc_ref[...] = (jnp.dot(mag, wp_ref[...],
                                preferred_element_type=jnp.float32)
                        + bias_ref[...])

    x = acc_ref[...]                                                     # (B*N, E)
    E = x.shape[-1]
    F = w1_ref.shape[-1]
    dh = E // heads

    # ---- unpack the per-layer vector slab (1 DMA instead of 7) ----
    vec = vec_ref[...]                                                   # (8, >=4E)
    b1   = vec[0:1, :F]                                                  # (1, F)
    ln1g = vec[1:2, 0 * E:1 * E]
    ln1b = vec[1:2, 1 * E:2 * E]
    bo   = vec[1:2, 2 * E:3 * E]
    ln2g = vec[1:2, 3 * E:4 * E]
    ln2b = vec[2:3, 0 * E:1 * E]
    b2   = vec[2:3, 1 * E:2 * E]

    def layer_norm(v, g, b):                                             # g, b: (1, E)
        mu = jnp.mean(v, axis=-1, keepdims=True)
        var = jnp.mean(jnp.square(v - mu), axis=-1, keepdims=True)
        return (v - mu) * jax.lax.rsqrt(var + 1e-5) * g + b

    # ---- pre-norm linear-attention block ----
    xn = layer_norm(x, ln1g, ln1b)
    qkv = jnp.dot(xn, wqkv_ref[...], preferred_element_type=jnp.float32)  # (B*N, 3E)

    scale = dh ** -0.5
    for b in range(batch):                           # static unroll (tiny B)
        rows = slice(b * n_tokens, (b + 1) * n_tokens)
        for h in range(heads):                       # static unroll
            lo = h * dh
            qh = qkv[rows, lo:lo + dh]
            kh = qkv[rows, E + lo:E + lo + dh]
            vh = qkv[rows, 2 * E + lo:2 * E + lo + dh]
            # softmax over the feature dim for q (then * dh**-0.5)
            qh = jnp.exp(qh - jnp.max(qh, axis=-1, keepdims=True))
            qh = qh * (scale / jnp.sum(qh, axis=-1, keepdims=True))
            # softmax over the sequence dim for k (per batch element)
            kh = jnp.exp(kh - jnp.max(kh, axis=0, keepdims=True))
            kh = kh / jnp.sum(kh, axis=0, keepdims=True)
            ctx = jax.lax.dot_general(kh, vh, (((0,), (0,)), ((), ())),
                                      preferred_element_type=jnp.float32)  # (dh, dh)
            # write the head output straight into its aligned 128-lane slab
            attn_ref[rows, lo:lo + dh] = jnp.dot(
                qh, ctx, preferred_element_type=jnp.float32)

    x = x + jnp.dot(attn_ref[...], wo_ref[...],
                    preferred_element_type=jnp.float32) + bo

    # ---- pre-norm feed-forward block ----
    xn2 = layer_norm(x, ln2g, ln2b)
    h1 = jnp.dot(xn2, w1_ref[...], preferred_element_type=jnp.float32) + b1
    # TODO(synk): torch nn.GELU defaults to the exact erf form; tanh approximation used here.
    h1 = 0.5 * h1 * (1.0 + jnp.tanh(0.7978845608028654
                                    * (h1 + 0.044715 * h1 * h1 * h1)))
    x = x + jnp.dot(h1, w2_ref[...], preferred_element_type=jnp.float32) + b2
    acc_ref[...] = x

    # ---- epilogue: mean over the token dim, per batch element ----
    @pl.when(d == pl.num_programs(0) - 1)
    def _():
        for b in range(batch):                       # static unroll
            out_ref[b:b + 1, :] = jnp.mean(
                x[b * n_tokens:(b + 1) * n_tokens, :], axis=0, keepdims=True)


# ---------------------------------------------------------------------------
# Host-side glue: framing, DFT / bias construction, per-layer vector packing,
# single pallas_call. Wrap this whole function in jax.jit at the call site.
# ---------------------------------------------------------------------------
def biot_encoder_forward(x, params, *, n_fft, hop_length, heads, n_channel_offset=0):
    B, C, L = x.shape
    T = 1 + (L - n_fft) // hop_length                  # torch.stft, center=False
    N = C * T                                          # tokens per batch element
    n_freq = n_fft // 2 + 1                            # onesided
    n_freq_pad = ((n_freq + 127) // 128) * 128         # pad lanes to 128
    E = params["w_proj"].shape[1]
    F = params["w1"].shape[-1]
    depth = params["wqkv"].shape[0]
    W = max(F, 4 * E)                                  # vector-slab lane width

    # combined real-DFT matrix [cos | -sin], zero-padded freq columns
    n = jnp.arange(n_fft, dtype=jnp.float32)[:, None]
    kk = jnp.arange(n_freq, dtype=jnp.float32)[None, :]
    ang = 2.0 * math.pi * n * kk / n_fft
    dft = jnp.zeros((n_fft, 2 * n_freq_pad), jnp.float32)
    dft = dft.at[:, :n_freq].set(jnp.cos(ang))
    dft = dft.at[:, n_freq_pad:n_freq_pad + n_freq].set(-jnp.sin(ang))
    wp_pad = jnp.zeros((n_freq_pad, E), jnp.float32).at[:n_freq].set(params["w_proj"])

    # frame the raw signal: (B, C, T, n_fft) -> rows ordered (b, c, t)
    frame_idx = jnp.arange(T)[:, None] * hop_length + jnp.arange(n_fft)[None, :]
    frames = x[:, :, frame_idx].reshape(B * N, n_fft)

    # per-token additive bias: projection bias + channel token + positional enc.
    chan = params["chan_tokens"][n_channel_offset:n_channel_offset + C]   # (C, E)
    bias = (params["b_proj"][None]                     # (1, 1, E)
            + chan[:, None, :]                         # (C, 1, E)
            + params["pe"][None, :T, :])               # (1, T, E) -> (C, T, E)
    bias = jnp.broadcast_to(bias[None], (B, C, T, E)).reshape(B * N, E)

    # pack all small per-layer vectors into one (depth, 8, W) slab:
    #   row 0: b1 (FF hidden bias, F lanes)
    #   row 1: [ln1_g | ln1_b | bo | ln2_g]      (4 x E lanes)
    #   row 2: [ln2_b | b2 | 0 ... ]             (2 x E lanes)
    vec = jnp.zeros((depth, 8, W), jnp.float32)
    vec = vec.at[:, 0, :F].set(params["b1"][:, 0, :])
    vec = vec.at[:, 1, 0 * E:1 * E].set(params["ln1_g"][:, 0, :])
    vec = vec.at[:, 1, 1 * E:2 * E].set(params["ln1_b"][:, 0, :])
    vec = vec.at[:, 1, 2 * E:3 * E].set(params["bo"][:, 0, :])
    vec = vec.at[:, 1, 3 * E:4 * E].set(params["ln2_g"][:, 0, :])
    vec = vec.at[:, 2, 0 * E:1 * E].set(params["ln2_b"][:, 0, :])
    vec = vec.at[:, 2, 1 * E:2 * E].set(params["b2"][:, 0, :])

    def const2(shape):                                 # loaded once (constant index)
        return pl.BlockSpec(shape, lambda d: (0, 0))

    def per_layer(shape):                              # depth-stacked, pipelined
        return pl.BlockSpec((None,) + shape, lambda d: (d, 0, 0))

    kern = functools.partial(_biot_kernel, heads=heads, batch=B,
                             n_tokens=N, n_freq_pad=n_freq_pad)

    # VMEM budget: ~3.1 MB/layer weights double-buffered + <0.5 MB of
    # activations/inputs — far below the scoped-VMEM default on v5e/v6e/v7x,
    # so no vmem_limit_bytes / Buffered() tuning is needed at this size.
    # NOTE(v7x): the grid is a sequential depth loop (layer-carried state), so
    # only one TensorCore is used; the workload is too small to split further.
    return pl.pallas_call(
        kern,
        out_shape=jax.ShapeDtypeStruct((B, E), jnp.float32),
        grid=(depth,),
        in_specs=[
            const2((B * N, n_fft)),
            const2((n_fft, 2 * n_freq_pad)),
            const2((n_freq_pad, E)),
            const2((B * N, E)),
            per_layer((E, 3 * E)),
            per_layer((E, E)),
            per_layer((E, F)),
            per_layer((F, E)),
            per_layer((8, W)),
        ],
        out_specs=pl.BlockSpec((B, E), lambda d: (0, 0)),
        scratch_shapes=[pltpu.VMEM((B * N, E), jnp.float32),   # activation accumulator
                        pltpu.VMEM((B * N, E), jnp.float32)],  # per-head attn staging
        compiler_params=pltpu.CompilerParams(dimension_semantics=("arbitrary",)),
    )(frames, dft, wp_pad, bias,
      params["wqkv"], params["wo"], params["w1"], params["w2"], vec)


# ---------------------------------------------------------------------------
# Deterministic parameter construction (synthetic init, module shapes).
# Transformer weights are stacked with a leading depth axis and the q/k/v
# projections are concatenated into one (E, 3E) matrix per layer.
# ---------------------------------------------------------------------------
def make_params(key, *, emb_size, heads, depth, n_channels, n_fft, max_len=1000):
    assert emb_size == 256, "channel token embedding is 256-dim in the module"
    n_freq = n_fft // 2 + 1
    ff = 4 * emb_size
    keys = iter(jax.random.split(key, 16))

    def nrm(shape, scale=0.02):
        return (scale * jax.random.normal(next(keys), shape)).astype(jnp.float32)

    # sinusoidal positional encoding buffer
    position = jnp.arange(max_len, dtype=jnp.float32)[:, None]
    div_term = jnp.exp(jnp.arange(0, emb_size, 2, dtype=jnp.float32)
                       * (-math.log(10000.0) / emb_size))
    pe = jnp.zeros((max_len, emb_size), jnp.float32)
    pe = pe.at[:, 0::2].set(jnp.sin(position * div_term))
    pe = pe.at[:, 1::2].set(jnp.cos(position * div_term))

    return dict(
        w_proj=nrm((n_freq, emb_size)),                  # PatchFrequencyEmbedding
        b_proj=jnp.zeros((1, emb_size), jnp.float32),
        chan_tokens=nrm((n_channels, 256)),              # nn.Embedding(n_channels, 256)
        pe=pe,
        ln1_g=jnp.ones((depth, 1, emb_size), jnp.float32),
        ln1_b=jnp.zeros((depth, 1, emb_size), jnp.float32),
        wqkv=jnp.concatenate([nrm((depth, emb_size, emb_size)),
                              nrm((depth, emb_size, emb_size)),
                              nrm((depth, emb_size, emb_size))], axis=-1),
        wo=nrm((depth, emb_size, emb_size)),
        bo=jnp.zeros((depth, 1, emb_size), jnp.float32),
        ln2_g=jnp.ones((depth, 1, emb_size), jnp.float32),
        ln2_b=jnp.zeros((depth, 1, emb_size), jnp.float32),
        w1=nrm((depth, emb_size, ff)),
        b1=jnp.zeros((depth, 1, ff), jnp.float32),
        w2=nrm((depth, ff, emb_size)),
        b2=jnp.zeros((depth, 1, emb_size), jnp.float32),
    )


if __name__ == "__main__":
    # emb_size must be 256: the module adds a 256-dim channel token embedding.
    emb_size, heads, depth = 256, 2, 2
    n_channels, n_fft, hop_length = 2, 64, 32
    B, L = 2, 256

    key = jax.random.PRNGKey(0)
    pkey, xkey = jax.random.split(key)
    params = make_params(pkey, emb_size=emb_size, heads=heads, depth=depth,
                         n_channels=n_channels, n_fft=n_fft)
    x = jax.random.normal(xkey, (B, n_channels, L), dtype=jnp.float32)

    fwd = jax.jit(functools.partial(biot_encoder_forward, n_fft=n_fft,
                                    hop_length=hop_length, heads=heads))
    out = jax.block_until_ready(fwd(x, params))

    assert out.shape == (B, emb_size), out.shape
    assert bool(jnp.all(jnp.isfinite(out)))
    print("KERNEL_OK")
</pallas_src>

<mosaic_0001>
module attributes {stable_mosaic.version = 11 : i64} {
  func.func @_biot_kernel(%arg0: i32, %arg1: memref<28x64xf32, #tpu.memory_space<vmem>>, %arg2: memref<64x256xf32, #tpu.memory_space<vmem>>, %arg3: memref<128x256xf32, #tpu.memory_space<vmem>>, %arg4: memref<28x256xf32, #tpu.memory_space<vmem>>, %arg5: memref<1x256x768xf32, #tpu.memory_space<vmem>>, %arg6: memref<1x256x256xf32, #tpu.memory_space<vmem>>, %arg7: memref<1x256x1024xf32, #tpu.memory_space<vmem>>, %arg8: memref<1x1024x256xf32, #tpu.memory_space<vmem>>, %arg9: memref<1x8x1024xf32, #tpu.memory_space<vmem>>, %arg10: memref<2x256xf32, #tpu.memory_space<vmem>>, %arg11: memref<28x256xf32, #tpu.memory_space<vmem>>, %arg12: memref<28x256xf32, #tpu.memory_space<vmem>>) attributes {dimension_semantics = [#tpu.dimension_semantics<arbitrary>], iteration_bounds = array<i64: 2>, scalar_prefetch = 0 : i64, scratch_operands = 2 : i64, tpu.core_type = #tpu.core_type<tc>, window_params = [{pipeline_mode = #tpu.pipeline_mode<synchronous>, transform_indices = @transform_0, window_bounds = array<i64: 28, 64>}, {pipeline_mode = #tpu.pipeline_mode<synchronous>, transform_indices = @transform_1, window_bounds = array<i64: 64, 256>}, {pipeline_mode = #tpu.pipeline_mode<synchronous>, transform_indices = @transform_2, window_bounds = array<i64: 128, 256>}, {pipeline_mode = #tpu.pipeline_mode<synchronous>, transform_indices = @transform_3, window_bounds = array<i64: 28, 256>}, {transform_indices = @transform_4, window_bounds = array<i64: 1, 256, 768>}, {transform_indices = @transform_5, window_bounds = array<i64: 1, 256, 256>}, {transform_indices = @transform_6, window_bounds = array<i64: 1, 256, 1024>}, {transform_indices = @transform_7, window_bounds = array<i64: 1, 1024, 256>}, {transform_indices = @transform_8, window_bounds = array<i64: 1, 8, 1024>}, {pipeline_mode = #tpu.pipeline_mode<synchronous>, transform_indices = @transform_9, window_bounds = array<i64: 2, 256>}]} {
    %c0_i32 = arith.constant 0 : i32
    %0 = arith.cmpi eq, %arg0, %c0_i32 : i32
    %1 = arith.extui %0 : i1 to i32
    %c0_i32_0 = arith.constant 0 : i32
    %2 = arith.cmpi ne, %1, %c0_i32_0 : i32
    scf.if %2 {
      %c0_73 = arith.constant 0 : index
      %c0_74 = arith.constant 0 : index
      %199 = vector.load %arg1[%c0_73, %c0_74] : memref<28x64xf32, #tpu.memory_space<vmem>>, vector<28x64xf32>
      %c0_75 = arith.constant 0 : index
      %c0_76 = arith.constant 0 : index
      %200 = vector.load %arg2[%c0_75, %c0_76] : memref<64x256xf32, #tpu.memory_space<vmem>>, vector<64x256xf32>
      %cst_77 = arith.constant dense<0.000000e+00> : vector<28x256xf32>
      %201 = tpu.matmul %199, %200, %cst_77 {dimension_numbers = #tpu.dot_dimension_numbers<[1], [0], [0], [1], [0, 0, 1, 1], [], []>} : vector<28x64xf32>, vector<64x256xf32>, vector<28x256xf32> -> vector<28x256xf32>
      %202 = vector.extract_strided_slice %201 {offsets = [0, 0], sizes = [28, 128], strides = [1, 1]} : vector<28x256xf32> to vector<28x128xf32>
      %203 = vector.extract_strided_slice %201 {offsets = [0, 128], sizes = [28, 128], strides = [1, 1]} : vector<28x256xf32> to vector<28x128xf32>
      %204 = arith.mulf %202, %202 : vector<28x128xf32>
      %205 = arith.mulf %203, %203 : vector<28x128xf32>
      %206 = arith.addf %204, %205 : vector<28x128xf32>
      %207 = math.sqrt %206 : vector<28x128xf32>
      %c0_78 = arith.constant 0 : index
      %c0_79 = arith.constant 0 : index
      %208 = vector.load %arg3[%c0_78, %c0_79] : memref<128x256xf32, #tpu.memory_space<vmem>>, vector<128x256xf32>
      %cst_80 = arith.constant dense<0.000000e+00> : vector<28x256xf32>
      %209 = tpu.matmul %207, %208, %cst_80 {dimension_numbers = #tpu.dot_dimension_numbers<[1], [0], [0], [1], [0, 0, 1, 1], [], []>} : vector<28x128xf32>, vector<128x256xf32>, vector<28x256xf32> -> vector<28x256xf32>
      %c0_81 = arith.constant 0 : index
      %c0_82 = arith.constant 0 : index
      %210 = vector.load %arg4[%c0_81, %c0_82] : memref<28x256xf32, #tpu.memory_space<vmem>>, vector<28x256xf32>
      %211 = arith.addf %209, %210 : vector<28x256xf32>
      %c0_83 = arith.constant 0 : index
      %c0_84 = arith.constant 0 : index
      %212 = vector.load %arg11[%c0_83, %c0_84] : memref<28x256xf32, #tpu.memory_space<vmem>>, vector<28x256xf32>
      tpu.vector_store %arg11[%c0_83, %c0_84], %211 {strides = array<i32>} : memref<28x256xf32, #tpu.memory_space<vmem>>, vector<28x256xf32>,
    } else {
    }
    %c0 = arith.constant 0 : index
    %c0_1 = arith.constant 0 : index
    %3 = vector.load %arg11[%c0, %c0_1] : memref<28x256xf32, #tpu.memory_space<vmem>>, vector<28x256xf32>
    %c0_2 = arith.constant 0 : index
    %c0_3 = arith.constant 0 : index
    %c0_4 = arith.constant 0 : index
    %4 = vector.load %arg9[%c0_2, %c0_3, %c0_4] : memref<1x8x1024xf32, #tpu.memory_space<vmem>>, vector<1x8x1024xf32>
    %5 = vector.shape_cast %4 : vector<1x8x1024xf32> to vector<8x1024xf32>
    %6 = vector.extract_strided_slice %5 {offsets = [0, 0], sizes = [1, 1024], strides = [1, 1]} : vector<8x1024xf32> to vector<1x1024xf32>
    %7 = vector.extract_strided_slice %5 {offsets = [1, 0], sizes = [1, 256], strides = [1, 1]} : vector<8x1024xf32> to vector<1x256xf32>
    %8 = vector.extract_strided_slice %5 {offsets = [1, 256], sizes = [1, 256], strides = [1, 1]} : vector<8x1024xf32> to vector<1x256xf32>
    %9 = vector.extract_strided_slice %5 {offsets = [1, 512], sizes = [1, 256], strides = [1, 1]} : vector<8x1024xf32> to vector<1x256xf32>
    %10 = vector.extract_strided_slice %5 {offsets = [1, 768], sizes = [1, 256], strides = [1, 1]} : vector<8x1024xf32> to vector<1x256xf32>
    %11 = vector.extract_strided_slice %5 {offsets = [2, 0], sizes = [1, 256], strides = [1, 1]} : vector<8x1024xf32> to vector<1x256xf32>
    %12 = vector.extract_strided_slice %5 {offsets = [2, 256], sizes = [1, 256], strides = [1, 1]} : vector<8x1024xf32> to vector<1x256xf32>
    %cst = arith.constant dense<0.000000e+00> : vector<28xf32>
    %13 = vector.multi_reduction <add>, %3, %cst [1] : vector<28x256xf32> to vector<28xf32>
    %14 = vector.shape_cast %13 : vector<28xf32> to vector<28x1xf32>
    %cst_5 = arith.constant 2.560000e+02 : f32
    %15 = vector.broadcast %cst_5 : f32 to vector<28x1xf32>
    %16 = arith.divf %14, %15 : vector<28x1xf32>
    %17 = vector.broadcast %16 : vector<28x1xf32> to vector<28x256xf32>
    %18 = arith.subf %3, %17 : vector<28x256xf32>
    %19 = arith.mulf %18, %18 : vector<28x256xf32>
    %cst_6 = arith.constant dense<0.000000e+00> : vector<28xf32>
    %20 = vector.multi_reduction <add>, %19, %cst_6 [1] : vector<28x256xf32> to vector<28xf32>
    %21 = vector.shape_cast %20 : vector<28xf32> to vector<28x1xf32>
    %cst_7 = arith.constant 2.560000e+02 : f32
    %22 = vector.broadcast %cst_7 : f32 to vector<28x1xf32>
    %23 = arith.divf %21, %22 : vector<28x1xf32>
    %24 = vector.broadcast %16 : vector<28x1xf32> to vector<28x256xf32>
    %25 = arith.subf %3, %24 : vector<28x256xf32>
    %cst_8 = arith.constant 9.99999974E-6 : f32
    %26 = vector.broadcast %cst_8 : f32 to vector<28x1xf32>
    %27 = arith.addf %23, %26 : vector<28x1xf32>
    %28 = math.rsqrt %27 : vector<28x1xf32>
    %29 = vector.broadcast %28 : vector<28x1xf32> to vector<28x256xf32>
    %30 = arith.mulf %25, %29 : vector<28x256xf32>
    %31 = vector.broadcast %7 : vector<1x256xf32> to vector<28x256xf32>
    %32 = arith.mulf %30, %31 : vector<28x256xf32>
    %33 = vector.broadcast %8 : vector<1x256xf32> to vector<28x256xf32>
    %34 = arith.addf %32, %33 : vector<28x256xf32>
    %c0_9 = arith.constant 0 : index
    %c0_10 = arith.constant 0 : index
    %c0_11 = arith.constant 0 : index
    %35 = vector.load %arg5[%c0_9, %c0_10, %c0_11] : memref<1x256x768xf32, #tpu.memory_space<vmem>>, vector<1x256x768xf32>
    %36 = vector.shape_cast %35 : vector<1x256x768xf32> to vector<256x768xf32>
    %cst_12 = arith.constant dense<0.000000e+00> : vector<28x768xf32>
    %37 = tpu.matmul %34, %36, %cst_12 {dimension_numbers = #tpu.dot_dimension_numbers<[1], [0], [0], [1], [0, 0, 1, 1], [], []>} : vector<28x256xf32>, vector<256x768xf32>, vector<28x768xf32> -> vector<28x768xf32>
    %38 = vector.extract_strided_slice %37 {offsets = [0, 0], sizes = [14, 128], strides = [1, 1]} : vector<28x768xf32> to vector<14x128xf32>
    %39 = vector.extract_strided_slice %37 {offsets = [0, 256], sizes = [14, 128], strides = [1, 1]} : vector<28x768xf32> to vector<14x128xf32>
    %40 = vector.extract_strided_slice %37 {offsets = [0, 512], sizes = [14, 128], strides = [1, 1]} : vector<28x768xf32> to vector<14x128xf32>
    %cst_13 = arith.constant dense<0xFF800000> : vector<14xf32>
    %41 = vector.multi_reduction <maximumf>, %38, %cst_13 [1] : vector<14x128xf32> to vector<14xf32>
    %42 = vector.shape_cast %41 : vector<14xf32> to vector<14x1xf32>
    %43 = vector.broadcast %42 : vector<14x1xf32> to vector<14x128xf32>
    %44 = arith.subf %38, %43 : vector<14x128xf32>
    %45 = math.exp %44 : vector<14x128xf32>
    %cst_14 = arith.constant dense<0.000000e+00> : vector<14xf32>
    %46 = vector.multi_reduction <add>, %45, %cst_14 [1] : vector<14x128xf32> to vector<14xf32>
    %47 = vector.shape_cast %46 : vector<14xf32> to vector<14x1xf32>
    %cst_15 = arith.constant 0.0883883461 : f32
    %48 = vector.broadcast %cst_15 : f32 to vector<14x1xf32>
    %49 = arith.divf %48, %47 : vector<14x1xf32>
    %50 = vector.broadcast %49 : vector<14x1xf32> to vector<14x128xf32>
    %51 = arith.mulf %45, %50 : vector<14x128xf32>
    %cst_16 = arith.constant dense<0xFF800000> : vector<128xf32>
    %52 = vector.multi_reduction <maximumf>, %39, %cst_16 [0] : vector<14x128xf32> to vector<128xf32>
    %53 = vector.shape_cast %52 : vector<128xf32> to vector<1x128xf32>
    %54 = vector.broadcast %53 : vector<1x128xf32> to vector<14x128xf32>
    %55 = arith.subf %39, %54 : vector<14x128xf32>
    %56 = math.exp %55 : vector<14x128xf32>
    %cst_17 = arith.constant dense<0.000000e+00> : vector<128xf32>
    %57 = vector.multi_reduction <add>, %56, %cst_17 [0] : vector<14x128xf32> to vector<128xf32>
    %58 = vector.shape_cast %57 : vector<128xf32> to vector<1x128xf32>
    %59 = vector.broadcast %58 : vector<1x128xf32> to vector<14x128xf32>
    %60 = arith.divf %56, %59 : vector<14x128xf32>
    %cst_18 = arith.constant dense<0.000000e+00> : vector<128x128xf32>
    %61 = tpu.matmul %60, %40, %cst_18 {dimension_numbers = #tpu.dot_dimension_numbers<[0], [0], [1], [1], [0, 1, 1, 1], [], []>} : vector<14x128xf32>, vector<14x128xf32>, vector<128x128xf32> -> vector<128x128xf32>
    %cst_19 = arith.constant dense<0.000000e+00> : vector<14x128xf32>
    %62 = tpu.matmul %51, %61, %cst_19 {dimension_numbers = #tpu.dot_dimension_numbers<[1], [0], [0], [1], [0, 0, 1, 1], [], []>} : vector<14x128xf32>, vector<128x128xf32>, vector<14x128xf32> -> vector<14x128xf32>
    %c0_20 = arith.constant 0 : index
    %c0_21 = arith.constant 0 : index
    %63 = vector.load %arg12[%c0_20, %c0_21] : memref<28x256xf32, #tpu.memory_space<vmem>>, vector<14x128xf32>
    tpu.vector_store %arg12[%c0_20, %c0_21], %62 {strides = array<i32>} : memref<28x256xf32, #tpu.memory_space<vmem>>, vector<14x128xf32>,
    %64 = vector.extract_strided_slice %37 {offsets = [0, 128], sizes = [14, 128], strides = [1, 1]} : vector<28x768xf32> to vector<14x128xf32>
    %65 = vector.extract_strided_slice %37 {offsets = [0, 384], sizes = [14, 128], strides = [1, 1]} : vector<28x768xf32> to vector<14x128xf32>
    %66 = vector.extract_strided_slice %37 {offsets = [0, 640], sizes = [14, 128], strides = [1, 1]} : vector<28x768xf32> to vector<14x128xf32>
    %cst_22 = arith.constant dense<0xFF800000> : vector<14xf32>
    %67 = vector.multi_reduction <maximumf>, %64, %cst_22 [1] : vector<14x128xf32> to vector<14xf32>
    %68 = vector.shape_cast %67 : vector<14xf32> to vector<14x1xf32>
    %69 = vector.broadcast %68 : vector<14x1xf32> to vector<14x128xf32>
    %70 = arith.subf %64, %69 : vector<14x128xf32>
    %71 = math.exp %70 : vector<14x128xf32>
    %cst_23 = arith.constant dense<0.000000e+00> : vector<14xf32>
    %72 = vector.multi_reduction <add>, %71, %cst_23 [1] : vector<14x128xf32> to vector<14xf32>
    %73 = vector.shape_cast %72 : vector<14xf32> to vector<14x1xf32>
    %cst_24 = arith.constant 0.0883883461 : f32
    %74 = vector.broadcast %cst_24 : f32 to vector<14x1xf32>
    %75 = arith.divf %74, %73 : vector<14x1xf32>
    %76 = vector.broadcast %75 : vector<14x1xf32> to vector<14x128xf32>
    %77 = arith.mulf %71, %76 : vector<14x128xf32>
    %cst_25 = arith.constant dense<0xFF800000> : vector<128xf32>
    %78 = vector.multi_reduction <maximumf>, %65, %cst_25 [0] : vector<14x128xf32> to vector<128xf32>
    %79 = vector.shape_cast %78 : vector<128xf32> to vector<1x128xf32>
    %80 = vector.broadcast %79 : vector<1x128xf32> to vector<14x128xf32>
    %81 = arith.subf %65, %80 : vector<14x128xf32>
    %82 = math.exp %81 : vector<14x128xf32>
    %cst_26 = arith.constant dense<0.000000e+00> : vector<128xf32>
    %83 = vector.multi_reduction <add>, %82, %cst_26 [0] : vector<14x128xf32> to vector<128xf32>
    %84 = vector.shape_cast %83 : vector<128xf32> to vector<1x128xf32>
    %85 = vector.broadcast %84 : vector<1x128xf32> to vector<14x128xf32>
    %86 = arith.divf %82, %85 : vector<14x128xf32>
    %cst_27 = arith.constant dense<0.000000e+00> : vector<128x128xf32>
    %87 = tpu.matmul %86, %66, %cst_27 {dimension_numbers = #tpu.dot_dimension_numbers<[0], [0], [1], [1], [0, 1, 1, 1], [], []>} : vector<14x128xf32>, vector<14x128xf32>, vector<128x128xf32> -> vector<128x128xf32>
    %cst_28 = arith.constant dense<0.000000e+00> : vector<14x128xf32>
    %88 = tpu.matmul %77, %87, %cst_28 {dimension_numbers = #tpu.dot_dimension_numbers<[1], [0], [0], [1], [0, 0, 1, 1], [], []>} : vector<14x128xf32>, vector<128x128xf32>, vector<14x128xf32> -> vector<14x128xf32>
    %c0_29 = arith.constant 0 : index
    %c128 = arith.constant 128 : index
    %89 = vector.load %arg12[%c0_29, %c128] : memref<28x256xf32, #tpu.memory_space<vmem>>, vector<14x128xf32>
    tpu.vector_store %arg12[%c0_29, %c128], %88 {strides = array<i32>} : memref<28x256xf32, #tpu.memory_space<vmem>>, vector<14x128xf32>,
    %90 = vector.extract_strided_slice %37 {offsets = [14, 0], sizes = [14, 128], strides = [1, 1]} : vector<28x768xf32> to vector<14x128xf32>
    %91 = vector.extract_strided_slice %37 {offsets = [14, 256], sizes = [14, 128], strides = [1, 1]} : vector<28x768xf32> to vector<14x128xf32>
    %92 = vector.extract_strided_slice %37 {offsets = [14, 512], sizes = [14, 128], strides = [1, 1]} : vector<28x768xf32> to vector<14x128xf32>
    %cst_30 = arith.constant dense<0xFF800000> : vector<14xf32>
    %93 = vector.multi_reduction <maximumf>, %90, %cst_30 [1] : vector<14x128xf32> to vector<14xf32>
    %94 = vector.shape_cast %93 : vector<14xf32> to vector<14x1xf32>
    %95 = vector.broadcast %94 : vector<14x1xf32> to vector<14x128xf32>
    %96 = arith.subf %90, %95 : vector<14x128xf32>
    %97 = math.exp %96 : vector<14x128xf32>
    %cst_31 = arith.constant dense<0.000000e+00> : vector<14xf32>
    %98 = vector.multi_reduction <add>, %97, %cst_31 [1] : vector<14x128xf32> to vector<14xf32>
    %99 = vector.shape_cast %98 : vector<14xf32> to vector<14x1xf32>
    %cst_32 = arith.constant 0.0883883461 : f32
    %100 = vector.broadcast %cst_32 : f32 to vector<14x1xf32>
    %101 = arith.divf %100, %99 : vector<14x1xf32>
    %102 = vector.broadcast %101 : vector<14x1xf32> to vector<14x128xf32>
    %103 = arith.mulf %97, %102 : vector<14x128xf32>
    %cst_33 = arith.constant dense<0xFF800000> : vector<128xf32>
    %104 = vector.multi_reduction <maximumf>, %91, %cst_33 [0] : vector<14x128xf32> to vector<128xf32>
    %105 = vector.shape_cast %104 : vector<128xf32> to vector<1x128xf32>
    %106 = vector.broadcast %105 : vector<1x128xf32> to vector<14x128xf32>
    %107 = arith.subf %91, %106 : vector<14x128xf32>
    %108 = math.exp %107 : vector<14x128xf32>
    %cst_34 = arith.constant dense<0.000000e+00> : vector<128xf32>
    %109 = vector.multi_reduction <add>, %108, %cst_34 [0] : vector<14x128xf32> to vector<128xf32>
    %110 = vector.shape_cast %109 : vector<128xf32> to vector<1x128xf32>
    %111 = vector.broadcast %110 : vector<1x128xf32> to vector<14x128xf32>
    %112 = arith.divf %108, %111 : vector<14x128xf32>
    %cst_35 = arith.constant dense<0.000000e+00> : vector<128x128xf32>
    %113 = tpu.matmul %112, %92, %cst_35 {dimension_numbers = #tpu.dot_dimension_numbers<[0], [0], [1], [1], [0, 1, 1, 1], [], []>} : vector<14x128xf32>, vector<14x128xf32>, vector<128x128xf32> -> vector<128x128xf32>
    %cst_36 = arith.constant dense<0.000000e+00> : vector<14x128xf32>
    %114 = tpu.matmul %103, %113, %cst_36 {dimension_numbers = #tpu.dot_dimension_numbers<[1], [0], [0], [1], [0, 0, 1, 1], [], []>} : vector<14x128xf32>, vector<128x128xf32>, vector<14x128xf32> -> vector<14x128xf32>
    %c14 = arith.constant 14 : index
    %c0_37 = arith.constant 0 : index
    %115 = vector.load %arg12[%c14, %c0_37] : memref<28x256xf32, #tpu.memory_space<vmem>>, vector<14x128xf32>
    tpu.vector_store %arg12[%c14, %c0_37], %114 {strides = array<i32>} : memref<28x256xf32, #tpu.memory_space<vmem>>, vector<14x128xf32>,
    %116 = vector.extract_strided_slice %37 {offsets = [14, 128], sizes = [14, 128], strides = [1, 1]} : vector<28x768xf32> to vector<14x128xf32>
    %117 = vector.extract_strided_slice %37 {offsets = [14, 384], sizes = [14, 128], strides = [1, 1]} : vector<28x768xf32> to vector<14x128xf32>
    %118 = vector.extract_strided_slice %37 {offsets = [14, 640], sizes = [14, 128], strides = [1, 1]} : vector<28x768xf32> to vector<14x128xf32>
    %cst_38 = arith.constant dense<0xFF800000> : vector<14xf32>
    %119 = vector.multi_reduction <maximumf>, %116, %cst_38 [1] : vector<14x128xf32> to vector<14xf32>
    %120 = vector.shape_cast %119 : vector<14xf32> to vector<14x1xf32>
    %121 = vector.broadcast %120 : vector<14x1xf32> to vector<14x128xf32>
    %122 = arith.subf %116, %121 : vector<14x128xf32>
    %123 = math.exp %122 : vector<14x128xf32>
    %cst_39 = arith.constant dense<0.000000e+00> : vector<14xf32>
    %124 = vector.multi_reduction <add>, %123, %cst_39 [1] : vector<14x128xf32> to vector<14xf32>
    %125 = vector.shape_cast %124 : vector<14xf32> to vector<14x1xf32>
    %cst_40 = arith.constant 0.0883883461 : f32
    %126 = vector.broadcast %cst_40 : f32 to vector<14x1xf32>
    %127 = arith.divf %126, %125 : vector<14x1xf32>
    %128 = vector.broadcast %127 : vector<14x1xf32> to vector<14x128xf32>
    %129 = arith.mulf %123, %128 : vector<14x128xf32>
    %cst_41 = arith.constant dense<0xFF800000> : vector<128xf32>
    %130 = vector.multi_reduction <maximumf>, %117, %cst_41 [0] : vector<14x128xf32> to vector<128xf32>
    %131 = vector.shape_cast %130 : vector<128xf32> to vector<1x128xf32>
    %132 = vector.broadcast %131 : vector<1x128xf32> to vector<14x128xf32>
    %133 = arith.subf %117, %132 : vector<14x128xf32>
    %134 = math.exp %133 : vector<14x128xf32>
    %cst_42 = arith.constant dense<0.000000e+00> : vector<128xf32>
    %135 = vector.multi_reduction <add>, %134, %cst_42 [0] : vector<14x128xf32> to vector<128xf32>
    %136 = vector.shape_cast %135 : vector<128xf32> to vector<1x128xf32>
    %137 = vector.broadcast %136 : vector<1x128xf32> to vector<14x128xf32>
    %138 = arith.divf %134, %137 : vector<14x128xf32>
    %cst_43 = arith.constant dense<0.000000e+00> : vector<128x128xf32>
    %139 = tpu.matmul %138, %118, %cst_43 {dimension_numbers = #tpu.dot_dimension_numbers<[0], [0], [1], [1], [0, 1, 1, 1], [], []>} : vector<14x128xf32>, vector<14x128xf32>, vector<128x128xf32> -> vector<128x128xf32>
    %cst_44 = arith.constant dense<0.000000e+00> : vector<14x128xf32>
    %140 = tpu.matmul %129, %139, %cst_44 {dimension_numbers = #tpu.dot_dimension_numbers<[1], [0], [0], [1], [0, 0, 1, 1], [], []>} : vector<14x128xf32>, vector<128x128xf32>, vector<14x128xf32> -> vector<14x128xf32>
    %c14_45 = arith.constant 14 : index
    %c128_46 = arith.constant 128 : index
    %141 = vector.load %arg12[%c14_45, %c128_46] : memref<28x256xf32, #tpu.memory_space<vmem>>, vector<14x128xf32>
    tpu.vector_store %arg12[%c14_45, %c128_46], %140 {strides = array<i32>} : memref<28x256xf32, #tpu.memory_space<vmem>>, vector<14x128xf32>,
    %c0_47 = arith.constant 0 : index
    %c0_48 = arith.constant 0 : index
    %142 = vector.load %arg12[%c0_47, %c0_48] : memref<28x256xf32, #tpu.memory_space<vmem>>, vector<28x256xf32>
    %c0_49 = arith.constant 0 : index
    %c0_50 = arith.constant 0 : index
    %c0_51 = arith.constant 0 : index
    %143 = vector.load %arg6[%c0_49, %c0_50, %c0_51] : memref<1x256x256xf32, #tpu.memory_space<vmem>>, vector<1x256x256xf32>
    %144 = vector.shape_cast %143 : vector<1x256x256xf32> to vector<256x256xf32>
    %cst_52 = arith.constant dense<0.000000e+00> : vector<28x256xf32>
    %145 = tpu.matmul %142, %144, %cst_52 {dimension_numbers = #tpu.dot_dimension_numbers<[1], [0], [0], [1], [0, 0, 1, 1], [], []>} : vector<28x256xf32>, vector<256x256xf32>, vector<28x256xf32> -> vector<28x256xf32>
    %146 = arith.addf %3, %145 : vector<28x256xf32>
    %147 = vector.broadcast %9 : vector<1x256xf32> to vector<28x256xf32>
    %148 = arith.addf %146, %147 : vector<28x256xf32>
    %cst_53 = arith.constant dense<0.000000e+00> : vector<28xf32>
    %149 = vector.multi_reduction <add>, %148, %cst_53 [1] : vector<28x256xf32> to vector<28xf32>
    %150 = vector.shape_cast %149 : vector<28xf32> to vector<28x1xf32>
    %cst_54 = arith.constant 2.560000e+02 : f32
    %151 = vector.broadcast %cst_54 : f32 to vector<28x1xf32>
    %152 = arith.divf %150, %151 : vector<28x1xf32>
    %153 = vector.broadcast %152 : vector<28x1xf32> to vector<28x256xf32>
    %154 = arith.subf %148, %153 : vector<28x256xf32>
    %155 = arith.mulf %154, %154 : vector<28x256xf32>
    %cst_55 = arith.constant dense<0.000000e+00> : vector<28xf32>
    %156 = vector.multi_reduction <add>, %155, %cst_55 [1] : vector<28x256xf32> to vector<28xf32>
    %157 = vector.shape_cast %156 : vector<28xf32> to vector<28x1xf32>
    %cst_56 = arith.constant 2.560000e+02 : f32
    %158 = vector.broadcast %cst_56 : f32 to vector<28x1xf32>
    %159 = arith.divf %157, %158 : vector<28x1xf32>
    %160 = vector.broadcast %152 : vector<28x1xf32> to vector<28x256xf32>
    %161 = arith.subf %148, %160 : vector<28x256xf32>
    %cst_57 = arith.constant 9.99999974E-6 : f32
    %162 = vector.broadcast %cst_57 : f32 to vector<28x1xf32>
    %163 = arith.addf %159, %162 : vector<28x1xf32>
    %164 = math.rsqrt %163 : vector<28x1xf32>
    %165 = vector.broadcast %164 : vector<28x1xf32> to vector<28x256xf32>
    %166 = arith.mulf %161, %165 : vector<28x256xf32>
    %167 = vector.broadcast %10 : vector<1x256xf32> to vector<28x256xf32>
    %168 = arith.mulf %166, %167 : vector<28x256xf32>
    %169 = vector.broadcast %11 : vector<1x256xf32> to vector<28x256xf32>
    %170 = arith.addf %168, %169 : vector<28x256xf32>
    %c0_58 = arith.constant 0 : index
    %c0_59 = arith.constant 0 : index
    %c0_60 = arith.constant 0 : index
    %171 = vector.load %arg7[%c0_58, %c0_59, %c0_60] : memref<1x256x1024xf32, #tpu.memory_space<vmem>>, vector<1x256x1024xf32>
    %172 = vector.shape_cast %171 : vector<1x256x1024xf32> to vector<256x1024xf32>
    %cst_61 = arith.constant dense<0.000000e+00> : vector<28x1024xf32>
    %173 = tpu.matmul %170, %172, %cst_61 {dimension_numbers = #tpu.dot_dimension_numbers<[1], [0], [0], [1], [0, 0, 1, 1], [], []>} : vector<28x256xf32>, vector<256x1024xf32>, vector<28x1024xf32> -> vector<28x1024xf32>
    %174 = vector.broadcast %6 : vector<1x1024xf32> to vector<28x1024xf32>
    %175 = arith.addf %173, %174 : vector<28x1024xf32>
    %cst_62 = arith.constant 5.000000e-01 : f32
    %176 = vector.broadcast %cst_62 : f32 to vector<28x1024xf32>
    %177 = arith.mulf %176, %175 : vector<28x1024xf32>
    %cst_63 = arith.constant 4.471500e-02 : f32
    %178 = vector.broadcast %cst_63 : f32 to vector<28x1024xf32>
    %179 = arith.mulf %178, %175 : vector<28x1024xf32>
    %180 = arith.mulf %179, %175 : vector<28x1024xf32>
    %181 = arith.mulf %180, %175 : vector<28x1024xf32>
    %182 = arith.addf %175, %181 : vector<28x1024xf32>
    %cst_64 = arith.constant 0.797884583 : f32
    %183 = vector.broadcast %cst_64 : f32 to vector<28x1024xf32>
    %184 = arith.mulf %183, %182 : vector<28x1024xf32>
    %185 = math.tanh %184 : vector<28x1024xf32>
    %cst_65 = arith.constant 1.000000e+00 : f32
    %186 = vector.broadcast %cst_65 : f32 to vector<28x1024xf32>
    %187 = arith.addf %186, %185 : vector<28x1024xf32>
    %188 = arith.mulf %177, %187 : vector<28x1024xf32>
    %c0_66 = arith.constant 0 : index
    %c0_67 = arith.constant 0 : index
    %c0_68 = arith.constant 0 : index
    %189 = vector.load %arg8[%c0_66, %c0_67, %c0_68] : memref<1x1024x256xf32, #tpu.memory_space<vmem>>, vector<1x1024x256xf32>
    %190 = vector.shape_cast %189 : vector<1x1024x256xf32> to vector<1024x256xf32>
    %cst_69 = arith.constant dense<0.000000e+00> : vector<28x256xf32>
    %191 = tpu.matmul %188, %190, %cst_69 {dimension_numbers = #tpu.dot_dimension_numbers<[1], [0], [0], [1], [0, 0, 1, 1], [], []>} : vector<28x1024xf32>, vector<1024x256xf32>, vector<28x256xf32> -> vector<28x256xf32>
    %192 = arith.addf %148, %191 : vector<28x256xf32>
    %193 = vector.broadcast %12 : vector<1x256xf32> to vector<28x256xf32>
    %194 = arith.addf %192, %193 : vector<28x256xf32>
    %c0_70 = arith.constant 0 : index
    %c0_71 = arith.constant 0 : index
    %195 = vector.load %arg11[%c0_70, %c0_71] : memref<28x256xf32, #tpu.memory_space<vmem>>, vector<28x256xf32>
    tpu.vector_store %arg11[%c0_70, %c0_71], %194 {strides = array<i32>} : memref<28x256xf32, #tpu.memory_space<vmem>>, vector<28x256xf32>,
    %c1_i32 = arith.constant 1 : i32
    %196 = arith.cmpi eq, %arg0, %c1_i32 : i32
    %197 = arith.extui %196 : i1 to i32
    %c0_i32_72 = arith.constant 0 : i32
    %198 = arith.cmpi ne, %197, %c0_i32_72 : i32
    scf.if %198 {
      %199 = vector.extract_strided_slice %194 {offsets = [0, 0], sizes = [14, 256], strides = [1, 1]} : vector<28x256xf32> to vector<14x256xf32>
      %cst_73 = arith.constant dense<0.000000e+00> : vector<256xf32>
      %200 = vector.multi_reduction <add>, %199, %cst_73 [0] : vector<14x256xf32> to vector<256xf32>
      %201 = vector.shape_cast %200 : vector<256xf32> to vector<1x256xf32>
      %cst_74 = arith.constant 1.400000e+01 : f32
      %202 = vector.broadcast %cst_74 : f32 to vector<1x256xf32>
      %203 = arith.divf %201, %202 : vector<1x256xf32>
      %c0_75 = arith.constant 0 : index
      %c0_76 = arith.constant 0 : index
      %204 = vector.load %arg10[%c0_75, %c0_76] : memref<2x256xf32, #tpu.memory_space<vmem>>, vector<1x256xf32>
      tpu.vector_store %arg10[%c0_75, %c0_76], %203 {strides = array<i32>} : memref<2x256xf32, #tpu.memory_space<vmem>>, vector<1x256xf32>,
      %205 = vector.extract_strided_slice %194 {offsets = [14, 0], sizes = [14, 256], strides = [1, 1]} : vector<28x256xf32> to vector<14x256xf32>
      %cst_77 = arith.constant dense<0.000000e+00> : vector<256xf32>
      %206 = vector.multi_reduction <add>, %205, %cst_77 [0] : vector<14x256xf32> to vector<256xf32>
      %207 = vector.shape_cast %206 : vector<256xf32> to vector<1x256xf32>
      %cst_78 = arith.constant 1.400000e+01 : f32
      %208 = vector.broadcast %cst_78 : f32 to vector<1x256xf32>
      %209 = arith.divf %207, %208 : vector<1x256xf32>
      %c1 = arith.constant 1 : index
      %c0_79 = arith.constant 0 : index
      %210 = vector.load %arg10[%c1, %c0_79] : memref<2x256xf32, #tpu.memory_space<vmem>>, vector<1x256xf32>
      tpu.vector_store %arg10[%c1, %c0_79], %209 {strides = array<i32>} : memref<2x256xf32, #tpu.memory_space<vmem>>, vector<1x256xf32>,
    } else {
    }
    return
  }
  func.func @transform_0(%arg0: i32) -> (i32, i32) {
    %c0_i32 = arith.constant 0 : i32
    %c0_i32_0 = arith.constant 0 : i32
    %c0_i32_1 = arith.constant 0 : i32
    return %c0_i32, %c0_i32_0 : i32, i32
  }
  func.func @transform_1(%arg0: i32) -> (i32, i32) {
    %c0_i32 = arith.constant 0 : i32
    %c0_i32_0 = arith.constant 0 : i32
    %c0_i32_1 = arith.constant 0 : i32
    return %c0_i32, %c0_i32_0 : i32, i32
  }
  func.func @transform_2(%arg0: i32) -> (i32, i32) {
    %c0_i32 = arith.constant 0 : i32
    %c0_i32_0 = arith.constant 0 : i32
    %c0_i32_1 = arith.constant 0 : i32
    return %c0_i32, %c0_i32_0 : i32, i32
  }
  func.func @transform_3(%arg0: i32) -> (i32, i32) {
    %c0_i32 = arith.constant 0 : i32
    %c0_i32_0 = arith.constant 0 : i32
    %c0_i32_1 = arith.constant 0 : i32
    return %c0_i32, %c0_i32_0 : i32, i32
  }
  func.func @transform_4(%arg0: i32) -> (i32, i32, i32) {
    %c0_i32 = arith.constant 0 : i32
    %c0_i32_0 = arith.constant 0 : i32
    %c0_i32_1 = arith.constant 0 : i32
    return %arg0, %c0_i32, %c0_i32_0 : i32, i32, i32
  }
  func.func @transform_5(%arg0: i32) -> (i32, i32, i32) {
    %c0_i32 = arith.constant 0 : i32
    %c0_i32_0 = arith.constant 0 : i32
    %c0_i32_1 = arith.constant 0 : i32
    return %arg0, %c0_i32, %c0_i32_0 : i32, i32, i32
  }
  func.func @transform_6(%arg0: i32) -> (i32, i32, i32) {
    %c0_i32 = arith.constant 0 : i32
    %c0_i32_0 = arith.constant 0 : i32
    %c0_i32_1 = arith.constant 0 : i32
    return %arg0, %c0_i32, %c0_i32_0 : i32, i32, i32
  }
  func.func @transform_7(%arg0: i32) -> (i32, i32, i32) {
    %c0_i32 = arith.constant 0 : i32
    %c0_i32_0 = arith.constant 0 : i32
    %c0_i32_1 = arith.constant 0 : i32
    return %arg0, %c0_i32, %c0_i32_0 : i32, i32, i32
  }
  func.func @transform_8(%arg0: i32) -> (i32, i32, i32) {
    %c0_i32 = arith.constant 0 : i32
    %c0_i32_0 = arith.constant 0 : i32
    %c0_i32_1 = arith.constant 0 : i32
    return %arg0, %c0_i32, %c0_i32_0 : i32, i32, i32
  }
  func.func @transform_9(%arg0: i32) -> (i32, i32) {
    %c0_i32 = arith.constant 0 : i32
    %c0_i32_0 = arith.constant 0 : i32
    %c0_i32_1 = arith.constant 0 : i32
    return %c0_i32, %c0_i32_0 : i32, i32
  }
}

</mosaic_0001>

<bundles_post_ra>
// kernel: biot_encoder_forward.1
= control target key start
LH: loop header
LB: loop body
LE: loop exit
PB: predicated region body
PF: predicated region fallthrough
CT: control target
= control target key end

     0   :  { %s8176_s0 = inlined_call_operand.vmem [shape: f32[28,64], index: 0, kind: input, shape index: {}]   ;;  %s8177_s1 = inlined_call_operand.vmem [shape: f32[64,256], index: 1, kind: input, shape index: {}]   ;;  %s8178_s2 = inlined_call_operand.vmem [shape: f32[128,256], index: 2, kind: input, shape index: {}]   ;;  %s8179_s3 = inlined_call_operand.vmem [shape: f32[28,256], index: 3, kind: input, shape index: {}]   ;;  %s8180_s4 = inlined_call_operand.hbm [shape: f32[2,256,768], index: 4, kind: input, shape index: {}]   ;;  %s8181_s5 = inlined_call_operand.hbm [shape: f32[2,256,256], index: 5, kind: input, shape index: {}]   ;;  %s8182_s6 = inlined_call_operand.hbm [shape: f32[2,256,1024], index: 6, kind: input, shape index: {}]   ;;  %s8183_s7 = inlined_call_operand.hbm [shape: f32[2,1024,256], index: 7, kind: input, shape index: {}]   ;;  %s8184_s8 = inlined_call_operand.vmem [shape: f32[2,8,1024], index: 8, kind: input, shape index: {}]   ;;  %s8185_s9 = inlined_call_operand.hbm [shape: f32[2,256], index: 9, kind: output, shape index: {}]  }
   0x1   :  { %8195 = sst [smem:[#allocation27_spill]] %s8181_s5 }
   0x2   :  { %8196 = sst [smem:[#allocation28_spill]] %s8185_s9 }
   0x3   :  { %14 = vsyncpa [#allocation5], 0 }
   0x4   :  { %16 = vsyncpa [#allocation5 + $0x1], 0 }
   0x5   :  { %17 = vsyncpa [#allocation8], 0 }
   0x6   :  { %19 = vsyncpa [#allocation8 + $0x1], 0 }
   0x7   :  { %20 = vsyncpa [#allocation11], 0 }
   0x8   :  { %22 = vsyncpa [#allocation11 + $0x1], 0 }
   0x9   :  { %23 = vsyncpa [#allocation6], 0  ;;  %s5616_s30 = smov 0   ;;  %s5618_s10 = smov 0  }
   0xa   :  { %s5620_s11 = smov 0   ;;  %s5622_s12 = smov 0  }
   0xb LB: > { %8197 = sst [smem:[#allocation17_spill]] %s5551_s11  ;;  %s5635_s13 = sadd.s32 4294967295, %s5555_s12   ;;  %s5555_s12 = sphi %s5622_s12, %s8227_s12   ;;  %s5551_s11 = sphi %s5620_s11, %s8229_s11   ;;  %s5547_s10 = sphi %s5618_s10, %s8231_s10   ;;  %s5543_s30 = sphi %s5616_s30, %s8230_s30  }
   0xc   : > { %s5638_s14 = sadd.s32 1, %s5555_s12   ;;  %s120_s16 = sadd.s32 1, %s5551_s11 }
   0xd   : > { %8198 = sst [smem:[#allocation18_spill]] %s5638_s14  ;;  %s117_s15 = ssub.s32 %s5555_s12, %s5638_s14 }
   0xe   : > { %p118_p0 = scmp.eq.s32.totalorder %s117_s15, 0  ;;  %p127_p1 = scmp.ne.s32.totalorder %s5551_s11, %s5547_s10 }
   0xf   : > { %p128_p2 = scmp.eq.s32.totalorder %s5555_s12, 0  ;;  %p133_p3 = scmp.ne.s32.totalorder %s5547_s10, %s5543_s30 }
  0x10   : > { %s5648_s17 = scalar_select %p118_p0, %s5551_s11, %s120_s16  }
  0x11   : > { %p129_p4 = por %p128_p2, %p127_p1  ;;  %p134_p5 = scmp.eq.s32.totalorder %s5635_s13, 0 }
  0x12   : > { %8199 = sst [smem:[#allocation19_spill]] %s5648_s17  ;;  %p5138_p6 = scmp.lt.s32.totalorder %s5555_s12, 2 }
  0x13   : > { %p5652_p7 = por %p134_p5, %p133_p3  ;;  %s5657_s19 = sand.u32 1, %s5551_s11  }
  0x14   : > { %p5659_p8 = pnand %p5138_p6, %p129_p4  ;;  %s316_s21 = sand.u32 1, %s5555_s12  }
  0x15   : > { %s4945_s22 = sshll.u32 %s5657_s19, 9  ;;  %s5042_s23 = sshll.u32 %s5555_s12, 9 }
  0x16   : > { %s320_s24 = scalar_lea.vmem [#allocation7], %s4945_s22  ;;  %s8202_s5 = sld [smem:[#allocation27_spill]] }
  0x17   : > { %s328_s25 = sshll.u32 %s320_s24, 4  ;;  %s5669_s30 = scalar_lea.sflag [#allocation8], %s316_s21  ;;  %s329_s25 = int_to_ptr.vmem [resolvable:$true] %s328_s25 }
  0x18   : > { %p5365_p10 = pneg %p5659_p8 }
  0x1c   : > { %s325_s28 = scalar_lea.hbm %s8202_s5, %s5042_s23  ;;  %s5368_s26 = scalar_lea.hbm %s8202_s5, 1024 }
  0x1d   : > { %s326_s29 = sshll.u32 %s325_s28, 4  ;;  %s327_s29 = int_to_ptr.hbm [resolvable:$true] %s326_s29 }
  0x1e   : > { %s5361_s15 = sshra.s32 %s327_s29, 4  ;;  %s5362_s15 = int_to_ptr.hbm [resolvable:$true] %s5361_s15 }
  0x1f   : > { %s5363_s16 = scalar_lea.hbm %s5362_s15, 512  ;;  %p5369_p13 = scmp.lt.s32.totalorder %s5362_s15, %s8202_s5 }
  0x20   : > { %p5364_p9 = scmp.ne.s32.totalorder %s5362_s15, %s5363_s16  ;;  %p5370_p0 = scmp.lt.s32.totalorder %s5368_s26, %s5363_s16 }
  0x22   : > { %p5366_p11 = pnand %p5365_p10, %p5364_p9  ;;  %p5371_p1 = por %p5370_p0, %p5369_p13 }
  0x24   : > { %p5367_p12 = pneg %p5366_p11 }
  0x26   : > { %p5372_p2 = pnand %p5371_p1, %p5367_p12 }
  0x28   : > { %5375 = shalt.err (!%p5372_p2)
}
  0x29   : > { %s8187_s21 = smov 256   ;;  %s8188_s28 = smov 16  }
  0x2a   : > { %5131 = dma.hbm_to_vmem [thread:$0]  (!%p5659_p8), %s327_s29, 8192, %s329_s25, %s5669_s30, %s8187_s21, %s8187_s21, %s8188_s28  }
  0x2b   : > { %p4954_p3 = scmp.ge.s32.totalorder %s5555_s12, 1  ;;  %p388_p4 = scmp.lt.s32.totalorder %s5555_s12, 3 }
  0x2c   : > { %s5110_s15 = smul.u32 1536, %s5657_s19  ;;  %s295_s11 = scalar_lea.sflag [#allocation5], %s5657_s19 }
  0x2d   : > { %p5691_p5 = pnand %p4954_p3, %p388_p4  ;;  %s5111_s22 = smul.u32 1536, %s5555_s12 }
  0x2e   : > { %s298_s27 = scalar_lea.vmem [#allocation4], %s5110_s15  ;;  %s5398_s14 = scalar_lea.hbm %s8180_s4, 3072 }
  0x2f   : > { %s303_s23 = scalar_lea.hbm %s8180_s4, %s5111_s22  ;;  %s306_s5 = sshll.u32 %s298_s27, 4  ;;  %s307_s5 = int_to_ptr.vmem [resolvable:$true] %s306_s5 }
  0x30   : > { %s304_s17 = sshll.u32 %s303_s23, 4  ;;  %s305_s17 = int_to_ptr.hbm [resolvable:$true] %s304_s17 }
  0x31   : > { %s5391_s25 = sshra.s32 %s305_s17, 4  ;;  %s5392_s25 = int_to_ptr.hbm [resolvable:$true] %s5391_s25 }
  0x32   : > { %s5393_s29 = scalar_lea.hbm %s5392_s25, 1536  ;;  %p5399_p12 = scmp.lt.s32.totalorder %s5392_s25, %s8180_s4 }
  0x33   : > { %p5394_p6 = scmp.ne.s32.totalorder %s5392_s25, %s5393_s29  ;;  %p5400_p13 = scmp.lt.s32.totalorder %s5398_s14, %s5393_s29 }
  0x35   : > { %p5396_p9 = pnand %p5394_p6, %p5365_p10  ;;  %p5401_p0 = por %p5400_p13, %p5399_p12 }
  0x37   : > { %p5397_p11 = pneg %p5396_p9 }
  0x39   : > { %p5402_p1 = pnand %p5401_p0, %p5397_p11 }
  0x3b   : > { %5405 = shalt.err (!%p5402_p1)
}
  0x3c   : > { %s5559_s15 = smov 768   ;;  %s5560_s26 = smov 48  }
  0x3d   : > { %5128 = dma.hbm_to_vmem [thread:$0]  (!%p5659_p8), %s305_s17, 24576, %s307_s5, %s295_s11, %s5559_s15, %s5559_s15, %s5560_s26  }
  0x3e   : > { %s4948_s23 = sshll.u32 %s5657_s19, 11  ;;  %s5043_s27 = sshll.u32 %s5555_s12, 11 }
  0x3f   : > { %s347_s9 = scalar_lea.hbm %s8182_s6, %s5043_s27  ;;  %s342_s25 = scalar_lea.vmem [#allocation9], %s4948_s23 }
  0x40   : > { %s348_s24 = sshll.u32 %s347_s9, 4  ;;  %s350_s14 = sshll.u32 %s342_s25, 4  ;;  %s349_s24 = int_to_ptr.hbm [resolvable:$true] %s348_s24  ;;  %s351_s14 = int_to_ptr.vmem [resolvable:$true] %s350_s14 }
  0x41   : > { %s5421_s29 = sshra.s32 %s349_s24, 4  ;;  %s5428_s12 = scalar_lea.hbm %s8182_s6, 4096  ;;  %s5422_s29 = int_to_ptr.hbm [resolvable:$true] %s5421_s29 }
  0x42   : > { %s5423_s22 = scalar_lea.hbm %s5422_s29, 2048  ;;  %p5429_p6 = scmp.lt.s32.totalorder %s5422_s29, %s8182_s6 }
  0x43   : > { %p5424_p2 = scmp.ne.s32.totalorder %s5422_s29, %s5423_s22  ;;  %p5430_p9 = scmp.lt.s32.totalorder %s5428_s12, %s5423_s22 }
  0x45   : > { %p5426_p3 = pnand %p5424_p2, %p5365_p10  ;;  %p5431_p11 = por %p5430_p9, %p5429_p6 }
  0x47   : > { %p5427_p4 = pneg %p5426_p3 }
  0x49   : > { %p5432_p12 = pnand %p5431_p11, %p5427_p4 }
  0x4b   : > { %5435 = shalt.err (!%p5432_p12)
}
  0x4c   : > { %s5561_s9 = smov 1024   ;;  %s5562_s26 = smov 64  }
  0x4d   : > { %5134 = dma.hbm_to_vmem [thread:$0]  (!%p5659_p8), %s349_s24, 32768, %s351_s14, %s5669_s30, %s5561_s9, %s5561_s9, %s5562_s26  }
  0x4e   : > { %s369_s25 = scalar_lea.hbm %s8183_s7, %s5043_s27  ;;  %s364_s5 = scalar_lea.vmem [#allocation10], %s4948_s23 }
  0x4f   : > { %s372_s11 = sshll.u32 %s364_s5, 4  ;;  %s370_s17 = sshll.u32 %s369_s25, 4  ;;  %s373_s11 = int_to_ptr.vmem [resolvable:$true] %s372_s11  ;;  %s371_s17 = int_to_ptr.hbm [resolvable:$true] %s370_s17 }
  0x50   : > { %s361_s29 = scalar_lea.sflag [#allocation11], %s5657_s19  ;;  %s5451_s22 = sshra.s32 %s371_s17, 4  ;;  %s5452_s22 = int_to_ptr.hbm [resolvable:$true] %s5451_s22 }
  0x51   : > { %s5453_s12 = scalar_lea.hbm %s5452_s22, 2048  ;;  %s5458_s24 = scalar_lea.hbm %s8183_s7, 4096 }
  0x52   : > { %p5454_p13 = scmp.ne.s32.totalorder %s5452_s22, %s5453_s12  ;;  %p5459_p2 = scmp.lt.s32.totalorder %s5452_s22, %s8183_s7 }
  0x53   : > { %p5460_p3 = scmp.lt.s32.totalorder %s5458_s24, %s5453_s12 }
  0x54   : > { %p5456_p0 = pnand %p5454_p13, %p5365_p10 }
  0x55   : > { %p5461_p4 = por %p5460_p3, %p5459_p2 }
  0x56   : > { %p5457_p1 = pneg %p5456_p0 }
  0x58   : > { %p5462_p6 = pnand %p5461_p4, %p5457_p1 }
  0x5a   : > { %5465 = shalt.err (!%p5462_p6)
}
  0x5b   : > { %s8204_s19 = smov 16   ;;  %s8205_s23 = smov 256  }
  0x5c   : > { %5137 = dma.hbm_to_vmem [thread:$0]  (!%p5659_p8), %s371_s17, 32768, %s373_s11, %s361_s29, %s8205_s23, %s8205_s23, %s8204_s19  }
  0x5d   : > { %392 = sbr.rel (%p5691_p5) target bundleno = 3014 (0xbc6), region = 56 }
  0x62   : > { %s394_s9 = sand.u32 1, %s5547_s10  }
  0x63   : > { %s5112_s26 = smul.u32 1536, %s394_s9  ;;  %s395_s21 = scalar_lea.sflag [#allocation5], %s394_s9 }
  0x65   : > { %s5749_s28 = scalar_lea.vmem [#allocation4], %s5112_s26 }
  0x66   : > { %5526 = dma.done.wait (%p5652_p7), %s395_s21, 24576  }
  0x67   : > { %5528 = vsyncadd (%p5652_p7), %s395_s21, 4294942720  ;;  %s404_s20 = sand.u32 1, %s5635_s13   ;;  %s4955_s25 = sshll.u32 %s394_s9, 9 }
  0x68   : > { %s405_s5 = scalar_lea.sflag [#allocation8], %s404_s20  ;;  %s5756_s11 = scalar_lea.vmem [#allocation7], %s4955_s25 }
  0x69   : > { %5530 = dma.done.wait (%p5652_p7), %s405_s5, 40960  }
  0x6a   : > { %5532 = vsyncadd (%p5652_p7), %s405_s5, 4294926336  ;;  %s4956_s16 = sshll.u32 %s394_s9, 11  ;;  %s425_s29 = scalar_lea.sflag [#allocation11], %s394_s9 }
  0x6b   : > { %s5762_s17 = scalar_lea.vmem [#allocation9], %s4956_s16  ;;  %s5764_s22 = scalar_lea.vmem [#allocation10], %s4956_s16 }
  0x6c   : > { %5534 = dma.done.wait (%p5652_p7), %s425_s29, 32768  }
  0x6d   : > { %5536 = vsyncadd (%p5652_p7), %s425_s29, 4294934528  ;;  %p479_p8 = scmp.lt.s32.totalorder %s5635_s13, 1  ;;  %p4960_p10 = scmp.ne.s32.totalorder %s5635_s13, 0 }
  0x6f   : > { %s480_s12 = scalar_select %p479_p8, %s5635_s13, 1 }
  0x70   : > { %487 = sbr.rel (%p4960_p10) target bundleno = 444 (0x1bc), region = 76 }
  0x71   : > { %s5045_s15 = sshll.u32 %s480_s12, 6 }
  0x72   : > { %s5775_s14 = scalar_lea.vmem %s8184_s8, %s5045_s15 }
  0x75   : > { %v506_v0 = vld [vmem:[%s8177_s1 + $0x70] sm:$0xff]  ;;  %v507_v1 = vld [vmem:[%s8177_s1 + $0x78] sm:$0xff]  ;;  %v504_v2 = vld [vmem:[%s8177_s1 + $0x60] sm:$0xff]  ;;  %vm508_vm0 = vcmask 523264  }
  0x76   : > { %529 = vmatpush.msra.mxu0 %v506_v0  ;;  %558 = vmatpush.msra.mxu1 %v507_v1  ;;  %v505_v3 = vld [vmem:[%s8177_s1 + $0x68] sm:$0xff]  ;;  %v502_v4 = vld [vmem:[%s8177_s1 + $0x50] sm:$0xff]  ;;  %v503_v5 = vld [vmem:[%s8177_s1 + $0x58] sm:$0xff] }
  0x77   : > { %v500_v6 = vld [vmem:[%s8177_s1 + $0x40] sm:$0xff]  ;;  %v501_v7 = vld [vmem:[%s8177_s1 + $0x48] sm:$0xff]  ;;  %v498_v8 = vld [vmem:[%s8177_s1 + $0x30] sm:$0xff] }
  0x78   : > { %530 = vmatpush.msra.mxu0 %v504_v2  ;;  %559 = vmatpush.msra.mxu1 %v505_v3  ;;  %v499_v9 = vld [vmem:[%s8177_s1 + $0x38] sm:$0xff]  ;;  %v496_v10 = vld [vmem:[%s8177_s1 + $0x20] sm:$0xff]  ;;  %v497_v11 = vld [vmem:[%s8177_s1 + $0x28] sm:$0xff] }
  0x79   : > { %v669_v12 = vld [vmem:[%s8178_s2 + $0xf0] sm:$0xff]  ;;  %v670_v13 = vld [vmem:[%s8178_s2 + $0xf8] sm:$0xff]  ;;  %v667_v16 = vld [vmem:[%s8178_s2 + $0xe0] sm:$0xff] }
  0x7a   : > { %531 = vmatpush.msra.mxu0 %v502_v4  ;;  %560 = vmatpush.msra.mxu1 %v503_v5  ;;  %v494_v14 = vld [vmem:[%s8177_s1 + $0x10] sm:$0xff]  ;;  %v495_v15 = vld [vmem:[%s8177_s1 + $0x18] sm:$0xff]  ;;  %v668_v17 = vld [vmem:[%s8178_s2 + $0xe8] sm:$0xff] }
  0x7b   : > { %5046 = vmatpush.msra.mxu2 %v669_v12  ;;  %5062 = vmatpush.msra.mxu3 %v670_v13  ;;  %v492_v18 = vld [vmem:[%s8177_s1] sm:$0xff]  ;;  %v493_v19 = vld [vmem:[%s8177_s1 + $0x8] sm:$0xff]  ;;  %v665_v21 = vld [vmem:[%s8178_s2 + $0xd0] sm:$0xff] }
  0x7c   : > { %532 = vmatpush.msra.mxu0 %v500_v6  ;;  %561 = vmatpush.msra.mxu1 %v501_v7  ;;  %v488_v20 = vld [vmem:[%s8176_s0] sm:$0xff]  ;;  %v666_v22 = vld [vmem:[%s8178_s2 + $0xd8] sm:$0xff]  ;;  %v489_v23 = vld [vmem:[%s8176_s0 + $0x8] sm:$0xff] }
  0x7d   : > { %5047 = vmatpush.msra.mxu2 %v667_v16  ;;  %5063 = vmatpush.msra.mxu3 %v668_v17  ;;  %v490_v24 = vld [vmem:[%s8176_s0 + $0x10] sm:$0xff]  ;;  %v491_v25 = vld [vmem:[%s8176_s0 + $0x18] sm:$0xf]  ;;  %v663_v26 = vld [vmem:[%s8178_s2 + $0xc0] sm:$0xff] }
  0x7e   : > { %533 = vmatpush.msra.mxu0 %v498_v8  ;;  %562 = vmatpush.msra.mxu1 %v499_v9  ;;  %v664_v27 = vld [vmem:[%s8178_s2 + $0xc8] sm:$0xff]  ;;  %v661_v28 = vld [vmem:[%s8178_s2 + $0xb0] sm:$0xff]  ;;  %v662_v29 = vld [vmem:[%s8178_s2 + $0xb8] sm:$0xff] }
  0x7f   : > { %5048 = vmatpush.msra.mxu2 %v665_v21  ;;  %5064 = vmatpush.msra.mxu3 %v666_v22  ;;  %v659_v30 = vld [vmem:[%s8178_s2 + $0xa0] sm:$0xff]  ;;  %v660_v31 = vld [vmem:[%s8178_s2 + $0xa8] sm:$0xff]  ;;  %v657_v32 = vld [vmem:[%s8178_s2 + $0x90] sm:$0xff] }
  0x80   : > { %534 = vmatpush.msra.mxu0 %v496_v10  ;;  %563 = vmatpush.msra.mxu1 %v497_v11  ;;  %v658_v33 = vld [vmem:[%s8178_s2 + $0x98] sm:$0xff]  ;;  %v655_v34 = vld [vmem:[%s8178_s2 + $0x80] sm:$0xff]  ;;  %v656_v35 = vld [vmem:[%s8178_s2 + $0x88] sm:$0xff] }
  0x81   : > { %5049 = vmatpush.msra.mxu2 %v663_v26  ;;  %5065 = vmatpush.msra.mxu3 %v664_v27  ;;  %v653_v36 = vld [vmem:[%s8178_s2 + $0x70] sm:$0xff]  ;;  %v654_v37 = vld [vmem:[%s8178_s2 + $0x78] sm:$0xff]  ;;  %v651_v38 = vld [vmem:[%s8178_s2 + $0x60] sm:$0xff] }
  0x82   : > { %535 = vmatpush.msra.mxu0 %v494_v14  ;;  %564 = vmatpush.msra.mxu1 %v495_v15  ;;  %v652_v39 = vld [vmem:[%s8178_s2 + $0x68] sm:$0xff]  ;;  %v649_v40 = vld [vmem:[%s8178_s2 + $0x50] sm:$0xff]  ;;  %v650_v41 = vld [vmem:[%s8178_s2 + $0x58] sm:$0xff] }
  0x83   : > { %5050 = vmatpush.msra.mxu2 %v661_v28  ;;  %5066 = vmatpush.msra.mxu3 %v662_v29  ;;  %v647_v42 = vld [vmem:[%s8178_s2 + $0x40] sm:$0xff]  ;;  %v648_v43 = vld [vmem:[%s8178_s2 + $0x48] sm:$0xff]  ;;  %v645_v44 = vld [vmem:[%s8178_s2 + $0x30] sm:$0xff] }
  0x84   : > { %536 = vmatpush.msra.mxu0 %v492_v18  ;;  %565 = vmatpush.msra.mxu1 %v493_v19  ;;  %v646_v45 = vld [vmem:[%s8178_s2 + $0x38] sm:$0xff]  ;;  %v643_v46 = vld [vmem:[%s8178_s2 + $0x20] sm:$0xff]  ;;  %v644_v47 = vld [vmem:[%s8178_s2 + $0x28] sm:$0xff] }
  0x85   : > { %4961 = vmatmul.msk.f32.vlgmr.msra.gmra.mxu0 %vm508_vm0, %v488_v20  ;;  %4965 = vmatmul.msk.f32.vlgmr.msra.gmra.mxu1 %vm508_vm0, %v488_v20  ;;  %v641_v48 = vld [vmem:[%s8178_s2 + $0x10] sm:$0xff]  ;;  %v642_v49 = vld [vmem:[%s8178_s2 + $0x18] sm:$0xff]  ;;  %v639_v50 = vld [vmem:[%s8178_s2] sm:$0xff] }
  0x86   : > { %679 = vmatpush.msrb.mxu0 %v669_v12  ;;  %708 = vmatpush.msrb.mxu1 %v670_v13  ;;  %v640_v51 = vld [vmem:[%s8178_s2 + $0x8] sm:$0xff] }
  0x87   : > { %5051 = vmatpush.msra.mxu2 %v659_v30  ;;  %5067 = vmatpush.msra.mxu3 %v660_v31 }
  0x88   : > { %680 = vmatpush.msrb.mxu0 %v667_v16  ;;  %709 = vmatpush.msrb.mxu1 %v668_v17 }
  0x89   : > { %5052 = vmatpush.msra.mxu2 %v657_v32  ;;  %5068 = vmatpush.msra.mxu3 %v658_v33 }
  0x8a   : > { %681 = vmatpush.msrb.mxu0 %v665_v21  ;;  %710 = vmatpush.msrb.mxu1 %v666_v22 }
  0x8b   : > { %5053 = vmatpush.msra.mxu2 %v655_v34  ;;  %5069 = vmatpush.msra.mxu3 %v656_v35 }
  0x8c   : > { %682 = vmatpush.msrb.mxu0 %v663_v26  ;;  %711 = vmatpush.msrb.mxu1 %v664_v27 }
  0x8d   : > { %4962 = vmatmul.msk.f32.gmra.mxu0 %vm508_vm0, %v489_v23  ;;  %4966 = vmatmul.msk.f32.gmra.mxu1 %vm508_vm0, %v489_v23 }
  0x8e   : > { %683 = vmatpush.msrb.mxu0 %v661_v28  ;;  %712 = vmatpush.msrb.mxu1 %v662_v29 }
  0x8f   : > { %5054 = vmatpush.msra.mxu2 %v653_v36  ;;  %5070 = vmatpush.msra.mxu3 %v654_v37 }
  0x90   : > { %684 = vmatpush.msrb.mxu0 %v659_v30  ;;  %713 = vmatpush.msrb.mxu1 %v660_v31 }
  0x91   : > { %5055 = vmatpush.msra.mxu2 %v651_v38  ;;  %5071 = vmatpush.msra.mxu3 %v652_v39 }
  0x92   : > { %685 = vmatpush.msrb.mxu0 %v657_v32  ;;  %714 = vmatpush.msrb.mxu1 %v658_v33 }
  0x93   : > { %5056 = vmatpush.msra.mxu2 %v649_v40  ;;  %5072 = vmatpush.msra.mxu3 %v650_v41 }
  0x94   : > { %686 = vmatpush.msrb.mxu0 %v655_v34  ;;  %715 = vmatpush.msrb.mxu1 %v656_v35 }
  0x95   : > { %4963 = vmatmul.msk.f32.gmra.mxu0 %vm508_vm0, %v490_v24  ;;  %4967 = vmatmul.msk.f32.gmra.mxu1 %vm508_vm0, %v490_v24 }
  0x96   : > { %687 = vmatpush.msrb.mxu0 %v653_v36  ;;  %716 = vmatpush.msrb.mxu1 %v654_v37 }
  0x97   : > { %5057 = vmatpush.msra.mxu2 %v647_v42  ;;  %5073 = vmatpush.msra.mxu3 %v648_v43 }
  0x98   : > { %688 = vmatpush.msrb.mxu0 %v651_v38  ;;  %717 = vmatpush.msrb.mxu1 %v652_v39 }
  0x99   : > { %5058 = vmatpush.msra.mxu2 %v645_v44  ;;  %5074 = vmatpush.msra.mxu3 %v646_v45 }
  0x9a   : > { %689 = vmatpush.msrb.mxu0 %v649_v40  ;;  %718 = vmatpush.msrb.mxu1 %v650_v41 }
  0x9b   : > { %5059 = vmatpush.msra.mxu2 %v643_v46  ;;  %5075 = vmatpush.msra.mxu3 %v644_v47 }
  0x9c   : > { %690 = vmatpush.msrb.mxu0 %v647_v42  ;;  %719 = vmatpush.msrb.mxu1 %v648_v43 }
  0x9d   : > { %4964 = vmatmul.msk.f32.gmra.mxu0 %vm508_vm0, %v491_v25  ;;  %4968 = vmatmul.msk.f32.gmra.mxu1 %vm508_vm0, %v491_v25 }
  0x9e   : > { %691 = vmatpush.msrb.mxu0 %v645_v44  ;;  %720 = vmatpush.msrb.mxu1 %v646_v45 }
  0x9f   : > { %5060 = vmatpush.msra.mxu2 %v641_v48  ;;  %5076 = vmatpush.msra.mxu3 %v642_v49 }
  0xa0   : > { %692 = vmatpush.msrb.mxu0 %v643_v46  ;;  %721 = vmatpush.msrb.mxu1 %v644_v47 }
  0xa1   : > { %5061 = vmatpush.msra.mxu2 %v639_v50  ;;  %5077 = vmatpush.msra.mxu3 %v640_v51 }
  0xa2   : > { %693 = vmatpush.msrb.mxu0 %v641_v48  ;;  %722 = vmatpush.msrb.mxu1 %v642_v49  ;;  %v671_v48 = vld [vmem:[%s8179_s3] sm:$0xff]  ;;  %v672_v49 = vld [vmem:[%s8179_s3 + $0x8] sm:$0xff] }
  0xa4   : > { %694 = vmatpush.msrb.mxu0 %v639_v50  ;;  %723 = vmatpush.msrb.mxu1 %v640_v51 }
 0x102   : > { %v538_v52 = vpop.f32.mrf.mxu0  ;;  %v567_v53 = vpop.f32.mrf.mxu1 }
 0x103   : > { %v579_v54 = vmul.f32 %v538_v52, %v538_v52  ;;  %v583_v55 = vmul.f32 %v567_v53, %v567_v53 }
 0x105   : > { %v587_v56 = vadd.f32 %v583_v55, %v579_v54  ;;  %v673_v54 = vld [vmem:[%s8179_s3 + $0x10] sm:$0xff]  ;;  %v674_v55 = vld [vmem:[%s8179_s3 + $0x18] sm:$0xff] }
 0x107   : > { %5183 = vrsqrt.f32 %v587_v56  ;;  %vm598_vm1 = vcmp.eq.f32.partialorder %v587_v56, inf  ;;  %v601_v13 = vand.u32 2147483648, %v587_v56  ;;  %vm600_vm2 = vcmp.eq.f32.partialorder %v587_v56, 0.0 }
 0x10a   : > { %v541_v57 = vpop.f32.mrf.mxu0  ;;  %v570_v58 = vpop.f32.mrf.mxu1 }
 0x10b   : > { %v580_v59 = vmul.f32 %v541_v57, %v541_v57  ;;  %v584_v60 = vmul.f32 %v570_v58, %v570_v58 }
 0x10d   : > { %v5184_v61 = vpop.eup %5183  ;;  %v588_v62 = vadd.f32 %v584_v60, %v580_v59  ;;  %v675_v60 = vld [vmem:[%s8179_s3 + $0x20] sm:$0xff] }
 0x10e   : > { %v592_v63 = vmul.f32 %v5184_v61, %v587_v56 }
 0x10f   : > { %5185 = vrsqrt.f32 %v588_v62  ;;  %vm610_vm3 = vcmp.eq.f32.partialorder %v588_v62, inf  ;;  %v613_v28 = vand.u32 2147483648, %v588_v62  ;;  %vm612_vm4 = vcmp.eq.f32.partialorder %v588_v62, 0.0 }
 0x110   : > { %v593_v0 = vmul.f32 %v5184_v61, %v592_v63 }
 0x112   : > { %v544_v1 = vpop.f32.mrf.mxu0  ;;  %v573_v2 = vpop.f32.mrf.mxu1  ;;  %v594_v3 = vmul.f32 0.5, %v593_v0 }
 0x113   : > { %v581_v4 = vmul.f32 %v544_v1, %v544_v1  ;;  %v585_v5 = vmul.f32 %v573_v2, %v573_v2  ;;  %v677_v2 = vld [vmem:[%s8179_s3 + $0x30] sm:$0xf] }
 0x114   : > { %v595_v6 = vsub.f32 1.5, %v594_v3  ;;  %v678_v3 = vld [vmem:[%s8179_s3 + $0x38] sm:$0xf] }
 0x115   : > { %v5186_v7 = vpop.eup %5185  ;;  %v589_v8 = vadd.f32 %v585_v5, %v581_v4 }
 0x116   : > { %v596_v9 = vmul.f32 %v5184_v61, %v595_v6  ;;  %v604_v10 = vmul.f32 %v5186_v7, %v588_v62  ;;  %v676_v61 = vld [vmem:[%s8179_s3 + $0x28] sm:$0xff] }
 0x117   : > { %5187 = vrsqrt.f32 %v589_v8  ;;  %vm622_vm5 = vcmp.eq.f32.partialorder %v589_v8, inf  ;;  %v625_v38 = vand.u32 2147483648, %v589_v8  ;;  %vm624_vm6 = vcmp.eq.f32.partialorder %v589_v8, 0.0 }
 0x118   : > { %v597_v11 = vmul.f32 %v596_v9, %v587_v56  ;;  %v605_v12 = vmul.f32 %v5186_v7, %v604_v10 }
 0x11a   : > { %v547_v14 = vpop.f32.mrf.mxu0  ;;  %v576_v15 = vpop.f32.mrf.mxu1  ;;  %v599_v16 = vsel %vm598_vm1, %v587_v56, %v597_v11  ;;  %v606_v17 = vmul.f32 0.5, %v605_v12 }
 0x11b   : > { %v582_v18 = vmul.f32 %v547_v14, %v547_v14  ;;  %v586_v19 = vmul.f32 %v576_v15, %v576_v15  ;;  %v602_v20 = vsel %vm600_vm2, %v601_v13, %v599_v16 }
 0x11c   : > { %695 = vmatmul.f32.vlgmr.msrb.gmra.mxu0 %v602_v20  ;;  %724 = vmatmul.f32.vlgmr.msrb.gmra.mxu1 %v602_v20  ;;  %v607_v21 = vsub.f32 1.5, %v606_v17 }
 0x11d   : > { %v5188_v22 = vpop.eup %5187  ;;  %v590_v23 = vadd.f32 %v586_v19, %v582_v18 }
 0x11e   : > { %v608_v24 = vmul.f32 %v5186_v7, %v607_v21  ;;  %v616_v25 = vmul.f32 %v5188_v22, %v589_v8 }
 0x11f   : > { %5189 = vrsqrt.f32 %v590_v23  ;;  %vm634_vm7 = vcmp.eq.f32.partialorder %v590_v23, inf  ;;  %v637_v45 = vand.u32 2147483648, %v590_v23  ;;  %vm636_vm8 = vcmp.eq.f32.partialorder %v590_v23, 0.0 }
 0x120   : > { %v609_v26 = vmul.f32 %v608_v24, %v588_v62  ;;  %v617_v27 = vmul.f32 %v5188_v22, %v616_v25 }
 0x122   : > { %v611_v29 = vsel %vm610_vm3, %v588_v62, %v609_v26  ;;  %v618_v30 = vmul.f32 0.5, %v617_v27 }
 0x123   : > { %v614_v31 = vsel %vm612_vm4, %v613_v28, %v611_v29 }
 0x124   : > { %698 = vmatmul.f32.vlgmr.msra.gmra.mxu2 %v614_v31  ;;  %727 = vmatmul.f32.vlgmr.msra.gmra.mxu3 %v614_v31  ;;  %v619_v32 = vsub.f32 1.5, %v618_v30 }
 0x125   : > { %v5190_v33 = vpop.eup %5189 }
 0x126   : > { %v620_v34 = vmul.f32 %v5188_v22, %v619_v32  ;;  %v628_v35 = vmul.f32 %v5190_v33, %v590_v23 }
 0x128   : > { %v621_v36 = vmul.f32 %v620_v34, %v589_v8  ;;  %v629_v37 = vmul.f32 %v5190_v33, %v628_v35 }
 0x12a   : > { %v623_v39 = vsel %vm622_vm5, %v589_v8, %v621_v36  ;;  %v630_v40 = vmul.f32 0.5, %v629_v37 }
 0x12b   : > { %v626_v41 = vsel %vm624_vm6, %v625_v38, %v623_v39 }
 0x12c   : > { %701 = vmatmul.f32.gmra.mxu2 %v626_v41  ;;  %730 = vmatmul.f32.gmra.mxu3 %v626_v41  ;;  %v631_v42 = vsub.f32 1.5, %v630_v40 }
 0x12e   : > { %v632_v43 = vmul.f32 %v5190_v33, %v631_v42 }
 0x130   : > { %v633_v44 = vmul.f32 %v632_v43, %v590_v23 }
 0x132   : > { %v635_v46 = vsel %vm634_vm7, %v590_v23, %v633_v44 }
 0x133   : > { %v638_v47 = vsel %vm636_vm8, %v637_v45, %v635_v46 }
 0x134   : > { %704 = vmatmul.f32.gmra.mxu2 %v638_v47  ;;  %733 = vmatmul.f32.gmra.mxu3 %v638_v47 }
 0x199   : > { %v696_v50 = vpop.f32.mrf.mxu0  ;;  %v725_v51 = vpop.f32.mrf.mxu1 }
 0x19a   : > { %v697_v52 = vadd.f32 %v696_v50, %v671_v48  ;;  %v726_v53 = vadd.f32 %v725_v51, %v672_v49 }
 0x19c   : > { %737 = vst [vmem:[#allocation2 + $0x30] sm:$0xff] %v697_v52 }
 0x19d   : > { %738 = vst [vmem:[#allocation2] sm:$0xff] %v726_v53 }
 0x1a7   : > { %v699_v56 = vpop.f32.mrf.mxu2  ;;  %v728_v57 = vpop.f32.mrf.mxu3 }
 0x1a8   : > { %v700_v58 = vadd.f32 %v699_v56, %v673_v54  ;;  %v729_v59 = vadd.f32 %v728_v57, %v674_v55 }
 0x1aa   : > { %739 = vst [vmem:[#allocation2 + $0x18] sm:$0xff] %v700_v58 }
 0x1ab   : > { %740 = vst [vmem:[#allocation2 + $0x10] sm:$0xff] %v729_v59 }
 0x1af   : > { %v702_v62 = vpop.f32.mrf.mxu2  ;;  %v731_v63 = vpop.f32.mrf.mxu3 }
 0x1b0   : > { %v703_v0 = vadd.f32 %v702_v62, %v675_v60  ;;  %v732_v1 = vadd.f32 %v731_v63, %v676_v61 }
 0x1b2   : > { %741 = vst [vmem:[#allocation2 + $0x8] sm:$0xff] %v703_v0 }
 0x1b3   : > { %742 = vst [vmem:[#allocation2 + $0x20] sm:$0xff] %v732_v1 }
 0x1b7   : > { %v705_v4 = vpop.f32.mrf.mxu2  ;;  %v734_v5 = vpop.f32.mrf.mxu3 }
 0x1b8   : > { %v706_v6 = vadd.f32 %v705_v4, %v677_v2  ;;  %v735_v7 = vadd.f32 %v734_v5, %v678_v3 }
 0x1ba   : > { %743 = vst [vmem:[#allocation2 + $0x28] sm:$0xf] %v706_v6 }
 0x1bb   : > { %744 = vst [vmem:[#allocation2 + $0x38] sm:$0xf] %v735_v7 }
 0x1bc PF: > { %v749_v8 = vld [vmem:[#allocation2 + $0x8] sm:$0xff]  ;;  %v750_v9 = vld [vmem:[#allocation2 + $0x20] sm:$0xff]  ;;  %v745_v10 = vld [vmem:[#allocation2 + $0x30] sm:$0xff]  ;;  %vm770_vm9 = vcmask 1043456   ;;  %v5563_v22 = vmov 256.0   ;;  %vm1435_vm7 = vcmask 1045504  }
 0x1bd   : > { %v767_v11 = vadd.f32 %v750_v9, %v749_v8  ;;  %v746_v12 = vld [vmem:[#allocation2] sm:$0xff]  ;;  %v747_v18 = vld [vmem:[#allocation2 + $0x18] sm:$0xff]  ;;  %v748_v19 = vld [vmem:[#allocation2 + $0x10] sm:$0xff]  ;;  %5191 = vrcp.f32 %v5563_v22  ;;  %vm1953_vm8 = vcmask 1047558   ;;  %p5037_p7 = scmp.ne.s32.totalorder %s5635_s13, 1 }
 0x1be   : > { %v761_v15 = vadd.f32 %v746_v12, %v745_v10  ;;  %v764_v21 = vadd.f32 %v748_v19, %v747_v18  ;;  %v983_v26 = vld [vmem:[%s5749_s28 + $0x2d0] sm:$0xff]  ;;  %v984_v28 = vld [vmem:[%s5749_s28 + $0x2d8] sm:$0xff]  ;;  %v977_v30 = vld [vmem:[%s5749_s28 + $0x2a0] sm:$0xff] }
 0x1bf   : > { %768 = vadd.xlane.f32.xlu1 %v767_v11  ;;  %v1079_v27 = vld [vmem:[%s5749_s28 + $0x5d0] sm:$0xff]  ;;  %1085 = vmatpush.msra.mxu0 %v983_v26  ;;  %v1080_v29 = vld [vmem:[%s5749_s28 + $0x5d8] sm:$0xff]  ;;  %v1073_v31 = vld [vmem:[%s5749_s28 + $0x5a0] sm:$0xff] }
 0x1c0   : > { %762 = vadd.xlane.f32.xlu0 %v761_v15  ;;  %1114 = vmatpush.msra.mxu1 %v1079_v27  ;;  %v978_v32 = vld [vmem:[%s5749_s28 + $0x2a8] sm:$0xff]  ;;  %v971_v3 = vld [vmem:[%s5749_s28 + $0x270] sm:$0xff]  ;;  %v972_v5 = vld [vmem:[%s5749_s28 + $0x278] sm:$0xff] }
 0x1c1   : > { %v751_v13 = vld [vmem:[#allocation2 + $0x28] sm:$0xf]  ;;  %1143 = vmatpush.msra.mxu2 %v984_v28  ;;  %1172 = vmatpush.msra.mxu3 %v1080_v29  ;;  %v1067_v4 = vld [vmem:[%s5749_s28 + $0x570] sm:$0xff]  ;;  %v1068_v6 = vld [vmem:[%s5749_s28 + $0x578] sm:$0xff] }
 0x1c2   : > { %v752_v14 = vld [vmem:[#allocation2 + $0x38] sm:$0xf]  ;;  %v771_v16 = vsel %vm770_vm9, %v751_v13, 0.0  ;;  %v1074_v33 = vld [vmem:[%s5749_s28 + $0x5a8] sm:$0xff]  ;;  %1086 = vmatpush.msra.mxu0 %v977_v30  ;;  %1115 = vmatpush.msra.mxu1 %v1073_v31  ;;  %v965_v7 = vld [vmem:[%s5749_s28 + $0x240] sm:$0xff] }
 0x1c3   : > { %v772_v17 = vsel %vm770_vm9, %v752_v14, 0.0  ;;  %v5192_v23 = vpop.eup %5191  ;;  %1144 = vmatpush.msra.mxu2 %v978_v32  ;;  %1173 = vmatpush.msra.mxu3 %v1074_v33  ;;  %v959_v11 = vld [vmem:[%s5749_s28 + $0x210] sm:$0xff]  ;;  %v953_v15 = vld [vmem:[%s5749_s28 + $0x1e0] sm:$0xff]  ;;  %v1044_v22 = vld [vmem:[%s5749_s28 + $0x4b8] sm:$0xff] }
 0x1c4   : > { %v773_v20 = vadd.f32 %v772_v17, %v771_v16  ;;  %v777_v24 = vmul.f32 256.0, %v5192_v23  ;;  %vm781_vm10 = vweird.f32 %v5192_v23  ;;  %1087 = vmatpush.msra.mxu0 %v971_v3  ;;  %1116 = vmatpush.msra.mxu1 %v1067_v4  ;;  %v1049_v16 = vld [vmem:[%s5749_s28 + $0x4e0] sm:$0xff]  ;;  %v954_v17 = vld [vmem:[%s5749_s28 + $0x1e8] sm:$0xff]  ;;  %v935_v27 = vld [vmem:[%s5749_s28 + $0x150] sm:$0xff] }
 0x1c5   : > { %1145 = vmatpush.msra.mxu2 %v972_v5  ;;  %1174 = vmatpush.msra.mxu3 %v1068_v6  ;;  %v1038_v26 = vld [vmem:[%s5749_s28 + $0x488] sm:$0xff]  ;;  %v1031_v28 = vld [vmem:[%s5749_s28 + $0x450] sm:$0xff]  ;;  %v936_v29 = vld [vmem:[%s5749_s28 + $0x158] sm:$0xff] }
 0x1c6   : > { %v778_v25 = vsub.f32 1.0, %v777_v24  ;;  %1088 = vmatpush.msra.mxu0 %v965_v7  ;;  %v1037_v24 = vld [vmem:[%s5749_s28 + $0x480] sm:$0xff]  ;;  %v1032_v30 = vld [vmem:[%s5749_s28 + $0x458] sm:$0xff]  ;;  %v930_v33 = vld [vmem:[%s5749_s28 + $0x128] sm:$0xff] }
 0x1c7   : > { %774 = vadd.xlane.f32.xlu1 %v773_v20  ;;  %v1043_v20 = vld [vmem:[%s5749_s28 + $0x4b0] sm:$0xff]  ;;  %v929_v31 = vld [vmem:[%s5749_s28 + $0x120] sm:$0xff]  ;;  %v990_v3 = vld [vmem:[%s5749_s28 + $0x308] sm:$0xff] }
 0x1c8   : > { %765 = vadd.xlane.f32.xlu0 %v764_v21  ;;  %v779_v34 = vmul.f32 %v5192_v23, %v778_v25  ;;  %1089 = vmatpush.msra.mxu0 %v959_v11  ;;  %v948_v21 = vld [vmem:[%s5749_s28 + $0x1b8] sm:$0xff]  ;;  %v942_v25 = vld [vmem:[%s5749_s28 + $0x188] sm:$0xff]  ;;  %v1025_v32 = vld [vmem:[%s5749_s28 + $0x420] sm:$0xff] }
 0x1c9   : > { %v985_v4 = vld [vmem:[%s5749_s28 + $0x2e0] sm:$0xff]  ;;  %v986_v6 = vld [vmem:[%s5749_s28 + $0x2e8] sm:$0xff]  ;;  %v979_v11 = vld [vmem:[%s5749_s28 + $0x2b0] sm:$0xff] }
 0x1ca   : > { %v780_v35 = vadd.f32 %v5192_v23, %v779_v34  ;;  %1090 = vmatpush.msra.mxu0 %v953_v15  ;;  %v1026_v34 = vld [vmem:[%s5749_s28 + $0x428] sm:$0xff]  ;;  %v1081_v5 = vld [vmem:[%s5749_s28 + $0x5e0] sm:$0xff]  ;;  %v1076_v15 = vld [vmem:[%s5749_s28 + $0x5b8] sm:$0xff] }
 0x1cc   : > { %v5976_v36 = vsel %vm781_vm10, %v5192_v23, %v780_v35  ;;  %v941_v23 = vld [vmem:[%s5749_s28 + $0x180] sm:$0xff]  ;;  %v923_v35 = vld [vmem:[%s5749_s28 + $0xf0] sm:$0xff] }
 0x1cd   : > { %8206 = vst [vmem:[#allocation20_spill] sm:$0xff] %v5976_v36 }
 0x232   : > { %v769_v37 = vpop.xlane.xlu1 %768 }
 0x233   : > { %v785_v38 = vmul.f32 %v5976_v36, %v769_v37  ;;  %v763_v39 = vpop.xlane.xlu0 %762  ;;  %v1019_v37 = vld [vmem:[%s5749_s28 + $0x3f0] sm:$0xff] }
 0x234   : > { %v783_v40 = vmul.f32 %v5976_v36, %v763_v39  ;;  %v1020_v39 = vld [vmem:[%s5749_s28 + $0x3f8] sm:$0xff] }
 0x235   : > { %v5980_v41 = vsub.f32 %v749_v8, %v785_v38  ;;  %v5982_v42 = vsub.f32 %v750_v9, %v785_v38  ;;  %v1061_v8 = vld [vmem:[%s5749_s28 + $0x540] sm:$0xff]  ;;  %v966_v9 = vld [vmem:[%s5749_s28 + $0x248] sm:$0xff]  ;;  %v924_v38 = vld [vmem:[%s5749_s28 + $0xf8] sm:$0xff] }
 0x236   : > { %v5984_v43 = vsub.f32 %v745_v10, %v783_v40  ;;  %v5986_v44 = vsub.f32 %v746_v12, %v783_v40  ;;  %1117 = vmatpush.msra.mxu1 %v1061_v8  ;;  %v1062_v10 = vld [vmem:[%s5749_s28 + $0x548] sm:$0xff]  ;;  %1146 = vmatpush.msra.mxu2 %v966_v9  ;;  %v1055_v12 = vld [vmem:[%s5749_s28 + $0x510] sm:$0xff]  ;;  %v917_v40 = vld [vmem:[%s5749_s28 + $0xc0] sm:$0xff] }
 0x237   : > { %v799_v45 = vmul.f32 %v5980_v41, %v5980_v41  ;;  %v800_v46 = vmul.f32 %v5982_v42, %v5982_v42  ;;  %1175 = vmatpush.msra.mxu3 %v1062_v10  ;;  %v1082_v8 = vld [vmem:[%s5749_s28 + $0x5e8] sm:$0xff] }
 0x238   : > { %v795_v47 = vmul.f32 %v5984_v43, %v5984_v43  ;;  %v796_v48 = vmul.f32 %v5986_v44, %v5986_v44  ;;  %1118 = vmatpush.msra.mxu1 %v1055_v12  ;;  %v1075_v12 = vld [vmem:[%s5749_s28 + $0x5b0] sm:$0xff] }
 0x239   : > { %v809_v49 = vadd.f32 %v800_v46, %v799_v45  ;;  %v1013_v45 = vld [vmem:[%s5749_s28 + $0x3c0] sm:$0xff]  ;;  %v918_v46 = vld [vmem:[%s5749_s28 + $0xc8] sm:$0xff] }
 0x23a   : > { %v775_v50 = vpop.xlane.xlu1 %774  ;;  %v803_v51 = vadd.f32 %v796_v48, %v795_v47  ;;  %1119 = vmatpush.msra.mxu1 %v1049_v16  ;;  %v1014_v47 = vld [vmem:[%s5749_s28 + $0x3c8] sm:$0xff]  ;;  %v911_v48 = vld [vmem:[%s5749_s28 + $0x90] sm:$0xff] }
 0x23b   : > { %v786_v52 = vmul.f32 %v5976_v36, %v775_v50  ;;  %v766_v53 = vpop.xlane.xlu0 %765  ;;  %810 = vadd.xlane.f32.xlu0 %v809_v49  ;;  %v1007_v49 = vld [vmem:[%s5749_s28 + $0x390] sm:$0xff]  ;;  %v912_v50 = vld [vmem:[%s5749_s28 + $0x98] sm:$0xff] }
 0x23c   : > { %v784_v54 = vmul.f32 %v5976_v36, %v766_v53  ;;  %804 = vadd.xlane.f32.xlu2 %v803_v51  ;;  %1120 = vmatpush.msra.mxu1 %v1043_v20  ;;  %v1008_v51 = vld [vmem:[%s5749_s28 + $0x398] sm:$0xff]  ;;  %v1001_v53 = vld [vmem:[%s5749_s28 + $0x360] sm:$0xff] }
 0x23d   : > { %v5998_v55 = vsub.f32 %v751_v13, %v786_v52  ;;  %v6000_v56 = vsub.f32 %v752_v14, %v786_v52  ;;  %v960_v13 = vld [vmem:[%s5749_s28 + $0x218] sm:$0xff]  ;;  %v905_v52 = vld [vmem:[%s5749_s28 + $0x60] sm:$0xff] }
 0x23e   : > { %v6002_v57 = vsub.f32 %v747_v18, %v784_v54  ;;  %v6004_v58 = vsub.f32 %v748_v19, %v784_v54  ;;  %v1056_v14 = vld [vmem:[%s5749_s28 + $0x518] sm:$0xff]  ;;  %1147 = vmatpush.msra.mxu2 %v960_v13  ;;  %v1050_v18 = vld [vmem:[%s5749_s28 + $0x4e8] sm:$0xff]  ;;  %v947_v19 = vld [vmem:[%s5749_s28 + $0x1b0] sm:$0xff]  ;;  %1121 = vmatpush.msra.mxu1 %v1037_v24 }
 0x23f   : > { %v801_v59 = vmul.f32 %v5998_v55, %v5998_v55  ;;  %v802_v60 = vmul.f32 %v6000_v56, %v6000_v56  ;;  %1176 = vmatpush.msra.mxu3 %v1056_v14  ;;  %1091 = vmatpush.msra.mxu0 %v947_v19  ;;  %v906_v54 = vld [vmem:[%s5749_s28 + $0x68] sm:$0xff]  ;;  %v980_v13 = vld [vmem:[%s5749_s28 + $0x2b8] sm:$0xff] }
 0x240   : > { %v797_v61 = vmul.f32 %v6002_v57, %v6002_v57  ;;  %v798_v62 = vmul.f32 %v6004_v58, %v6004_v58  ;;  %1148 = vmatpush.msra.mxu2 %v954_v17  ;;  %1122 = vmatpush.msra.mxu1 %v1031_v28  ;;  %v973_v17 = vld [vmem:[%s5749_s28 + $0x280] sm:$0xff]  ;;  %v974_v19 = vld [vmem:[%s5749_s28 + $0x288] sm:$0xff]  ;;  %v968_v24 = vld [vmem:[%s5749_s28 + $0x258] sm:$0xff] }
 0x241   : > { %v812_v63 = vsel %vm770_vm9, %v801_v59, 0.0  ;;  %v813_v0 = vsel %vm770_vm9, %v802_v60, 0.0  ;;  %1177 = vmatpush.msra.mxu3 %v1050_v18  ;;  %1092 = vmatpush.msra.mxu0 %v941_v23  ;;  %v1002_v59 = vld [vmem:[%s5749_s28 + $0x368] sm:$0xff]  ;;  %v899_v60 = vld [vmem:[%s5749_s28 + $0x30] sm:$0xff]  ;;  %v1069_v18 = vld [vmem:[%s5749_s28 + $0x580] sm:$0xff] }
 0x242   : > { %v806_v1 = vadd.f32 %v798_v62, %v797_v61  ;;  %v814_v2 = vadd.f32 %v813_v0, %v812_v63  ;;  %1149 = vmatpush.msra.mxu2 %v948_v21  ;;  %1123 = vmatpush.msra.mxu1 %v1025_v32  ;;  %v995_v61 = vld [vmem:[%s5749_s28 + $0x330] sm:$0xff]  ;;  %v900_v62 = vld [vmem:[%s5749_s28 + $0x38] sm:$0xff]  ;;  %v893_v0 = vld [vmem:[%s5749_s28] sm:$0xff] }
 0x243   : > { %1178 = vmatpush.msra.mxu3 %v1044_v22  ;;  %1093 = vmatpush.msra.mxu0 %v935_v27  ;;  %v996_v63 = vld [vmem:[%s5749_s28 + $0x338] sm:$0xff]  ;;  %v1070_v21 = vld [vmem:[%s5749_s28 + $0x588] sm:$0xff]  ;;  %v967_v22 = vld [vmem:[%s5749_s28 + $0x250] sm:$0xff] }
 0x244   : > { %807 = vadd.xlane.f32.xlu2 %v806_v1  ;;  %815 = vadd.xlane.f32.xlu1 %v814_v2  ;;  %v989_v1 = vld [vmem:[%s5749_s28 + $0x300] sm:$0xff]  ;;  %v894_v2 = vld [vmem:[%s5749_s28 + $0x8] sm:$0xff]  ;;  %v1063_v23 = vld [vmem:[%s5749_s28 + $0x550] sm:$0xff] }
 0x245   : > { %1150 = vmatpush.msra.mxu2 %v942_v25  ;;  %1179 = vmatpush.msra.mxu3 %v1038_v26  ;;  %v1064_v25 = vld [vmem:[%s5749_s28 + $0x558] sm:$0xff]  ;;  %v961_v26 = vld [vmem:[%s5749_s28 + $0x220] sm:$0xff]  ;;  %v962_v28 = vld [vmem:[%s5749_s28 + $0x228] sm:$0xff] }
 0x246   : > { %1094 = vmatpush.msra.mxu0 %v929_v31  ;;  %1124 = vmatpush.msra.mxu1 %v1019_v37  ;;  %v1057_v27 = vld [vmem:[%s5749_s28 + $0x520] sm:$0xff]  ;;  %v1051_v31 = vld [vmem:[%s5749_s28 + $0x4f0] sm:$0xff] }
 0x247   : > { %1151 = vmatpush.msra.mxu2 %v936_v29  ;;  %1180 = vmatpush.msra.mxu3 %v1032_v30  ;;  %v1058_v29 = vld [vmem:[%s5749_s28 + $0x528] sm:$0xff]  ;;  %v955_v30 = vld [vmem:[%s5749_s28 + $0x1f0] sm:$0xff]  ;;  %v949_v37 = vld [vmem:[%s5749_s28 + $0x1c0] sm:$0xff] }
 0x248   : > { %1095 = vmatpush.msra.mxu0 %v923_v35  ;;  %1125 = vmatpush.msra.mxu1 %v1013_v45  ;;  %v1052_v35 = vld [vmem:[%s5749_s28 + $0x4f8] sm:$0xff]  ;;  %v950_v45 = vld [vmem:[%s5749_s28 + $0x1c8] sm:$0xff] }
 0x249   : > { %1152 = vmatpush.msra.mxu2 %v930_v33  ;;  %1181 = vmatpush.msra.mxu3 %v1026_v34  ;;  %v956_v34 = vld [vmem:[%s5749_s28 + $0x1f8] sm:$0xff] }
 0x24a   : > { %1096 = vmatpush.msra.mxu0 %v917_v40  ;;  %1126 = vmatpush.msra.mxu1 %v1007_v49  ;;  %v1045_v40 = vld [vmem:[%s5749_s28 + $0x4c0] sm:$0xff]  ;;  %v1039_v49 = vld [vmem:[%s5749_s28 + $0x490] sm:$0xff] }
 0x24b   : > { %1153 = vmatpush.msra.mxu2 %v924_v38  ;;  %1182 = vmatpush.msra.mxu3 %v1020_v39 }
 0x24c   : > { %1097 = vmatpush.msra.mxu0 %v911_v48  ;;  %1127 = vmatpush.msra.mxu1 %v1001_v53  ;;  %v943_v48 = vld [vmem:[%s5749_s28 + $0x190] sm:$0xff] }
 0x24d   : > { %1154 = vmatpush.msra.mxu2 %v918_v46  ;;  %1183 = vmatpush.msra.mxu3 %v1014_v47  ;;  %v1046_v46 = vld [vmem:[%s5749_s28 + $0x4c8] sm:$0xff] }
 0x24e   : > { %1098 = vmatpush.msra.mxu0 %v905_v52  ;;  %1128 = vmatpush.msra.mxu1 %v995_v61 }
 0x24f   : > { %1155 = vmatpush.msra.mxu2 %v912_v50  ;;  %1184 = vmatpush.msra.mxu3 %v1008_v51 }
 0x250   : > { %1099 = vmatpush.msra.mxu0 %v899_v60  ;;  %1129 = vmatpush.msra.mxu1 %v989_v1 }
 0x251   : > { %1156 = vmatpush.msra.mxu2 %v906_v54  ;;  %1185 = vmatpush.msra.mxu3 %v1002_v59  ;;  %v944_v54 = vld [vmem:[%s5749_s28 + $0x198] sm:$0xff] }
 0x252   : > { %1100 = vmatpush.msra.mxu0 %v893_v0  ;;  %1230 = vmatpush.msrb.mxu1 %v1081_v5  ;;  %v1040_v59 = vld [vmem:[%s5749_s28 + $0x498] sm:$0xff]  ;;  %v938_v0 = vld [vmem:[%s5749_s28 + $0x168] sm:$0xff]  ;;  %v753_v5 = vld [vmem:[%s5775_s14] sm:$0xff] }
 0x253   : > { %1157 = vmatpush.msra.mxu2 %v900_v62  ;;  %1186 = vmatpush.msra.mxu3 %v996_v63  ;;  %v937_v62 = vld [vmem:[%s5749_s28 + $0x160] sm:$0xff] }
 0x254   : > { %1201 = vmatpush.msrb.mxu0 %v985_v4  ;;  %1231 = vmatpush.msrb.mxu1 %v1075_v12  ;;  %v1033_v63 = vld [vmem:[%s5749_s28 + $0x460] sm:$0xff]  ;;  %v1027_v4 = vld [vmem:[%s5749_s28 + $0x430] sm:$0xff]  ;;  %v1022_v12 = vld [vmem:[%s5749_s28 + $0x408] sm:$0xff] }
 0x255   : > { %1158 = vmatpush.msra.mxu2 %v894_v2  ;;  %1187 = vmatpush.msra.mxu3 %v990_v3  ;;  %v1034_v2 = vld [vmem:[%s5749_s28 + $0x468] sm:$0xff]  ;;  %v931_v3 = vld [vmem:[%s5749_s28 + $0x130] sm:$0xff] }
 0x256   : > { %1202 = vmatpush.msrb.mxu0 %v979_v11  ;;  %1232 = vmatpush.msrb.mxu1 %v1069_v18  ;;  %v926_v11 = vld [vmem:[%s5749_s28 + $0x108] sm:$0xff] }
 0x257   : > { %1259 = vmatpush.msrb.mxu2 %v986_v6  ;;  %1288 = vmatpush.msrb.mxu3 %v1082_v8  ;;  %v1028_v8 = vld [vmem:[%s5749_s28 + $0x438] sm:$0xff] }
 0x258   : > { %1203 = vmatpush.msrb.mxu0 %v973_v17  ;;  %1233 = vmatpush.msrb.mxu1 %v1063_v23  ;;  %v1015_v17 = vld [vmem:[%s5749_s28 + $0x3d0] sm:$0xff] }
 0x259   : > { %1260 = vmatpush.msrb.mxu2 %v980_v13  ;;  %1289 = vmatpush.msrb.mxu3 %v1076_v15  ;;  %v754_v13 = vld [vmem:[%s5775_s14 + $0x8] sm:$0xff]  ;;  %v919_v15 = vld [vmem:[%s5749_s28 + $0xd0] sm:$0xff] }
 0x25a   : > { %1204 = vmatpush.msrb.mxu0 %v967_v22  ;;  %1234 = vmatpush.msrb.mxu1 %v1057_v27  ;;  %v920_v22 = vld [vmem:[%s5749_s28 + $0xd8] sm:$0xff] }
 0x25b   : > { %1261 = vmatpush.msrb.mxu2 %v974_v19  ;;  %1290 = vmatpush.msrb.mxu3 %v1070_v21  ;;  %v755_v19 = vld [vmem:[%s5775_s14 + $0x10] sm:$0xff]  ;;  %v1016_v27 = vld [vmem:[%s5749_s28 + $0x3d8] sm:$0xff] }
 0x25c   : > { %1205 = vmatpush.msrb.mxu0 %v961_v26  ;;  %1235 = vmatpush.msrb.mxu1 %v1051_v31 }
 0x25d   : > { %1262 = vmatpush.msrb.mxu2 %v968_v24  ;;  %1291 = vmatpush.msrb.mxu3 %v1064_v25  ;;  %v756_v24 = vld [vmem:[%s5775_s14 + $0x18] sm:$0xff] }
 0x25e   : > { %1206 = vmatpush.msrb.mxu0 %v955_v30  ;;  %1236 = vmatpush.msrb.mxu1 %v1045_v40  ;;  %v914_v40 = vld [vmem:[%s5749_s28 + $0xa8] sm:$0xff] }
 0x25f   : > { %1263 = vmatpush.msrb.mxu2 %v962_v28  ;;  %1292 = vmatpush.msrb.mxu3 %v1058_v29  ;;  %v6159_v28 = vperm.slane %v753_v5, 1  ;;  %v6161_v29 = vperm.slane %v754_v13, 1  ;;  %v998_v5 = vld [vmem:[%s5749_s28 + $0x348] sm:$0xff]  ;;  %v1083_v13 = vld [vmem:[%s5749_s28 + $0x5f0] sm:$0xff] }
 0x260   : > { %1207 = vmatpush.msrb.mxu0 %v949_v37  ;;  %1237 = vmatpush.msrb.mxu1 %v1039_v49 }
 0x261   : > { %1264 = vmatpush.msrb.mxu2 %v956_v34  ;;  %1293 = vmatpush.msrb.mxu3 %v1052_v35  ;;  %v1009_v34 = vld [vmem:[%s5749_s28 + $0x3a0] sm:$0xff]  ;;  %v6173_v35 = vperm.slane %v756_v24, 1 }
 0x262   : > { %1208 = vmatpush.msrb.mxu0 %v943_v48  ;;  %1238 = vmatpush.msrb.mxu1 %v1033_v63 }
 0x263   : > { %1265 = vmatpush.msrb.mxu2 %v950_v45  ;;  %1294 = vmatpush.msrb.mxu3 %v1046_v46  ;;  %v1010_v45 = vld [vmem:[%s5749_s28 + $0x3a8] sm:$0xff]  ;;  %v907_v46 = vld [vmem:[%s5749_s28 + $0x70] sm:$0xff] }
 0x264   : > { %1209 = vmatpush.msrb.mxu0 %v937_v62  ;;  %1239 = vmatpush.msrb.mxu1 %v1027_v4 }
 0x265   : > { %1266 = vmatpush.msrb.mxu2 %v944_v54  ;;  %1295 = vmatpush.msrb.mxu3 %v1040_v59  ;;  %v1004_v54 = vld [vmem:[%s5749_s28 + $0x378] sm:$0xff]  ;;  %v901_v59 = vld [vmem:[%s5749_s28 + $0x40] sm:$0xff] }
 0x266   : > { %1210 = vmatpush.msrb.mxu0 %v931_v3 }
 0x267   : > { %1267 = vmatpush.msrb.mxu2 %v938_v0  ;;  %1296 = vmatpush.msrb.mxu3 %v1034_v2  ;;  %v945_v2 = vld [vmem:[%s5749_s28 + $0x1a0] sm:$0xff] }
 0x269   : > { %1297 = vmatpush.msrb.mxu3 %v1028_v8 }
 0x26b   : > { %1298 = vmatpush.msrb.mxu3 %v1022_v12 }
 0x26d   : > { %1299 = vmatpush.msrb.mxu3 %v1016_v27  ;;  %v976_v27 = vld [vmem:[%s5749_s28 + $0x298] sm:$0xff] }
 0x26f   : > { %1300 = vmatpush.msrb.mxu3 %v1010_v45  ;;  %v1059_v45 = vld [vmem:[%s5749_s28 + $0x530] sm:$0xff] }
 0x271   : > { %1301 = vmatpush.msrb.mxu3 %v1004_v54  ;;  %v957_v54 = vld [vmem:[%s5749_s28 + $0x200] sm:$0xff] }
 0x273   : > { %1302 = vmatpush.msrb.mxu3 %v998_v5  ;;  %v1042_v5 = vld [vmem:[%s5749_s28 + $0x4a8] sm:$0xff] }
 0x2ae   : > { %v811_v7 = vpop.xlane.xlu0 %810 }
 0x2af   : > { %v805_v9 = vpop.xlane.xlu2 %804  ;;  %v819_v10 = vmul.f32 %v811_v7, %v5976_v36  ;;  %v932_v7 = vld [vmem:[%s5749_s28 + $0x138] sm:$0xff] }
 0x2b0   : > { %v817_v14 = vmul.f32 %v805_v9, %v5976_v36  ;;  %v925_v9 = vld [vmem:[%s5749_s28 + $0x100] sm:$0xff]  ;;  %1268 = vmatpush.msrb.mxu2 %v932_v7  ;;  %v896_v7 = vld [vmem:[%s5749_s28 + $0x18] sm:$0xff] }
 0x2b1   : > { %v6082_v16 = vadd.f32 1e-05, %v819_v10  ;;  %v1021_v10 = vld [vmem:[%s5749_s28 + $0x400] sm:$0xff]  ;;  %1211 = vmatpush.msrb.mxu0 %v925_v9  ;;  %v987_v9 = vld [vmem:[%s5749_s28 + $0x2f0] sm:$0xff] }
 0x2b2   : > { %v6087_v20 = vadd.f32 1e-05, %v817_v14  ;;  %1240 = vmatpush.msrb.mxu1 %v1021_v10  ;;  %1269 = vmatpush.msrb.mxu2 %v926_v11 }
 0x2b3   : > { %5193 = vrsqrt.f32 %v6082_v16  ;;  %1212 = vmatpush.msrb.mxu0 %v919_v15  ;;  %vm851_vm14 = vweird.f32 %v6082_v16 }
 0x2b4   : > { %5195 = vrsqrt.f32 %v6087_v20  ;;  %vm831_vm12 = vweird.f32 %v6087_v20  ;;  %1241 = vmatpush.msrb.mxu1 %v1015_v17  ;;  %1270 = vmatpush.msrb.mxu2 %v920_v22  ;;  %v1084_v17 = vld [vmem:[%s5749_s28 + $0x5f8] sm:$0xff] }
 0x2b6   : > { %1242 = vmatpush.msrb.mxu1 %v1009_v34  ;;  %1271 = vmatpush.msrb.mxu2 %v914_v40  ;;  %v1065_v34 = vld [vmem:[%s5749_s28 + $0x560] sm:$0xff]  ;;  %v963_v40 = vld [vmem:[%s5749_s28 + $0x230] sm:$0xff] }
 0x2b7   : > { %v808_v32 = vpop.xlane.xlu2 %807  ;;  %v816_v33 = vpop.xlane.xlu1 %815 }
 0x2b8   : > { %v818_v38 = vmul.f32 %v808_v32, %v5976_v36  ;;  %v820_v39 = vmul.f32 %v816_v33, %v5976_v36  ;;  %v913_v33 = vld [vmem:[%s5749_s28 + $0xa0] sm:$0xff] }
 0x2b9   : > { %v6110_v47 = vpop.eup %5193  ;;  %1213 = vmatpush.msrb.mxu0 %v913_v33 }
 0x2ba   : > { %v6114_v50 = vpop.eup %5195  ;;  %v846_v51 = vmul.f32 %v6110_v47, %v6082_v16  ;;  %v6118_v52 = vadd.f32 1e-05, %v818_v38  ;;  %v6120_v53 = vadd.f32 1e-05, %v820_v39  ;;  %vm852_vm15 = vweird.f32 %v6110_v47  ;;  %v991_v16 = vld [vmem:[%s5749_s28 + $0x310] sm:$0xff] }
 0x2bb   : > { %v826_v60 = vmul.f32 %v6114_v50, %v6087_v20  ;;  %vm832_vm11 = vweird.f32 %v6114_v50  ;;  %v6167_v20 = vperm.slane %v755_v19, 1  ;;  %1214 = vmatpush.msrb.mxu0 %v907_v46  ;;  %vm6203_vm1 = vmor %vm851_vm14, %vm852_vm15  ;;  %v964_v46 = vld [vmem:[%s5749_s28 + $0x238] sm:$0xff]  ;;  %vm2049_vm14 = vcmask 1041408  }
 0x2bc   : > { %5197 = vrsqrt.f32 %v6118_v52  ;;  %v847_v1 = vmul.f32 %v6110_v47, %v846_v51  ;;  %vm833_vm13 = vmor %vm831_vm12, %vm832_vm11  ;;  %v908_v51 = vld [vmem:[%s5749_s28 + $0x78] sm:$0xff]  ;;  %vm841_vm2 = vweird.f32 %v6118_v52  ;;  %vm861_vm4 = vweird.f32 %v6120_v53 }
 0x2bd   : > { %v827_v61 = vmul.f32 %v6114_v50, %v826_v60  ;;  %5199 = vrsqrt.f32 %v6120_v53  ;;  %v997_v60 = vld [vmem:[%s5749_s28 + $0x340] sm:$0xff]  ;;  %1272 = vmatpush.msrb.mxu2 %v908_v51  ;;  %1215 = vmatpush.msrb.mxu0 %v901_v59  ;;  %v1060_v51 = vld [vmem:[%s5749_s28 + $0x538] sm:$0xff] }
 0x2be   : > { %v848_v21 = vmul.f32 0.5, %v847_v1 }
 0x2bf   : > { %v828_v6 = vmul.f32 0.5, %v827_v61  ;;  %v902_v61 = vld [vmem:[%s5749_s28 + $0x48] sm:$0xff] }
 0x2c0   : > { %v849_v39 = vsub.f32 1.5, %v848_v21  ;;  %1273 = vmatpush.msrb.mxu2 %v902_v61  ;;  %v1047_v61 = vld [vmem:[%s5749_s28 + $0x4d0] sm:$0xff] }
 0x2c1   : > { %v829_v14 = vsub.f32 1.5, %v828_v6  ;;  %v895_v6 = vld [vmem:[%s5749_s28 + $0x10] sm:$0xff] }
 0x2c2   : > { %v6147_v18 = vpop.eup %5197  ;;  %v850_v1 = vmul.f32 %v6110_v47, %v849_v39  ;;  %1216 = vmatpush.msrb.mxu0 %v895_v6  ;;  %1274 = vmatpush.msrb.mxu2 %v896_v7  ;;  %v1066_v39 = vld [vmem:[%s5749_s28 + $0x568] sm:$0xff]  ;;  %v939_v6 = vld [vmem:[%s5749_s28 + $0x170] sm:$0xff]  ;;  %v933_v7 = vld [vmem:[%s5749_s28 + $0x140] sm:$0xff] }
 0x2c3   : > { %v6151_v23 = vpop.eup %5199  ;;  %v830_v25 = vmul.f32 %v6114_v50, %v829_v14  ;;  %v836_v26 = vmul.f32 %v6147_v18, %v6118_v52  ;;  %vm842_vm0 = vweird.f32 %v6147_v18  ;;  %v992_v52 = vld [vmem:[%s5749_s28 + $0x318] sm:$0xff] }
 0x2c4   : > { %v856_v30 = vmul.f32 %v6151_v23, %v6120_v53  ;;  %vm843_vm3 = vmor %vm841_vm2, %vm842_vm0  ;;  %v854_v10 = vsel %vm6203_vm1, %v6110_v47, %v850_v1  ;;  %v988_v14 = vld [vmem:[%s5749_s28 + $0x2f8] sm:$0xff]  ;;  %1303 = vmatpush.msrb.mxu3 %v992_v52  ;;  %v982_v47 = vld [vmem:[%s5749_s28 + $0x2c8] sm:$0xff]  ;;  %vm862_vm5 = vweird.f32 %v6151_v23 }
 0x2c5   : > { %v834_v31 = vsel %vm833_vm13, %v6114_v50, %v830_v25  ;;  %v837_v32 = vmul.f32 %v6147_v18, %v836_v26  ;;  %v1003_v50 = vld [vmem:[%s5749_s28 + $0x370] sm:$0xff]  ;;  %v870_v22 = vmul.f32 %v854_v10, %v5982_v42  ;;  %v1078_v53 = vld [vmem:[%s5749_s28 + $0x5c8] sm:$0xff]  ;;  %vm863_vm6 = vmor %vm861_vm4, %vm862_vm5 }
 0x2c6   : > { %v865_v37 = vmul.f32 %v834_v31, %v5984_v43  ;;  %v866_v38 = vmul.f32 %v834_v31, %v5986_v44  ;;  %v857_v49 = vmul.f32 %v6151_v23, %v856_v30  ;;  %1243 = vmatpush.msrb.mxu1 %v1003_v50  ;;  %v975_v26 = vld [vmem:[%s5749_s28 + $0x290] sm:$0xff]  ;;  %v1072_v31 = vld [vmem:[%s5749_s28 + $0x598] sm:$0xff]  ;;  %v934_v52 = vld [vmem:[%s5749_s28 + $0x148] sm:$0xff] }
 0x2c7   : > { %v838_v48 = vmul.f32 0.5, %v837_v32  ;;  %v1071_v42 = vld [vmem:[%s5749_s28 + $0x590] sm:$0xff]  ;;  %v969_v32 = vld [vmem:[%s5749_s28 + $0x260] sm:$0xff]  ;;  %v880_v33 = vmul.f32 %v6161_v29, %v870_v22  ;;  %v1048_v1 = vld [vmem:[%s5749_s28 + $0x4d8] sm:$0xff] }
 0x2c8   : > { %v875_v43 = vmul.f32 %v6159_v28, %v865_v37  ;;  %v876_v44 = vmul.f32 %v6161_v29, %v866_v38  ;;  %v858_v4 = vmul.f32 0.5, %v857_v49  ;;  %1244 = vmatpush.msrb.mxu1 %v997_v60  ;;  %v970_v37 = vld [vmem:[%s5749_s28 + $0x268] sm:$0xff]  ;;  %v1005_v22 = vld [vmem:[%s5749_s28 + $0x380] sm:$0xff] }
 0x2c9   : > { %v839_v62 = vsub.f32 1.5, %v838_v48 }
 0x2ca   : > { %v6193_v63 = vadd.f32 %v6167_v20, %v875_v43  ;;  %v6196_v0 = vadd.f32 %v6173_v35, %v876_v44  ;;  %v859_v15 = vsub.f32 1.5, %v858_v4  ;;  %1245 = vmatpush.msrb.mxu1 %v991_v16  ;;  %v1053_v43 = vld [vmem:[%s5749_s28 + $0x500] sm:$0xff]  ;;  %v958_v44 = vld [vmem:[%s5749_s28 + $0x208] sm:$0xff]  ;;  %v1035_v16 = vld [vmem:[%s5749_s28 + $0x470] sm:$0xff] }
 0x2cb   : > { %v840_v3 = vmul.f32 %v6147_v18, %v839_v62  ;;  %v952_v62 = vld [vmem:[%s5749_s28 + $0x1d8] sm:$0xff]  ;;  %v946_v4 = vld [vmem:[%s5749_s28 + $0x1a8] sm:$0xff] }
 0x2cc   : > { %1101 = vmatmul.f32.vlgmr.msra.gmra.mxu0 %v6193_v63  ;;  %1130 = vmatmul.f32.vlgmr.msra.gmra.mxu1 %v6196_v0 }
 0x2cd   : > { %v844_v8 = vsel %vm843_vm3, %v6147_v18, %v840_v3  ;;  %1159 = vmatmul.f32.vlgmr.msra.gmra.mxu2 %v6193_v63  ;;  %1188 = vmatmul.f32.vlgmr.msra.gmra.mxu3 %v6196_v0  ;;  %v981_v18 = vld [vmem:[%s5749_s28 + $0x2c0] sm:$0xff] }
 0x2ce   : > { %v867_v11 = vmul.f32 %v844_v8, %v6002_v57  ;;  %v868_v12 = vmul.f32 %v844_v8, %v6004_v58  ;;  %1317 = vmatpush.msra.mxu0 %v987_v9  ;;  %v1077_v57 = vld [vmem:[%s5749_s28 + $0x5c0] sm:$0xff]  ;;  %v869_v58 = vmul.f32 %v854_v10, %v5980_v41  ;;  %1346 = vmatpush.msra.mxu1 %v1083_v13  ;;  %v1030_v9 = vld [vmem:[%s5749_s28 + $0x448] sm:$0xff]  ;;  %v927_v10 = vld [vmem:[%s5749_s28 + $0x110] sm:$0xff] }
 0x2cf   : > { %1375 = vmatpush.msra.mxu2 %v988_v14  ;;  %1404 = vmatpush.msra.mxu3 %v1084_v17  ;;  %v860_v41 = vmul.f32 %v6151_v23, %v859_v15  ;;  %v1041_v3 = vld [vmem:[%s5749_s28 + $0x4a0] sm:$0xff]  ;;  %v1024_v13 = vld [vmem:[%s5749_s28 + $0x418] sm:$0xff]  ;;  %v922_v17 = vld [vmem:[%s5749_s28 + $0xe8] sm:$0xff] }
 0x2d0   : > { %v877_v19 = vmul.f32 %v6159_v28, %v867_v11  ;;  %v878_v21 = vmul.f32 %v6161_v29, %v868_v12  ;;  %1318 = vmatpush.msra.mxu0 %v981_v18  ;;  %1347 = vmatpush.msra.mxu1 %v1077_v57  ;;  %v879_v30 = vmul.f32 %v6159_v28, %v869_v58  ;;  %v1029_v8 = vld [vmem:[%s5749_s28 + $0x440] sm:$0xff]  ;;  %v1023_v11 = vld [vmem:[%s5749_s28 + $0x410] sm:$0xff]  ;;  %v928_v12 = vld [vmem:[%s5749_s28 + $0x118] sm:$0xff] }
 0x2d1   : > { %1376 = vmatpush.msra.mxu2 %v982_v47  ;;  %1405 = vmatpush.msra.mxu3 %v1078_v53  ;;  %v864_v38 = vsel %vm863_vm6, %v6151_v23, %v860_v41  ;;  %v6269_v23 = vadd.f32 %v6173_v35, %v880_v33  ;;  %v921_v14 = vld [vmem:[%s5749_s28 + $0xe0] sm:$0xff]  ;;  %v1018_v18 = vld [vmem:[%s5749_s28 + $0x3e8] sm:$0xff]  ;;  %v916_v57 = vld [vmem:[%s5749_s28 + $0xb8] sm:$0xff] }
 0x2d2   : > { %v6240_v24 = vadd.f32 %v6167_v20, %v877_v19  ;;  %v6243_v25 = vadd.f32 %v6173_v35, %v878_v21  ;;  %1319 = vmatpush.msra.mxu0 %v975_v26  ;;  %1348 = vmatpush.msra.mxu1 %v1071_v42  ;;  %v6266_v48 = vadd.f32 %v6167_v20, %v879_v30  ;;  %v1017_v15 = vld [vmem:[%s5749_s28 + $0x3e0] sm:$0xff]  ;;  %v915_v19 = vld [vmem:[%s5749_s28 + $0xb0] sm:$0xff]  ;;  %v1012_v47 = vld [vmem:[%s5749_s28 + $0x3b8] sm:$0xff] }
 0x2d3   : > { %1377 = vmatpush.msra.mxu2 %v976_v27  ;;  %1406 = vmatpush.msra.mxu3 %v1072_v31  ;;  %v871_v49 = vmul.f32 %v864_v38, %v5998_v55  ;;  %v872_v50 = vmul.f32 %v864_v38, %v6000_v56  ;;  %v1054_v55 = vld [vmem:[%s5749_s28 + $0x508] sm:$0xff]  ;;  %v951_v56 = vld [vmem:[%s5749_s28 + $0x1d0] sm:$0xff]  ;;  %v909_v58 = vld [vmem:[%s5749_s28 + $0x80] sm:$0xff] }
 0x2d4   : > { %1104 = vmatmul.f32.gmra.mxu0 %v6240_v24  ;;  %1133 = vmatmul.f32.gmra.mxu1 %v6243_v25  ;;  %v1011_v21 = vld [vmem:[%s5749_s28 + $0x3b0] sm:$0xff]  ;;  %v910_v41 = vld [vmem:[%s5749_s28 + $0x88] sm:$0xff]  ;;  %v904_v27 = vld [vmem:[%s5749_s28 + $0x58] sm:$0xff] }
 0x2d5   : > { %1162 = vmatmul.f32.gmra.mxu2 %v6240_v24  ;;  %1191 = vmatmul.f32.gmra.mxu3 %v6243_v25  ;;  %v881_v59 = vmul.f32 %v6159_v28, %v871_v49  ;;  %v882_v60 = vmul.f32 %v6161_v29, %v872_v50  ;;  %v1006_v53 = vld [vmem:[%s5749_s28 + $0x388] sm:$0xff]  ;;  %v903_v26 = vld [vmem:[%s5749_s28 + $0x50] sm:$0xff]  ;;  %v1000_v30 = vld [vmem:[%s5749_s28 + $0x358] sm:$0xff] }
 0x2d6   : > { %1320 = vmatpush.msra.mxu0 %v969_v32  ;;  %1349 = vmatpush.msra.mxu1 %v1065_v34  ;;  %v999_v42 = vld [vmem:[%s5749_s28 + $0x350] sm:$0xff]  ;;  %v897_v31 = vld [vmem:[%s5749_s28 + $0x20] sm:$0xff]  ;;  %v898_v33 = vld [vmem:[%s5749_s28 + $0x28] sm:$0xff] }
 0x2d7   : > { %1378 = vmatpush.msra.mxu2 %v970_v37  ;;  %1407 = vmatpush.msra.mxu3 %v1066_v39  ;;  %v6292_v28 = vadd.f32 %v6167_v20, %v881_v59  ;;  %v6295_v29 = vadd.f32 %v6173_v35, %v882_v60  ;;  %v940_v20 = vld [vmem:[%s5749_s28 + $0x178] sm:$0xff]  ;;  %v993_v32 = vld [vmem:[%s5749_s28 + $0x320] sm:$0xff]  ;;  %v994_v34 = vld [vmem:[%s5749_s28 + $0x328] sm:$0xff] }
 0x2d8   : > { %1321 = vmatpush.msra.mxu0 %v963_v40  ;;  %1350 = vmatpush.msra.mxu1 %v1059_v45  ;;  %v1036_v35 = vld [vmem:[%s5749_s28 + $0x478] sm:$0xff] }
 0x2d9   : > { %1379 = vmatpush.msra.mxu2 %v964_v46  ;;  %1408 = vmatpush.msra.mxu3 %v1060_v51 }
 0x2da   : > { %1322 = vmatpush.msra.mxu0 %v957_v54  ;;  %1351 = vmatpush.msra.mxu1 %v1053_v43 }
 0x2db   : > { %1380 = vmatpush.msra.mxu2 %v958_v44  ;;  %1409 = vmatpush.msra.mxu3 %v1054_v55 }
 0x2dc   : > { %1107 = vmatmul.f32.gmra.mxu0 %v6266_v48  ;;  %1136 = vmatmul.f32.gmra.mxu1 %v6269_v23 }
 0x2dd   : > { %1165 = vmatmul.f32.gmra.mxu2 %v6266_v48  ;;  %1194 = vmatmul.f32.gmra.mxu3 %v6269_v23 }
 0x2de   : > { %1323 = vmatpush.msra.mxu0 %v951_v56  ;;  %1352 = vmatpush.msra.mxu1 %v1047_v61 }
 0x2df   : > { %1381 = vmatpush.msra.mxu2 %v952_v62  ;;  %1410 = vmatpush.msra.mxu3 %v1048_v1 }
 0x2e0   : > { %1324 = vmatpush.msra.mxu0 %v945_v2  ;;  %1353 = vmatpush.msra.mxu1 %v1041_v3 }
 0x2e1   : > { %1382 = vmatpush.msra.mxu2 %v946_v4  ;;  %1411 = vmatpush.msra.mxu3 %v1042_v5 }
 0x2e2   : > { %1325 = vmatpush.msra.mxu0 %v939_v6  ;;  %1354 = vmatpush.msra.mxu1 %v1035_v16 }
 0x2e3   : > { %1383 = vmatpush.msra.mxu2 %v940_v20  ;;  %1412 = vmatpush.msra.mxu3 %v1036_v35 }
 0x2e4   : > { %1110 = vmatmul.f32.gmra.mxu0 %v6292_v28  ;;  %1139 = vmatmul.f32.gmra.mxu1 %v6295_v29 }
 0x2e5   : > { %1168 = vmatmul.f32.gmra.mxu2 %v6292_v28  ;;  %1197 = vmatmul.f32.gmra.mxu3 %v6295_v29 }
 0x2e6   : > { %1326 = vmatpush.msra.mxu0 %v933_v7  ;;  %1355 = vmatpush.msra.mxu1 %v1029_v8 }
 0x2e7   : > { %1384 = vmatpush.msra.mxu2 %v934_v52  ;;  %1413 = vmatpush.msra.mxu3 %v1030_v9 }
 0x2e8   : > { %1327 = vmatpush.msra.mxu0 %v927_v10  ;;  %1356 = vmatpush.msra.mxu1 %v1023_v11 }
 0x2e9   : > { %1385 = vmatpush.msra.mxu2 %v928_v12  ;;  %1414 = vmatpush.msra.mxu3 %v1024_v13 }
 0x2ea   : > { %1328 = vmatpush.msra.mxu0 %v921_v14  ;;  %1357 = vmatpush.msra.mxu1 %v1017_v15 }
 0x2eb   : > { %1386 = vmatpush.msra.mxu2 %v922_v17  ;;  %1415 = vmatpush.msra.mxu3 %v1018_v18 }
 0x2ec   : > { %1217 = vmatmul.f32.vlgmr.msrb.gmra.mxu0 %v6193_v63  ;;  %1246 = vmatmul.f32.vlgmr.msrb.gmra.mxu1 %v6196_v0 }
 0x2ed   : > { %1275 = vmatmul.f32.vlgmr.msrb.gmra.mxu2 %v6193_v63  ;;  %1304 = vmatmul.f32.vlgmr.msrb.gmra.mxu3 %v6196_v0 }
 0x2ee   : > { %1329 = vmatpush.msra.mxu0 %v915_v19  ;;  %1358 = vmatpush.msra.mxu1 %v1011_v21 }
 0x2ef   : > { %1387 = vmatpush.msra.mxu2 %v916_v57  ;;  %1416 = vmatpush.msra.mxu3 %v1012_v47 }
 0x2f0   : > { %1330 = vmatpush.msra.mxu0 %v909_v58  ;;  %1359 = vmatpush.msra.mxu1 %v1005_v22 }
 0x2f1   : > { %1388 = vmatpush.msra.mxu2 %v910_v41  ;;  %1417 = vmatpush.msra.mxu3 %v1006_v53 }
 0x2f2   : > { %1331 = vmatpush.msra.mxu0 %v903_v26  ;;  %1360 = vmatpush.msra.mxu1 %v999_v42 }
 0x2f3   : > { %1389 = vmatpush.msra.mxu2 %v904_v27  ;;  %1418 = vmatpush.msra.mxu3 %v1000_v30 }
 0x2f4   : > { %1220 = vmatmul.f32.gmra.mxu0 %v6240_v24  ;;  %1249 = vmatmul.f32.gmra.mxu1 %v6243_v25 }
 0x2f5   : > { %1278 = vmatmul.f32.gmra.mxu2 %v6240_v24  ;;  %1307 = vmatmul.f32.gmra.mxu3 %v6243_v25 }
 0x2f6   : > { %1332 = vmatpush.msra.mxu0 %v897_v31  ;;  %1361 = vmatpush.msra.mxu1 %v993_v32 }
 0x2f7   : > { %1390 = vmatpush.msra.mxu2 %v898_v33  ;;  %1419 = vmatpush.msra.mxu3 %v994_v34 }
 0x2fc   : > { %1223 = vmatmul.f32.gmra.mxu0 %v6266_v48  ;;  %1252 = vmatmul.f32.gmra.mxu1 %v6269_v23 }
 0x2fd   : > { %1281 = vmatmul.f32.gmra.mxu2 %v6266_v48  ;;  %1310 = vmatmul.f32.gmra.mxu3 %v6269_v23 }
 0x304   : > { %1226 = vmatmul.f32.gmra.mxu0 %v6292_v28  ;;  %1255 = vmatmul.f32.gmra.mxu1 %v6295_v29 }
 0x305   : > { %1284 = vmatmul.f32.gmra.mxu2 %v6292_v28  ;;  %1313 = vmatmul.f32.gmra.mxu3 %v6295_v29 }
 0x30c   : > { %1333 = vmatmul.f32.vlgmr.msra.gmra.mxu0 %v6193_v63  ;;  %1362 = vmatmul.f32.vlgmr.msra.gmra.mxu1 %v6196_v0 }
 0x30d   : > { %1391 = vmatmul.f32.vlgmr.msra.gmra.mxu2 %v6193_v63  ;;  %1420 = vmatmul.f32.vlgmr.msra.gmra.mxu3 %v6196_v0 }
 0x314   : > { %1336 = vmatmul.f32.gmra.mxu0 %v6240_v24  ;;  %1365 = vmatmul.f32.gmra.mxu1 %v6243_v25 }
 0x315   : > { %1394 = vmatmul.f32.gmra.mxu2 %v6240_v24  ;;  %1423 = vmatmul.f32.gmra.mxu3 %v6243_v25 }
 0x31c   : > { %1339 = vmatmul.f32.gmra.mxu0 %v6266_v48  ;;  %1368 = vmatmul.f32.gmra.mxu1 %v6269_v23 }
 0x31d   : > { %1397 = vmatmul.f32.gmra.mxu2 %v6266_v48  ;;  %1426 = vmatmul.f32.gmra.mxu3 %v6269_v23 }
 0x324   : > { %1342 = vmatmul.f32.gmra.mxu0 %v6292_v28  ;;  %1371 = vmatmul.f32.gmra.mxu1 %v6295_v29 }
 0x325   : > { %1400 = vmatmul.f32.gmra.mxu2 %v6292_v28  ;;  %1429 = vmatmul.f32.gmra.mxu3 %v6295_v29 }
 0x349   : > { %v1102_v63 = vpop.f32.mrf.mxu0  ;;  %v1131_v0 = vpop.f32.mrf.mxu1 }
 0x34a   : > { %v6366_v24 = vadd.f32 %v1131_v0, %v1102_v63 }
 0x34c   : > { %1433 = vmax.xlane.f32.xlu0 %v6366_v24 }
 0x350   : > { %v6369_v25 = vpop.f32.mrf.mxu2  ;;  %v6371_v37 = vpop.f32.mrf.mxu3 }
 0x351   : > { %v1105_v38 = vpop.f32.mrf.mxu0  ;;  %v1134_v39 = vpop.f32.mrf.mxu1 }
 0x352   : > { %v6373_v40 = vadd.f32 %v1134_v39, %v1105_v38 }
 0x354   : > { %v1436_v45 = vsel %vm1435_vm7, %v6373_v40, -inf }
 0x355   : > { %1437 = vmax.xlane.f32.xlu1 %v1436_v45 }
 0x358   : > { %v6377_v46 = vpop.f32.mrf.mxu2  ;;  %v6379_v48 = vpop.f32.mrf.mxu3 }
 0x359   : > { %v6381_v23 = vpop.f32.mrf.mxu0  ;;  %v6383_v49 = vpop.f32.mrf.mxu1 }
 0x360   : > { %v6385_v50 = vpop.f32.mrf.mxu2  ;;  %v6387_v51 = vpop.f32.mrf.mxu3 }
 0x361   : > { %v6389_v54 = vpop.f32.mrf.mxu0  ;;  %v6391_v43 = vpop.f32.mrf.mxu1 }
 0x368   : > { %v6393_v44 = vpop.f32.mrf.mxu2  ;;  %v6395_v55 = vpop.f32.mrf.mxu3 }
 0x369   : > { %v1218_v56 = vpop.f32.mrf.mxu0  ;;  %v1247_v59 = vpop.f32.mrf.mxu1 }
 0x36a   : > { %v1248_v3 = vadd.f32 %v1247_v59, %v1218_v56 }
 0x370   : > { %v1276_v60 = vpop.f32.mrf.mxu2  ;;  %v1305_v61 = vpop.f32.mrf.mxu3 }
 0x371   : > { %v1221_v62 = vpop.f32.mrf.mxu0  ;;  %v1250_v1 = vpop.f32.mrf.mxu1  ;;  %v6410_v19 = vadd.f32 %v1305_v61, %v1276_v60 }
 0x372   : > { %v6397_v2 = vadd.f32 %v1250_v1, %v1221_v62 }
 0x374   : > { %v1482_v4 = vsel %vm1435_vm7, %v6397_v2, -inf  ;;  %v2027_v34 = vsel %vm1953_vm8, %v6397_v2, -inf }
 0x375   : > { %v1483_v28 = vmax.f32 %v1248_v3, %v1482_v4 }
 0x377   : > { %v1484_v29 = vrot.slane %v1483_v28, 4 }
 0x378   : > { %v1279_v5 = vpop.f32.mrf.mxu2  ;;  %v1308_v6 = vpop.f32.mrf.mxu3 }
 0x379   : > { %v1485_v16 = vmax.f32 %v1483_v28, %v1484_v29  ;;  %v1224_v20 = vpop.f32.mrf.mxu0  ;;  %v1253_v35 = vpop.f32.mrf.mxu1  ;;  %v6401_v9 = vadd.f32 %v1308_v6, %v1279_v5 }
 0x37a   : > { %v6421_v30 = vadd.f32 %v1253_v35, %v1224_v20 }
 0x37b   : > { %v1486_v7 = vrot.slane %v1485_v16, 2  ;;  %v1742_v18 = vsel %vm1435_vm7, %v6401_v9, -inf }
 0x37c   : > { %v1743_v47 = vmax.f32 %v6410_v19, %v1742_v18  ;;  %v2029_v45 = vmax.f32 %v2027_v34, %v6421_v30 }
 0x37d   : > { %v1487_v8 = vmax.f32 %v1485_v16, %v1486_v7 }
 0x37e   : > { %v1744_v26 = vrot.slane %v1743_v47, 4 }
 0x37f   : > { %v1488_v52 = vrot.slane %v1487_v8, 1 }
 0x380   : > { %v6403_v10 = vpop.f32.mrf.mxu2  ;;  %v6405_v11 = vpop.f32.mrf.mxu3  ;;  %v1745_v32 = vmax.f32 %v1743_v47, %v1744_v26 }
 0x381   : > { %v1489_v12 = vmax.f32 %v1487_v8, %v1488_v52  ;;  %v1227_v13 = vpop.f32.mrf.mxu0  ;;  %v1256_v14 = vpop.f32.mrf.mxu1 }
 0x382   : > { %v6417_v42 = vadd.f32 %v1256_v14, %v1227_v13  ;;  %v1746_v62 = vrot.slane %v1745_v32, 2 }
 0x383   : > { %v1491_v15 = vsub.f32 %v6397_v2, %v1489_v12  ;;  %v1490_v17 = vsub.f32 %v1248_v3, %v1489_v12 }
 0x384   : > { %v2028_v63 = vsel %vm770_vm9, %v6417_v42, -inf  ;;  %v1747_v29 = vmax.f32 %v1745_v32, %v1746_v62 }
 0x385   : > { %v1494_v21 = vmul.f32 1.442695, %v1491_v15  ;;  %v1492_v57 = vmul.f32 1.442695, %v1490_v17  ;;  %v2030_v1 = vmax.f32 %v2029_v45, %v2028_v63 }
 0x386   : > { %v1748_v7 = vrot.slane %v1747_v29, 1 }
 0x387   : > { %5201 = vpow2.f32 %v1492_v57  ;;  %v2031_v5 = vrot.slane %v2030_v1, 4 }
 0x388   : > { %v6413_v58 = vpop.f32.mrf.mxu2  ;;  %v6415_v22 = vpop.f32.mrf.mxu3  ;;  %5203 = vpow2.f32 %v1494_v21  ;;  %v1749_v14 = vmax.f32 %v1747_v29, %v1748_v7 }
 0x389   : > { %v1334_v41 = vpop.f32.mrf.mxu0  ;;  %v1363_v53 = vpop.f32.mrf.mxu1  ;;  %v2032_v8 = vmax.f32 %v2030_v1, %v2031_v5 }
 0x38a   : > { %v1364_v3 = vadd.f32 %v1363_v53, %v1334_v41  ;;  %v1751_v17 = vsub.f32 %v6401_v9, %v1749_v14  ;;  %v1750_v47 = vsub.f32 %v6410_v19, %v1749_v14 }
 0x38b   : > { %v2033_v15 = vrot.slane %v2032_v8, 2 }
 0x38c   : > { %v1754_v41 = vmul.f32 1.442695, %v1751_v17  ;;  %v1752_v63 = vmul.f32 1.442695, %v1750_v47 }
 0x38d   : > { %v6419_v27 = vpop.eup %5201  ;;  %v2034_v18 = vmax.f32 %v2032_v8, %v2033_v15 }
 0x38e   : > { %v6423_v31 = vpop.eup %5203 }
 0x38f   : > { %v1496_v33 = vsel %vm1435_vm7, %v6423_v31, 0.0  ;;  %v2035_v53 = vrot.slane %v2034_v18, 1 }
 0x390   : > { %v1392_v0 = vpop.f32.mrf.mxu2  ;;  %v1421_v38 = vpop.f32.mrf.mxu3  ;;  %v1497_v39 = vadd.f32 %v6419_v27, %v1496_v33 }
 0x391   : > { %v1337_v56 = vpop.f32.mrf.mxu0  ;;  %v1366_v59 = vpop.f32.mrf.mxu1  ;;  %v1422_v52 = vadd.f32 %v1421_v38, %v1392_v0  ;;  %v2036_v0 = vmax.f32 %v2034_v18, %v2035_v53 }
 0x392   : > { %v6433_v60 = vadd.f32 %v1366_v59, %v1337_v56  ;;  %v1498_v61 = vrot.slane %v1497_v39, 4 }
 0x393   : > { %v2039_v56 = vsub.f32 %v6417_v42, %v2036_v0  ;;  %v2038_v59 = vsub.f32 %v6421_v30, %v2036_v0  ;;  %v2037_v1 = vsub.f32 %v6397_v2, %v2036_v0 }
 0x394   : > { %4969 = vmatpush.msk.msrb.mxu0 %vm1435_vm7, %v6433_v60  ;;  %v1499_v4 = vadd.f32 %v1498_v61, %v1497_v39 }
 0x395   : > { %v2042_v29 = vmul.f32 1.442695, %v2038_v59  ;;  %v2040_v5 = vmul.f32 1.442695, %v2037_v1 }
 0x396   : > { %1619 = vmatpush.msrb.mxu0 %v1364_v3  ;;  %v1500_v28 = vrot.slane %v1499_v4, 2  ;;  %v2044_v3 = vmul.f32 1.442695, %v2039_v56 }
 0x398   : > { %v1395_v6 = vpop.f32.mrf.mxu2  ;;  %v1424_v16 = vpop.f32.mrf.mxu3  ;;  %v1501_v20 = vadd.f32 %v1500_v28, %v1499_v4 }
 0x399   : > { %v6437_v35 = vadd.f32 %v1424_v16, %v1395_v6 }
 0x39a   : > { %v1502_v12 = vrot.slane %v1501_v20, 1 }
 0x39b   : > { %8209 = vst [vmem:[#allocation21_spill] sm:$0xff] %v6437_v35  ;;  %4986 = vmatpush.msk.msrb.mxu2 %vm1435_vm7, %v6437_v35 }
 0x39c   : > { %v1503_v13 = vadd.f32 %v1502_v12, %v1501_v20 }
 0x39d   : > { %1878 = vmatpush.msrb.mxu2 %v1422_v52 }
 0x39e   : > { %5205 = vrcp.f32 %v1503_v13  ;;  %v1515_v32 = vand.u32 2147483648, %v1503_v13  ;;  %v1513_v34 = vand.u32 2147483647, %v1503_v13  ;;  %vm1509_vm11 = vweird.f32 %v1503_v13 }
 0x39f   : > { %5207 = vpow2.f32 %v1754_v41 }
 0x3a0   : > { %v1516_v39 = vor.u32 1.1754944e-38, %v1515_v32  ;;  %vm1514_vm13 = vcmp.eq.f32.partialorder %v1513_v34, 8.507059e+37  ;;  %5209 = vpow2.f32 %v1752_v63 }
 0x3a1   : > { %5211 = vpow2.f32 %v2044_v3 }
 0x3a2   : > { %5213 = vpow2.f32 %v2042_v29 }
 0x3a3   : > { %5215 = vpow2.f32 %v2040_v5 }
 0x3a4   : > { %v5206_v21 = vpop.eup %5205 }
 0x3a5   : > { %v1505_v57 = vmul.f32 %v5206_v21, %v1503_v13  ;;  %vm1510_vm10 = vweird.f32 %v5206_v21  ;;  %v6446_v62 = vpop.eup %5207 }
 0x3a6   : > { %vm1511_vm12 = vmor %vm1509_vm11, %vm1510_vm10  ;;  %v6449_v4 = vpop.eup %5209  ;;  %v1756_v28 = vsel %vm1435_vm7, %v6446_v62, 0.0  ;;  %vm1552_vm10 = vcmask 113664  }
 0x3a7   : > { %v1506_v26 = vsub.f32 1.0, %v1505_v57  ;;  %v1757_v42 = vadd.f32 %v6449_v4, %v1756_v28  ;;  %v6455_v6 = vpop.eup %5211 }
 0x3a8   : > { %v6457_v2 = vpop.eup %5213  ;;  %v2053_v52 = vrot.slane %v6455_v6, 6 }
 0x3a9   : > { %v1507_v33 = vmul.f32 %v5206_v21, %v1506_v26  ;;  %v6460_v8 = vpop.eup %5215  ;;  %v2051_v12 = vrot.slane %v6457_v2, 6 }
 0x3aa   : > { %v2050_v14 = vrot.slane %v6460_v8, 6 }
 0x3ab   : > { %v1508_v38 = vadd.f32 %v5206_v21, %v1507_v33  ;;  %v2054_v15 = vsel %vm2049_vm14, %v2051_v12, %v2053_v52 }
 0x3ad   : > { %v1512_v45 = vsel %vm1511_vm12, %v5206_v21, %v1508_v38  ;;  %v2052_v21 = vsel %vm2049_vm14, %v2050_v14, %v2051_v12 }
 0x3ae   : > { %v1517_v19 = vsel %vm1514_vm13, %v1516_v39, %v1512_v45 }
 0x3af   : > { %v1518_v61 = vmul.f32 %v6419_v27, %v1517_v19  ;;  %v1519_v30 = vmul.f32 %v6423_v31, %v1517_v19  ;;  %v1758_v27 = vrot.slane %v1757_v42, 4 }
 0x3b1   : > { %1520 = vxpose.xlu2.b32.start [1/2] (short) %v1518_v61, 128  ;;  %v1759_v20 = vadd.f32 %v1758_v27, %v1757_v42 }
 0x3b3   : > { %v1760_v31 = vrot.slane %v1759_v20, 2 }
 0x3b5   : > { %v1761_v17 = vadd.f32 %v1760_v31, %v1759_v20 }
 0x3b7   : > { %v1762_v53 = vrot.slane %v1761_v17, 1 }
 0x3b9   : > { %1521 = vxpose.xlu2.b32.end [2/2] (short) %v1519_v30, 128  ;;  %v1763_v32 = vadd.f32 %v1762_v53, %v1761_v17 }
 0x3bb   : > { %v1775_v28 = vand.u32 2147483648, %v1763_v32  ;;  %vm1769_vm0 = vweird.f32 %v1763_v32  ;;  %v1773_v29 = vand.u32 2147483647, %v1763_v32 }
 0x3bd   : > { %v1776_v30 = vor.u32 1.1754944e-38, %v1775_v28  ;;  %vm1774_vm2 = vcmp.eq.f32.partialorder %v1773_v29, 8.507059e+37 }
 0x3bf   : > { %v1434_v16 = vpop.xlane.xlu0 %1433 }
 0x3c0   : > { %v1439_v7 = vsub.f32 %v6366_v24, %v1434_v16  ;;  %v2057_v24 = vsel %vm1435_vm7, %v2054_v15, 0.0 }
 0x3c1   : > { %v2058_v26 = vadd.f32 %v2057_v24, %v2052_v21 }
 0x3c2   : > { %v1441_v13 = vmul.f32 1.442695, %v1439_v7 }
 0x3c3   : > { %v2059_v33 = vrot.slane %v2058_v26, 4 }
 0x3c4   : > { %5217 = vpow2.f32 %v1441_v13 }
 0x3c5   : > { %v2060_v63 = vadd.f32 %v2059_v33, %v2058_v26 }
 0x3c7   : > { %v2061_v38 = vrot.slane %v2060_v63, 2 }
 0x3c8   : > { %v1438_v18 = vpop.xlane.xlu1 %1437 }
 0x3c9   : > { %v1440_v57 = vsub.f32 %v6373_v40, %v1438_v18  ;;  %v2062_v45 = vadd.f32 %v2061_v38, %v2060_v63 }
 0x3ca   : > { %v6469_v47 = vpop.eup %5217 }
 0x3cb   : > { %v1443_v41 = vmul.f32 1.442695, %v1440_v57  ;;  %1445 = vadd.xlane.f32.xlu0 %v6469_v47  ;;  %v2063_v19 = vrot.slane %v2062_v45, 1 }
 0x3cd   : > { %5219 = vpow2.f32 %v1443_v41  ;;  %v2064_v61 = vadd.f32 %v2063_v19, %v2062_v45 }
 0x3ce   : > { %5221 = vrcp.f32 %v1763_v32 }
 0x3cf   : > { %5223 = vrcp.f32 %v2064_v61  ;;  %v2076_v31 = vand.u32 2147483648, %v2064_v61  ;;  %vm2070_vm4 = vweird.f32 %v2064_v61  ;;  %v2074_v14 = vand.u32 2147483647, %v2064_v61 }
 0x3d1   : > { %v2077_v17 = vor.u32 1.1754944e-38, %v2076_v31  ;;  %vm2075_vm6 = vcmp.eq.f32.partialorder %v2074_v14, 8.507059e+37 }
 0x3d3   : > { %v6472_v34 = vpop.eup %5219 }
 0x3d4   : > { %v1447_v0 = vsel %vm1435_vm7, %v6472_v34, 0.0  ;;  %v5222_v39 = vpop.eup %5221 }
 0x3d5   : > { %1448 = vadd.xlane.f32.xlu1 %v1447_v0  ;;  %v1765_v56 = vmul.f32 %v5222_v39, %v1763_v32  ;;  %vm1770_vm15 = vweird.f32 %v5222_v39  ;;  %v5224_v5 = vpop.eup %5223 }
 0x3d6   : > { %vm1771_vm1 = vmor %vm1769_vm0, %vm1770_vm15  ;;  %v2066_v16 = vmul.f32 %v5224_v5, %v2064_v61  ;;  %vm2071_vm3 = vweird.f32 %v5224_v5 }
 0x3d7   : > { %v1766_v59 = vsub.f32 1.0, %v1765_v56  ;;  %vm2072_vm5 = vmor %vm2070_vm4, %vm2071_vm3 }
 0x3d8   : > { %v2067_v7 = vsub.f32 1.0, %v2066_v16 }
 0x3d9   : > { %v1767_v1 = vmul.f32 %v5222_v39, %v1766_v59  ;;  %v6497_v59 = vadd.f32 %v6371_v37, %v6369_v25  ;;  %v6511_v25 = vadd.f32 %v6391_v43, %v6389_v54  ;;  %v6521_v54 = vpop.f32.mrf.mxu0 }
 0x3da   : > { %v2068_v52 = vmul.f32 %v5224_v5, %v2067_v7 }
 0x3db   : > { %v1768_v3 = vadd.f32 %v5222_v39, %v1767_v1  ;;  %v1959_v29 = vsel %vm770_vm9, %v6511_v25, -inf }
 0x3dc   : > { %v2069_v13 = vadd.f32 %v5224_v5, %v2068_v52 }
 0x3dd   : > { %v1772_v42 = vsel %vm1771_vm1, %v5222_v39, %v1768_v3  ;;  %v6504_v3 = vadd.f32 %v6383_v49, %v6381_v23 }
 0x3de   : > { %v1777_v27 = vsel %vm1774_vm2, %v1776_v30, %v1772_v42  ;;  %v2073_v15 = vsel %vm2072_vm5, %v5224_v5, %v2069_v13 }
 0x3df   : > { %v1778_v20 = vmul.f32 %v6449_v4, %v1777_v27  ;;  %v1779_v12 = vmul.f32 %v6446_v62, %v1777_v27  ;;  %v2078_v18 = vsel %vm2075_vm6, %v2077_v17, %v2073_v15  ;;  %v6543_v17 = vadd.f32 %v6379_v48, %v6377_v46 }
 0x3e0   : > { %v2079_v21 = vmul.f32 %v6460_v8, %v2078_v18  ;;  %v2080_v4 = vmul.f32 %v6457_v2, %v2078_v18  ;;  %v2081_v62 = vmul.f32 %v6455_v6, %v2078_v18  ;;  %v1954_v46 = vsel %vm1953_vm8, %v6373_v40, -inf }
 0x3e2   : > { %v2085_v24 = vrot.slane %v2079_v21, 6  ;;  %v2086_v57 = vrot.slane %v2080_v4, 6  ;;  %v2088_v53 = vrot.slane %v2081_v62, 6 }
 0x3e4   : > { %v2087_v41 = vsel %vm2049_vm14, %v2085_v24, %v2086_v57  ;;  %v2089_v26 = vsel %vm2049_vm14, %v2086_v57, %v2088_v53  ;;  %v1696_v24 = vsel %vm1435_vm7, %v6543_v17, -inf }
 0x3f4   : > { %1780 = vxpose.xlu0.b32.start [1/2] (short) %v1778_v20, 128  ;;  %v6527_v20 = vpop.f32.mrf.mxu0 }
 0x3fc   : > { %1781 = vxpose.xlu0.b32.end [2/2] (short) %v1779_v12, 128 }
 0x40f   : > { %2092 = vxpose.xlu1.b32.start [1/2] (short) %v2087_v41, 128 }
 0x417   : > { %2093 = vxpose.xlu1.b32.end [2/2] (short) %v2089_v26, 128 }
 0x43e   : > { %v6492_v45 = vpop.xlane.xlu0 %1445 }
 0x43f   : > { %vm1455_vm12 = vweird.f32 %v6492_v45 }
 0x448   : > { %v6518_v49 = vpop.xlane.xlu1 %1448 }
 0x449   : > { %vm1470_vm1 = vweird.f32 %v6518_v49 }
 0x44a   : > { %v1536_v32 = vpop.trf.xlu2 }
 0x44b   : > { %4970 = vmatmul.msk.f32.vlgmr.msrb.gmra.mxu0 %vm1552_vm10, %v1536_v32 }
 0x452   : > { %v1537_v33 = vpop.trf.xlu2 }
 0x453   : > { %4971 = vmatmul.msk.f32.gmra.mxu0 %vm1552_vm10, %v1537_v33 }
 0x45a   : > { %v1538_v8 = vpop.trf.xlu2 }
 0x45b   : > { %4972 = vmatmul.msk.f32.gmra.mxu0 %vm1552_vm10, %v1538_v8 }
 0x462   : > { %v1539_v2 = vpop.trf.xlu2 }
 0x463   : > { %4973 = vmatmul.msk.f32.gmra.mxu0 %vm1552_vm10, %v1539_v2 }
 0x46a   : > { %v1540_v63 = vpop.trf.xlu2 }
 0x46b   : > { %4974 = vmatmul.msk.f32.gmra.mxu0 %vm1552_vm10, %v1540_v63 }
 0x472   : > { %v1541_v6 = vpop.trf.xlu2 }
 0x473   : > { %4975 = vmatmul.msk.f32.gmra.mxu0 %vm1552_vm10, %v1541_v6 }
 0x47a   : > { %v1542_v0 = vpop.trf.xlu2 }
 0x47b   : > { %4976 = vmatmul.msk.f32.gmra.mxu0 %vm1552_vm10, %v1542_v0 }
 0x482   : > { %v1543_v38 = vpop.trf.xlu2 }
 0x483   : > { %4977 = vmatmul.msk.f32.gmra.mxu0 %vm1552_vm10, %v1543_v38 }
 0x48a   : > { %v1544_v39 = vpop.trf.xlu2 }
 0x48b   : > { %4978 = vmatmul.msk.f32.gmra.mxu0 %vm1552_vm10, %v1544_v39 }
 0x492   : > { %v1545_v56 = vpop.trf.xlu2 }
 0x493   : > { %4979 = vmatmul.msk.f32.gmra.mxu0 %vm1552_vm10, %v1545_v56 }
 0x498   : > { %v1796_v19 = vpop.trf.xlu0 }
 0x499   : > { %4987 = vmatmul.msk.f32.vlgmr.msrb.gmra.mxu2 %vm1552_vm10, %v1796_v19  ;;  %v6580_v19 = vpop.f32.mrf.mxu2 }
 0x49a   : > { %1694 = vmax.xlane.f32.xlu2 %v6497_v59  ;;  %v1546_v61 = vpop.trf.xlu2  ;;  %8210 = vst [vmem:[#allocation22_spill] sm:$0xff] %v6580_v19 }
 0x49b   : > { %4980 = vmatmul.msk.f32.gmra.mxu0 %vm1552_vm10, %v1546_v61 }
 0x4a0   : > { %v1797_v1 = vpop.trf.xlu0 }
 0x4a1   : > { %4988 = vmatmul.msk.f32.gmra.mxu2 %vm1552_vm10, %v1797_v1 }
 0x4a2   : > { %1957 = vmax.xlane.f32.xlu2 %v6504_v3  ;;  %v1547_v28 = vpop.trf.xlu2 }
 0x4a3   : > { %4981 = vmatmul.msk.f32.gmra.mxu0 %vm1552_vm10, %v1547_v28 }
 0x4a8   : > { %v1798_v37 = vpop.trf.xlu0 }
 0x4a9   : > { %4989 = vmatmul.msk.f32.gmra.mxu2 %vm1552_vm10, %v1798_v37 }
 0x4aa   : > { %v1548_v42 = vpop.trf.xlu2  ;;  %1960 = vmax.xlane.f32.xlu2 %v1959_v29 }
 0x4ab   : > { %4982 = vmatmul.msk.f32.gmra.mxu0 %vm1552_vm10, %v1548_v42 }
 0x4b0   : > { %v1799_v23 = vpop.trf.xlu0 }
 0x4b1   : > { %4990 = vmatmul.msk.f32.gmra.mxu2 %vm1552_vm10, %v1799_v23  ;;  %v6588_v23 = vpop.f32.mrf.mxu2 }
 0x4b2   : > { %v1549_v5 = vpop.trf.xlu2  ;;  %8211 = vst [vmem:[#allocation23_spill] sm:$0xff] %v6588_v23 }
 0x4b3   : > { %4983 = vmatmul.msk.f32.gmra.mxu0 %vm1552_vm10, %v1549_v5  ;;  %v6524_v30 = vpop.trf.xlu1 }
 0x4b8   : > { %v1800_v43 = vpop.trf.xlu0 }
 0x4b9   : > { %4991 = vmatmul.msk.f32.gmra.mxu2 %vm1552_vm10, %v1800_v43 }
 0x4ba   : > { %v1550_v27 = vpop.trf.xlu2 }
 0x4bb   : > { %4984 = vmatmul.msk.f32.gmra.mxu0 %vm1552_vm10, %v1550_v27  ;;  %v6531_v52 = vpop.trf.xlu1 }
 0x4c0   : > { %v1801_v16 = vpop.trf.xlu0 }
 0x4c1   : > { %4992 = vmatmul.msk.f32.gmra.mxu2 %vm1552_vm10, %v1801_v16 }
 0x4c2   : > { %v1551_v7 = vpop.trf.xlu2 }
 0x4c3   : > { %4985 = vmatmul.msk.f32.gmra.mxu0 %vm1552_vm10, %v1551_v7  ;;  %v6536_v31 = vpop.trf.xlu1 }
 0x4c8   : > { %v1802_v12 = vpop.trf.xlu0  ;;  %v6533_v13 = vpop.f32.mrf.mxu0 }
 0x4c9   : > { %4993 = vmatmul.msk.f32.gmra.mxu2 %vm1552_vm10, %v1802_v12 }
 0x4cb   : > { %v6545_v21 = vpop.trf.xlu1 }
 0x4d0   : > { %v1803_v14 = vpop.trf.xlu0  ;;  %v6538_v15 = vpop.f32.mrf.mxu0 }
 0x4d1   : > { %4994 = vmatmul.msk.f32.gmra.mxu2 %vm1552_vm10, %v1803_v14  ;;  %v1315_v14 = vadd.f32 %v6415_v22, %v6413_v58 }
 0x4d3   : > { %v6555_v62 = vpop.trf.xlu1 }
 0x4d8   : > { %v1804_v18 = vpop.trf.xlu0  ;;  %v6547_v4 = vpop.f32.mrf.mxu0 }
 0x4d9   : > { %4995 = vmatmul.msk.f32.gmra.mxu2 %vm1552_vm10, %v1804_v18  ;;  %v1312_v18 = vadd.f32 %v6405_v11, %v6403_v10  ;;  %v2291_v11 = vsel %vm1953_vm8, %v6543_v17, -inf }
 0x4db   : > { %v6562_v26 = vpop.trf.xlu1 }
 0x4dd   : > { %1697 = vmax.xlane.f32.xlu0 %v1696_v24 }
 0x4e0   : > { %v1805_v57 = vpop.trf.xlu0  ;;  %v6552_v41 = vpop.f32.mrf.mxu0 }
 0x4e1   : > { %4996 = vmatmul.msk.f32.gmra.mxu2 %vm1552_vm10, %v1805_v57 }
 0x4e3   : > { %v6567_v8 = vpop.trf.xlu1 }
 0x4e7   : > { %1955 = vmax.xlane.f32.xlu1 %v1954_v46  ;;  %v2365_v46 = vsel %vm770_vm9, %v1315_v14, -inf }
 0x4e8   : > { %v1806_v48 = vpop.trf.xlu0  ;;  %v6559_v53 = vpop.f32.mrf.mxu0 }
 0x4e9   : > { %4997 = vmatmul.msk.f32.gmra.mxu2 %vm1552_vm10, %v1806_v48 }
 0x4eb   : > { %v6572_v0 = vpop.trf.xlu1 }
 0x4f0   : > { %v1807_v32 = vpop.trf.xlu0  ;;  %v6564_v33 = vpop.f32.mrf.mxu0 }
 0x4f1   : > { %4998 = vmatmul.msk.f32.gmra.mxu2 %vm1552_vm10, %v1807_v32 }
 0x4f3   : > { %v6582_v61 = vpop.trf.xlu1 }
 0x4f8   : > { %v1808_v2 = vpop.trf.xlu0  ;;  %v6569_v63 = vpop.f32.mrf.mxu0 }
 0x4f9   : > { %4999 = vmatmul.msk.f32.gmra.mxu2 %vm1552_vm10, %v1808_v2 }
 0x4fb   : > { %v6590_v5 = vpop.trf.xlu1 }
 0x500   : > { %v1809_v6 = vpop.trf.xlu0  ;;  %v6574_v38 = vpop.f32.mrf.mxu0 }
 0x501   : > { %5000 = vmatmul.msk.f32.gmra.mxu2 %vm1552_vm10, %v1809_v6 }
 0x503   : > { %v6602_v24 = vpop.trf.xlu1 }
 0x508   : > { %v1810_v39 = vpop.trf.xlu0  ;;  %v6577_v56 = vpop.f32.mrf.mxu0 }
 0x509   : > { %5001 = vmatmul.msk.f32.gmra.mxu2 %vm1552_vm10, %v1810_v39 }
 0x50b   : > { %v6612_v22 = vpop.trf.xlu1 }
 0x50d   : > { %v1695_v1 = vpop.xlane.xlu2 %1694 }
 0x50e   : > { %v1699_v28 = vsub.f32 %v6497_v59, %v1695_v1 }
 0x510   : > { %v1811_v37 = vpop.trf.xlu0  ;;  %v1701_v29 = vmul.f32 1.442695, %v1699_v28  ;;  %v6585_v42 = vpop.f32.mrf.mxu0  ;;  %v6620_v28 = vadd.f32 %v6395_v55, %v6393_v44 }
 0x511   : > { %5002 = vmatmul.msk.f32.gmra.mxu2 %vm1552_vm10, %v1811_v37 }
 0x512   : > { %5225 = vpow2.f32 %v1701_v29 }
 0x515   : > { %v1958_v43 = vpop.xlane.xlu2 %1957 }
 0x516   : > { %v1963_v27 = vsub.f32 %v6504_v3, %v1958_v43  ;;  %v2364_v3 = vsel %vm1953_vm8, %v6401_v9, -inf  ;;  %v2296_v43 = vsel %vm770_vm9, %v6620_v28, -inf }
 0x517   : > { %v2366_v32 = vmax.f32 %v2364_v3, %v1312_v18 }
 0x518   : > { %v6593_v16 = vpop.eup %5225  ;;  %v1967_v7 = vmul.f32 1.442695, %v1963_v27  ;;  %v1651_v12 = vpop.f32.mrf.mxu0 }
 0x519   : > { %1705 = vadd.xlane.f32.xlu2 %v6593_v16  ;;  %v2367_v2 = vmax.f32 %v2366_v32, %v2365_v46  ;;  %v6624_v27 = vpop.trf.xlu1 }
 0x51a   : > { %5227 = vpow2.f32 %v1967_v7 }
 0x51b   : > { %v2368_v58 = vrot.slane %v2367_v2, 4  ;;  %5229 = vrcp.f32 %v6492_v45 }
 0x51c   : > { %v6596_v59 = vpop.f32.mrf.mxu2  ;;  %5231 = vrcp.f32 %v6518_v49 }
 0x51d   : > { %v2369_v39 = vmax.f32 %v2367_v2, %v2368_v58 }
 0x51f   : > { %v2370_v37 = vrot.slane %v2369_v39, 2 }
 0x520   : > { %v6604_v57 = vpop.eup %5227  ;;  %v1654_v48 = vpop.f32.mrf.mxu0 }
 0x521   : > { %8212 = vst [vmem:[#allocation24_spill] sm:$0xff] %v6604_v57  ;;  %1974 = vadd.xlane.f32.xlu2 %v6604_v57  ;;  %v2371_v7 = vmax.f32 %v2369_v39, %v2370_v37  ;;  %v6631_v44 = vpop.trf.xlu1  ;;  %v5230_v35 = vpop.eup %5229 }
 0x522   : > { %vm1456_vm11 = vweird.f32 %v5230_v35 }
 0x523   : > { %v2372_v46 = vrot.slane %v2371_v7, 1  ;;  %vm1457_vm13 = vmor %vm1455_vm12, %vm1456_vm11 }
 0x524   : > { %v6610_v6 = vpop.f32.mrf.mxu2 }
 0x525   : > { %v2373_v2 = vmax.f32 %v2371_v7, %v2372_v46  ;;  %v1451_v46 = vmul.f32 %v5230_v35, %v6492_v45 }
 0x527   : > { %v2376_v55 = vsub.f32 %v1315_v14, %v2373_v2  ;;  %v2374_v37 = vsub.f32 %v6401_v9, %v2373_v2 }
 0x528   : > { %v1657_v10 = vpop.f32.mrf.mxu0 }
 0x529   : > { %2292 = vmax.xlane.f32.xlu2 %v2291_v11  ;;  %v2375_v11 = vsub.f32 %v1312_v18, %v2373_v2  ;;  %v6638_v19 = vpop.trf.xlu1  ;;  %v2377_v14 = vmul.f32 1.442695, %v2374_v37  ;;  %v1452_v18 = vsub.f32 1.0, %v1451_v46  ;;  %v1961_v2 = vpop.xlane.xlu2 %1960  ;;  %v1461_v46 = vand.u32 2147483648, %v6492_v45 }
 0x52a   : > { %8213 = vst [vmem:[#allocation25_spill] sm:$0xff] %v6638_v19 }
 0x52b   : > { %v2379_v7 = vmul.f32 1.442695, %v2375_v11  ;;  %v1453_v23 = vmul.f32 %v5230_v35, %v1452_v18 }
 0x52c   : > { %v6616_v1 = vpop.f32.mrf.mxu2 }
 0x530   : > { %v1660_v29 = vpop.f32.mrf.mxu0 }
 0x531   : > { %2297 = vmax.xlane.f32.xlu2 %v2296_v43  ;;  %v2381_v43 = vmul.f32 1.442695, %v2376_v55  ;;  %v1369_v55 = vpop.f32.mrf.mxu1 }
 0x533   : > { %5233 = vpow2.f32 %v2381_v43 }
 0x534   : > { %v6626_v3 = vpop.f32.mrf.mxu2  ;;  %5235 = vpow2.f32 %v2379_v7 }
 0x535   : > { %5237 = vpow2.f32 %v2377_v14 }
 0x538   : > { %v1663_v32 = vpop.f32.mrf.mxu0 }
 0x53c   : > { %v6629_v58 = vpop.f32.mrf.mxu2 }
 0x540   : > { %v1666_v36 = vpop.f32.mrf.mxu0 }
 0x541   : > { %1669 = vmatpush.msrb.mxu1 %v1666_v36  ;;  %v6640_v36 = vpop.eup %5231 }
 0x542   : > { %v1466_v9 = vmul.f32 %v6640_v36, %v6518_v49  ;;  %vm1471_vm0 = vweird.f32 %v6640_v36 }
 0x543   : > { %1670 = vmatpush.msrb.mxu1 %v1663_v32  ;;  %vm1472_vm2 = vmor %vm1470_vm1, %vm1471_vm0 }
 0x544   : > { %v6634_v39 = vpop.f32.mrf.mxu2  ;;  %v1467_v43 = vsub.f32 1.0, %v1466_v9 }
 0x545   : > { %1671 = vmatpush.msrb.mxu1 %v1660_v29  ;;  %v6646_v29 = vpop.eup %5233 }
 0x546   : > { %v2389_v7 = vrot.slane %v6646_v29, 6  ;;  %v1468_v57 = vmul.f32 %v6640_v36, %v1467_v43 }
 0x547   : > { %1672 = vmatpush.msrb.mxu1 %v1657_v10  ;;  %v6649_v10 = vpop.eup %5235 }
 0x548   : > { %v6659_v14 = vpop.eup %5237 }
 0x549   : > { %1673 = vmatpush.msrb.mxu1 %v1654_v48  ;;  %v6652_v48 = vpop.trf.xlu1  ;;  %v2386_v19 = vrot.slane %v6659_v14, 6 }
 0x54a   : > { %8214 = vst [vmem:[#allocation26_spill] sm:$0xff] %v6652_v48  ;;  %v1462_v48 = vor.u32 1.1754944e-38, %v1461_v46 }
 0x54b   : > { %1674 = vmatpush.msrb.mxu1 %v1651_v12  ;;  %v1454_v12 = vadd.f32 %v5230_v35, %v1453_v23  ;;  %v1964_v23 = vsub.f32 %v6511_v25, %v1961_v2 }
 0x54c   : > { %v6642_v32 = vpop.f32.mrf.mxu2 }
 0x54d   : > { %1675 = vmatpush.msrb.mxu1 %v6585_v42  ;;  %v2387_v42 = vrot.slane %v6649_v10, 6 }
 0x54f   : > { %1676 = vmatpush.msrb.mxu1 %v6577_v56  ;;  %v1459_v56 = vand.u32 2147483647, %v6492_v45  ;;  %v1969_v45 = vmul.f32 1.442695, %v1964_v23  ;;  %v2390_v25 = vsel %vm2049_vm14, %v2387_v42, %v2389_v7 }
 0x550   : > { %v1698_v11 = vpop.xlane.xlu0 %1697 }
 0x551   : > { %v1700_v37 = vsub.f32 %v6543_v17, %v1698_v11  ;;  %1677 = vmatpush.msrb.mxu1 %v6574_v38  ;;  %v1458_v11 = vsel %vm1457_vm13, %v5230_v35, %v1454_v12  ;;  %v1372_v38 = vpop.f32.mrf.mxu1  ;;  %vm1460_vm15 = vcmp.eq.f32.partialorder %v1459_v56, 8.507059e+37  ;;  %v1469_v12 = vadd.f32 %v6640_v36, %v1468_v57 }
 0x552   : > { %v1463_v2 = vsel %vm1460_vm15, %v1462_v48, %v1458_v11  ;;  %v1373_v35 = vadd.f32 %v1372_v38, %v6527_v20  ;;  %v1474_v57 = vand.u32 2147483647, %v6518_v49 }
 0x553   : > { %v1703_v18 = vmul.f32 1.442695, %v1700_v37  ;;  %1678 = vmatpush.msrb.mxu1 %v6569_v63  ;;  %v1370_v63 = vadd.f32 %v1369_v55, %v6521_v54  ;;  %v2388_v37 = vsel %vm2049_vm14, %v2386_v19, %v2387_v42  ;;  %v1464_v20 = vmul.f32 0.088388346, %v1463_v2 }
 0x554   : > { %v6665_v9 = vpop.f32.mrf.mxu2  ;;  %v2129_v19 = vrot.slane %v1373_v35, 6  ;;  %v1473_v46 = vsel %vm1472_vm2, %v6640_v36, %v1469_v12  ;;  %vm1475_vm3 = vcmp.eq.f32.partialorder %v1474_v57, 8.507059e+37  ;;  %v6713_v35 = vadd.f32 %v6387_v51, %v6385_v50 }
 0x555   : > { %5239 = vpow2.f32 %v1703_v18  ;;  %1679 = vmatpush.msrb.mxu1 %v6564_v33  ;;  %v1476_v33 = vand.u32 2147483648, %v6518_v49  ;;  %v2127_v49 = vrot.slane %v1370_v63, 6  ;;  %v2126_v18 = vrot.slane %v6433_v60, 6 }
 0x556   : > { %5241 = vpow2.f32 %v1969_v45 }
 0x557   : > { %1680 = vmatpush.msrb.mxu1 %v6559_v53  ;;  %v2393_v53 = vsel %vm1435_vm7, %v2390_v25, 0.0  ;;  %v2130_v11 = vsel %vm2049_vm14, %v2127_v49, %v2129_v19 }
 0x558   : > { %v2394_v42 = vadd.f32 %v2393_v53, %v2388_v37 }
 0x559   : > { %1681 = vmatpush.msrb.mxu1 %v6552_v41 }
 0x55a   : > { %v1956_v43 = vpop.xlane.xlu1 %1955  ;;  %v2395_v36 = vrot.slane %v2394_v42, 4 }
 0x55b   : > { %v6681_v48 = vpop.eup %5239  ;;  %v1962_v54 = vsub.f32 %v6373_v40, %v1956_v43  ;;  %1682 = vmatpush.msrb.mxu1 %v6547_v4  ;;  %v1477_v40 = vor.u32 1.1754944e-38, %v1476_v33  ;;  %v1480_v4 = vmul.f32 %v6469_v47, %v1464_v20 }
 0x55c   : > { %v6686_v55 = vpop.f32.mrf.mxu2  ;;  %v1707_v41 = vsel %vm1435_vm7, %v6681_v48, 0.0  ;;  %v6696_v23 = vpop.eup %5241  ;;  %v2396_v25 = vadd.f32 %v2395_v36, %v2394_v42 }
 0x55d   : > { %v1965_v7 = vmul.f32 1.442695, %v1962_v54  ;;  %1708 = vadd.xlane.f32.xlu0 %v1707_v41  ;;  %1683 = vmatpush.msrb.mxu1 %v6538_v15  ;;  %v1478_v56 = vsel %vm1475_vm3, %v1477_v40, %v1473_v46  ;;  %v2128_v15 = vsel %vm2049_vm14, %v2126_v18, %v2127_v49  ;;  %v1976_v47 = vsel %vm770_vm9, %v6696_v23, 0.0 }
 0x55e   : > { %v1479_v38 = vmul.f32 0.088388346, %v1478_v56  ;;  %v2397_v63 = vrot.slane %v2396_v25, 2 }
 0x55f   : > { %5243 = vpow2.f32 %v1965_v7  ;;  %1684 = vmatpush.msrb.mxu1 %v6533_v13 }
 0x560   : > { %1685 = vmatmul.f32.vlgmr.msrb.gmra.mxu1 %v1480_v4  ;;  %v1481_v2 = vmul.f32 %v6472_v34, %v1479_v38  ;;  %v2398_v33 = vadd.f32 %v2397_v63, %v2396_v25 }
 0x561   : > { %5003 = vmatpush.msk.msra.mxu1 %vm1435_vm7, %v2130_v11 }
 0x562   : > { %v2399_v43 = vrot.slane %v2398_v33, 1 }
 0x563   : > { %2197 = vmatpush.msra.mxu1 %v2128_v15 }
 0x564   : > { %v6702_v45 = vpop.f32.mrf.mxu2  ;;  %v2400_v53 = vadd.f32 %v2399_v43, %v2398_v33 }
 0x565   : > { %v6706_v13 = vpop.eup %5243  ;;  %1977 = vadd.xlane.f32.xlu0 %v1976_v47 }
 0x566   : > { %v1971_v60 = vsel %vm1953_vm8, %v6706_v13, 0.0  ;;  %5245 = vrcp.f32 %v2400_v53  ;;  %v2412_v7 = vand.u32 2147483648, %v2400_v53  ;;  %vm2406_vm5 = vweird.f32 %v2400_v53 }
 0x567   : > { %1972 = vadd.xlane.f32.xlu1 %v1971_v60 }
 0x568   : > { %1688 = vmatmul.f32.gmra.mxu1 %v1481_v2  ;;  %v2413_v46 = vor.u32 1.1754944e-38, %v2412_v7 }
 0x56c   : > { %v1910_v12 = vpop.f32.mrf.mxu2  ;;  %v5246_v54 = vpop.eup %5245 }
 0x56d   : > { %2294 = vmax.xlane.f32.xlu0 %v6713_v35  ;;  %v2402_v50 = vmul.f32 %v5246_v54, %v2400_v53  ;;  %vm2407_vm4 = vweird.f32 %v5246_v54 }
 0x56e   : > { %vm2408_vm6 = vmor %vm2406_vm5, %vm2407_vm4 }
 0x56f   : > { %v2403_v20 = vsub.f32 1.0, %v2402_v50 }
 0x570   : > { %5004 = vmatmul.msk.f32.vlgmr.msra.gmra.mxu1 %vm1552_vm10, %v6524_v30 }
 0x571   : > { %v2404_v57 = vmul.f32 %v5246_v54, %v2403_v20 }
 0x573   : > { %v2405_v19 = vadd.f32 %v5246_v54, %v2404_v57  ;;  %v2645_v57 = vld [vmem:[%s5756_s11 + $0x50] sm:$0xff] }
 0x574   : > { %v1913_v37 = vpop.f32.mrf.mxu2 }
 0x578   : > { %5005 = vmatmul.msk.f32.gmra.mxu1 %vm1552_vm10, %v6531_v52  ;;  %v2410_v52 = vand.u32 2147483647, %v2400_v53 }
 0x57a   : > { %vm2411_vm11 = vcmp.eq.f32.partialorder %v2410_v52, 8.507059e+37 }
 0x57c   : > { %v1916_v34 = vpop.f32.mrf.mxu2 }
 0x580   : > { %5006 = vmatmul.msk.f32.gmra.mxu1 %vm1552_vm10, %v6536_v31  ;;  %v2409_v31 = vsel %vm2408_vm6, %v5246_v54, %v2405_v19  ;;  %v2657_v54 = vld [vmem:[%s5756_s11 + $0xb0] sm:$0xff] }
 0x581   : > { %v2414_v40 = vsel %vm2411_vm11, %v2413_v46, %v2409_v31 }
 0x582   : > { %v2415_v4 = vmul.f32 %v6659_v14, %v2414_v40  ;;  %v2416_v56 = vmul.f32 %v6649_v10, %v2414_v40  ;;  %v2417_v10 = vmul.f32 %v6646_v29, %v2414_v40 }
 0x584   : > { %v1919_v51 = vpop.f32.mrf.mxu2  ;;  %v2422_v11 = vrot.slane %v2416_v56, 6 }
 0x588   : > { %5007 = vmatmul.msk.f32.gmra.mxu1 %vm1552_vm10, %v6545_v21 }
 0x58c   : > { %v1922_v30 = vpop.f32.mrf.mxu2  ;;  %v6724_v41 = vpop.xlane.xlu2 %1705 }
 0x58d   : > { %5247 = vrcp.f32 %v6724_v41  ;;  %v1721_v29 = vand.u32 2147483648, %v6724_v41  ;;  %vm1715_vm13 = vweird.f32 %v6724_v41 }
 0x58f   : > { %v1722_v53 = vor.u32 1.1754944e-38, %v1721_v29 }
 0x590   : > { %5008 = vmatmul.msk.f32.gmra.mxu1 %vm1552_vm10, %v6555_v62  ;;  %v2421_v62 = vrot.slane %v2415_v4, 6 }
 0x592   : > { %v2423_v14 = vsel %vm2049_vm14, %v2421_v62, %v2422_v11 }
 0x593   : > { %v5248_v49 = vpop.eup %5247 }
 0x594   : > { %v1925_v42 = vpop.f32.mrf.mxu2  ;;  %v6729_v21 = vpop.xlane.xlu2 %1974  ;;  %v1711_v18 = vmul.f32 %v5248_v49, %v6724_v41  ;;  %vm1716_vm12 = vweird.f32 %v5248_v49 }
 0x595   : > { %1928 = vmatpush.msrb.mxu3 %v1925_v42  ;;  %vm6752_vm15 = vmor %vm1715_vm13, %vm1716_vm12  ;;  %vm1999_vm2 = vweird.f32 %v6729_v21  ;;  %v2003_v62 = vand.u32 2147483647, %v6729_v21 }
 0x596   : > { %v1712_v36 = vsub.f32 1.0, %v1711_v18 }
 0x597   : > { %1929 = vmatpush.msrb.mxu3 %v1922_v30  ;;  %v2641_v30 = vld [vmem:[%s5756_s11 + $0x30] sm:$0xff]  ;;  %vm2004_vm11 = vcmp.eq.f32.partialorder %v2003_v62, 8.507059e+37 }
 0x598   : > { %5009 = vmatmul.msk.f32.gmra.mxu1 %vm1552_vm10, %v6562_v26  ;;  %v1713_v25 = vmul.f32 %v5248_v49, %v1712_v36  ;;  %v2665_v26 = vld [vmem:[%s5756_s11 + $0xf0] sm:$0xff] }
 0x599   : > { %1930 = vmatpush.msrb.mxu3 %v1919_v51  ;;  %2699 = vmatpush.msra.mxu2 %v2665_v26  ;;  %v8219_v26 = vld [vmem:[#allocation25_spill] sm:$0xff] }
 0x59a   : > { %v1714_v60 = vadd.f32 %v5248_v49, %v1713_v25 }
 0x59b   : > { %1931 = vmatpush.msrb.mxu3 %v1916_v34 }
 0x59c   : > { %v2293_v15 = vpop.xlane.xlu2 %2292  ;;  %v1718_v43 = vsel %vm6752_vm15, %v5248_v49, %v1714_v60 }
 0x59d   : > { %1932 = vmatpush.msrb.mxu3 %v1913_v37  ;;  %v2299_v38 = vsub.f32 %v6543_v17, %v2293_v15  ;;  %v2424_v17 = vrot.slane %v2417_v10, 6 }
 0x59f   : > { %1933 = vmatpush.msrb.mxu3 %v1910_v12  ;;  %v2302_v47 = vmul.f32 1.442695, %v2299_v38  ;;  %v1719_v12 = vand.u32 2147483647, %v6724_v41  ;;  %v2637_v41 = vld [vmem:[%s5756_s11 + $0x10] sm:$0xff] }
 0x5a0   : > { %5010 = vmatmul.msk.f32.gmra.mxu1 %vm1552_vm10, %v6567_v8  ;;  %v2663_v8 = vld [vmem:[%s5756_s11 + $0xe0] sm:$0xff] }
 0x5a1   : > { %2428 = vxpose.xlu1.b32.start [1/2] (short) %v2423_v14, 128  ;;  %5249 = vpow2.f32 %v2302_v47  ;;  %1934 = vmatpush.msrb.mxu3 %v6702_v45  ;;  %vm1720_vm0 = vcmp.eq.f32.partialorder %v1719_v12, 8.507059e+37 }
 0x5a2   : > { %2700 = vmatpush.msra.mxu2 %v2663_v8  ;;  %v1723_v34 = vsel %vm1720_vm0, %v1722_v53, %v1718_v43  ;;  %v8220_v53 = vld [vmem:[#allocation26_spill] sm:$0xff] }
 0x5a3   : > { %1935 = vmatpush.msrb.mxu3 %v6686_v55  ;;  %v1724_v50 = vmul.f32 0.088388346, %v1723_v34  ;;  %v8221_v34 = vld [vmem:[#allocation24_spill] sm:$0xff] }
 0x5a4   : > { %v2298_v2 = vpop.xlane.xlu2 %2297 }
 0x5a5   : > { %v2301_v63 = vsub.f32 %v6620_v28, %v2298_v2  ;;  %1936 = vmatpush.msrb.mxu3 %v6665_v9  ;;  %v2425_v28 = vsel %vm2049_vm14, %v2422_v11, %v2424_v17  ;;  %v2661_v9 = vld [vmem:[%s5756_s11 + $0xd0] sm:$0xff]  ;;  %v1740_v20 = vmul.f32 %v6593_v16, %v1724_v50  ;;  %v2639_v16 = vld [vmem:[%s5756_s11 + $0x20] sm:$0xff] }
 0x5a6   : > { %2701 = vmatpush.msra.mxu2 %v2661_v9 }
 0x5a7   : > { %v6750_v45 = vpop.eup %5249  ;;  %v2306_v33 = vmul.f32 1.442695, %v2301_v63  ;;  %1937 = vmatpush.msrb.mxu3 %v6642_v32  ;;  %v2659_v32 = vld [vmem:[%s5756_s11 + $0xc0] sm:$0xff] }
 0x5a8   : > { %5011 = vmatmul.msk.f32.gmra.mxu1 %vm1552_vm10, %v6572_v0  ;;  %v2308_v37 = vsel %vm1953_vm8, %v6750_v45, 0.0  ;;  %2702 = vmatpush.msra.mxu2 %v2659_v32  ;;  %v2655_v0 = vld [vmem:[%s5756_s11 + $0xa0] sm:$0xff] }
 0x5a9   : > { %2429 = vxpose.xlu1.b32.end [2/2] (short) %v2425_v28, 128  ;;  %5251 = vpow2.f32 %v2306_v33  ;;  %2309 = vadd.xlane.f32.xlu0 %v2308_v37 }
 0x5aa   : > { %1938 = vmatpush.msrb.mxu3 %v6634_v39  ;;  %2703 = vmatpush.msra.mxu2 %v2657_v54  ;;  %v2653_v39 = vld [vmem:[%s5756_s11 + $0x90] sm:$0xff]  ;;  %5253 = vrcp.f32 %v6729_v21 }
 0x5ac   : > { %1939 = vmatpush.msrb.mxu3 %v6629_v58  ;;  %2704 = vmatpush.msra.mxu2 %v2655_v0 }
 0x5ae   : > { %1940 = vmatpush.msrb.mxu3 %v6626_v3  ;;  %v2651_v3 = vld [vmem:[%s5756_s11 + $0x80] sm:$0xff]  ;;  %2705 = vmatpush.msra.mxu2 %v2653_v39 }
 0x5af   : > { %v6771_v51 = vpop.eup %5251 }
 0x5b0   : > { %1941 = vmatpush.msrb.mxu3 %v6616_v1  ;;  %5012 = vmatmul.msk.f32.gmra.mxu1 %vm1552_vm10, %v6582_v61  ;;  %v2313_v58 = vsel %vm770_vm9, %v6771_v51, 0.0  ;;  %v2649_v1 = vld [vmem:[%s5756_s11 + $0x70] sm:$0xff]  ;;  %v2647_v61 = vld [vmem:[%s5756_s11 + $0x60] sm:$0xff] }
 0x5b1   : > { %2314 = vadd.xlane.f32.xlu0 %v2313_v58  ;;  %2706 = vmatpush.msra.mxu2 %v2651_v3 }
 0x5b2   : > { %1942 = vmatpush.msrb.mxu3 %v6610_v6  ;;  %v2643_v6 = vld [vmem:[%s5756_s11 + $0x40] sm:$0xff] }
 0x5b3   : > { %2707 = vmatpush.msra.mxu2 %v2649_v1 }
 0x5b4   : > { %1943 = vmatpush.msrb.mxu3 %v6596_v59  ;;  %v2635_v59 = vld [vmem:[%s5756_s11] sm:$0xff] }
 0x5b5   : > { %1944 = vmatmul.f32.vlgmr.msrb.gmra.mxu3 %v1740_v20  ;;  %2708 = vmatpush.msra.mxu2 %v2647_v61 }
 0x5b7   : > { %2709 = vmatpush.msra.mxu2 %v2645_v57  ;;  %v2697_v57 = vld [vmem:[%s5756_s11 + $0x1f0] sm:$0xff] }
 0x5b8   : > { %5013 = vmatmul.msk.f32.gmra.mxu1 %vm1552_vm10, %v6590_v5  ;;  %v5254_v5 = vpop.eup %5253 }
 0x5b9   : > { %2710 = vmatpush.msra.mxu2 %v2643_v6  ;;  %v1995_v19 = vmul.f32 %v5254_v5, %v6729_v21  ;;  %vm2000_vm8 = vweird.f32 %v5254_v5  ;;  %2728 = vmatpush.msrb.mxu1 %v2697_v57  ;;  %v2693_v6 = vld [vmem:[%s5756_s11 + $0x1d0] sm:$0xff] }
 0x5ba   : > { %vm6805_vm3 = vmor %vm1999_vm2, %vm2000_vm8 }
 0x5bb   : > { %2711 = vmatpush.msra.mxu2 %v2641_v30  ;;  %v1996_v52 = vsub.f32 1.0, %v1995_v19  ;;  %v2691_v30 = vld [vmem:[%s5756_s11 + $0x1c0] sm:$0xff] }
 0x5bc   : > { %v2683_v19 = vld [vmem:[%s5756_s11 + $0x180] sm:$0xff] }
 0x5bd   : > { %2712 = vmatpush.msra.mxu2 %v2639_v16 }
 0x5bf   : > { %2713 = vmatpush.msra.mxu2 %v2637_v41  ;;  %v2689_v41 = vld [vmem:[%s5756_s11 + $0x1b0] sm:$0xff] }
 0x5c0   : > { %5014 = vmatmul.msk.f32.gmra.mxu1 %vm1552_vm10, %v6602_v24  ;;  %v1997_v24 = vmul.f32 %v5254_v5, %v1996_v52  ;;  %v2681_v52 = vld [vmem:[%s5756_s11 + $0x170] sm:$0xff] }
 0x5c1   : > { %2714 = vmatpush.msra.mxu2 %v2635_v59  ;;  %v2687_v59 = vld [vmem:[%s5756_s11 + $0x1a0] sm:$0xff] }
 0x5c2   : > { %v1998_v49 = vadd.f32 %v5254_v5, %v1997_v24  ;;  %v2677_v24 = vld [vmem:[%s5756_s11 + $0x150] sm:$0xff] }
 0x5c4   : > { %v2002_v38 = vsel %vm6805_vm3, %v5254_v5, %v1998_v49  ;;  %v2685_v5 = vld [vmem:[%s5756_s11 + $0x190] sm:$0xff] }
 0x5c5   : > { %v2669_v49 = vld [vmem:[%s5756_s11 + $0x110] sm:$0xff] }
 0x5c8   : > { %5015 = vmatmul.msk.f32.gmra.mxu1 %vm1552_vm10, %v6612_v22 }
 0x5d0   : > { %v1709_v7 = vpop.xlane.xlu0 %1708  ;;  %5016 = vmatmul.msk.f32.gmra.mxu1 %vm1552_vm10, %v6624_v27  ;;  %v2005_v27 = vand.u32 2147483648, %v6729_v21 }
 0x5d1   : > { %5255 = vrcp.f32 %v1709_v7  ;;  %v1736_v22 = vand.u32 2147483648, %v1709_v7  ;;  %v1734_v56 = vand.u32 2147483647, %v1709_v7  ;;  %vm1730_vm4 = vweird.f32 %v1709_v7 }
 0x5d2   : > { %v2006_v25 = vor.u32 1.1754944e-38, %v2005_v27  ;;  %v1427_v27 = vpop.f32.mrf.mxu3 }
 0x5d3   : > { %v1737_v15 = vor.u32 1.1754944e-38, %v1736_v22  ;;  %vm1735_vm6 = vcmp.eq.f32.partialorder %v1734_v56, 8.507059e+37  ;;  %v2671_v22 = vld [vmem:[%s5756_s11 + $0x120] sm:$0xff] }
 0x5d4   : > { %v2007_v8 = vsel %vm2004_vm11, %v2006_v25, %v2002_v38 }
 0x5d5   : > { %v2008_v43 = vmul.f32 0.088388346, %v2007_v8 }
 0x5d7   : > { %v5256_v31 = vpop.eup %5255 }
 0x5d8   : > { %v1726_v46 = vmul.f32 %v5256_v31, %v1709_v7  ;;  %v1978_v42 = vpop.xlane.xlu0 %1977  ;;  %5017 = vmatmul.msk.f32.gmra.mxu1 %vm1552_vm10, %v6631_v44  ;;  %vm1731_vm1 = vweird.f32 %v5256_v31 }
 0x5d9   : > { %5257 = vrcp.f32 %v1978_v42  ;;  %vm1732_vm5 = vmor %vm1730_vm4, %vm1731_vm1  ;;  %v2020_v29 = vand.u32 2147483648, %v1978_v42  ;;  %v2018_v55 = vand.u32 2147483647, %v1978_v42  ;;  %vm2014_vm13 = vweird.f32 %v1978_v42 }
 0x5da   : > { %v1727_v40 = vsub.f32 1.0, %v1726_v46  ;;  %v2675_v46 = vld [vmem:[%s5756_s11 + $0x140] sm:$0xff]  ;;  %v1973_v25 = vpop.xlane.xlu1 %1972 }
 0x5db   : > { %vm2019_vm0 = vcmp.eq.f32.partialorder %v2018_v55, 8.507059e+37  ;;  %vm1984_vm1 = vweird.f32 %v1973_v25  ;;  %v1988_v55 = vand.u32 2147483647, %v1973_v25 }
 0x5dc   : > { %v1728_v4 = vmul.f32 %v5256_v31, %v1727_v40  ;;  %v2673_v40 = vld [vmem:[%s5756_s11 + $0x130] sm:$0xff] }
 0x5dd   : > { %v6810_v44 = vpop.f32.mrf.mxu1  ;;  %vm1989_vm3 = vcmp.eq.f32.partialorder %v1988_v55, 8.507059e+37 }
 0x5de   : > { %v1729_v11 = vadd.f32 %v5256_v31, %v1728_v4  ;;  %2715 = vmatmul.f32.vlgmr.msra.gmra.mxu2 %v6810_v44  ;;  %v2667_v4 = vld [vmem:[%s5756_s11 + $0x100] sm:$0xff] }
 0x5df   : > { %v5258_v36 = vpop.eup %5257 }
 0x5e0   : > { %v2010_v47 = vmul.f32 %v5258_v36, %v1978_v42  ;;  %v2295_v14 = vpop.xlane.xlu0 %2294  ;;  %v1733_v10 = vsel %vm1732_vm5, %v5256_v31, %v1729_v11  ;;  %5018 = vmatmul.msk.f32.gmra.mxu1 %vm1552_vm10, %v8219_v26  ;;  %vm2015_vm12 = vweird.f32 %v5258_v36  ;;  %v2679_v31 = vld [vmem:[%s5756_s11 + $0x160] sm:$0xff]  ;;  %v1430_v11 = vpop.f32.mrf.mxu3 }
 0x5e1   : > { %v2300_v21 = vsub.f32 %v6713_v35, %v2295_v14  ;;  %v1738_v17 = vsel %vm1735_vm6, %v1737_v15, %v1733_v10  ;;  %vm2016_vm15 = vmor %vm2014_vm13, %vm2015_vm12  ;;  %v2021_v35 = vor.u32 1.1754944e-38, %v2020_v29 }
 0x5e2   : > { %v2011_v60 = vsub.f32 1.0, %v2010_v47  ;;  %v1739_v2 = vmul.f32 0.088388346, %v1738_v17 }
 0x5e3   : > { %v2304_v63 = vmul.f32 1.442695, %v2300_v21 }
 0x5e4   : > { %v2012_v12 = vmul.f32 %v5258_v36, %v2011_v60  ;;  %v1741_v33 = vmul.f32 %v6681_v48, %v1739_v2  ;;  %v6822_v48 = vmul.f32 %v8221_v34, %v2008_v43 }
 0x5e5   : > { %5259 = vpow2.f32 %v2304_v63  ;;  %v1689_v9 = vpop.f32.mrf.mxu1 }
 0x5e6   : > { %v2013_v28 = vadd.f32 %v5258_v36, %v2012_v12  ;;  %1947 = vmatmul.f32.gmra.mxu3 %v1741_v33  ;;  %1693 = vst [vmem:[#allocation3 + $0x18] sm:$0x3f] %v1689_v9  ;;  %v2251_v58 = vrot.slane %v6822_v48, 6  ;;  %5261 = vrcp.f32 %v1973_v25  ;;  %v1990_v12 = vand.u32 2147483648, %v1973_v25 }
 0x5e8   : > { %v2017_v37 = vsel %vm2016_vm15, %v5258_v36, %v2013_v28  ;;  %5019 = vmatmul.msk.f32.gmra.mxu1 %vm1552_vm10, %v8220_v53  ;;  %v1991_v28 = vor.u32 1.1754944e-38, %v1990_v12  ;;  %v8222_v53 = vld [vmem:[#allocation23_spill] sm:$0xff] }
 0x5e9   : > { %v2022_v32 = vsel %vm2019_vm0, %v2021_v35, %v2017_v37 }
 0x5ea   : > { %v2023_v54 = vmul.f32 0.088388346, %v2022_v32  ;;  %v1431_v32 = vadd.f32 %v1430_v11, %v8222_v53  ;;  %v2678_v11 = vld [vmem:[%s5756_s11 + $0x158] sm:$0xff] }
 0x5eb   : > { %v6824_v0 = vpop.eup %5259 }
 0x5ec   : > { %2311 = vadd.xlane.f32.xlu2 %v6824_v0  ;;  %v2026_v50 = vmul.f32 %v6696_v23, %v2023_v54  ;;  %v2695_v23 = vld [vmem:[%s5756_s11 + $0x1e0] sm:$0xff]  ;;  %v5262_v21 = vpop.eup %5261  ;;  %v8223_v54 = vld [vmem:[#allocation22_spill] sm:$0xff]  ;;  %v2465_v57 = vrot.slane %v1431_v32, 6 }
 0x5ed   : > { %v6828_v39 = vpop.f32.mrf.mxu1  ;;  %2729 = vmatpush.msrb.mxu1 %v2695_v23  ;;  %v1980_v17 = vmul.f32 %v5262_v21, %v1973_v25  ;;  %vm1985_vm8 = vweird.f32 %v5262_v21 }
 0x5ee   : > { %v2253_v3 = vrot.slane %v2026_v50, 6  ;;  %vm1986_vm2 = vmor %vm1984_vm1, %vm1985_vm8  ;;  %v1428_v50 = vadd.f32 %v1427_v27, %v8223_v54  ;;  %v2682_v27 = vld [vmem:[%s5756_s11 + $0x178] sm:$0xff] }
 0x5ef   : > { %2730 = vmatpush.msrb.mxu1 %v2693_v6  ;;  %v1981_v2 = vsub.f32 1.0, %v1980_v17  ;;  %v8224_v6 = vld [vmem:[#allocation21_spill] sm:$0xff] }
 0x5f0   : > { %v6834_v20 = vsel %vm2049_vm14, %v2251_v58, %v2253_v3  ;;  %v2463_v23 = vrot.slane %v1428_v50, 6 }
 0x5f1   : > { %2731 = vmatpush.msrb.mxu1 %v2691_v30  ;;  %v1982_v63 = vmul.f32 %v5262_v21, %v1981_v2  ;;  %v2462_v30 = vrot.slane %v8224_v6, 6 }
 0x5f3   : > { %2732 = vmatpush.msrb.mxu1 %v2689_v41  ;;  %v1983_v8 = vadd.f32 %v5262_v21, %v1982_v63 }
 0x5f5   : > { %v6836_v1 = vpop.f32.mrf.mxu1  ;;  %2733 = vmatpush.msrb.mxu1 %v2687_v59  ;;  %v1987_v33 = vsel %vm1986_vm2, %v5262_v21, %v1983_v8  ;;  %v2668_v21 = vld [vmem:[%s5756_s11 + $0x108] sm:$0xff] }
 0x5f6   : > { %v1992_v43 = vsel %vm1989_vm3, %v1991_v28, %v1987_v33 }
 0x5f7   : > { %2734 = vmatpush.msrb.mxu1 %v2685_v5  ;;  %v1993_v35 = vmul.f32 0.088388346, %v1992_v43 }
 0x5f9   : > { %2735 = vmatpush.msrb.mxu1 %v2683_v19  ;;  %v2024_v37 = vmul.f32 %v6706_v13, %v1993_v35 }
 0x5fb   : > { %2736 = vmatpush.msrb.mxu1 %v2681_v52  ;;  %v2250_v3 = vrot.slane %v2024_v37, 6 }
 0x5fd   : > { %v6838_v61 = vpop.f32.mrf.mxu1  ;;  %2737 = vmatpush.msrb.mxu1 %v2679_v31  ;;  %v2252_v13 = vsel %vm2049_vm14, %v2250_v3, %v2251_v58  ;;  %v2698_v31 = vld [vmem:[%s5756_s11 + $0x1f8] sm:$0xff] }
 0x5fe   : > { %2786 = vmatpush.msrb.mxu2 %v2698_v31 }
 0x5ff   : > { %2738 = vmatpush.msrb.mxu1 %v2677_v24  ;;  %v2696_v24 = vld [vmem:[%s5756_s11 + $0x1e8] sm:$0xff] }
 0x600   : > { %2787 = vmatpush.msrb.mxu2 %v2696_v24 }
 0x601   : > { %2739 = vmatpush.msrb.mxu1 %v2675_v46  ;;  %v2694_v46 = vld [vmem:[%s5756_s11 + $0x1d8] sm:$0xff] }
 0x602   : > { %2788 = vmatpush.msrb.mxu2 %v2694_v46 }
 0x603   : > { %2740 = vmatpush.msrb.mxu1 %v2673_v40 }
 0x605   : > { %v6844_v16 = vpop.f32.mrf.mxu1  ;;  %2741 = vmatpush.msrb.mxu1 %v2671_v22  ;;  %v2690_v22 = vld [vmem:[%s5756_s11 + $0x1b8] sm:$0xff] }
 0x607   : > { %2742 = vmatpush.msrb.mxu1 %v2669_v49  ;;  %v2688_v49 = vld [vmem:[%s5756_s11 + $0x1a8] sm:$0xff] }
 0x609   : > { %2743 = vmatpush.msrb.mxu1 %v2667_v4  ;;  %v2686_v4 = vld [vmem:[%s5756_s11 + $0x198] sm:$0xff] }
 0x60d   : > { %v6850_v7 = vpop.f32.mrf.mxu1 }
 0x615   : > { %v2214_v42 = vpop.f32.mrf.mxu1 }
 0x61c   : > { %v2310_v3 = vpop.xlane.xlu0 %2309 }
 0x61d   : > { %v2217_v56 = vpop.f32.mrf.mxu1  ;;  %v2327_v31 = vand.u32 2147483648, %v2310_v3  ;;  %vm2321_vm11 = vweird.f32 %v2310_v3  ;;  %v2325_v24 = vand.u32 2147483647, %v2310_v3 }
 0x61f   : > { %vm2326_vm15 = vcmp.eq.f32.partialorder %v2325_v24, 8.507059e+37 }
 0x625   : > { %v2220_v18 = vpop.f32.mrf.mxu1 }
 0x62d   : > { %v2223_v62 = vpop.f32.mrf.mxu1 }
 0x635   : > { %v2226_v36 = vpop.f32.mrf.mxu1 }
 0x638   : > { %v6860_v15 = vpop.f32.mrf.mxu3 }
 0x639   : > { %2744 = vmatmul.f32.vlgmr.msrb.gmra.mxu1 %v6860_v15 }
 0x63d   : > { %v2229_v38 = vpop.f32.mrf.mxu1 }
 0x645   : > { %v2232_v47 = vpop.f32.mrf.mxu1  ;;  %v2444_v9 = vpop.trf.xlu1 }
 0x64d   : > { %v2235_v14 = vpop.f32.mrf.mxu1  ;;  %v2445_v34 = vpop.trf.xlu1 }
 0x655   : > { %v2238_v10 = vpop.f32.mrf.mxu1  ;;  %v2446_v41 = vpop.trf.xlu1 }
 0x65d   : > { %v2241_v26 = vpop.f32.mrf.mxu1 }
 0x665   : > { %v2244_v60 = vpop.f32.mrf.mxu1 }
 0x666   : > { %2257 = vmatpush.msra.mxu3 %v2244_v60 }
 0x668   : > { %2258 = vmatpush.msra.mxu3 %v2241_v26  ;;  %v2670_v26 = vld [vmem:[%s5756_s11 + $0x118] sm:$0xff] }
 0x669   : > { %v1948_v29 = vpop.f32.mrf.mxu3 }
 0x66a   : > { %1952 = vst [vmem:[#allocation3 + $0x20] sm:$0x3f] %v1948_v29  ;;  %2259 = vmatpush.msra.mxu3 %v2238_v10 }
 0x66c   : > { %2260 = vmatpush.msra.mxu3 %v2235_v14  ;;  %v2672_v14 = vld [vmem:[%s5756_s11 + $0x128] sm:$0xff] }
 0x66e   : > { %2261 = vmatpush.msra.mxu3 %v2232_v47 }
 0x670   : > { %2262 = vmatpush.msra.mxu3 %v2229_v38  ;;  %v2674_v38 = vld [vmem:[%s5756_s11 + $0x138] sm:$0xff] }
 0x672   : > { %2263 = vmatpush.msra.mxu3 %v2226_v36  ;;  %v2676_v36 = vld [vmem:[%s5756_s11 + $0x148] sm:$0xff] }
 0x674   : > { %2264 = vmatpush.msra.mxu3 %v2223_v62  ;;  %v2680_v62 = vld [vmem:[%s5756_s11 + $0x168] sm:$0xff] }
 0x676   : > { %2265 = vmatpush.msra.mxu3 %v2220_v18 }
 0x678   : > { %2266 = vmatpush.msra.mxu3 %v2217_v56  ;;  %v2684_v56 = vld [vmem:[%s5756_s11 + $0x188] sm:$0xff] }
 0x67a   : > { %2267 = vmatpush.msra.mxu3 %v2214_v42  ;;  %v2692_v42 = vld [vmem:[%s5756_s11 + $0x1c8] sm:$0xff] }
 0x67b   : > { %2789 = vmatpush.msrb.mxu2 %v2692_v42 }
 0x67c   : > { %2268 = vmatpush.msra.mxu3 %v6850_v7 }
 0x67d   : > { %2790 = vmatpush.msrb.mxu2 %v2690_v22 }
 0x67e   : > { %2269 = vmatpush.msra.mxu3 %v6844_v16  ;;  %v2466_v16 = vsel %vm2049_vm14, %v2463_v23, %v2465_v57  ;;  %v2312_v57 = vpop.xlane.xlu2 %2311 }
 0x67f   : > { %2791 = vmatpush.msrb.mxu2 %v2688_v49  ;;  %5263 = vrcp.f32 %v2312_v57  ;;  %vm2336_vm5 = vweird.f32 %v2312_v57  ;;  %v2328_v49 = vor.u32 1.1754944e-38, %v2327_v31  ;;  %v5342_v31 = vld [vmem:[#allocation2] sm:$0xff] }
 0x680   : > { %2270 = vmatpush.msra.mxu3 %v6838_v61  ;;  %v2464_v61 = vsel %vm2049_vm14, %v2462_v30, %v2463_v23  ;;  %5265 = vrcp.f32 %v2310_v3 }
 0x681   : > { %2792 = vmatpush.msrb.mxu2 %v2686_v4 }
 0x682   : > { %2271 = vmatpush.msra.mxu3 %v6836_v1  ;;  %v2447_v1 = vpop.trf.xlu1 }
 0x683   : > { %2793 = vmatpush.msrb.mxu2 %v2684_v56 }
 0x684   : > { %2272 = vmatpush.msra.mxu3 %v6828_v39 }
 0x685   : > { %2273 = vmatmul.f32.vlgmr.msra.gmra.mxu3 %v2252_v13  ;;  %2794 = vmatpush.msrb.mxu2 %v2682_v27  ;;  %v2315_v13 = vpop.xlane.xlu0 %2314 }
 0x686   : > { %5020 = vmatpush.msk.msrb.mxu3 %vm1435_vm7, %v2466_v16  ;;  %5267 = vrcp.f32 %v2315_v13  ;;  %vm2351_vm8 = vweird.f32 %v2315_v13 }
 0x687   : > { %2795 = vmatpush.msrb.mxu2 %v2680_v62  ;;  %v2357_v62 = vand.u32 2147483648, %v2315_v13 }
 0x688   : > { %2533 = vmatpush.msrb.mxu3 %v2464_v61 }
 0x689   : > { %2796 = vmatpush.msrb.mxu2 %v2678_v11 }
 0x68a   : > { %v2448_v39 = vpop.trf.xlu1 }
 0x68b   : > { %2797 = vmatpush.msrb.mxu2 %v2676_v36  ;;  %v2355_v36 = vand.u32 2147483647, %v2315_v13 }
 0x68d   : > { %2276 = vmatmul.f32.gmra.mxu3 %v6834_v20  ;;  %2798 = vmatpush.msrb.mxu2 %v2674_v38  ;;  %vm2356_vm2 = vcmp.eq.f32.partialorder %v2355_v36, 8.507059e+37  ;;  %v5344_v36 = vld [vmem:[#allocation2 + $0x10] sm:$0xff] }
 0x68f   : > { %2799 = vmatpush.msrb.mxu2 %v2672_v14  ;;  %v2358_v14 = vor.u32 1.1754944e-38, %v2357_v62 }
 0x691   : > { %2800 = vmatpush.msrb.mxu2 %v2670_v26 }
 0x692   : > { %v2449_v48 = vpop.trf.xlu1 }
 0x693   : > { %2801 = vmatpush.msrb.mxu2 %v2668_v21 }
 0x695   : > { %5021 = vmatmul.msk.f32.vlgmr.msrb.gmra.mxu3 %vm1552_vm10, %v2444_v9 }
 0x69a   : > { %v2450_v58 = vpop.trf.xlu1 }
 0x69d   : > { %5022 = vmatmul.msk.f32.gmra.mxu3 %vm1552_vm10, %v2445_v34 }
 0x6a2   : > { %v2451_v59 = vpop.trf.xlu1 }
 0x6a5   : > { %5023 = vmatmul.msk.f32.gmra.mxu3 %vm1552_vm10, %v2446_v41 }
 0x6aa   : > { %v2452_v20 = vpop.trf.xlu1 }
 0x6ad   : > { %5024 = vmatmul.msk.f32.gmra.mxu3 %vm1552_vm10, %v2447_v1 }
 0x6b2   : > { %v2453_v5 = vpop.trf.xlu1 }
 0x6b5   : > { %5025 = vmatmul.msk.f32.gmra.mxu3 %vm1552_vm10, %v2448_v39 }
 0x6ba   : > { %v2454_v19 = vpop.trf.xlu1 }
 0x6bd   : > { %5026 = vmatmul.msk.f32.gmra.mxu3 %vm1552_vm10, %v2449_v48 }
 0x6c2   : > { %v2455_v7 = vpop.trf.xlu1 }
 0x6c5   : > { %5027 = vmatmul.msk.f32.gmra.mxu3 %vm1552_vm10, %v2450_v58 }
 0x6ca   : > { %v2456_v52 = vpop.trf.xlu1 }
 0x6cd   : > { %5028 = vmatmul.msk.f32.gmra.mxu3 %vm1552_vm10, %v2451_v59 }
 0x6d2   : > { %v2457_v40 = vpop.trf.xlu1 }
 0x6d5   : > { %5029 = vmatmul.msk.f32.gmra.mxu3 %vm1552_vm10, %v2452_v20 }
 0x6da   : > { %v2458_v18 = vpop.trf.xlu1 }
 0x6dd   : > { %5030 = vmatmul.msk.f32.gmra.mxu3 %vm1552_vm10, %v2453_v5  ;;  %v2342_v5 = vand.u32 2147483648, %v2312_v57 }
 0x6df   : > { %v2343_v42 = vor.u32 1.1754944e-38, %v2342_v5 }
 0x6e2   : > { %v2459_v25 = vpop.trf.xlu1 }
 0x6e5   : > { %5031 = vmatmul.msk.f32.gmra.mxu3 %vm1552_vm10, %v2454_v19 }
 0x6ed   : > { %5032 = vmatmul.msk.f32.gmra.mxu3 %vm1552_vm10, %v2455_v7 }
 0x6f5   : > { %5033 = vmatmul.msk.f32.gmra.mxu3 %vm1552_vm10, %v2456_v52  ;;  %v2340_v52 = vand.u32 2147483647, %v2312_v57 }
 0x6f7   : > { %vm2341_vm13 = vcmp.eq.f32.partialorder %v2340_v52, 8.507059e+37 }
 0x6fd   : > { %5034 = vmatmul.msk.f32.gmra.mxu3 %vm1552_vm10, %v2457_v40 }
 0x705   : > { %5035 = vmatmul.msk.f32.gmra.mxu3 %vm1552_vm10, %v2458_v18 }
 0x708   : > { %v2274_v47 = vpop.f32.mrf.mxu3 }
 0x709   : > { %v2282_v10 = vrot.slane %v2274_v47, 2 }
 0x70b   : > { %2288 = vst [vmem:[#allocation3 + $0x18] sm:$0xc0] %v2282_v10 }
 0x70d   : > { %5036 = vmatmul.msk.f32.gmra.mxu3 %vm1552_vm10, %v2459_v25 }
 0x710   : > { %v2277_v17 = vpop.f32.mrf.mxu3 }
 0x711   : > { %v2283_v60 = vrot.slane %v2277_v17, 2 }
 0x712   : > { %v6911_v2 = vld [vmem:[#allocation3 + $0x18] sm:$0xff] }
 0x713   : > { %v6914_v29 = vsel %vm1435_vm7, %v2282_v10, %v2283_v60  ;;  %2290 = vst [vmem:[#allocation3 + $0x10] sm:$0xf] %v2283_v60  ;;  %2718 = vmatmul.f32.gmra.mxu2 %v6911_v2 }
 0x718   : > { %v6917_v63 = vpop.f32.mrf.mxu3 }
 0x71a   : > { %v6922_v12 = vld [vmem:[#allocation3 + $0x10] sm:$0xf] }
 0x71b   : > { %2721 = vmatmul.f32.gmra.mxu2 %v6914_v29 }
 0x720   : > { %v6920_v8 = vpop.f32.mrf.mxu3 }
 0x723   : > { %2724 = vmatmul.f32.gmra.mxu2 %v6922_v12 }
 0x728   : > { %v6925_v55 = vpop.f32.mrf.mxu3 }
 0x72b   : > { %2802 = vmatmul.f32.vlgmr.msrb.gmra.mxu2 %v6860_v15  ;;  %v5264_v15 = vpop.eup %5263 }
 0x72c   : > { %v5266_v6 = vpop.eup %5265  ;;  %v2332_v30 = vmul.f32 %v5264_v15, %v2312_v57  ;;  %vm2337_vm10 = vweird.f32 %v5264_v15  ;;  %v2636_v57 = vld [vmem:[%s5756_s11 + $0x8] sm:$0xff] }
 0x72d   : > { %v2317_v16 = vmul.f32 %v5266_v6, %v2310_v3  ;;  %v5268_v39 = vpop.eup %5267  ;;  %vm2322_vm4 = vweird.f32 %v5266_v6  ;;  %vm2338_vm6 = vmor %vm2336_vm5, %vm2337_vm10  ;;  %v2638_v3 = vld [vmem:[%s5756_s11 + $0x18] sm:$0xff] }
 0x72e   : > { %v2333_v41 = vsub.f32 1.0, %v2332_v30  ;;  %v2347_v59 = vmul.f32 %v5268_v39, %v2315_v13  ;;  %vm2323_vm12 = vmor %vm2321_vm11, %vm2322_vm4  ;;  %vm2352_vm0 = vweird.f32 %v5268_v39 }
 0x72f   : > { %v2318_v1 = vsub.f32 1.0, %v2317_v16  ;;  %vm2353_vm1 = vmor %vm2351_vm8, %vm2352_vm0 }
 0x730   : > { %v6928_v33 = vpop.f32.mrf.mxu3  ;;  %v2334_v48 = vmul.f32 %v5264_v15, %v2333_v41  ;;  %v2348_v7 = vsub.f32 1.0, %v2347_v59 }
 0x731   : > { %v2319_v58 = vmul.f32 %v5266_v6, %v2318_v1 }
 0x732   : > { %v2335_v20 = vadd.f32 %v5264_v15, %v2334_v48  ;;  %v2349_v22 = vmul.f32 %v5268_v39, %v2348_v7  ;;  %v758_v48 = vld [vmem:[%s5775_s14 + $0x28] sm:$0xff] }
 0x733   : > { %v2320_v19 = vadd.f32 %v5266_v6, %v2319_v58  ;;  %v2824_v52 = vperm.slane %v758_v48, 1  ;;  %v3197_v48 = vld [vmem:[%s5762_s17 + $0x780] sm:$0xff] }
 0x734   : > { %v2339_v46 = vsel %vm2338_vm6, %v5264_v15, %v2335_v20  ;;  %v2350_v27 = vadd.f32 %v5268_v39, %v2349_v22  ;;  %v5341_v20 = vld [vmem:[#allocation2 + $0x30] sm:$0xff] }
 0x735   : > { %v2324_v40 = vsel %vm2323_vm12, %v5266_v6, %v2320_v19  ;;  %v2344_v4 = vsel %vm2341_vm13, %v2343_v42, %v2339_v46 }
 0x736   : > { %v2329_v56 = vsel %vm2326_vm15, %v2328_v49, %v2324_v40  ;;  %v2345_v18 = vmul.f32 0.088388346, %v2344_v4  ;;  %v2354_v47 = vsel %vm2353_vm1, %v5268_v39, %v2350_v27  ;;  %v757_v39 = vld [vmem:[%s5775_s14 + $0x20] sm:$0xff]  ;;  %v5343_v27 = vld [vmem:[#allocation2 + $0x18] sm:$0xff] }
 0x737   : > { %v2330_v11 = vmul.f32 0.088388346, %v2329_v56  ;;  %v2359_v25 = vsel %vm2356_vm2, %v2358_v14, %v2354_v47  ;;  %v2823_v19 = vperm.slane %v757_v39, 1  ;;  %v3069_v39 = vld [vmem:[%s5762_s17 + $0x380] sm:$0xff] }
 0x738   : > { %v6930_v28 = vpop.f32.mrf.mxu3  ;;  %v2362_v38 = vmul.f32 %v6824_v0, %v2345_v18  ;;  %v2360_v17 = vmul.f32 0.088388346, %v2359_v25  ;;  %v2666_v0 = vld [vmem:[%s5756_s11 + $0xf8] sm:$0xff] }
 0x739   : > { %v2361_v10 = vmul.f32 %v6750_v45, %v2330_v11 }
 0x73a   : > { %v2587_v26 = vrot.slane %v2362_v38, 6  ;;  %v2363_v45 = vmul.f32 %v6771_v51, %v2360_v17  ;;  %v2652_v51 = vld [vmem:[%s5756_s11 + $0x88] sm:$0xff] }
 0x73b   : > { %v2586_v21 = vrot.slane %v2361_v10, 6  ;;  %v5345_v17 = vld [vmem:[#allocation2 + $0x8] sm:$0xff] }
 0x73d   : > { %v2588_v60 = vsel %vm2049_vm14, %v2586_v21, %v2587_v26 }
 0x740   : > { %v6932_v9 = vpop.f32.mrf.mxu3 }
 0x748   : > { %v2553_v43 = vpop.f32.mrf.mxu3 }
 0x750   : > { %v2556_v35 = vpop.f32.mrf.mxu3 }
 0x758   : > { %v2559_v37 = vpop.f32.mrf.mxu3 }
 0x760   : > { %v2562_v53 = vpop.f32.mrf.mxu3 }
 0x768   : > { %v2565_v32 = vpop.f32.mrf.mxu3 }
 0x770   : > { %v2568_v34 = vpop.f32.mrf.mxu3 }
 0x778   : > { %v2571_v54 = vpop.f32.mrf.mxu3 }
 0x780   : > { %v2574_v50 = vpop.f32.mrf.mxu3 }
 0x788   : > { %v2577_v23 = vpop.f32.mrf.mxu3 }
 0x790   : > { %v2580_v61 = vpop.f32.mrf.mxu3 }
 0x791   : > { %2593 = vmatpush.msra.mxu0 %v2580_v61 }
 0x793   : > { %2594 = vmatpush.msra.mxu0 %v2577_v23  ;;  %v2716_v23 = vpop.f32.mrf.mxu2 }
 0x795   : > { %2595 = vmatpush.msra.mxu0 %v2574_v50  ;;  %v2640_v50 = vld [vmem:[%s5756_s11 + $0x28] sm:$0xff] }
 0x797   : > { %2596 = vmatpush.msra.mxu0 %v2571_v54  ;;  %v2642_v54 = vld [vmem:[%s5756_s11 + $0x38] sm:$0xff] }
 0x799   : > { %2597 = vmatpush.msra.mxu0 %v2568_v34  ;;  %v2644_v34 = vld [vmem:[%s5756_s11 + $0x48] sm:$0xff] }
 0x79b   : > { %2598 = vmatpush.msra.mxu0 %v2565_v32  ;;  %v2646_v32 = vld [vmem:[%s5756_s11 + $0x58] sm:$0xff]  ;;  %v2719_v6 = vpop.f32.mrf.mxu2 }
 0x79d   : > { %2599 = vmatpush.msra.mxu0 %v2562_v53  ;;  %v2648_v53 = vld [vmem:[%s5756_s11 + $0x68] sm:$0xff] }
 0x79f   : > { %2600 = vmatpush.msra.mxu0 %v2559_v37  ;;  %v2650_v37 = vld [vmem:[%s5756_s11 + $0x78] sm:$0xff] }
 0x7a1   : > { %2601 = vmatpush.msra.mxu0 %v2556_v35  ;;  %v2654_v35 = vld [vmem:[%s5756_s11 + $0x98] sm:$0xff] }
 0x7a3   : > { %2602 = vmatpush.msra.mxu0 %v2553_v43  ;;  %v2656_v43 = vld [vmem:[%s5756_s11 + $0xa8] sm:$0xff] }
 0x7a5   : > { %2603 = vmatpush.msra.mxu0 %v6932_v9  ;;  %v2658_v9 = vld [vmem:[%s5756_s11 + $0xb8] sm:$0xff] }
 0x7a7   : > { %2604 = vmatpush.msra.mxu0 %v6930_v28  ;;  %v2589_v28 = vrot.slane %v2363_v45, 6  ;;  %v5346_v45 = vld [vmem:[#allocation2 + $0x20] sm:$0xff] }
 0x7a9   : > { %2605 = vmatpush.msra.mxu0 %v6928_v33  ;;  %v2664_v33 = vld [vmem:[%s5756_s11 + $0xe8] sm:$0xff] }
 0x7ab   : > { %2606 = vmatpush.msra.mxu0 %v6925_v55  ;;  %v2662_v55 = vld [vmem:[%s5756_s11 + $0xd8] sm:$0xff] }
 0x7ad   : > { %2607 = vmatpush.msra.mxu0 %v6920_v8  ;;  %v2660_v8 = vld [vmem:[%s5756_s11 + $0xc8] sm:$0xff] }
 0x7af   : > { %2608 = vmatpush.msra.mxu0 %v6917_v63  ;;  %v2590_v63 = vsel %vm2049_vm14, %v2587_v26, %v2589_v28 }
 0x7b0   : > { %2609 = vmatmul.f32.vlgmr.msra.gmra.mxu0 %v2588_v60 }
 0x7b1   : > { %2757 = vmatpush.msrb.mxu0 %v2666_v0 }
 0x7b3   : > { %2758 = vmatpush.msrb.mxu0 %v2664_v33 }
 0x7b5   : > { %2759 = vmatpush.msrb.mxu0 %v2662_v55 }
 0x7b7   : > { %2760 = vmatpush.msrb.mxu0 %v2660_v8 }
 0x7b8   : > { %2612 = vmatmul.f32.gmra.mxu0 %v2590_v63 }
 0x7b9   : > { %2761 = vmatpush.msrb.mxu0 %v2658_v9 }
 0x7bb   : > { %2762 = vmatpush.msrb.mxu0 %v2656_v43  ;;  %v5347_v43 = vld [vmem:[#allocation2 + $0x28] sm:$0xf] }
 0x7bd   : > { %2763 = vmatpush.msrb.mxu0 %v2654_v35 }
 0x7bf   : > { %2764 = vmatpush.msrb.mxu0 %v2652_v51  ;;  %v8225_v51 = vld [vmem:[#allocation20_spill] sm:$0xff] }
 0x7c1   : > { %2765 = vmatpush.msrb.mxu0 %v2650_v37 }
 0x7c3   : > { %2766 = vmatpush.msrb.mxu0 %v2648_v53 }
 0x7c5   : > { %2767 = vmatpush.msrb.mxu0 %v2646_v32 }
 0x7c7   : > { %2768 = vmatpush.msrb.mxu0 %v2644_v34 }
 0x7c9   : > { %2769 = vmatpush.msrb.mxu0 %v2642_v54 }
 0x7cb   : > { %2770 = vmatpush.msrb.mxu0 %v2640_v50 }
 0x7cd   : > { %2771 = vmatpush.msrb.mxu0 %v2638_v3 }
 0x7cf   : > { %2772 = vmatpush.msrb.mxu0 %v2636_v57 }
 0x7d0   : > { %2773 = vmatmul.f32.vlgmr.msrb.gmra.mxu0 %v6810_v44  ;;  %v2722_v44 = vpop.f32.mrf.mxu2 }
 0x7d8   : > { %2776 = vmatmul.f32.gmra.mxu0 %v6911_v2  ;;  %v2725_v2 = vpop.f32.mrf.mxu2 }
 0x7e0   : > { %2779 = vmatmul.f32.gmra.mxu0 %v6914_v29  ;;  %v2745_v29 = vpop.f32.mrf.mxu1  ;;  %v2803_v58 = vpop.f32.mrf.mxu2 }
 0x7e1   : > { %v2746_v1 = vadd.f32 %v2745_v29, %v2716_v23  ;;  %v5348_v23 = vld [vmem:[#allocation2 + $0x38] sm:$0xf]  ;;  %v3205_v29 = vld [vmem:[%s5762_s17 + $0x7c0] sm:$0xff] }
 0x7e2   : > { %3250 = vmatpush.msra.mxu3 %v3205_v29  ;;  %v2990_v29 = vld [vmem:[%s5762_s17 + $0x108] sm:$0xff] }
 0x7e3   : > { %v2815_v5 = vadd.f32 %v5341_v20, %v2746_v1  ;;  %v3206_v1 = vld [vmem:[%s5762_s17 + $0x7c8] sm:$0xff]  ;;  %v3061_v20 = vld [vmem:[%s5762_s17 + $0x340] sm:$0xff] }
 0x7e4   : > { %3308 = vmatpush.msra.mxu2 %v3206_v1  ;;  %3251 = vmatpush.msra.mxu3 %v3197_v48  ;;  %v3118_v1 = vld [vmem:[%s5762_s17 + $0x508] sm:$0xff]  ;;  %v3109_v48 = vld [vmem:[%s5762_s17 + $0x4c0] sm:$0xff] }
 0x7e5   : > { %v6968_v46 = vadd.f32 %v2823_v19, %v2815_v5  ;;  %v3189_v5 = vld [vmem:[%s5762_s17 + $0x740] sm:$0xff] }
 0x7e6   : > { %3252 = vmatpush.msra.mxu3 %v3189_v5  ;;  %v3110_v5 = vld [vmem:[%s5762_s17 + $0x4c8] sm:$0xff] }
 0x7e8   : > { %2782 = vmatmul.f32.gmra.mxu0 %v6922_v12 }
 0x82d   : > { %v2610_v15 = vpop.f32.mrf.mxu0 }
 0x82e   : > { %v2618_v13 = vrot.slane %v2610_v15, 2 }
 0x830   : > { %2624 = vst [vmem:[#allocation3 + $0x20] sm:$0xc0] %v2618_v13 }
 0x835   : > { %v2613_v30 = vpop.f32.mrf.mxu0 }
 0x836   : > { %v2619_v16 = vrot.slane %v2613_v30, 2 }
 0x837   : > { %v2630_v61 = vld [vmem:[#allocation3 + $0x20] sm:$0xff] }
 0x838   : > { %v2620_v41 = vsel %vm1435_vm7, %v2618_v13, %v2619_v16  ;;  %2626 = vst [vmem:[#allocation3 + $0x38] sm:$0xf] %v2619_v16  ;;  %2747 = vmatmul.f32.gmra.mxu1 %v2630_v61  ;;  %2805 = vmatmul.f32.gmra.mxu2 %v2630_v61 }
 0x83f   : > { %v2634_v12 = vld [vmem:[#allocation3 + $0x38] sm:$0xf] }
 0x840   : > { %2750 = vmatmul.f32.gmra.mxu1 %v2620_v41  ;;  %2808 = vmatmul.f32.gmra.mxu2 %v2620_v41 }
 0x848   : > { %2753 = vmatmul.f32.gmra.mxu1 %v2634_v12  ;;  %2811 = vmatmul.f32.gmra.mxu2 %v2634_v12  ;;  %v3078_v12 = vld [vmem:[%s5762_s17 + $0x3c8] sm:$0xff] }
 0x849   : > { %3279 = vmatpush.msra.mxu0 %v3078_v12 }
 0x84d   : > { %v2774_v59 = vpop.f32.mrf.mxu0 }
 0x84e   : > { %v2804_v7 = vadd.f32 %v2803_v58, %v2774_v59  ;;  %v3070_v58 = vld [vmem:[%s5762_s17 + $0x388] sm:$0xff] }
 0x84f   : > { %v3198_v59 = vld [vmem:[%s5762_s17 + $0x788] sm:$0xff]  ;;  %3280 = vmatpush.msra.mxu0 %v3070_v58 }
 0x850   : > { %v2816_v24 = vadd.f32 %v5342_v31, %v2804_v7  ;;  %3309 = vmatpush.msra.mxu2 %v3198_v59  ;;  %v3190_v7 = vld [vmem:[%s5762_s17 + $0x748] sm:$0xff]  ;;  %v3181_v31 = vld [vmem:[%s5762_s17 + $0x700] sm:$0xff] }
 0x851   : > { %3253 = vmatpush.msra.mxu3 %v3181_v31  ;;  %v2982_v58 = vld [vmem:[%s5762_s17 + $0xc8] sm:$0xff] }
 0x852   : > { %v6970_v42 = vadd.f32 %v2824_v52, %v2816_v24  ;;  %3310 = vmatpush.msra.mxu2 %v3190_v7  ;;  %v3054_v24 = vld [vmem:[%s5762_s17 + $0x308] sm:$0xff]  ;;  %v3101_v7 = vld [vmem:[%s5762_s17 + $0x480] sm:$0xff] }
 0x853   : > { %v3102_v31 = vld [vmem:[%s5762_s17 + $0x488] sm:$0xff] }
 0x854   : > { %v2833_v40 = vadd.f32 %v6970_v42, %v6968_v46 }
 0x855   : > { %v2777_v49 = vpop.f32.mrf.mxu0 }
 0x856   : > { %2834 = vadd.xlane.f32.xlu2 %v2833_v40  ;;  %v3182_v40 = vld [vmem:[%s5762_s17 + $0x708] sm:$0xff] }
 0x857   : > { %3311 = vmatpush.msra.mxu2 %v3182_v40 }
 0x85d   : > { %v2780_v25 = vpop.f32.mrf.mxu0 }
 0x865   : > { %v2783_v32 = vpop.f32.mrf.mxu0 }
 0x8b5   : > { %v2748_v22 = vpop.f32.mrf.mxu1 }
 0x8b6   : > { %v2749_v4 = vadd.f32 %v2748_v22, %v2719_v6  ;;  %v3045_v22 = vld [vmem:[%s5762_s17 + $0x2c0] sm:$0xff] }
 0x8b8   : > { %v2817_v18 = vadd.f32 %v5343_v27, %v2749_v4  ;;  %v3046_v4 = vld [vmem:[%s5762_s17 + $0x2c8] sm:$0xff]  ;;  %v3037_v27 = vld [vmem:[%s5762_s17 + $0x280] sm:$0xff] }
 0x8ba   : > { %v6974_v47 = vadd.f32 %v2823_v19, %v2817_v18  ;;  %v3165_v18 = vld [vmem:[%s5762_s17 + $0x680] sm:$0xff] }
 0x8bb   : > { %v2806_v56 = vpop.f32.mrf.mxu2 }
 0x8bc   : > { %v2807_v62 = vadd.f32 %v2806_v56, %v2777_v49  ;;  %v3173_v49 = vld [vmem:[%s5762_s17 + $0x6c0] sm:$0xff]  ;;  %v3174_v56 = vld [vmem:[%s5762_s17 + $0x6c8] sm:$0xff] }
 0x8bd   : > { %v2751_v11 = vpop.f32.mrf.mxu1  ;;  %3254 = vmatpush.msra.mxu3 %v3173_v49  ;;  %3312 = vmatpush.msra.mxu2 %v3174_v56  ;;  %v3093_v49 = vld [vmem:[%s5762_s17 + $0x440] sm:$0xff]  ;;  %v3094_v56 = vld [vmem:[%s5762_s17 + $0x448] sm:$0xff] }
 0x8be   : > { %v2818_v38 = vadd.f32 %v5344_v36, %v2807_v62  ;;  %v2752_v10 = vadd.f32 %v2751_v11, %v2722_v44  ;;  %v3038_v62 = vld [vmem:[%s5762_s17 + $0x288] sm:$0xff]  ;;  %v3029_v36 = vld [vmem:[%s5762_s17 + $0x240] sm:$0xff] }
 0x8bf   : > { %3255 = vmatpush.msra.mxu3 %v3165_v18  ;;  %v3166_v11 = vld [vmem:[%s5762_s17 + $0x688] sm:$0xff]  ;;  %v2957_v18 = vld [vmem:[%s5762_s17] sm:$0xff] }
 0x8c0   : > { %v6976_v14 = vadd.f32 %v2824_v52, %v2818_v38  ;;  %v2819_v0 = vadd.f32 %v5345_v17, %v2752_v10  ;;  %3313 = vmatpush.msra.mxu2 %v3166_v11  ;;  %v3157_v38 = vld [vmem:[%s5762_s17 + $0x640] sm:$0xff]  ;;  %v3030_v10 = vld [vmem:[%s5762_s17 + $0x248] sm:$0xff] }
 0x8c1   : > { %3256 = vmatpush.msra.mxu3 %v3157_v38  ;;  %v3149_v17 = vld [vmem:[%s5762_s17 + $0x600] sm:$0xff]  ;;  %v3086_v38 = vld [vmem:[%s5762_s17 + $0x408] sm:$0xff] }
 0x8c2   : > { %v2836_v26 = vadd.f32 %v6976_v14, %v6974_v47  ;;  %v6980_v28 = vadd.f32 %v2823_v19, %v2819_v0  ;;  %v3022_v0 = vld [vmem:[%s5762_s17 + $0x208] sm:$0xff] }
 0x8c3   : > { %v2809_v21 = vpop.f32.mrf.mxu2  ;;  %3257 = vmatpush.msra.mxu3 %v3149_v17 }
 0x8c4   : > { %2837 = vadd.xlane.f32.xlu0 %v2836_v26  ;;  %v2810_v60 = vadd.f32 %v2809_v21, %v2780_v25  ;;  %v3158_v25 = vld [vmem:[%s5762_s17 + $0x648] sm:$0xff]  ;;  %v3021_v21 = vld [vmem:[%s5762_s17 + $0x200] sm:$0xff] }
 0x8c5   : > { %v2754_v33 = vpop.f32.mrf.mxu1  ;;  %3314 = vmatpush.msra.mxu2 %v3158_v25 }
 0x8c6   : > { %v2820_v55 = vadd.f32 %v5346_v45, %v2810_v60  ;;  %v2755_v8 = vadd.f32 %v2754_v33, %v2725_v2  ;;  %v3077_v2 = vld [vmem:[%s5762_s17 + $0x3c0] sm:$0xff]  ;;  %v3150_v33 = vld [vmem:[%s5762_s17 + $0x608] sm:$0xff] }
 0x8c7   : > { %3221 = vmatpush.msra.mxu1 %v3077_v2  ;;  %3315 = vmatpush.msra.mxu2 %v3150_v33  ;;  %v3013_v45 = vld [vmem:[%s5762_s17 + $0x1c0] sm:$0xff] }
 0x8c8   : > { %v6982_v9 = vadd.f32 %v2824_v52, %v2820_v55  ;;  %v2821_v35 = vadd.f32 %v5347_v43, %v2755_v8  ;;  %v3141_v55 = vld [vmem:[%s5762_s17 + $0x5c0] sm:$0xff]  ;;  %v3014_v8 = vld [vmem:[%s5762_s17 + $0x1c8] sm:$0xff] }
 0x8c9   : > { %v2835_v63 = vpop.xlane.xlu2 %2834  ;;  %3222 = vmatpush.msra.mxu1 %v3069_v39  ;;  %3258 = vmatpush.msra.mxu3 %v3141_v55  ;;  %v3117_v2 = vld [vmem:[%s5762_s17 + $0x500] sm:$0xff] }
 0x8ca   : > { %v2847_v37 = vmul.f32 %v2835_v63, %v8225_v51  ;;  %v2839_v53 = vadd.f32 %v6982_v9, %v6980_v28  ;;  %v6993_v57 = vadd.f32 %v2823_v19, %v2821_v35  ;;  %v3062_v19 = vld [vmem:[%s5762_s17 + $0x348] sm:$0xff]  ;;  %v2981_v39 = vld [vmem:[%s5762_s17 + $0xc0] sm:$0xff] }
 0x8cb   : > { %v2812_v34 = vpop.f32.mrf.mxu2  ;;  %3223 = vmatpush.msra.mxu1 %v3061_v20  ;;  %3281 = vmatpush.msra.mxu0 %v3062_v19  ;;  %v3142_v35 = vld [vmem:[%s5762_s17 + $0x5c8] sm:$0xff]  ;;  %v2973_v19 = vld [vmem:[%s5762_s17 + $0x80] sm:$0xff] }
 0x8cc   : > { %v6988_v54 = vsub.f32 %v6968_v46, %v2847_v37  ;;  %v6991_v50 = vsub.f32 %v6970_v42, %v2847_v37  ;;  %v2813_v3 = vadd.f32 %v2812_v34, %v2783_v32  ;;  %2840 = vadd.xlane.f32.xlu2 %v2839_v53  ;;  %v2842_v61 = vsel %vm770_vm9, %v6993_v57, 0.0  ;;  %3316 = vmatpush.msra.mxu2 %v3142_v35  ;;  %v3005_v37 = vld [vmem:[%s5762_s17 + $0x180] sm:$0xff]  ;;  %v3006_v32 = vld [vmem:[%s5762_s17 + $0x188] sm:$0xff] }
 0x8cd   : > { %3282 = vmatpush.msra.mxu0 %v3054_v24  ;;  %v3133_v53 = vld [vmem:[%s5762_s17 + $0x580] sm:$0xff] }
 0x8ce   : > { %v2822_v15 = vadd.f32 %v5348_v23, %v2813_v3  ;;  %v2859_v13 = vmul.f32 %v6988_v54, %v6988_v54  ;;  %v2860_v6 = vmul.f32 %v6991_v50, %v6991_v50  ;;  %3259 = vmatpush.msra.mxu3 %v3133_v53  ;;  %v3134_v23 = vld [vmem:[%s5762_s17 + $0x588] sm:$0xff]  ;;  %v2965_v24 = vld [vmem:[%s5762_s17 + $0x40] sm:$0xff] }
 0x8cf   : > { %3283 = vmatpush.msra.mxu0 %v3046_v4  ;;  %3317 = vmatpush.msra.mxu2 %v3134_v23  ;;  %v2966_v4 = vld [vmem:[%s5762_s17 + $0x48] sm:$0xff] }
 0x8d0   : > { %v6999_v30 = vadd.f32 %v2824_v52, %v2822_v15  ;;  %v2867_v16 = vadd.f32 %v2860_v6, %v2859_v13  ;;  %v3053_v52 = vld [vmem:[%s5762_s17 + $0x300] sm:$0xff]  ;;  %v2998_v6 = vld [vmem:[%s5762_s17 + $0x148] sm:$0xff] }
 0x8d1   : > { %3224 = vmatpush.msra.mxu1 %v3053_v52  ;;  %3284 = vmatpush.msra.mxu0 %v3038_v62  ;;  %v2997_v15 = vld [vmem:[%s5762_s17 + $0x140] sm:$0xff]  ;;  %v2974_v52 = vld [vmem:[%s5762_s17 + $0x88] sm:$0xff] }
 0x8d2   : > { %v2843_v41 = vsel %vm770_vm9, %v6999_v30, 0.0  ;;  %v3125_v13 = vld [vmem:[%s5762_s17 + $0x540] sm:$0xff] }
 0x8d3   : > { %v2844_v44 = vadd.f32 %v2843_v41, %v2842_v61  ;;  %3225 = vmatpush.msra.mxu1 %v3045_v22  ;;  %3285 = vmatpush.msra.mxu0 %v3030_v10  ;;  %v3126_v61 = vld [vmem:[%s5762_s17 + $0x548] sm:$0xff]  ;;  %v3085_v62 = vld [vmem:[%s5762_s17 + $0x400] sm:$0xff] }
 0x8d4   : > { %2868 = vadd.xlane.f32.xlu2 %v2867_v16  ;;  %3260 = vmatpush.msra.mxu3 %v3125_v13 }
 0x8d5   : > { %2845 = vadd.xlane.f32.xlu0 %v2844_v44  ;;  %3226 = vmatpush.msra.mxu1 %v3037_v27  ;;  %v2989_v44 = vld [vmem:[%s5762_s17 + $0x100] sm:$0xff] }
 0x8d6   : > { %3286 = vmatpush.msra.mxu0 %v3022_v0  ;;  %3318 = vmatpush.msra.mxu2 %v3126_v61  ;;  %v7112_v61 = vld [vmem:[%s5775_s14] sm:$0xff] }
 0x8d7   : > { %3227 = vmatpush.msra.mxu1 %v3029_v36  ;;  %3261 = vmatpush.msra.mxu3 %v3117_v2  ;;  %v2958_v36 = vld [vmem:[%s5762_s17 + $0x8] sm:$0xff] }
 0x8d8   : > { %3287 = vmatpush.msra.mxu0 %v3014_v8  ;;  %3319 = vmatpush.msra.mxu2 %v3118_v1 }
 0x8d9   : > { %3228 = vmatpush.msra.mxu1 %v3021_v21  ;;  %3262 = vmatpush.msra.mxu3 %v3109_v48 }
 0x8da   : > { %3288 = vmatpush.msra.mxu0 %v3006_v32  ;;  %3320 = vmatpush.msra.mxu2 %v3110_v5  ;;  %v3080_v5 = vld [vmem:[%s5762_s17 + $0x3d8] sm:$0xff] }
 0x8db   : > { %3229 = vmatpush.msra.mxu1 %v3013_v45  ;;  %3263 = vmatpush.msra.mxu3 %v3101_v7  ;;  %v3071_v7 = vld [vmem:[%s5762_s17 + $0x390] sm:$0xff] }
 0x8dc   : > { %3289 = vmatpush.msra.mxu0 %v2998_v6  ;;  %3321 = vmatpush.msra.mxu2 %v3102_v31  ;;  %v3072_v31 = vld [vmem:[%s5762_s17 + $0x398] sm:$0xff] }
 0x8dd   : > { %3230 = vmatpush.msra.mxu1 %v3005_v37  ;;  %3264 = vmatpush.msra.mxu3 %v3093_v49  ;;  %v3191_v49 = vld [vmem:[%s5762_s17 + $0x750] sm:$0xff] }
 0x8de   : > { %3290 = vmatpush.msra.mxu0 %v2990_v29  ;;  %3322 = vmatpush.msra.mxu2 %v3094_v56 }
 0x8df   : > { %3231 = vmatpush.msra.mxu1 %v2997_v15  ;;  %3265 = vmatpush.msra.mxu3 %v3085_v62  ;;  %v3183_v62 = vld [vmem:[%s5762_s17 + $0x710] sm:$0xff] }
 0x8e0   : > { %3291 = vmatpush.msra.mxu0 %v2982_v58  ;;  %3323 = vmatpush.msra.mxu2 %v3086_v38  ;;  %v3184_v38 = vld [vmem:[%s5762_s17 + $0x718] sm:$0xff] }
 0x8e1   : > { %3232 = vmatpush.msra.mxu1 %v2989_v44  ;;  %v7118_v44 = vld [vmem:[%s5775_s14 + $0x8] sm:$0xff] }
 0x8e2   : > { %3292 = vmatpush.msra.mxu0 %v2974_v52  ;;  %v7121_v2 = vperm.slane %v7118_v44, 2  ;;  %v3199_v52 = vld [vmem:[%s5762_s17 + $0x790] sm:$0xff] }
 0x8e3   : > { %3233 = vmatpush.msra.mxu1 %v2981_v39 }
 0x8e4   : > { %3293 = vmatpush.msra.mxu0 %v2966_v4  ;;  %v3064_v4 = vld [vmem:[%s5762_s17 + $0x358] sm:$0xff] }
 0x8e5   : > { %3234 = vmatpush.msra.mxu1 %v2973_v19  ;;  %v3208_v19 = vld [vmem:[%s5762_s17 + $0x7d8] sm:$0xff] }
 0x8e6   : > { %3294 = vmatpush.msra.mxu0 %v2958_v36  ;;  %3424 = vmatpush.msrb.mxu2 %v3208_v19  ;;  %v3007_v19 = vld [vmem:[%s5762_s17 + $0x190] sm:$0xff] }
 0x8e7   : > { %3235 = vmatpush.msra.mxu1 %v2965_v24  ;;  %v3200_v24 = vld [vmem:[%s5762_s17 + $0x798] sm:$0xff] }
 0x8e8   : > { %3395 = vmatpush.msrb.mxu0 %v3080_v5  ;;  %3425 = vmatpush.msrb.mxu2 %v3200_v24  ;;  %v3144_v5 = vld [vmem:[%s5762_s17 + $0x5d8] sm:$0xff] }
 0x8e9   : > { %3236 = vmatpush.msra.mxu1 %v2957_v18  ;;  %v3055_v18 = vld [vmem:[%s5762_s17 + $0x310] sm:$0xff]  ;;  %v3136_v24 = vld [vmem:[%s5762_s17 + $0x598] sm:$0xff] }
 0x8ea   : > { %3396 = vmatpush.msrb.mxu0 %v3072_v31  ;;  %v3008_v31 = vld [vmem:[%s5762_s17 + $0x198] sm:$0xff] }
 0x8ec   : > { %3397 = vmatpush.msrb.mxu0 %v3064_v4 }
 0x937   : > { %v2838_v26 = vpop.xlane.xlu0 %2837 }
 0x938   : > { %v2848_v60 = vmul.f32 %v2838_v26, %v8225_v51 }
 0x93a   : > { %v7042_v63 = vsub.f32 %v6974_v47, %v2848_v60  ;;  %v7045_v43 = vsub.f32 %v6976_v14, %v2848_v60 }
 0x93c   : > { %v2861_v34 = vmul.f32 %v7042_v63, %v7042_v63  ;;  %v2862_v3 = vmul.f32 %v7045_v43, %v7045_v43 }
 0x93e   : > { %v2870_v16 = vadd.f32 %v2862_v3, %v2861_v34  ;;  %v759_v34 = vld [vmem:[%s5775_s14 + $0x30] sm:$0xff]  ;;  %v760_v3 = vld [vmem:[%s5775_s14 + $0x38] sm:$0xff] }
 0x93f   : > { %v2841_v41 = vpop.xlane.xlu2 %2840  ;;  %v7107_v13 = vperm.slane %v759_v34, 1  ;;  %v7109_v6 = vperm.slane %v760_v3, 1  ;;  %v3160_v34 = vld [vmem:[%s5762_s17 + $0x658] sm:$0xff]  ;;  %v3023_v3 = vld [vmem:[%s5762_s17 + $0x210] sm:$0xff] }
 0x940   : > { %2871 = vadd.xlane.f32.xlu0 %v2870_v16  ;;  %v2849_v12 = vmul.f32 %v2841_v41, %v8225_v51  ;;  %v7115_v41 = vperm.slane %v7112_v61, 2 }
 0x942   : > { %v7069_v59 = vsub.f32 %v6980_v28, %v2849_v12  ;;  %v7072_v20 = vsub.f32 %v6982_v9, %v2849_v12 }
 0x944   : > { %v2863_v40 = vmul.f32 %v7069_v59, %v7069_v59  ;;  %v2864_v22 = vmul.f32 %v7072_v20, %v7072_v20 }
 0x946   : > { %v2873_v27 = vadd.f32 %v2864_v22, %v2863_v40  ;;  %v3063_v22 = vld [vmem:[%s5762_s17 + $0x350] sm:$0xff] }
 0x947   : > { %v2869_v11 = vpop.xlane.xlu2 %2868 }
 0x948   : > { %v2881_v10 = vmul.f32 %v2869_v11, %v8225_v51  ;;  %v2846_v25 = vpop.xlane.xlu0 %2845  ;;  %2874 = vadd.xlane.f32.xlu2 %v2873_v27  ;;  %v3192_v27 = vld [vmem:[%s5762_s17 + $0x758] sm:$0xff] }
 0x949   : > { %v2850_v26 = vmul.f32 %v2846_v25, %v8225_v51  ;;  %3426 = vmatpush.msrb.mxu2 %v3192_v27  ;;  %v3056_v11 = vld [vmem:[%s5762_s17 + $0x318] sm:$0xff]  ;;  %v3175_v25 = vld [vmem:[%s5762_s17 + $0x6d0] sm:$0xff] }
 0x94a   : > { %v2885_v21 = vadd.f32 1e-05, %v2881_v10  ;;  %3398 = vmatpush.msrb.mxu0 %v3056_v11  ;;  %v3047_v10 = vld [vmem:[%s5762_s17 + $0x2d0] sm:$0xff]  ;;  %v3120_v11 = vld [vmem:[%s5762_s17 + $0x518] sm:$0xff] }
 0x94b   : > { %v7094_v17 = vsub.f32 %v6993_v57, %v2850_v26  ;;  %v7097_v0 = vsub.f32 %v6999_v30, %v2850_v26  ;;  %3427 = vmatpush.msrb.mxu2 %v3184_v38  ;;  %v3048_v26 = vld [vmem:[%s5762_s17 + $0x2d8] sm:$0xff]  ;;  %v2991_v27 = vld [vmem:[%s5762_s17 + $0x110] sm:$0xff] }
 0x94c   : > { %5269 = vrsqrt.f32 %v2885_v21  ;;  %vm2895_vm10 = vweird.f32 %v2885_v21  ;;  %3399 = vmatpush.msrb.mxu0 %v3048_v26  ;;  %v3111_v26 = vld [vmem:[%s5762_s17 + $0x4d0] sm:$0xff] }
 0x94d   : > { %v2865_v60 = vmul.f32 %v7094_v17, %v7094_v17  ;;  %v2866_v33 = vmul.f32 %v7097_v0, %v7097_v0 }
 0x94f   : > { %v2876_v45 = vsel %vm770_vm9, %v2865_v60, 0.0  ;;  %v2877_v55 = vsel %vm770_vm9, %v2866_v33, 0.0  ;;  %v3039_v60 = vld [vmem:[%s5762_s17 + $0x290] sm:$0xff] }
 0x950   : > { %v2878_v8 = vadd.f32 %v2877_v55, %v2876_v45  ;;  %v3167_v33 = vld [vmem:[%s5762_s17 + $0x690] sm:$0xff]  ;;  %v3040_v45 = vld [vmem:[%s5762_s17 + $0x298] sm:$0xff] }
 0x951   : > { %v3168_v55 = vld [vmem:[%s5762_s17 + $0x698] sm:$0xff]  ;;  %3400 = vmatpush.msrb.mxu0 %v3040_v45 }
 0x952   : > { %v5270_v35 = vpop.eup %5269  ;;  %2879 = vadd.xlane.f32.xlu0 %v2878_v8  ;;  %v3112_v45 = vld [vmem:[%s5762_s17 + $0x4d8] sm:$0xff] }
 0x953   : > { %v2890_v37 = vmul.f32 %v5270_v35, %v2885_v21  ;;  %vm2896_vm3 = vweird.f32 %v5270_v35  ;;  %v3176_v21 = vld [vmem:[%s5762_s17 + $0x6d8] sm:$0xff] }
 0x954   : > { %vm2897_vm4 = vmor %vm2895_vm10, %vm2896_vm3  ;;  %3428 = vmatpush.msrb.mxu2 %v3176_v21 }
 0x955   : > { %v2891_v53 = vmul.f32 %v5270_v35, %v2890_v37  ;;  %v3159_v37 = vld [vmem:[%s5762_s17 + $0x650] sm:$0xff] }
 0x956   : > { %3429 = vmatpush.msrb.mxu2 %v3168_v55 }
 0x957   : > { %v2892_v32 = vmul.f32 0.5, %v2891_v53  ;;  %v3032_v53 = vld [vmem:[%s5762_s17 + $0x258] sm:$0xff] }
 0x958   : > { %3401 = vmatpush.msrb.mxu0 %v3032_v53  ;;  %3430 = vmatpush.msrb.mxu2 %v3160_v34  ;;  %v2976_v53 = vld [vmem:[%s5762_s17 + $0x98] sm:$0xff] }
 0x959   : > { %v2893_v23 = vsub.f32 1.5, %v2892_v32 }
 0x95b   : > { %v2894_v15 = vmul.f32 %v5270_v35, %v2893_v23  ;;  %v3151_v23 = vld [vmem:[%s5762_s17 + $0x610] sm:$0xff] }
 0x95d   : > { %v2898_v16 = vsel %vm2897_vm4, %v5270_v35, %v2894_v15  ;;  %v3031_v35 = vld [vmem:[%s5762_s17 + $0x250] sm:$0xff]  ;;  %v3024_v15 = vld [vmem:[%s5762_s17 + $0x218] sm:$0xff] }
 0x95e   : > { %v2929_v29 = vmul.f32 %v2898_v16, %v6988_v54  ;;  %v2930_v12 = vmul.f32 %v2898_v16, %v6991_v50  ;;  %v3079_v54 = vld [vmem:[%s5762_s17 + $0x3d0] sm:$0xff]  ;;  %3402 = vmatpush.msrb.mxu0 %v3024_v15 }
 0x95f   : > { %v3207_v50 = vld [vmem:[%s5762_s17 + $0x7d0] sm:$0xff]  ;;  %3337 = vmatpush.msrb.mxu1 %v3079_v54 }
 0x960   : > { %v2939_v1 = vmul.f32 %v7107_v13, %v2929_v29  ;;  %v2940_v39 = vmul.f32 %v7109_v6, %v2930_v12  ;;  %3366 = vmatpush.msrb.mxu3 %v3207_v50  ;;  %v3152_v12 = vld [vmem:[%s5762_s17 + $0x618] sm:$0xff]  ;;  %v3143_v54 = vld [vmem:[%s5762_s17 + $0x5d0] sm:$0xff] }
 0x961   : > { %3338 = vmatpush.msrb.mxu1 %v3071_v7  ;;  %3431 = vmatpush.msrb.mxu2 %v3152_v12  ;;  %v3016_v50 = vld [vmem:[%s5762_s17 + $0x1d8] sm:$0xff]  ;;  %v3095_v12 = vld [vmem:[%s5762_s17 + $0x450] sm:$0xff] }
 0x962   : > { %v7128_v48 = vadd.f32 %v7115_v41, %v2939_v1  ;;  %v7131_v58 = vadd.f32 %v7121_v2, %v2940_v39  ;;  %3367 = vmatpush.msrb.mxu3 %v3199_v52  ;;  %v3015_v39 = vld [vmem:[%s5762_s17 + $0x1d0] sm:$0xff]  ;;  %3403 = vmatpush.msrb.mxu0 %v3016_v50 }
 0x963   : > { %3339 = vmatpush.msrb.mxu1 %v3063_v22  ;;  %3432 = vmatpush.msrb.mxu2 %v3144_v5  ;;  %v3135_v52 = vld [vmem:[%s5762_s17 + $0x590] sm:$0xff] }
 0x964   : > { %3237 = vmatmul.f32.vlgmr.msra.gmra.mxu1 %v7128_v48  ;;  %3266 = vmatmul.f32.vlgmr.msra.gmra.mxu3 %v7131_v58  ;;  %v3127_v22 = vld [vmem:[%s5762_s17 + $0x550] sm:$0xff] }
 0x965   : > { %3295 = vmatmul.f32.vlgmr.msra.gmra.mxu0 %v7128_v48  ;;  %3324 = vmatmul.f32.vlgmr.msra.gmra.mxu2 %v7131_v58  ;;  %v2959_v50 = vld [vmem:[%s5762_s17 + $0x10] sm:$0xff] }
 0x966   : > { %3368 = vmatpush.msrb.mxu3 %v3191_v49  ;;  %3340 = vmatpush.msrb.mxu1 %v3055_v18  ;;  %v3000_v49 = vld [vmem:[%s5762_s17 + $0x158] sm:$0xff]  ;;  %v3119_v18 = vld [vmem:[%s5762_s17 + $0x510] sm:$0xff] }
 0x967   : > { %3404 = vmatpush.msrb.mxu0 %v3008_v31  ;;  %3433 = vmatpush.msrb.mxu2 %v3136_v24  ;;  %v3087_v5 = vld [vmem:[%s5762_s17 + $0x410] sm:$0xff]  ;;  %v3088_v31 = vld [vmem:[%s5762_s17 + $0x418] sm:$0xff] }
 0x968   : > { %3369 = vmatpush.msrb.mxu3 %v3183_v62  ;;  %3341 = vmatpush.msrb.mxu1 %v3047_v10  ;;  %v2992_v62 = vld [vmem:[%s5762_s17 + $0x118] sm:$0xff] }
 0x969   : > { %3405 = vmatpush.msrb.mxu0 %v3000_v49 }
 0x96a   : > { %3370 = vmatpush.msrb.mxu3 %v3175_v25  ;;  %3342 = vmatpush.msrb.mxu1 %v3039_v60  ;;  %v2983_v25 = vld [vmem:[%s5762_s17 + $0xd0] sm:$0xff] }
 0x96b   : > { %3406 = vmatpush.msrb.mxu0 %v2992_v62  ;;  %v3201_v62 = vld [vmem:[%s5762_s17 + $0x7a0] sm:$0xff] }
 0x96c   : > { %3371 = vmatpush.msrb.mxu3 %v3167_v33  ;;  %3343 = vmatpush.msrb.mxu1 %v3031_v35  ;;  %v2984_v33 = vld [vmem:[%s5762_s17 + $0xd8] sm:$0xff]  ;;  %v2975_v35 = vld [vmem:[%s5762_s17 + $0x90] sm:$0xff] }
 0x96d   : > { %3407 = vmatpush.msrb.mxu0 %v2984_v33 }
 0x96e   : > { %3372 = vmatpush.msrb.mxu3 %v3159_v37  ;;  %3344 = vmatpush.msrb.mxu1 %v3023_v3  ;;  %v3103_v37 = vld [vmem:[%s5762_s17 + $0x490] sm:$0xff] }
 0x96f   : > { %3408 = vmatpush.msrb.mxu0 %v2976_v53  ;;  %v3057_v53 = vld [vmem:[%s5762_s17 + $0x320] sm:$0xff] }
 0x970   : > { %3373 = vmatpush.msrb.mxu3 %v3151_v23  ;;  %3345 = vmatpush.msrb.mxu1 %v3015_v39 }
 0x972   : > { %3374 = vmatpush.msrb.mxu3 %v3143_v54  ;;  %3346 = vmatpush.msrb.mxu1 %v3007_v19  ;;  %v2960_v19 = vld [vmem:[%s5762_s17 + $0x18] sm:$0xff] }
 0x974   : > { %3375 = vmatpush.msrb.mxu3 %v3135_v52 }
 0x976   : > { %3376 = vmatpush.msrb.mxu3 %v3127_v22  ;;  %v3209_v22 = vld [vmem:[%s5762_s17 + $0x7e0] sm:$0xff] }
 0x978   : > { %3377 = vmatpush.msrb.mxu3 %v3119_v18  ;;  %v3073_v18 = vld [vmem:[%s5762_s17 + $0x3a0] sm:$0xff] }
 0x97a   : > { %3378 = vmatpush.msrb.mxu3 %v3111_v26 }
 0x97c   : > { %3379 = vmatpush.msrb.mxu3 %v3103_v37 }
 0x97e   : > { %3380 = vmatpush.msrb.mxu3 %v3095_v12  ;;  %v3178_v12 = vld [vmem:[%s5762_s17 + $0x6e8] sm:$0xff] }
 0x980   : > { %3381 = vmatpush.msrb.mxu3 %v3087_v5  ;;  %v3033_v5 = vld [vmem:[%s5762_s17 + $0x260] sm:$0xff] }
 0x982   : > { %3482 = vmatpush.msra.mxu3 %v3209_v22 }
 0x984   : > { %3483 = vmatpush.msra.mxu3 %v3201_v62  ;;  %v3010_v62 = vld [vmem:[%s5762_s17 + $0x1a8] sm:$0xff] }
 0x9b3   : > { %v2872_v40 = vpop.xlane.xlu0 %2871 }
 0x9b4   : > { %v2882_v56 = vmul.f32 %v2872_v40, %v8225_v51  ;;  %v2999_v40 = vld [vmem:[%s5762_s17 + $0x150] sm:$0xff] }
 0x9b5   : > { %3347 = vmatpush.msrb.mxu1 %v2999_v40  ;;  %v3081_v40 = vld [vmem:[%s5762_s17 + $0x3e0] sm:$0xff] }
 0x9b6   : > { %v7153_v36 = vadd.f32 1e-05, %v2882_v56  ;;  %v3128_v56 = vld [vmem:[%s5762_s17 + $0x558] sm:$0xff] }
 0x9b7   : > { %3434 = vmatpush.msrb.mxu2 %v3128_v56  ;;  %3348 = vmatpush.msrb.mxu1 %v2991_v27  ;;  %v3210_v56 = vld [vmem:[%s5762_s17 + $0x7e8] sm:$0xff] }
 0x9b8   : > { %5271 = vrsqrt.f32 %v7153_v36  ;;  %vm2905_vm5 = vweird.f32 %v7153_v36 }
 0x9b9   : > { %3435 = vmatpush.msrb.mxu2 %v3120_v11  ;;  %3349 = vmatpush.msrb.mxu1 %v2983_v25  ;;  %v3202_v25 = vld [vmem:[%s5762_s17 + $0x7a8] sm:$0xff] }
 0x9bb   : > { %v2875_v8 = vpop.xlane.xlu2 %2874  ;;  %3436 = vmatpush.msrb.mxu2 %v3112_v45  ;;  %3350 = vmatpush.msrb.mxu1 %v2975_v35 }
 0x9bc   : > { %v2883_v32 = vmul.f32 %v2875_v8, %v8225_v51 }
 0x9be   : > { %v7173_v16 = vpop.eup %5271  ;;  %v7175_v29 = vadd.f32 1e-05, %v2883_v32  ;;  %v3104_v32 = vld [vmem:[%s5762_s17 + $0x498] sm:$0xff] }
 0x9bf   : > { %v2900_v1 = vmul.f32 %v7173_v16, %v7153_v36  ;;  %vm2906_vm9 = vweird.f32 %v7173_v16  ;;  %3437 = vmatpush.msrb.mxu2 %v3104_v32  ;;  %v3185_v32 = vld [vmem:[%s5762_s17 + $0x720] sm:$0xff] }
 0x9c0   : > { %5273 = vrsqrt.f32 %v7175_v29  ;;  %vm2907_vm6 = vmor %vm2905_vm5, %vm2906_vm9  ;;  %vm2915_vm12 = vweird.f32 %v7175_v29 }
 0x9c1   : > { %v2901_v7 = vmul.f32 %v7173_v16, %v2900_v1  ;;  %v2968_v1 = vld [vmem:[%s5762_s17 + $0x58] sm:$0xff] }
 0x9c2   : > { %3409 = vmatpush.msrb.mxu0 %v2968_v1 }
 0x9c3   : > { %v2902_v4 = vmul.f32 0.5, %v2901_v7 }
 0x9c4   : > { %3410 = vmatpush.msrb.mxu0 %v2960_v19  ;;  %v3161_v19 = vld [vmem:[%s5762_s17 + $0x660] sm:$0xff] }
 0x9c5   : > { %v2903_v38 = vsub.f32 1.5, %v2902_v4  ;;  %v2880_v10 = vpop.xlane.xlu0 %2879  ;;  %v3082_v4 = vld [vmem:[%s5762_s17 + $0x3e8] sm:$0xff] }
 0x9c6   : > { %v7201_v21 = vpop.eup %5273  ;;  %v2884_v60 = vmul.f32 %v2880_v10, %v8225_v51  ;;  %v3074_v10 = vld [vmem:[%s5762_s17 + $0x3a8] sm:$0xff]  ;;  %3511 = vmatpush.msra.mxu0 %v3082_v4  ;;  %v3145_v4 = vld [vmem:[%s5762_s17 + $0x5e0] sm:$0xff] }
 0x9c7   : > { %v2904_v55 = vmul.f32 %v7173_v16, %v2903_v38  ;;  %v2910_v8 = vmul.f32 %v7201_v21, %v7175_v29  ;;  %vm2916_vm11 = vweird.f32 %v7201_v21 }
 0x9c8   : > { %v7214_v51 = vadd.f32 1e-05, %v2884_v60  ;;  %vm2917_vm13 = vmor %vm2915_vm12, %vm2916_vm11  ;;  %v3193_v60 = vld [vmem:[%s5762_s17 + $0x760] sm:$0xff]  ;;  %3512 = vmatpush.msra.mxu0 %v3074_v10 }
 0x9c9   : > { %v2908_v36 = vsel %vm2907_vm6, %v7173_v16, %v2904_v55  ;;  %v2911_v34 = vmul.f32 %v7201_v21, %v2910_v8  ;;  %v2967_v16 = vld [vmem:[%s5762_s17 + $0x50] sm:$0xff]  ;;  %v3194_v55 = vld [vmem:[%s5762_s17 + $0x768] sm:$0xff]  ;;  %3484 = vmatpush.msra.mxu3 %v3193_v60  ;;  %v3129_v10 = vld [vmem:[%s5762_s17 + $0x560] sm:$0xff] }
 0x9ca   : > { %v2931_v3 = vmul.f32 %v2908_v36, %v7042_v63  ;;  %v2932_v23 = vmul.f32 %v2908_v36, %v7045_v43  ;;  %5275 = vrsqrt.f32 %v7214_v51  ;;  %3351 = vmatpush.msrb.mxu1 %v2967_v16  ;;  %v3096_v43 = vld [vmem:[%s5762_s17 + $0x458] sm:$0xff]  ;;  %v3058_v36 = vld [vmem:[%s5762_s17 + $0x328] sm:$0xff]  ;;  %vm2925_vm0 = vweird.f32 %v7214_v51  ;;  %v3121_v60 = vld [vmem:[%s5762_s17 + $0x520] sm:$0xff] }
 0x9cb   : > { %v2912_v15 = vmul.f32 0.5, %v2911_v34  ;;  %3438 = vmatpush.msrb.mxu2 %v3096_v43  ;;  %v3186_v34 = vld [vmem:[%s5762_s17 + $0x728] sm:$0xff]  ;;  %3485 = vmatpush.msra.mxu3 %v3185_v32  ;;  %v3105_v32 = vld [vmem:[%s5762_s17 + $0x4a0] sm:$0xff] }
 0x9cc   : > { %v2941_v39 = vmul.f32 %v7107_v13, %v2931_v3  ;;  %v2942_v63 = vmul.f32 %v7109_v6, %v2932_v23  ;;  %3352 = vmatpush.msrb.mxu1 %v2959_v50  ;;  %v3049_v23 = vld [vmem:[%s5762_s17 + $0x2e0] sm:$0xff]  ;;  %v3050_v16 = vld [vmem:[%s5762_s17 + $0x2e8] sm:$0xff] }
 0x9cd   : > { %v2913_v54 = vsub.f32 1.5, %v2912_v15  ;;  %3439 = vmatpush.msrb.mxu2 %v3088_v31  ;;  %v3177_v15 = vld [vmem:[%s5762_s17 + $0x6e0] sm:$0xff]  ;;  %v3170_v50 = vld [vmem:[%s5762_s17 + $0x6a8] sm:$0xff] }
 0x9ce   : > { %v7234_v7 = vadd.f32 %v7115_v41, %v2941_v39  ;;  %v7237_v52 = vadd.f32 %v7121_v2, %v2942_v63  ;;  %3453 = vmatpush.msra.mxu1 %v3081_v40  ;;  %v3169_v39 = vld [vmem:[%s5762_s17 + $0x6a0] sm:$0xff]  ;;  %3486 = vmatpush.msra.mxu3 %v3177_v15  ;;  %v2970_v15 = vld [vmem:[%s5762_s17 + $0x68] sm:$0xff] }
 0x9cf   : > { %v2914_v24 = vmul.f32 %v7201_v21, %v2913_v54  ;;  %3540 = vmatpush.msra.mxu2 %v3210_v56  ;;  %v3042_v54 = vld [vmem:[%s5762_s17 + $0x2a8] sm:$0xff] }
 0x9d0   : > { %v5276_v49 = vpop.eup %5275  ;;  %3240 = vmatmul.f32.gmra.mxu1 %v7234_v7  ;;  %3269 = vmatmul.f32.gmra.mxu3 %v7237_v52  ;;  %v3018_v56 = vld [vmem:[%s5762_s17 + $0x1e8] sm:$0xff] }
 0x9d1   : > { %v2918_v29 = vsel %vm2917_vm13, %v7201_v21, %v2914_v24  ;;  %v2920_v27 = vmul.f32 %v5276_v49, %v7214_v51  ;;  %3298 = vmatmul.f32.gmra.mxu0 %v7234_v7  ;;  %3327 = vmatmul.f32.gmra.mxu2 %v7237_v52  ;;  %v3065_v21 = vld [vmem:[%s5762_s17 + $0x360] sm:$0xff]  ;;  %vm2926_vm15 = vweird.f32 %v5276_v49 }
 0x9d2   : > { %v2933_v11 = vmul.f32 %v2918_v29, %v7069_v59  ;;  %v2934_v38 = vmul.f32 %v2918_v29, %v7072_v20  ;;  %3454 = vmatpush.msra.mxu1 %v3073_v18  ;;  %v3066_v59 = vld [vmem:[%s5762_s17 + $0x368] sm:$0xff]  ;;  %3541 = vmatpush.msra.mxu2 %v3202_v25  ;;  %vm2927_vm8 = vmor %vm2925_vm0, %vm2926_vm15  ;;  %v3041_v51 = vld [vmem:[%s5762_s17 + $0x2a0] sm:$0xff] }
 0x9d3   : > { %v2921_v26 = vmul.f32 %v5276_v49, %v2920_v27  ;;  %3513 = vmatpush.msra.mxu0 %v3066_v59  ;;  %3487 = vmatpush.msra.mxu3 %v3169_v39  ;;  %v3146_v29 = vld [vmem:[%s5762_s17 + $0x5e8] sm:$0xff]  ;;  %v3009_v27 = vld [vmem:[%s5762_s17 + $0x1a0] sm:$0xff] }
 0x9d4   : > { %v2943_v33 = vmul.f32 %v7107_v13, %v2933_v11  ;;  %v2944_v45 = vmul.f32 %v7109_v6, %v2934_v38  ;;  %3455 = vmatpush.msra.mxu1 %v3065_v21  ;;  %3542 = vmatpush.msra.mxu2 %v3194_v55  ;;  %v3137_v18 = vld [vmem:[%s5762_s17 + $0x5a0] sm:$0xff]  ;;  %v3138_v11 = vld [vmem:[%s5762_s17 + $0x5a8] sm:$0xff] }
 0x9d5   : > { %v2922_v20 = vmul.f32 0.5, %v2921_v26  ;;  %3514 = vmatpush.msra.mxu0 %v3058_v36  ;;  %3488 = vmatpush.msra.mxu3 %v3161_v19  ;;  %v3001_v38 = vld [vmem:[%s5762_s17 + $0x160] sm:$0xff]  ;;  %v3002_v25 = vld [vmem:[%s5762_s17 + $0x168] sm:$0xff]  ;;  %v3203_v19 = vld [vmem:[%s5762_s17 + $0x7b0] sm:$0xff] }
 0x9d6   : > { %v7267_v8 = vadd.f32 %v7115_v41, %v2943_v33  ;;  %v7270_v35 = vadd.f32 %v7121_v2, %v2944_v45  ;;  %3456 = vmatpush.msra.mxu1 %v3057_v53  ;;  %3543 = vmatpush.msra.mxu2 %v3186_v34  ;;  %v3130_v26 = vld [vmem:[%s5762_s17 + $0x568] sm:$0xff]  ;;  %v2993_v21 = vld [vmem:[%s5762_s17 + $0x120] sm:$0xff] }
 0x9d7   : > { %v2923_v37 = vsub.f32 1.5, %v2922_v20  ;;  %3515 = vmatpush.msra.mxu0 %v3050_v16  ;;  %v2994_v33 = vld [vmem:[%s5762_s17 + $0x128] sm:$0xff]  ;;  %v2985_v59 = vld [vmem:[%s5762_s17 + $0xe0] sm:$0xff] }
 0x9d8   : > { %3243 = vmatmul.f32.gmra.mxu1 %v7267_v8  ;;  %3272 = vmatmul.f32.gmra.mxu3 %v7270_v35  ;;  %v3122_v45 = vld [vmem:[%s5762_s17 + $0x528] sm:$0xff]  ;;  %v3113_v55 = vld [vmem:[%s5762_s17 + $0x4e0] sm:$0xff] }
 0x9d9   : > { %v2924_v3 = vmul.f32 %v5276_v49, %v2923_v37  ;;  %3301 = vmatmul.f32.gmra.mxu0 %v7267_v8  ;;  %3330 = vmatmul.f32.gmra.mxu2 %v7270_v35  ;;  %v2986_v20 = vld [vmem:[%s5762_s17 + $0xe8] sm:$0xff]  ;;  %v2977_v53 = vld [vmem:[%s5762_s17 + $0xa0] sm:$0xff] }
 0x9da   : > { %3457 = vmatpush.msra.mxu1 %v3049_v23  ;;  %3544 = vmatpush.msra.mxu2 %v3178_v12  ;;  %v3114_v37 = vld [vmem:[%s5762_s17 + $0x4e8] sm:$0xff]  ;;  %v3097_v23 = vld [vmem:[%s5762_s17 + $0x460] sm:$0xff] }
 0x9db   : > { %v2928_v1 = vsel %vm2927_vm8, %v5276_v49, %v2924_v3  ;;  %3516 = vmatpush.msra.mxu0 %v3042_v54  ;;  %v3026_v49 = vld [vmem:[%s5762_s17 + $0x228] sm:$0xff]  ;;  %v2969_v3 = vld [vmem:[%s5762_s17 + $0x60] sm:$0xff]  ;;  %v3084_v54 = vld [vmem:[%s5762_s17 + $0x3f8] sm:$0xff] }
 0x9dc   : > { %v2935_v63 = vmul.f32 %v2928_v1, %v7094_v17  ;;  %v2936_v43 = vmul.f32 %v2928_v1, %v7097_v0  ;;  %3458 = vmatpush.msra.mxu1 %v3041_v51  ;;  %v3034_v17 = vld [vmem:[%s5762_s17 + $0x268] sm:$0xff]  ;;  %3545 = vmatpush.msra.mxu2 %v3170_v50  ;;  %v2961_v12 = vld [vmem:[%s5762_s17 + $0x20] sm:$0xff]  ;;  %v3212_v50 = vld [vmem:[%s5762_s17 + $0x7f8] sm:$0xff] }
 0x9dd   : > { %v3162_v0 = vld [vmem:[%s5762_s17 + $0x668] sm:$0xff]  ;;  %3517 = vmatpush.msra.mxu0 %v3034_v17  ;;  %v3089_v1 = vld [vmem:[%s5762_s17 + $0x420] sm:$0xff]  ;;  %v3067_v17 = vld [vmem:[%s5762_s17 + $0x370] sm:$0xff] }
 0x9de   : > { %v2945_v31 = vmul.f32 %v7107_v13, %v2935_v63  ;;  %v2946_v24 = vmul.f32 %v7109_v6, %v2936_v43  ;;  %3459 = vmatpush.msra.mxu1 %v3033_v5  ;;  %3546 = vmatpush.msra.mxu2 %v3162_v0  ;;  %v3025_v13 = vld [vmem:[%s5762_s17 + $0x220] sm:$0xff]  ;;  %v2978_v36 = vld [vmem:[%s5762_s17 + $0xa8] sm:$0xff]  ;;  %v3083_v63 = vld [vmem:[%s5762_s17 + $0x3f0] sm:$0xff] }
 0x9df   : > { %v3153_v6 = vld [vmem:[%s5762_s17 + $0x620] sm:$0xff]  ;;  %3518 = vmatpush.msra.mxu0 %v3026_v49  ;;  %v3106_v34 = vld [vmem:[%s5762_s17 + $0x4a8] sm:$0xff]  ;;  %v3211_v43 = vld [vmem:[%s5762_s17 + $0x7f0] sm:$0xff] }
 0x9e0   : > { %v7299_v40 = vadd.f32 %v7115_v41, %v2945_v31  ;;  %v7302_v22 = vadd.f32 %v7121_v2, %v2946_v24  ;;  %v3154_v41 = vld [vmem:[%s5762_s17 + $0x628] sm:$0xff]  ;;  %v3017_v2 = vld [vmem:[%s5762_s17 + $0x1e0] sm:$0xff]  ;;  %3460 = vmatpush.msra.mxu1 %v3025_v13  ;;  %3489 = vmatpush.msra.mxu3 %v3153_v6  ;;  %v3075_v5 = vld [vmem:[%s5762_s17 + $0x3b0] sm:$0xff] }
 0x9e1   : > { %3547 = vmatpush.msra.mxu2 %v3154_v41  ;;  %3519 = vmatpush.msra.mxu0 %v3018_v56  ;;  %v3098_v16 = vld [vmem:[%s5762_s17 + $0x468] sm:$0xff]  ;;  %v3076_v31 = vld [vmem:[%s5762_s17 + $0x3b8] sm:$0xff]  ;;  %v3195_v0 = vld [vmem:[%s5762_s17 + $0x770] sm:$0xff] }
 0x9e2   : > { %3246 = vmatmul.f32.gmra.mxu1 %v7299_v40  ;;  %3275 = vmatmul.f32.gmra.mxu3 %v7302_v22  ;;  %v2962_v51 = vld [vmem:[%s5762_s17 + $0x28] sm:$0xff]  ;;  %v3204_v24 = vld [vmem:[%s5762_s17 + $0x7b8] sm:$0xff]  ;;  %v3059_v49 = vld [vmem:[%s5762_s17 + $0x330] sm:$0xff] }
 0x9e3   : > { %3304 = vmatmul.f32.gmra.mxu0 %v7299_v40  ;;  %3333 = vmatmul.f32.gmra.mxu2 %v7302_v22  ;;  %v3090_v39 = vld [vmem:[%s5762_s17 + $0x428] sm:$0xff]  ;;  %v3068_v13 = vld [vmem:[%s5762_s17 + $0x378] sm:$0xff]  ;;  %v3187_v41 = vld [vmem:[%s5762_s17 + $0x730] sm:$0xff] }
 0x9e4   : > { %3461 = vmatpush.msra.mxu1 %v3017_v2  ;;  %3490 = vmatpush.msra.mxu3 %v3145_v4  ;;  %v3196_v6 = vld [vmem:[%s5762_s17 + $0x778] sm:$0xff]  ;;  %v3051_v56 = vld [vmem:[%s5762_s17 + $0x2f0] sm:$0xff] }
 0x9e5   : > { %3548 = vmatpush.msra.mxu2 %v3146_v29  ;;  %3520 = vmatpush.msra.mxu0 %v3010_v62  ;;  %v3060_v2 = vld [vmem:[%s5762_s17 + $0x338] sm:$0xff]  ;;  %v3179_v29 = vld [vmem:[%s5762_s17 + $0x6f0] sm:$0xff] }
 0x9e6   : > { %3462 = vmatpush.msra.mxu1 %v3009_v27  ;;  %3491 = vmatpush.msra.mxu3 %v3137_v18  ;;  %v3188_v4 = vld [vmem:[%s5762_s17 + $0x738] sm:$0xff]  ;;  %v3043_v62 = vld [vmem:[%s5762_s17 + $0x2b0] sm:$0xff] }
 0x9e7   : > { %3549 = vmatpush.msra.mxu2 %v3138_v11  ;;  %3521 = vmatpush.msra.mxu0 %v3002_v25  ;;  %v3052_v27 = vld [vmem:[%s5762_s17 + $0x2f8] sm:$0xff]  ;;  %v3171_v11 = vld [vmem:[%s5762_s17 + $0x6b0] sm:$0xff] }
 0x9e8   : > { %3463 = vmatpush.msra.mxu1 %v3001_v38  ;;  %3492 = vmatpush.msra.mxu3 %v3129_v10  ;;  %v3180_v18 = vld [vmem:[%s5762_s17 + $0x6f8] sm:$0xff]  ;;  %v3035_v25 = vld [vmem:[%s5762_s17 + $0x270] sm:$0xff] }
 0x9e9   : > { %3550 = vmatpush.msra.mxu2 %v3130_v26  ;;  %3522 = vmatpush.msra.mxu0 %v2994_v33  ;;  %v3044_v38 = vld [vmem:[%s5762_s17 + $0x2b8] sm:$0xff]  ;;  %v3163_v26 = vld [vmem:[%s5762_s17 + $0x670] sm:$0xff] }
 0x9ea   : > { %3353 = vmatmul.f32.vlgmr.msrb.gmra.mxu1 %v7128_v48  ;;  %3382 = vmatmul.f32.vlgmr.msrb.gmra.mxu3 %v7131_v58  ;;  %v3172_v10 = vld [vmem:[%s5762_s17 + $0x6b8] sm:$0xff]  ;;  %v3027_v33 = vld [vmem:[%s5762_s17 + $0x230] sm:$0xff] }
 0x9eb   : > { %3411 = vmatmul.f32.vlgmr.msrb.gmra.mxu0 %v7128_v48  ;;  %3440 = vmatmul.f32.vlgmr.msrb.gmra.mxu2 %v7131_v58 }
 0x9ec   : > { %3464 = vmatpush.msra.mxu1 %v2993_v21  ;;  %3493 = vmatpush.msra.mxu3 %v3121_v60  ;;  %v3036_v21 = vld [vmem:[%s5762_s17 + $0x278] sm:$0xff] }
 0x9ed   : > { %3551 = vmatpush.msra.mxu2 %v3122_v45  ;;  %3523 = vmatpush.msra.mxu0 %v2986_v20  ;;  %v3164_v60 = vld [vmem:[%s5762_s17 + $0x678] sm:$0xff]  ;;  %v3155_v45 = vld [vmem:[%s5762_s17 + $0x630] sm:$0xff] }
 0x9ee   : > { %3465 = vmatpush.msra.mxu1 %v2985_v59  ;;  %3494 = vmatpush.msra.mxu3 %v3113_v55  ;;  %v3028_v59 = vld [vmem:[%s5762_s17 + $0x238] sm:$0xff]  ;;  %v3019_v20 = vld [vmem:[%s5762_s17 + $0x1f0] sm:$0xff] }
 0x9ef   : > { %3552 = vmatpush.msra.mxu2 %v3114_v37  ;;  %3524 = vmatpush.msra.mxu0 %v2978_v36  ;;  %v3156_v55 = vld [vmem:[%s5762_s17 + $0x638] sm:$0xff]  ;;  %v3147_v37 = vld [vmem:[%s5762_s17 + $0x5f0] sm:$0xff] }
 0x9f0   : > { %3466 = vmatpush.msra.mxu1 %v2977_v53  ;;  %3495 = vmatpush.msra.mxu3 %v3105_v32  ;;  %v3020_v53 = vld [vmem:[%s5762_s17 + $0x1f8] sm:$0xff]  ;;  %v3011_v36 = vld [vmem:[%s5762_s17 + $0x1b0] sm:$0xff] }
 0x9f1   : > { %3553 = vmatpush.msra.mxu2 %v3106_v34  ;;  %3525 = vmatpush.msra.mxu0 %v2970_v15  ;;  %v3148_v32 = vld [vmem:[%s5762_s17 + $0x5f8] sm:$0xff]  ;;  %v3139_v34 = vld [vmem:[%s5762_s17 + $0x5b0] sm:$0xff] }
 0x9f2   : > { %3356 = vmatmul.f32.gmra.mxu1 %v7234_v7  ;;  %3385 = vmatmul.f32.gmra.mxu3 %v7237_v52  ;;  %v3003_v15 = vld [vmem:[%s5762_s17 + $0x170] sm:$0xff] }
 0x9f3   : > { %3414 = vmatmul.f32.gmra.mxu0 %v7234_v7  ;;  %3443 = vmatmul.f32.gmra.mxu2 %v7237_v52 }
 0x9f4   : > { %3467 = vmatpush.msra.mxu1 %v2969_v3  ;;  %3496 = vmatpush.msra.mxu3 %v3097_v23  ;;  %v3012_v3 = vld [vmem:[%s5762_s17 + $0x1b8] sm:$0xff] }
 0x9f5   : > { %3554 = vmatpush.msra.mxu2 %v3098_v16  ;;  %3526 = vmatpush.msra.mxu0 %v2962_v51  ;;  %v3140_v23 = vld [vmem:[%s5762_s17 + $0x5b8] sm:$0xff]  ;;  %v3131_v16 = vld [vmem:[%s5762_s17 + $0x570] sm:$0xff] }
 0x9f6   : > { %3468 = vmatpush.msra.mxu1 %v2961_v12  ;;  %3497 = vmatpush.msra.mxu3 %v3089_v1  ;;  %v3004_v12 = vld [vmem:[%s5762_s17 + $0x178] sm:$0xff]  ;;  %v2995_v51 = vld [vmem:[%s5762_s17 + $0x130] sm:$0xff] }
 0x9f7   : > { %3555 = vmatpush.msra.mxu2 %v3090_v39  ;;  %3627 = vmatpush.msrb.mxu0 %v3084_v54  ;;  %v3132_v1 = vld [vmem:[%s5762_s17 + $0x578] sm:$0xff]  ;;  %v3123_v39 = vld [vmem:[%s5762_s17 + $0x530] sm:$0xff] }
 0x9f8   : > { %3569 = vmatpush.msrb.mxu1 %v3083_v63  ;;  %3598 = vmatpush.msrb.mxu3 %v3211_v43  ;;  %v2996_v63 = vld [vmem:[%s5762_s17 + $0x138] sm:$0xff]  ;;  %v2987_v54 = vld [vmem:[%s5762_s17 + $0xf0] sm:$0xff] }
 0x9f9   : > { %3656 = vmatpush.msrb.mxu2 %v3212_v50  ;;  %3628 = vmatpush.msrb.mxu0 %v3076_v31  ;;  %v3124_v43 = vld [vmem:[%s5762_s17 + $0x538] sm:$0xff]  ;;  %v3115_v50 = vld [vmem:[%s5762_s17 + $0x4f0] sm:$0xff] }
 0x9fa   : > { %3359 = vmatmul.f32.gmra.mxu1 %v7267_v8  ;;  %3388 = vmatmul.f32.gmra.mxu3 %v7270_v35  ;;  %v2979_v31 = vld [vmem:[%s5762_s17 + $0xb0] sm:$0xff] }
 0x9fb   : > { %3417 = vmatmul.f32.gmra.mxu0 %v7267_v8  ;;  %3446 = vmatmul.f32.gmra.mxu2 %v7270_v35 }
 0x9fc   : > { %3570 = vmatpush.msrb.mxu1 %v3075_v5  ;;  %3599 = vmatpush.msrb.mxu3 %v3203_v19  ;;  %v2988_v5 = vld [vmem:[%s5762_s17 + $0xf8] sm:$0xff] }
 0x9fd   : > { %3657 = vmatpush.msrb.mxu2 %v3204_v24  ;;  %3629 = vmatpush.msrb.mxu0 %v3068_v13  ;;  %v3116_v19 = vld [vmem:[%s5762_s17 + $0x4f8] sm:$0xff]  ;;  %v3107_v24 = vld [vmem:[%s5762_s17 + $0x4b0] sm:$0xff] }
 0x9fe   : > { %3571 = vmatpush.msrb.mxu1 %v3067_v17  ;;  %3600 = vmatpush.msrb.mxu3 %v3195_v0  ;;  %v2980_v17 = vld [vmem:[%s5762_s17 + $0xb8] sm:$0xff]  ;;  %v2971_v13 = vld [vmem:[%s5762_s17 + $0x70] sm:$0xff] }
 0x9ff   : > { %3658 = vmatpush.msrb.mxu2 %v3196_v6  ;;  %3630 = vmatpush.msrb.mxu0 %v3060_v2  ;;  %v3108_v0 = vld [vmem:[%s5762_s17 + $0x4b8] sm:$0xff]  ;;  %v3099_v6 = vld [vmem:[%s5762_s17 + $0x470] sm:$0xff] }
 0xa00   : > { %3572 = vmatpush.msrb.mxu1 %v3059_v49  ;;  %3601 = vmatpush.msrb.mxu3 %v3187_v41  ;;  %v7431_v49 = vperm.slane %v7112_v61, 0  ;;  %v2972_v41 = vld [vmem:[%s5762_s17 + $0x78] sm:$0xff]  ;;  %v3267_v61 = vpop.f32.mrf.mxu3 }
 0xa01   : > { %3659 = vmatpush.msrb.mxu2 %v3188_v4  ;;  %3631 = vmatpush.msrb.mxu0 %v3052_v27  ;;  %v3100_v2 = vld [vmem:[%s5762_s17 + $0x478] sm:$0xff]  ;;  %v3238_v4 = vpop.f32.mrf.mxu1  ;;  %v2963_v27 = vld [vmem:[%s5762_s17 + $0x30] sm:$0xff] }
 0xa02   : > { %3362 = vmatmul.f32.gmra.mxu1 %v7299_v40  ;;  %3391 = vmatmul.f32.gmra.mxu3 %v7302_v22 }
 0xa03   : > { %3420 = vmatmul.f32.gmra.mxu0 %v7299_v40  ;;  %3449 = vmatmul.f32.gmra.mxu2 %v7302_v22 }
 0xa04   : > { %3573 = vmatpush.msrb.mxu1 %v3051_v56  ;;  %3602 = vmatpush.msrb.mxu3 %v3179_v29  ;;  %v7436_v56 = vperm.slane %v7118_v44, 0  ;;  %v3296_v29 = vpop.f32.mrf.mxu0  ;;  %v2964_v44 = vld [vmem:[%s5762_s17 + $0x38] sm:$0xff] }
 0xa05   : > { %3660 = vmatpush.msrb.mxu2 %v3180_v18  ;;  %3632 = vmatpush.msrb.mxu0 %v3044_v38  ;;  %v3091_v18 = vld [vmem:[%s5762_s17 + $0x430] sm:$0xff]  ;;  %v3092_v38 = vld [vmem:[%s5762_s17 + $0x438] sm:$0xff] }
 0xa06   : > { %3574 = vmatpush.msrb.mxu1 %v3043_v62  ;;  %3603 = vmatpush.msrb.mxu3 %v3171_v11  ;;  %v3239_v62 = vadd.f32 %v3238_v4, %v7431_v49  ;;  %v3325_v11 = vpop.f32.mrf.mxu2  ;;  %v3975_v4 = vld [vmem:[%s5764_s22 + $0x10] sm:$0xff] }
 0xa07   : > { %3661 = vmatpush.msrb.mxu2 %v3172_v10  ;;  %3633 = vmatpush.msrb.mxu0 %v3036_v21  ;;  %v3297_v10 = vadd.f32 %v3296_v29, %v7436_v56  ;;  %v4007_v29 = vld [vmem:[%s5764_s22 + $0x110] sm:$0xff] }
 0xa08   : > { %3575 = vmatpush.msrb.mxu1 %v3035_v25  ;;  %3604 = vmatpush.msrb.mxu3 %v3163_v26  ;;  %v4003_v25 = vld [vmem:[%s5764_s22 + $0xf0] sm:$0xff]  ;;  %v7450_v21 = vadd.f32 %v3267_v61, %v3239_v62  ;;  %v4005_v62 = vld [vmem:[%s5764_s22 + $0x100] sm:$0xff] }
 0xa09   : > { %3662 = vmatpush.msrb.mxu2 %v3164_v60  ;;  %3634 = vmatpush.msrb.mxu0 %v3028_v59  ;;  %v4035_v26 = vld [vmem:[%s5764_s22 + $0x1f0] sm:$0xff]  ;;  %v7452_v60 = vadd.f32 %v3325_v11, %v3297_v10 }
 0xa0a   : > { %3469 = vmatmul.f32.vlgmr.msra.gmra.mxu1 %v7128_v48  ;;  %3498 = vmatmul.f32.vlgmr.msra.gmra.mxu3 %v7131_v58  ;;  %v3717_v59 = vmul.f32 0.044715, %v7450_v21  ;;  %v4067_v11 = vld [vmem:[%s5764_s22 + $0x2f0] sm:$0xff] }
 0xa0b   : > { %3527 = vmatmul.f32.vlgmr.msra.gmra.mxu0 %v7128_v48  ;;  %3556 = vmatmul.f32.vlgmr.msra.gmra.mxu2 %v7131_v58 }
 0xa0c   : > { %3576 = vmatpush.msrb.mxu1 %v3027_v33  ;;  %3605 = vmatpush.msrb.mxu3 %v3155_v45  ;;  %v4001_v33 = vld [vmem:[%s5764_s22 + $0xe0] sm:$0xff] }
 0xa0d   : > { %3663 = vmatpush.msrb.mxu2 %v3156_v55  ;;  %3635 = vmatpush.msrb.mxu0 %v3020_v53  ;;  %v4033_v45 = vld [vmem:[%s5764_s22 + $0x1e0] sm:$0xff]  ;;  %v3718_v55 = vmul.f32 0.044715, %v7452_v60 }
 0xa0e   : > { %3577 = vmatpush.msrb.mxu1 %v3019_v20  ;;  %3606 = vmatpush.msrb.mxu3 %v3147_v37  ;;  %v3999_v20 = vld [vmem:[%s5764_s22 + $0xd0] sm:$0xff]  ;;  %v3997_v53 = vld [vmem:[%s5764_s22 + $0xc0] sm:$0xff] }
 0xa0f   : > { %3664 = vmatpush.msrb.mxu2 %v3148_v32  ;;  %3636 = vmatpush.msrb.mxu0 %v3012_v3  ;;  %v4031_v37 = vld [vmem:[%s5764_s22 + $0x1d0] sm:$0xff]  ;;  %v4029_v32 = vld [vmem:[%s5764_s22 + $0x1c0] sm:$0xff] }
 0xa10   : > { %3578 = vmatpush.msrb.mxu1 %v3011_v36  ;;  %3607 = vmatpush.msrb.mxu3 %v3139_v34  ;;  %v3749_v36 = vmul.f32 %v3717_v59, %v7450_v21  ;;  %v3750_v34 = vmul.f32 %v3718_v55, %v7452_v60  ;;  %v3995_v3 = vld [vmem:[%s5764_s22 + $0xb0] sm:$0xff]  ;;  %v4061_v59 = vld [vmem:[%s5764_s22 + $0x2c0] sm:$0xff] }
 0xa11   : > { %3665 = vmatpush.msrb.mxu2 %v3140_v23  ;;  %3637 = vmatpush.msrb.mxu0 %v3004_v12  ;;  %v4027_v23 = vld [vmem:[%s5764_s22 + $0x1b0] sm:$0xff]  ;;  %v4093_v55 = vld [vmem:[%s5764_s22 + $0x3c0] sm:$0xff] }
 0xa12   : > { %3472 = vmatmul.f32.gmra.mxu1 %v7234_v7  ;;  %3501 = vmatmul.f32.gmra.mxu3 %v7237_v52  ;;  %v3991_v12 = vld [vmem:[%s5764_s22 + $0x90] sm:$0xff] }
 0xa13   : > { %3530 = vmatmul.f32.gmra.mxu0 %v7234_v7  ;;  %3559 = vmatmul.f32.gmra.mxu2 %v7237_v52 }
 0xa14   : > { %3579 = vmatpush.msrb.mxu1 %v3003_v15  ;;  %3608 = vmatpush.msrb.mxu3 %v3131_v16  ;;  %v3993_v15 = vld [vmem:[%s5764_s22 + $0xa0] sm:$0xff] }
 0xa15   : > { %3666 = vmatpush.msrb.mxu2 %v3132_v1  ;;  %3638 = vmatpush.msrb.mxu0 %v2996_v63  ;;  %v4025_v16 = vld [vmem:[%s5764_s22 + $0x1a0] sm:$0xff]  ;;  %v4023_v1 = vld [vmem:[%s5764_s22 + $0x190] sm:$0xff] }
 0xa16   : > { %3580 = vmatpush.msrb.mxu1 %v2995_v51  ;;  %3609 = vmatpush.msrb.mxu3 %v3123_v39  ;;  %v3989_v63 = vld [vmem:[%s5764_s22 + $0x80] sm:$0xff] }
 0xa17   : > { %3667 = vmatpush.msrb.mxu2 %v3124_v43  ;;  %3639 = vmatpush.msrb.mxu0 %v2988_v5  ;;  %v4021_v43 = vld [vmem:[%s5764_s22 + $0x180] sm:$0xff] }
 0xa18   : > { %3581 = vmatpush.msrb.mxu1 %v2987_v54  ;;  %3610 = vmatpush.msrb.mxu3 %v3115_v50  ;;  %v4019_v50 = vld [vmem:[%s5764_s22 + $0x170] sm:$0xff]  ;;  %v3985_v5 = vld [vmem:[%s5764_s22 + $0x60] sm:$0xff] }
 0xa19   : > { %3668 = vmatpush.msrb.mxu2 %v3116_v19  ;;  %3640 = vmatpush.msrb.mxu0 %v2980_v17  ;;  %v4017_v19 = vld [vmem:[%s5764_s22 + $0x160] sm:$0xff] }
 0xa1a   : > { %3475 = vmatmul.f32.gmra.mxu1 %v7267_v8  ;;  %3504 = vmatmul.f32.gmra.mxu3 %v7270_v35  ;;  %v3981_v17 = vld [vmem:[%s5764_s22 + $0x40] sm:$0xff] }
 0xa1b   : > { %3533 = vmatmul.f32.gmra.mxu0 %v7267_v8  ;;  %3562 = vmatmul.f32.gmra.mxu2 %v7270_v35 }
 0xa1c   : > { %3582 = vmatpush.msrb.mxu1 %v2979_v31  ;;  %3611 = vmatpush.msrb.mxu3 %v3107_v24  ;;  %v3983_v31 = vld [vmem:[%s5764_s22 + $0x50] sm:$0xff] }
 0xa1d   : > { %3669 = vmatpush.msrb.mxu2 %v3108_v0  ;;  %3641 = vmatpush.msrb.mxu0 %v2972_v41  ;;  %v4015_v24 = vld [vmem:[%s5764_s22 + $0x150] sm:$0xff]  ;;  %v4013_v0 = vld [vmem:[%s5764_s22 + $0x140] sm:$0xff] }
 0xa1e   : > { %3583 = vmatpush.msrb.mxu1 %v2971_v13  ;;  %3612 = vmatpush.msrb.mxu3 %v3099_v6  ;;  %v4011_v13 = vld [vmem:[%s5764_s22 + $0x130] sm:$0xff]  ;;  %v3977_v41 = vld [vmem:[%s5764_s22 + $0x20] sm:$0xff] }
 0xa1f   : > { %3670 = vmatpush.msrb.mxu2 %v3100_v2  ;;  %3642 = vmatpush.msrb.mxu0 %v2964_v44  ;;  %v4009_v2 = vld [vmem:[%s5764_s22 + $0x120] sm:$0xff]  ;;  %v4099_v44 = vld [vmem:[%s5764_s22 + $0x3f0] sm:$0xff] }
 0xa20   : > { %3584 = vmatpush.msrb.mxu1 %v2963_v27  ;;  %3613 = vmatpush.msrb.mxu3 %v3091_v18  ;;  %v3973_v18 = vld [vmem:[%s5764_s22] sm:$0xff] }
 0xa21   : > { %3671 = vmatpush.msrb.mxu2 %v3092_v38  ;;  %4287 = vmatpush.msra.mxu0 %v4067_v11 }
 0xa22   : > { %3478 = vmatmul.f32.gmra.mxu1 %v7299_v40  ;;  %3507 = vmatmul.f32.gmra.mxu3 %v7302_v22 }
 0xa23   : > { %3536 = vmatmul.f32.gmra.mxu0 %v7299_v40  ;;  %3565 = vmatmul.f32.gmra.mxu2 %v7302_v22 }
 0xa24   : > { %4229 = vmatpush.msra.mxu1 %v4003_v25  ;;  %4258 = vmatpush.msra.mxu3 %v4035_v26  ;;  %v4065_v25 = vld [vmem:[%s5764_s22 + $0x2e0] sm:$0xff] }
 0xa25   : > { %4316 = vmatpush.msra.mxu2 %v4099_v44  ;;  %v4097_v26 = vld [vmem:[%s5764_s22 + $0x3e0] sm:$0xff]  ;;  %4288 = vmatpush.msra.mxu0 %v4065_v25 }
 0xa26   : > { %4230 = vmatpush.msra.mxu1 %v4001_v33  ;;  %4259 = vmatpush.msra.mxu3 %v4033_v45 }
 0xa27   : > { %4317 = vmatpush.msra.mxu2 %v4097_v26 }
 0xa28   : > { %4231 = vmatpush.msra.mxu1 %v3999_v20  ;;  %4260 = vmatpush.msra.mxu3 %v4031_v37  ;;  %v4059_v37 = vld [vmem:[%s5764_s22 + $0x2b0] sm:$0xff] }
 0xa2a   : > { %3585 = vmatmul.f32.vlgmr.msrb.gmra.mxu1 %v7128_v48  ;;  %3614 = vmatmul.f32.vlgmr.msrb.gmra.mxu3 %v7131_v58 }
 0xa2b   : > { %3643 = vmatmul.f32.vlgmr.msrb.gmra.mxu0 %v7128_v48  ;;  %3672 = vmatmul.f32.vlgmr.msrb.gmra.mxu2 %v7131_v58  ;;  %v3781_v48 = vmul.f32 %v3749_v36, %v7450_v21  ;;  %v3782_v58 = vmul.f32 %v3750_v34, %v7452_v60 }
 0xa2c   : > { %4232 = vmatpush.msra.mxu1 %v3997_v53  ;;  %4261 = vmatpush.msra.mxu3 %v4029_v32  ;;  %v4091_v53 = vld [vmem:[%s5764_s22 + $0x3b0] sm:$0xff] }
 0xa2d   : > { %v3813_v51 = vadd.f32 %v3781_v48, %v7450_v21  ;;  %v3814_v39 = vadd.f32 %v3782_v58, %v7452_v60  ;;  %v4089_v48 = vld [vmem:[%s5764_s22 + $0x3a0] sm:$0xff] }
 0xa2e   : > { %4233 = vmatpush.msra.mxu1 %v3995_v3  ;;  %4262 = vmatpush.msra.mxu3 %v4027_v23  ;;  %v4057_v23 = vld [vmem:[%s5764_s22 + $0x2a0] sm:$0xff] }
 0xa2f   : > { %v3845_v54 = vmul.f32 0.7978846, %v3813_v51 }
 0xa30   : > { %4234 = vmatpush.msra.mxu1 %v3993_v15  ;;  %4263 = vmatpush.msra.mxu3 %v4025_v16  ;;  %v4055_v16 = vld [vmem:[%s5764_s22 + $0x290] sm:$0xff] }
 0xa31   : > { %5277 = vtanh.f32 %v3845_v54  ;;  %v4085_v54 = vld [vmem:[%s5764_s22 + $0x380] sm:$0xff] }
 0xa32   : > { %3588 = vmatmul.f32.gmra.mxu1 %v7234_v7  ;;  %3617 = vmatmul.f32.gmra.mxu3 %v7237_v52 }
 0xa33   : > { %3646 = vmatmul.f32.gmra.mxu0 %v7234_v7  ;;  %3675 = vmatmul.f32.gmra.mxu2 %v7237_v52  ;;  %v3846_v7 = vmul.f32 0.7978846, %v3814_v39  ;;  %v3987_v52 = vld [vmem:[%s5764_s22 + $0x70] sm:$0xff] }
 0xa34   : > { %4235 = vmatpush.msra.mxu1 %v3991_v12  ;;  %4264 = vmatpush.msra.mxu3 %v4023_v1  ;;  %v4087_v12 = vld [vmem:[%s5764_s22 + $0x390] sm:$0xff] }
 0xa35   : > { %5279 = vtanh.f32 %v3846_v7 }
 0xa36   : > { %4236 = vmatpush.msra.mxu1 %v3989_v63  ;;  %4265 = vmatpush.msra.mxu3 %v4021_v43  ;;  %v4053_v43 = vld [vmem:[%s5764_s22 + $0x280] sm:$0xff] }
 0xa38   : > { %4237 = vmatpush.msra.mxu1 %v3987_v52  ;;  %4266 = vmatpush.msra.mxu3 %v4019_v50 }
 0xa3a   : > { %3591 = vmatmul.f32.gmra.mxu1 %v7267_v8  ;;  %3620 = vmatmul.f32.gmra.mxu3 %v7270_v35 }
 0xa3b   : > { %3649 = vmatmul.f32.gmra.mxu0 %v7267_v8  ;;  %3678 = vmatmul.f32.gmra.mxu2 %v7270_v35  ;;  %v5278_v8 = vpop.eup %5277  ;;  %v3979_v35 = vld [vmem:[%s5764_s22 + $0x30] sm:$0xff] }
 0xa3c   : > { %4238 = vmatpush.msra.mxu1 %v3985_v5  ;;  %4267 = vmatpush.msra.mxu3 %v4017_v19  ;;  %v5280_v6 = vpop.eup %5279  ;;  %v3909_v61 = vadd.f32 1.0, %v5278_v8  ;;  %v4051_v5 = vld [vmem:[%s5764_s22 + $0x270] sm:$0xff]  ;;  %v4081_v8 = vld [vmem:[%s5764_s22 + $0x360] sm:$0xff] }
 0xa3d   : > { %v3910_v27 = vadd.f32 1.0, %v5280_v6  ;;  %v4083_v19 = vld [vmem:[%s5764_s22 + $0x370] sm:$0xff] }
 0xa3e   : > { %4239 = vmatpush.msra.mxu1 %v3983_v31  ;;  %4268 = vmatpush.msra.mxu3 %v4015_v24 }
 0xa40   : > { %4240 = vmatpush.msra.mxu1 %v3981_v17  ;;  %4269 = vmatpush.msra.mxu3 %v4013_v0  ;;  %v4049_v0 = vld [vmem:[%s5764_s22 + $0x260] sm:$0xff] }
 0xa42   : > { %3594 = vmatmul.f32.gmra.mxu1 %v7299_v40  ;;  %3623 = vmatmul.f32.gmra.mxu3 %v7302_v22 }
 0xa43   : > { %3652 = vmatmul.f32.gmra.mxu0 %v7299_v40  ;;  %3681 = vmatmul.f32.gmra.mxu2 %v7302_v22  ;;  %v3685_v40 = vmul.f32 0.5, %v7450_v21  ;;  %v3686_v22 = vmul.f32 0.5, %v7452_v60  ;;  %v4063_v21 = vld [vmem:[%s5764_s22 + $0x2d0] sm:$0xff] }
 0xa44   : > { %4241 = vmatpush.msra.mxu1 %v3979_v35  ;;  %4270 = vmatpush.msra.mxu3 %v4011_v13  ;;  %v4095_v60 = vld [vmem:[%s5764_s22 + $0x3d0] sm:$0xff] }
 0xa45   : > { %v7512_v38 = vmul.f32 %v3909_v61, %v3685_v40  ;;  %v7514_v10 = vmul.f32 %v3910_v27, %v3686_v22  ;;  %4289 = vmatpush.msra.mxu0 %v4063_v21  ;;  %4318 = vmatpush.msra.mxu2 %v4095_v60  ;;  %v4043_v21 = vld [vmem:[%s5764_s22 + $0x230] sm:$0xff] }
 0xa46   : > { %4242 = vmatpush.msra.mxu1 %v3977_v41  ;;  %4271 = vmatpush.msra.mxu3 %v4009_v2  ;;  %v4047_v41 = vld [vmem:[%s5764_s22 + $0x250] sm:$0xff] }
 0xa47   : > { %4290 = vmatpush.msra.mxu0 %v4061_v59  ;;  %4319 = vmatpush.msra.mxu2 %v4093_v55  ;;  %v4079_v2 = vld [vmem:[%s5764_s22 + $0x350] sm:$0xff]  ;;  %v4073_v59 = vld [vmem:[%s5764_s22 + $0x320] sm:$0xff] }
 0xa48   : > { %4243 = vmatpush.msra.mxu1 %v3975_v4  ;;  %4272 = vmatpush.msra.mxu3 %v4007_v29  ;;  %v4075_v60 = vld [vmem:[%s5764_s22 + $0x330] sm:$0xff] }
 0xa49   : > { %4291 = vmatpush.msra.mxu0 %v4059_v37  ;;  %4320 = vmatpush.msra.mxu2 %v4091_v53  ;;  %v4039_v53 = vld [vmem:[%s5764_s22 + $0x210] sm:$0xff] }
 0xa4a   : > { %4244 = vmatpush.msra.mxu1 %v3973_v18  ;;  %4273 = vmatpush.msra.mxu3 %v4005_v62  ;;  %v4045_v18 = vld [vmem:[%s5764_s22 + $0x240] sm:$0xff] }
 0xa4b   : > { %4245 = vmatmul.f32.vlgmr.msra.gmra.mxu1 %v7512_v38  ;;  %4274 = vmatmul.f32.vlgmr.msra.gmra.mxu3 %v7514_v10  ;;  %v4077_v62 = vld [vmem:[%s5764_s22 + $0x340] sm:$0xff] }
 0xa4c   : > { %4292 = vmatpush.msra.mxu0 %v4057_v23  ;;  %4321 = vmatpush.msra.mxu2 %v4089_v48 }
 0xa4d   : > { %v3241_v33 = vpop.f32.mrf.mxu1 }
 0xa4e   : > { %v3299_v45 = vpop.f32.mrf.mxu0  ;;  %v3242_v20 = vadd.f32 %v3241_v33, %v7431_v49  ;;  %4293 = vmatpush.msra.mxu0 %v4055_v16  ;;  %4322 = vmatpush.msra.mxu2 %v4087_v12  ;;  %v5351_v12 = vld [vmem:[%s5775_s14 + $0x10] sm:$0xff] }
 0xa4f   : > { %v3300_v32 = vadd.f32 %v3299_v45, %v7436_v56  ;;  %v4041_v45 = vld [vmem:[%s5764_s22 + $0x220] sm:$0xff] }
 0xa50   : > { %4294 = vmatpush.msra.mxu0 %v4053_v43  ;;  %4323 = vmatpush.msra.mxu2 %v4085_v54 }
 0xa52   : > { %4295 = vmatpush.msra.mxu0 %v4051_v5  ;;  %4324 = vmatpush.msra.mxu2 %v4083_v19 }
 0xa53   : > { %v3270_v36 = vpop.f32.mrf.mxu3 }
 0xa54   : > { %v7528_v34 = vadd.f32 %v3270_v36, %v3242_v20  ;;  %v3328_v3 = vpop.f32.mrf.mxu2  ;;  %4296 = vmatpush.msra.mxu0 %v4049_v0  ;;  %4325 = vmatpush.msra.mxu2 %v4081_v8  ;;  %v4131_v8 = vld [vmem:[%s5764_s22 + $0x4f0] sm:$0xff] }
 0xa55   : > { %v7532_v58 = vadd.f32 %v3328_v3, %v3300_v32  ;;  %v3244_v51 = vpop.f32.mrf.mxu1  ;;  %v4071_v32 = vld [vmem:[%s5764_s22 + $0x310] sm:$0xff]  ;;  %4345 = vmatpush.msrb.mxu1 %v4131_v8 }
 0xa56   : > { %v3725_v15 = vmul.f32 0.044715, %v7528_v34  ;;  %v3302_v39 = vpop.f32.mrf.mxu0  ;;  %v3245_v52 = vadd.f32 %v3244_v51, %v7431_v49  ;;  %4297 = vmatpush.msra.mxu0 %v4047_v41  ;;  %4326 = vmatpush.msra.mxu2 %v4079_v2  ;;  %v4037_v51 = vld [vmem:[%s5764_s22 + $0x200] sm:$0xff]  ;;  %v3693_v54 = vmul.f32 0.5, %v7528_v34  ;;  %v4119_v8 = vld [vmem:[%s5764_s22 + $0x490] sm:$0xff] }
 0xa57   : > { %v3726_v1 = vmul.f32 0.044715, %v7532_v58  ;;  %v3303_v31 = vadd.f32 %v3302_v39, %v7436_v56  ;;  %v4069_v39 = vld [vmem:[%s5764_s22 + $0x300] sm:$0xff]  ;;  %v3694_v19 = vmul.f32 0.5, %v7532_v58 }
 0xa58   : > { %v3757_v63 = vmul.f32 %v3725_v15, %v7528_v34  ;;  %4298 = vmatpush.msra.mxu0 %v4045_v18  ;;  %4327 = vmatpush.msra.mxu2 %v4077_v62  ;;  %v4161_v2 = vld [vmem:[%s5764_s22 + $0x5e0] sm:$0xff]  ;;  %v4159_v62 = vld [vmem:[%s5764_s22 + $0x5d0] sm:$0xff] }
 0xa59   : > { %v3758_v7 = vmul.f32 %v3726_v1, %v7532_v58  ;;  %v7579_v1 = vperm.slane %v5351_v12, 0 }
 0xa5a   : > { %v3789_v50 = vmul.f32 %v3757_v63, %v7528_v34  ;;  %4299 = vmatpush.msra.mxu0 %v4043_v21  ;;  %4328 = vmatpush.msra.mxu2 %v4075_v60 }
 0xa5b   : > { %v3273_v24 = vpop.f32.mrf.mxu3  ;;  %v3790_v17 = vmul.f32 %v3758_v7, %v7532_v58 }
 0xa5c   : > { %v7550_v35 = vadd.f32 %v3273_v24, %v3245_v52  ;;  %v3331_v13 = vpop.f32.mrf.mxu2  ;;  %v3821_v6 = vadd.f32 %v3789_v50, %v7528_v34  ;;  %4300 = vmatpush.msra.mxu0 %v4041_v45  ;;  %4329 = vmatpush.msra.mxu2 %v4073_v59 }
 0xa5d   : > { %v7555_v4 = vadd.f32 %v3331_v13, %v3303_v31  ;;  %v3822_v29 = vadd.f32 %v3790_v17, %v7532_v58  ;;  %v5352_v17 = vld [vmem:[%s5775_s14 + $0x18] sm:$0xff]  ;;  %v4163_v13 = vld [vmem:[%s5764_s22 + $0x5f0] sm:$0xff] }
 0xa5e   : > { %v3733_v61 = vmul.f32 0.044715, %v7550_v35  ;;  %v3853_v27 = vmul.f32 0.7978846, %v3821_v6  ;;  %4301 = vmatpush.msra.mxu0 %v4039_v53  ;;  %4330 = vmatpush.msra.mxu2 %v4071_v32  ;;  %v7590_v34 = vperm.slane %v5352_v17, 0  ;;  %v4129_v6 = vld [vmem:[%s5764_s22 + $0x4e0] sm:$0xff] }
 0xa5f   : > { %v3734_v40 = vmul.f32 0.044715, %v7555_v4  ;;  %v3247_v22 = vpop.f32.mrf.mxu1  ;;  %v3854_v11 = vmul.f32 0.7978846, %v3822_v29  ;;  %4374 = vmatpush.msrb.mxu3 %v4163_v13  ;;  %4346 = vmatpush.msrb.mxu1 %v4129_v6  ;;  %v4151_v13 = vld [vmem:[%s5764_s22 + $0x590] sm:$0xff] }
 0xa60   : > { %v3305_v44 = vpop.f32.mrf.mxu0  ;;  %5281 = vtanh.f32 %v3853_v27  ;;  %v3765_v25 = vmul.f32 %v3733_v61, %v7550_v35  ;;  %v3248_v20 = vadd.f32 %v3247_v22, %v7431_v49  ;;  %4302 = vmatpush.msra.mxu0 %v4037_v51  ;;  %4331 = vmatpush.msra.mxu2 %v4069_v39  ;;  %v4127_v61 = vld [vmem:[%s5764_s22 + $0x4d0] sm:$0xff] }
 0xa61   : > { %5283 = vtanh.f32 %v3854_v11  ;;  %v3766_v26 = vmul.f32 %v3734_v40, %v7555_v4  ;;  %v3306_v36 = vadd.f32 %v3305_v44, %v7436_v56  ;;  %4375 = vmatpush.msrb.mxu3 %v4161_v2  ;;  %v4125_v44 = vld [vmem:[%s5764_s22 + $0x4c0] sm:$0xff]  ;;  %4347 = vmatpush.msrb.mxu1 %v4127_v61  ;;  %v4123_v39 = vld [vmem:[%s5764_s22 + $0x4b0] sm:$0xff] }
 0xa62   : > { %v3797_v33 = vmul.f32 %v3765_v25, %v7550_v35 }
 0xa63   : > { %v3798_v55 = vmul.f32 %v3766_v26, %v7555_v4  ;;  %4376 = vmatpush.msrb.mxu3 %v4159_v62  ;;  %4348 = vmatpush.msrb.mxu1 %v4125_v44 }
 0xa64   : > { %v3829_v37 = vadd.f32 %v3797_v33, %v7550_v35  ;;  %v4157_v33 = vld [vmem:[%s5764_s22 + $0x5c0] sm:$0xff] }
 0xa65   : > { %v3276_v3 = vpop.f32.mrf.mxu3  ;;  %v3830_v23 = vadd.f32 %v3798_v55, %v7555_v4  ;;  %4377 = vmatpush.msrb.mxu3 %v4157_v33  ;;  %4349 = vmatpush.msrb.mxu1 %v4123_v39 }
 0xa66   : > { %v5282_v48 = vpop.eup %5281  ;;  %v7576_v15 = vadd.f32 %v3276_v3, %v3248_v20  ;;  %v3334_v16 = vpop.f32.mrf.mxu2  ;;  %v3861_v49 = vmul.f32 0.7978846, %v3829_v37  ;;  %v3701_v20 = vmul.f32 0.5, %v7550_v35  ;;  %v3702_v3 = vmul.f32 0.5, %v7555_v4 }
 0xa67   : > { %v5284_v63 = vpop.eup %5283  ;;  %v7583_v43 = vadd.f32 %v3334_v16, %v3306_v36  ;;  %v3354_v56 = vpop.f32.mrf.mxu1  ;;  %v3917_v7 = vadd.f32 1.0, %v5282_v48  ;;  %v3862_v52 = vmul.f32 0.7978846, %v3830_v23 }
 0xa68   : > { %v3741_v50 = vmul.f32 0.044715, %v7576_v15  ;;  %v3412_v5 = vpop.f32.mrf.mxu0  ;;  %v3918_v31 = vadd.f32 1.0, %v5284_v63  ;;  %5285 = vtanh.f32 %v3861_v49  ;;  %v3355_v27 = vadd.f32 %v3354_v56, %v7579_v1  ;;  %v4155_v63 = vld [vmem:[%s5764_s22 + $0x5b0] sm:$0xff] }
 0xa69   : > { %v3742_v24 = vmul.f32 0.044715, %v7583_v43  ;;  %v7592_v0 = vmul.f32 %v3917_v7, %v3693_v54  ;;  %5287 = vtanh.f32 %v3862_v52  ;;  %v3413_v40 = vadd.f32 %v3412_v5, %v7590_v34  ;;  %4378 = vmatpush.msrb.mxu3 %v4155_v63  ;;  %v4121_v7 = vld [vmem:[%s5764_s22 + $0x4a0] sm:$0xff] }
 0xa6a   : > { %v7597_v41 = vmul.f32 %v3918_v31, %v3694_v19  ;;  %v3773_v58 = vmul.f32 %v3741_v50, %v7576_v15  ;;  %v4153_v52 = vld [vmem:[%s5764_s22 + $0x5a0] sm:$0xff]  ;;  %4350 = vmatpush.msrb.mxu1 %v4121_v7  ;;  %v3709_v62 = vmul.f32 0.5, %v7576_v15 }
 0xa6b   : > { %4248 = vmatmul.f32.gmra.mxu1 %v7592_v0  ;;  %v3774_v29 = vmul.f32 %v3742_v24, %v7583_v43  ;;  %4379 = vmatpush.msrb.mxu3 %v4153_v52  ;;  %v4109_v52 = vld [vmem:[%s5764_s22 + $0x440] sm:$0xff] }
 0xa6c   : > { %4277 = vmatmul.f32.gmra.mxu3 %v7597_v41  ;;  %v3805_v18 = vmul.f32 %v3773_v58, %v7576_v15  ;;  %4351 = vmatpush.msrb.mxu1 %v4119_v8  ;;  %v4141_v8 = vld [vmem:[%s5764_s22 + $0x540] sm:$0xff] }
 0xa6d   : > { %v3383_v22 = vpop.f32.mrf.mxu3  ;;  %v3806_v11 = vmul.f32 %v3774_v29, %v7583_v43  ;;  %4380 = vmatpush.msrb.mxu3 %v4151_v13 }
 0xa6e   : > { %v5286_v25 = vpop.eup %5285  ;;  %v7611_v26 = vadd.f32 %v3383_v22, %v3355_v27  ;;  %v3441_v21 = vpop.f32.mrf.mxu2  ;;  %v3837_v60 = vadd.f32 %v3805_v18, %v7576_v15  ;;  %v4147_v15 = vld [vmem:[%s5764_s22 + $0x570] sm:$0xff] }
 0xa6f   : > { %v5288_v45 = vpop.eup %5287  ;;  %v7615_v59 = vadd.f32 %v3441_v21, %v3413_v40  ;;  %v3357_v55 = vpop.f32.mrf.mxu1  ;;  %v3925_v37 = vadd.f32 1.0, %v5286_v25  ;;  %v3838_v53 = vadd.f32 %v3806_v11, %v7583_v43  ;;  %v4117_v40 = vld [vmem:[%s5764_s22 + $0x480] sm:$0xff] }
 0xa70   : > { %v3719_v32 = vmul.f32 0.044715, %v7611_v26  ;;  %v3415_v36 = vpop.f32.mrf.mxu0  ;;  %v3926_v23 = vadd.f32 1.0, %v5288_v45  ;;  %v3869_v48 = vmul.f32 0.7978846, %v3837_v60  ;;  %v3358_v54 = vadd.f32 %v3357_v55, %v7579_v1  ;;  %v4149_v21 = vld [vmem:[%s5764_s22 + $0x580] sm:$0xff]  ;;  %4352 = vmatpush.msrb.mxu1 %v4117_v40 }
 0xa71   : > { %v3720_v16 = vmul.f32 0.044715, %v7615_v59  ;;  %v7622_v12 = vmul.f32 %v3925_v37, %v3701_v20  ;;  %v3870_v35 = vmul.f32 0.7978846, %v3838_v53  ;;  %v3416_v5 = vadd.f32 %v3415_v36, %v7590_v34  ;;  %4381 = vmatpush.msrb.mxu3 %v4149_v21  ;;  %v4115_v55 = vld [vmem:[%s5764_s22 + $0x470] sm:$0xff]  ;;  %v4113_v53 = vld [vmem:[%s5764_s22 + $0x460] sm:$0xff] }
 0xa72   : > { %v3751_v49 = vmul.f32 %v3719_v32, %v7611_v26  ;;  %v7625_v51 = vmul.f32 %v3926_v23, %v3702_v3  ;;  %5289 = vtanh.f32 %v3869_v48  ;;  %v3710_v60 = vmul.f32 0.5, %v7583_v43  ;;  %4353 = vmatpush.msrb.mxu1 %v4115_v55  ;;  %v4145_v3 = vld [vmem:[%s5764_s22 + $0x560] sm:$0xff]  ;;  %v4103_v55 = vld [vmem:[%s5764_s22 + $0x410] sm:$0xff] }
 0xa73   : > { %v3752_v4 = vmul.f32 %v3720_v16, %v7615_v59  ;;  %4251 = vmatmul.f32.gmra.mxu1 %v7622_v12  ;;  %5291 = vtanh.f32 %v3870_v35  ;;  %4382 = vmatpush.msrb.mxu3 %v4147_v15  ;;  %v4111_v35 = vld [vmem:[%s5764_s22 + $0x450] sm:$0xff]  ;;  %v4137_v21 = vld [vmem:[%s5764_s22 + $0x520] sm:$0xff] }
 0xa74   : > { %v3783_v56 = vmul.f32 %v3751_v49, %v7611_v26  ;;  %4280 = vmatmul.f32.gmra.mxu3 %v7625_v51  ;;  %4354 = vmatpush.msrb.mxu1 %v4113_v53  ;;  %v4135_v53 = vld [vmem:[%s5764_s22 + $0x510] sm:$0xff] }
 0xa75   : > { %v3784_v50 = vmul.f32 %v3752_v4, %v7615_v59  ;;  %v3386_v19 = vpop.f32.mrf.mxu3  ;;  %v4143_v4 = vld [vmem:[%s5764_s22 + $0x550] sm:$0xff]  ;;  %4383 = vmatpush.msrb.mxu3 %v4145_v3 }
 0xa76   : > { %v3815_v31 = vadd.f32 %v3783_v56, %v7611_v26  ;;  %v7639_v24 = vadd.f32 %v3386_v19, %v3358_v54  ;;  %v3444_v17 = vpop.f32.mrf.mxu2  ;;  %4355 = vmatpush.msrb.mxu1 %v4111_v35  ;;  %v4101_v35 = vld [vmem:[%s5764_s22 + $0x400] sm:$0xff] }
 0xa77   : > { %v3816_v6 = vadd.f32 %v3784_v50, %v7615_v59  ;;  %v7644_v58 = vadd.f32 %v3444_v17, %v3416_v5  ;;  %v3360_v2 = vpop.f32.mrf.mxu1  ;;  %4384 = vmatpush.msrb.mxu3 %v4143_v4 }
 0xa78   : > { %v5290_v29 = vpop.eup %5289  ;;  %v3847_v61 = vmul.f32 0.7978846, %v3815_v31  ;;  %v3727_v27 = vmul.f32 0.044715, %v7639_v24  ;;  %v3418_v18 = vpop.f32.mrf.mxu0  ;;  %v3361_v32 = vadd.f32 %v3360_v2, %v7579_v1  ;;  %v3687_v31 = vmul.f32 0.5, %v7611_v26  ;;  %4356 = vmatpush.msrb.mxu1 %v4109_v52  ;;  %v4139_v26 = vld [vmem:[%s5764_s22 + $0x530] sm:$0xff] }
 0xa79   : > { %v5292_v22 = vpop.eup %5291  ;;  %v3848_v11 = vmul.f32 0.7978846, %v3816_v6  ;;  %v3728_v44 = vmul.f32 0.044715, %v7644_v58  ;;  %v3933_v25 = vadd.f32 1.0, %v5290_v29  ;;  %v3419_v23 = vadd.f32 %v3418_v18, %v7590_v34  ;;  %4385 = vmatpush.msrb.mxu3 %v4141_v8  ;;  %v4133_v52 = vld [vmem:[%s5764_s22 + $0x500] sm:$0xff] }
 0xa7a   : > { %5293 = vtanh.f32 %v3847_v61  ;;  %v3934_v33 = vadd.f32 1.0, %v5292_v22  ;;  %v3759_v45 = vmul.f32 %v3727_v27, %v7639_v24  ;;  %v4107_v61 = vld [vmem:[%s5764_s22 + $0x430] sm:$0xff]  ;;  %v3688_v27 = vmul.f32 0.5, %v7615_v59 }
 0xa7b   : > { %5295 = vtanh.f32 %v3848_v11  ;;  %v7655_v20 = vmul.f32 %v3933_v25, %v3709_v62  ;;  %v3760_v37 = vmul.f32 %v3728_v44, %v7644_v58  ;;  %v4105_v11 = vld [vmem:[%s5764_s22 + $0x420] sm:$0xff]  ;;  %4357 = vmatpush.msrb.mxu1 %v4107_v61  ;;  %4386 = vmatpush.msrb.mxu3 %v4139_v26  ;;  %v3696_v8 = vmul.f32 0.5, %v7644_v58 }
 0xa7c   : > { %v7660_v36 = vmul.f32 %v3934_v33, %v3710_v60  ;;  %v3791_v43 = vmul.f32 %v3759_v45, %v7639_v24 }
 0xa7d   : > { %v3389_v48 = vpop.f32.mrf.mxu3  ;;  %4254 = vmatmul.f32.gmra.mxu1 %v7655_v20  ;;  %v3792_v16 = vmul.f32 %v3760_v37, %v7644_v58  ;;  %4387 = vmatpush.msrb.mxu3 %v4137_v21 }
 0xa7e   : > { %v7668_v49 = vadd.f32 %v3389_v48, %v3361_v32  ;;  %v3447_v39 = vpop.f32.mrf.mxu2  ;;  %4283 = vmatmul.f32.gmra.mxu3 %v7660_v36  ;;  %v3823_v63 = vadd.f32 %v3791_v43, %v7639_v24  ;;  %4358 = vmatpush.msrb.mxu1 %v4105_v11  ;;  %v5353_v32 = vld [vmem:[%s5775_s14 + $0x20] sm:$0xff]  ;;  %v4002_v11 = vld [vmem:[%s5764_s22 + $0xe8] sm:$0xff] }
 0xa7f   : > { %v7673_v56 = vadd.f32 %v3447_v39, %v3419_v23  ;;  %v3363_v54 = vpop.f32.mrf.mxu1  ;;  %v3824_v7 = vadd.f32 %v3792_v16, %v7644_v58  ;;  %v7706_v43 = vperm.slane %v5353_v32, 0  ;;  %v5354_v23 = vld [vmem:[%s5775_s14 + $0x28] sm:$0xff]  ;;  %4388 = vmatpush.msrb.mxu3 %v4135_v53  ;;  %v4193_v58 = vld [vmem:[%s5764_s22 + $0x6e0] sm:$0xff]  ;;  %v4000_v53 = vld [vmem:[%s5764_s22 + $0xd8] sm:$0xff] }
 0xa80   : > { %v5294_v50 = vpop.eup %5293  ;;  %v3735_v5 = vmul.f32 0.044715, %v7668_v49  ;;  %v3421_v19 = vpop.f32.mrf.mxu0  ;;  %v3855_v17 = vmul.f32 0.7978846, %v3823_v63  ;;  %v3364_v44 = vadd.f32 %v3363_v54, %v7579_v1  ;;  %v7709_v48 = vperm.slane %v5354_v23, 0  ;;  %4359 = vmatpush.msrb.mxu1 %v4103_v55  ;;  %v4032_v32 = vld [vmem:[%s5764_s22 + $0x1d8] sm:$0xff] }
 0xa81   : > { %v5296_v13 = vpop.eup %5295  ;;  %v3736_v6 = vmul.f32 0.044715, %v7673_v56  ;;  %v3911_v2 = vadd.f32 1.0, %v5294_v50  ;;  %v3856_v29 = vmul.f32 0.7978846, %v3824_v7  ;;  %v3422_v60 = vadd.f32 %v3421_v19, %v7590_v34  ;;  %4389 = vmatpush.msrb.mxu3 %v4133_v52  ;;  %v3998_v52 = vld [vmem:[%s5764_s22 + $0xc8] sm:$0xff] }
 0xa82   : > { %v3912_v18 = vadd.f32 1.0, %v5296_v13  ;;  %5297 = vtanh.f32 %v3855_v17  ;;  %v3767_v62 = vmul.f32 %v3735_v5, %v7668_v49  ;;  %v3695_v54 = vmul.f32 0.5, %v7639_v24  ;;  %v4195_v17 = vld [vmem:[%s5764_s22 + $0x6f0] sm:$0xff]  ;;  %4360 = vmatpush.msrb.mxu1 %v4101_v35  ;;  %v4189_v35 = vld [vmem:[%s5764_s22 + $0x6c0] sm:$0xff] }
 0xa83   : > { %v7685_v40 = vmul.f32 %v3911_v2, %v3687_v31  ;;  %5299 = vtanh.f32 %v3856_v29  ;;  %v3768_v22 = vmul.f32 %v3736_v6, %v7673_v56  ;;  %4403 = vmatpush.msrb.mxu0 %v4195_v17  ;;  %v4227_v6 = vld [vmem:[%s5764_s22 + $0x7f0] sm:$0xff]  ;;  %v4004_v2 = vld [vmem:[%s5764_s22 + $0xf8] sm:$0xff] }
 0xa84   : > { %v7690_v25 = vmul.f32 %v3912_v18, %v3688_v27  ;;  %v3799_v59 = vmul.f32 %v3767_v62, %v7668_v49  ;;  %v4036_v29 = vld [vmem:[%s5764_s22 + $0x1f8] sm:$0xff]  ;;  %4432 = vmatpush.msrb.mxu2 %v4227_v6  ;;  %v4225_v18 = vld [vmem:[%s5764_s22 + $0x7e0] sm:$0xff]  ;;  %4461 = vmatpush.msra.mxu1 %v4004_v2  ;;  %v4187_v2 = vld [vmem:[%s5764_s22 + $0x6b0] sm:$0xff] }
 0xa85   : > { %v3392_v33 = vpop.f32.mrf.mxu3  ;;  %4303 = vmatmul.f32.vlgmr.msra.gmra.mxu0 %v7685_v40  ;;  %v3800_v45 = vmul.f32 %v3768_v22, %v7673_v56  ;;  %4490 = vmatpush.msra.mxu3 %v4036_v29  ;;  %v4219_v29 = vld [vmem:[%s5764_s22 + $0x7b0] sm:$0xff] }
 0xa86   : > { %v7698_v1 = vadd.f32 %v3392_v33, %v3364_v44  ;;  %v3450_v15 = vpop.f32.mrf.mxu2  ;;  %4332 = vmatmul.f32.vlgmr.msra.gmra.mxu2 %v7690_v25  ;;  %v3831_v37 = vadd.f32 %v3799_v59, %v7668_v49  ;;  %v4034_v44 = vld [vmem:[%s5764_s22 + $0x1e8] sm:$0xff]  ;;  %v4191_v33 = vld [vmem:[%s5764_s22 + $0x6d0] sm:$0xff]  ;;  %4404 = vmatpush.msrb.mxu0 %v4193_v58 }
 0xa87   : > { %v7703_v34 = vadd.f32 %v3450_v15, %v3422_v60  ;;  %v3470_v3 = vpop.f32.mrf.mxu1  ;;  %v3832_v16 = vadd.f32 %v3800_v45, %v7673_v56  ;;  %4433 = vmatpush.msrb.mxu2 %v4225_v18  ;;  %v4223_v45 = vld [vmem:[%s5764_s22 + $0x7d0] sm:$0xff]  ;;  %4462 = vmatpush.msra.mxu1 %v4002_v11  ;;  %v4185_v11 = vld [vmem:[%s5764_s22 + $0x6a0] sm:$0xff] }
 0xa88   : > { %v5298_v39 = vpop.eup %5297  ;;  %v3743_v63 = vmul.f32 0.044715, %v7698_v1  ;;  %v3528_v4 = vpop.f32.mrf.mxu0  ;;  %v3863_v7 = vmul.f32 0.7978846, %v3831_v37  ;;  %v3471_v62 = vadd.f32 %v3470_v3, %v7706_v43  ;;  %4491 = vmatpush.msra.mxu3 %v4034_v44  ;;  %4405 = vmatpush.msrb.mxu0 %v4191_v33  ;;  %v4217_v44 = vld [vmem:[%s5764_s22 + $0x7a0] sm:$0xff]  ;;  %v3994_v33 = vld [vmem:[%s5764_s22 + $0xa8] sm:$0xff] }
 0xa89   : > { %v5300_v50 = vpop.eup %5299  ;;  %v3744_v5 = vmul.f32 0.044715, %v7703_v34  ;;  %v3919_v19 = vadd.f32 1.0, %v5298_v39  ;;  %v3864_v31 = vmul.f32 0.7978846, %v3832_v16  ;;  %v3529_v59 = vadd.f32 %v3528_v4, %v7709_v48  ;;  %v4221_v39 = vld [vmem:[%s5764_s22 + $0x7c0] sm:$0xff]  ;;  %4434 = vmatpush.msrb.mxu2 %v4223_v45  ;;  %4463 = vmatpush.msra.mxu1 %v4000_v53 }
 0xa8a   : > { %v3920_v13 = vadd.f32 1.0, %v5300_v50  ;;  %5301 = vtanh.f32 %v3863_v7  ;;  %v3775_v24 = vmul.f32 %v3743_v63, %v7698_v1  ;;  %v4030_v50 = vld [vmem:[%s5764_s22 + $0x1c8] sm:$0xff]  ;;  %4492 = vmatpush.msra.mxu3 %v4032_v32  ;;  %4406 = vmatpush.msrb.mxu0 %v4189_v35  ;;  %v4183_v32 = vld [vmem:[%s5764_s22 + $0x690] sm:$0xff] }
 0xa8b   : > { %v7723_v61 = vmul.f32 %v3919_v19, %v3695_v54  ;;  %5303 = vtanh.f32 %v3864_v31  ;;  %v3776_v27 = vmul.f32 %v3744_v5, %v7703_v34  ;;  %v3703_v31 = vmul.f32 0.5, %v7668_v49  ;;  %4435 = vmatpush.msrb.mxu2 %v4221_v39  ;;  %4464 = vmatpush.msra.mxu1 %v3998_v52  ;;  %v4026_v45 = vld [vmem:[%s5764_s22 + $0x1a8] sm:$0xff] }
 0xa8c   : > { %v7729_v26 = vmul.f32 %v3920_v13, %v3696_v8  ;;  %v3807_v22 = vmul.f32 %v3775_v24, %v7698_v1  ;;  %v3704_v8 = vmul.f32 0.5, %v7673_v56  ;;  %4493 = vmatpush.msra.mxu3 %v4030_v50  ;;  %v4028_v56 = vld [vmem:[%s5764_s22 + $0x1b8] sm:$0xff]  ;;  %4407 = vmatpush.msrb.mxu0 %v4187_v2  ;;  %v3990_v2 = vld [vmem:[%s5764_s22 + $0x88] sm:$0xff] }
 0xa8d   : > { %v3499_v21 = vpop.f32.mrf.mxu3  ;;  %4306 = vmatmul.f32.gmra.mxu0 %v7723_v61  ;;  %v3808_v60 = vmul.f32 %v3776_v27, %v7703_v34  ;;  %v3996_v27 = vld [vmem:[%s5764_s22 + $0xb8] sm:$0xff]  ;;  %4436 = vmatpush.msrb.mxu2 %v4219_v29  ;;  %v4022_v29 = vld [vmem:[%s5764_s22 + $0x188] sm:$0xff] }
 0xa8e   : > { %v7739_v55 = vadd.f32 %v3499_v21, %v3471_v62  ;;  %v3557_v15 = vpop.f32.mrf.mxu2  ;;  %4335 = vmatmul.f32.gmra.mxu2 %v7729_v26  ;;  %v3839_v37 = vadd.f32 %v3807_v22, %v7698_v1  ;;  %4465 = vmatpush.msra.mxu1 %v3996_v27 }
 0xa8f   : > { %v7745_v3 = vadd.f32 %v3557_v15, %v3529_v59  ;;  %v3473_v23 = vpop.f32.mrf.mxu1  ;;  %v3840_v16 = vadd.f32 %v3808_v60, %v7703_v34  ;;  %4494 = vmatpush.msra.mxu3 %v4028_v56  ;;  %4408 = vmatpush.msrb.mxu0 %v4185_v11 }
 0xa90   : > { %v5302_v63 = vpop.eup %5301  ;;  %v3721_v4 = vmul.f32 0.044715, %v7739_v55  ;;  %v3531_v54 = vpop.f32.mrf.mxu0  ;;  %v3871_v7 = vmul.f32 0.7978846, %v3839_v37  ;;  %v3474_v62 = vadd.f32 %v3473_v23, %v7706_v43  ;;  %v4215_v23 = vld [vmem:[%s5764_s22 + $0x790] sm:$0xff]  ;;  %4437 = vmatpush.msrb.mxu2 %v4217_v44  ;;  %4466 = vmatpush.msra.mxu1 %v3994_v33 }
 0xa91   : > { %v5304_v5 = vpop.eup %5303  ;;  %v3722_v19 = vmul.f32 0.044715, %v7745_v3  ;;  %v3927_v17 = vadd.f32 1.0, %v5302_v63  ;;  %v3872_v6 = vmul.f32 0.7978846, %v3840_v16  ;;  %v3532_v21 = vadd.f32 %v3531_v54, %v7709_v48  ;;  %v3992_v63 = vld [vmem:[%s5764_s22 + $0x98] sm:$0xff]  ;;  %4495 = vmatpush.msra.mxu3 %v4026_v45  ;;  %4409 = vmatpush.msrb.mxu0 %v4183_v32 }
 0xa92   : > { %v3753_v13 = vmul.f32 %v3721_v4, %v7739_v55  ;;  %v3928_v24 = vadd.f32 1.0, %v5304_v5  ;;  %5305 = vtanh.f32 %v3871_v7  ;;  %v4024_v4 = vld [vmem:[%s5764_s22 + $0x198] sm:$0xff]  ;;  %v3711_v5 = vmul.f32 0.5, %v7698_v1  ;;  %4438 = vmatpush.msrb.mxu2 %v4215_v23  ;;  %4467 = vmatpush.msra.mxu1 %v3992_v63  ;;  %v4018_v63 = vld [vmem:[%s5764_s22 + $0x168] sm:$0xff] }
 0xa93   : > { %v3754_v49 = vmul.f32 %v3722_v19, %v7745_v3  ;;  %v7761_v58 = vmul.f32 %v3927_v17, %v3703_v31  ;;  %5307 = vtanh.f32 %v3872_v6  ;;  %v4181_v19 = vld [vmem:[%s5764_s22 + $0x680] sm:$0xff]  ;;  %v3712_v6 = vmul.f32 0.5, %v7703_v34  ;;  %4496 = vmatpush.msra.mxu3 %v4024_v4  ;;  %v3988_v34 = vld [vmem:[%s5764_s22 + $0x78] sm:$0xff] }
 0xa94   : > { %v3785_v18 = vmul.f32 %v3753_v13, %v7739_v55  ;;  %v7766_v22 = vmul.f32 %v3928_v24, %v3704_v8  ;;  %v4213_v13 = vld [vmem:[%s5764_s22 + $0x780] sm:$0xff]  ;;  %4410 = vmatpush.msrb.mxu0 %v4181_v19  ;;  %4468 = vmatpush.msra.mxu1 %v3990_v2  ;;  %v3984_v19 = vld [vmem:[%s5764_s22 + $0x58] sm:$0xff] }
 0xa95   : > { %v3786_v59 = vmul.f32 %v3754_v49, %v7745_v3  ;;  %v3502_v60 = vpop.f32.mrf.mxu3  ;;  %4309 = vmatmul.f32.gmra.mxu0 %v7761_v58  ;;  %4439 = vmatpush.msrb.mxu2 %v4213_v13 }
 0xa96   : > { %v3817_v15 = vadd.f32 %v3785_v18, %v7739_v55  ;;  %v7776_v37 = vadd.f32 %v3502_v60, %v3474_v62  ;;  %v3560_v53 = vpop.f32.mrf.mxu2  ;;  %4338 = vmatmul.f32.gmra.mxu2 %v7766_v22  ;;  %v4179_v18 = vld [vmem:[%s5764_s22 + $0x670] sm:$0xff]  ;;  %4497 = vmatpush.msra.mxu3 %v4022_v29 }
 0xa97   : > { %v3818_v16 = vadd.f32 %v3786_v59, %v7745_v3  ;;  %v7782_v35 = vadd.f32 %v3560_v53, %v3532_v21  ;;  %v3476_v39 = vpop.f32.mrf.mxu1  ;;  %v4211_v62 = vld [vmem:[%s5764_s22 + $0x770] sm:$0xff]  ;;  %v4020_v59 = vld [vmem:[%s5764_s22 + $0x178] sm:$0xff]  ;;  %v4209_v53 = vld [vmem:[%s5764_s22 + $0x760] sm:$0xff]  ;;  %4411 = vmatpush.msrb.mxu0 %v4179_v18  ;;  %4469 = vmatpush.msra.mxu1 %v3988_v34 }
 0xa98   : > { %v5306_v54 = vpop.eup %5305  ;;  %v3849_v7 = vmul.f32 0.7978846, %v3817_v15  ;;  %v3729_v52 = vmul.f32 0.044715, %v7776_v37  ;;  %v3534_v50 = vpop.f32.mrf.mxu0  ;;  %v3477_v11 = vadd.f32 %v3476_v39, %v7706_v43  ;;  %4440 = vmatpush.msrb.mxu2 %v4211_v62  ;;  %v4177_v15 = vld [vmem:[%s5764_s22 + $0x660] sm:$0xff]  ;;  %v3986_v39 = vld [vmem:[%s5764_s22 + $0x68] sm:$0xff]  ;;  %4498 = vmatpush.msra.mxu3 %v4020_v59 }
 0xa99   : > { %v3850_v31 = vmul.f32 0.7978846, %v3818_v16  ;;  %v3730_v17 = vmul.f32 0.044715, %v7782_v35  ;;  %v3935_v8 = vadd.f32 1.0, %v5306_v54  ;;  %v5308_v24 = vpop.eup %5307  ;;  %v3535_v21 = vadd.f32 %v3534_v50, %v7709_v48  ;;  %v4175_v50 = vld [vmem:[%s5764_s22 + $0x650] sm:$0xff]  ;;  %4412 = vmatpush.msrb.mxu0 %v4177_v15  ;;  %4470 = vmatpush.msra.mxu1 %v3986_v39 }
 0xa9a   : > { %5309 = vtanh.f32 %v3849_v7  ;;  %v3761_v1 = vmul.f32 %v3729_v52, %v7776_v37  ;;  %v3936_v49 = vadd.f32 1.0, %v5308_v24  ;;  %v3689_v7 = vmul.f32 0.5, %v7739_v55  ;;  %4441 = vmatpush.msrb.mxu2 %v4209_v53  ;;  %v4016_v24 = vld [vmem:[%s5764_s22 + $0x158] sm:$0xff]  ;;  %4499 = vmatpush.msra.mxu3 %v4018_v63  ;;  %v4014_v34 = vld [vmem:[%s5764_s22 + $0x148] sm:$0xff]  ;;  %v4203_v15 = vld [vmem:[%s5764_s22 + $0x730] sm:$0xff] }
 0xa9b   : > { %5311 = vtanh.f32 %v3850_v31  ;;  %v7795_v27 = vmul.f32 %v3935_v8, %v3711_v5  ;;  %v3762_v56 = vmul.f32 %v3730_v17, %v7782_v35  ;;  %v4207_v5 = vld [vmem:[%s5764_s22 + $0x750] sm:$0xff]  ;;  %4413 = vmatpush.msrb.mxu0 %v4175_v50  ;;  %4471 = vmatpush.msra.mxu1 %v3984_v19  ;;  %v3982_v59 = vld [vmem:[%s5764_s22 + $0x48] sm:$0xff]  ;;  %v4012_v39 = vld [vmem:[%s5764_s22 + $0x138] sm:$0xff] }
 0xa9c   : > { %v3793_v44 = vmul.f32 %v3761_v1, %v7776_v37  ;;  %v7806_v33 = vmul.f32 %v3936_v49, %v3712_v6  ;;  %v4173_v6 = vld [vmem:[%s5764_s22 + $0x640] sm:$0xff]  ;;  %4442 = vmatpush.msrb.mxu2 %v4207_v5  ;;  %4500 = vmatpush.msra.mxu3 %v4016_v24 }
 0xa9d   : > { %v3505_v60 = vpop.f32.mrf.mxu3  ;;  %4312 = vmatmul.f32.gmra.mxu0 %v7795_v27  ;;  %v3794_v45 = vmul.f32 %v3762_v56, %v7782_v35  ;;  %v4205_v49 = vld [vmem:[%s5764_s22 + $0x740] sm:$0xff]  ;;  %v3690_v56 = vmul.f32 0.5, %v7745_v3  ;;  %4472 = vmatpush.msra.mxu1 %v3982_v59 }
 0xa9e   : > { %v7811_v32 = vadd.f32 %v3505_v60, %v3477_v11  ;;  %v3563_v23 = vpop.f32.mrf.mxu2  ;;  %v3825_v16 = vadd.f32 %v3793_v44, %v7776_v37  ;;  %4341 = vmatmul.f32.gmra.mxu2 %v7806_v33  ;;  %4414 = vmatpush.msrb.mxu0 %v4173_v6  ;;  %v4169_v50 = vld [vmem:[%s5764_s22 + $0x620] sm:$0xff]  ;;  %v3978_v6 = vld [vmem:[%s5764_s22 + $0x28] sm:$0xff] }
 0xa9f   : > { %v7816_v4 = vadd.f32 %v3563_v23, %v3535_v21  ;;  %v3479_v54 = vpop.f32.mrf.mxu1  ;;  %v3826_v52 = vadd.f32 %v3794_v45, %v7782_v35  ;;  %4443 = vmatpush.msrb.mxu2 %v4205_v49  ;;  %v4171_v45 = vld [vmem:[%s5764_s22 + $0x630] sm:$0xff]  ;;  %4501 = vmatpush.msra.mxu3 %v4014_v34  ;;  %v4201_v5 = vld [vmem:[%s5764_s22 + $0x720] sm:$0xff] }
 0xaa0   : > { %v5310_v31 = vpop.eup %5309  ;;  %v3737_v17 = vmul.f32 0.044715, %v7811_v32  ;;  %v3537_v8 = vpop.f32.mrf.mxu0  ;;  %v3857_v13 = vmul.f32 0.7978846, %v3825_v16  ;;  %v3480_v3 = vadd.f32 %v3479_v54, %v7706_v43  ;;  %v3980_v43 = vld [vmem:[%s5764_s22 + $0x38] sm:$0xff]  ;;  %4415 = vmatpush.msrb.mxu0 %v4171_v45 }
 0xaa1   : > { %v5312_v1 = vpop.eup %5311  ;;  %v3738_v55 = vmul.f32 0.044715, %v7816_v4  ;;  %v3913_v2 = vadd.f32 1.0, %v5310_v31  ;;  %v3858_v29 = vmul.f32 0.7978846, %v3826_v52  ;;  %v3538_v53 = vadd.f32 %v3537_v8, %v7709_v48  ;;  %4444 = vmatpush.msrb.mxu2 %v4203_v15  ;;  %4473 = vmatpush.msra.mxu1 %v3980_v43  ;;  %v4197_v43 = vld [vmem:[%s5764_s22 + $0x700] sm:$0xff] }
 0xaa2   : > { %v3914_v18 = vadd.f32 1.0, %v5312_v1  ;;  %5313 = vtanh.f32 %v3857_v13  ;;  %v3769_v62 = vmul.f32 %v3737_v17, %v7811_v32  ;;  %v5356_v17 = vld [vmem:[%s5775_s14 + $0x38] sm:$0xff]  ;;  %v3697_v13 = vmul.f32 0.5, %v7776_v37  ;;  %v4010_v1 = vld [vmem:[%s5764_s22 + $0x128] sm:$0xff]  ;;  %4502 = vmatpush.msra.mxu3 %v4012_v39  ;;  %4416 = vmatpush.msrb.mxu0 %v4169_v50 }
 0xaa3   : > { %v7832_v11 = vmul.f32 %v3913_v2, %v3689_v7  ;;  %5315 = vtanh.f32 %v3858_v29  ;;  %v3770_v44 = vmul.f32 %v3738_v55, %v7816_v4  ;;  %v5355_v7 = vld [vmem:[%s5775_s14 + $0x30] sm:$0xff]  ;;  %v7859_v8 = vperm.slane %v5356_v17, 0  ;;  %4445 = vmatpush.msrb.mxu2 %v4201_v5  ;;  %4474 = vmatpush.msra.mxu1 %v3978_v6 }
 0xaa4   : > { %v7837_v21 = vmul.f32 %v3914_v18, %v3690_v56  ;;  %v3801_v60 = vmul.f32 %v3769_v62, %v7811_v32  ;;  %v7851_v52 = vperm.slane %v5355_v7, 0  ;;  %v4167_v55 = vld [vmem:[%s5764_s22 + $0x610] sm:$0xff]  ;;  %v3976_v62 = vld [vmem:[%s5764_s22 + $0x18] sm:$0xff]  ;;  %4503 = vmatpush.msra.mxu3 %v4010_v1  ;;  %v3974_v7 = vld [vmem:[%s5764_s22 + $0x8] sm:$0xff] }
 0xaa5   : > { %v3508_v23 = vpop.f32.mrf.mxu3  ;;  %4361 = vmatmul.f32.vlgmr.msrb.gmra.mxu1 %v7832_v11  ;;  %v3802_v16 = vmul.f32 %v3770_v44, %v7816_v4  ;;  %v4199_v18 = vld [vmem:[%s5764_s22 + $0x710] sm:$0xff]  ;;  %4417 = vmatpush.msrb.mxu0 %v4167_v55  ;;  %v4132_v55 = vld [vmem:[%s5764_s22 + $0x4f8] sm:$0xff] }
 0xaa6   : > { %v7847_v63 = vadd.f32 %v3508_v23, %v3480_v3  ;;  %v3566_v54 = vpop.f32.mrf.mxu2  ;;  %4390 = vmatmul.f32.vlgmr.msrb.gmra.mxu3 %v7837_v21  ;;  %v3833_v48 = vadd.f32 %v3801_v60, %v7811_v32  ;;  %v4008_v3 = vld [vmem:[%s5764_s22 + $0x118] sm:$0xff]  ;;  %v3698_v60 = vmul.f32 0.5, %v7782_v35  ;;  %4446 = vmatpush.msrb.mxu2 %v4199_v18 }
 0xaa7   : > { %v7856_v19 = vadd.f32 %v3566_v54, %v3538_v53  ;;  %v3586_v31 = vpop.f32.mrf.mxu1  ;;  %v3834_v24 = vadd.f32 %v3802_v16, %v7816_v4  ;;  %v4165_v53 = vld [vmem:[%s5764_s22 + $0x600] sm:$0xff]  ;;  %4475 = vmatpush.msra.mxu1 %v3976_v62  ;;  %4504 = vmatpush.msra.mxu3 %v4008_v3  ;;  %v4066_v62 = vld [vmem:[%s5764_s22 + $0x2e8] sm:$0xff] }
 0xaa8   : > { %v5314_v2 = vpop.eup %5313  ;;  %v3745_v29 = vmul.f32 0.044715, %v7847_v63  ;;  %v3644_v49 = vpop.f32.mrf.mxu0  ;;  %v3865_v56 = vmul.f32 0.7978846, %v3833_v48  ;;  %v3587_v35 = vadd.f32 %v3586_v31, %v7851_v52  ;;  %v4006_v48 = vld [vmem:[%s5764_s22 + $0x108] sm:$0xff]  ;;  %4418 = vmatpush.msrb.mxu0 %v4165_v53  ;;  %v4068_v31 = vld [vmem:[%s5764_s22 + $0x2f8] sm:$0xff]  ;;  %4447 = vmatpush.msrb.mxu2 %v4197_v43 }
 0xaa9   : > { %v5316_v34 = vpop.eup %5315  ;;  %v3746_v37 = vmul.f32 0.044715, %v7856_v19  ;;  %v3921_v44 = vadd.f32 1.0, %v5314_v2  ;;  %v3866_v59 = vmul.f32 0.7978846, %v3834_v24  ;;  %v3645_v50 = vadd.f32 %v3644_v49, %v7859_v8  ;;  %v4164_v2 = vld [vmem:[%s5764_s22 + $0x5f8] sm:$0xff]  ;;  %4476 = vmatpush.msra.mxu1 %v3974_v7  ;;  %4505 = vmatpush.msra.mxu3 %v4006_v48 }
 0xaaa   : > { %v3922_v45 = vadd.f32 1.0, %v5316_v34  ;;  %5317 = vtanh.f32 %v3865_v56  ;;  %v3777_v15 = vmul.f32 %v3745_v29, %v7847_v63  ;;  %v3705_v56 = vmul.f32 0.5, %v7811_v32  ;;  %v4098_v34 = vld [vmem:[%s5764_s22 + $0x3e8] sm:$0xff]  ;;  %4519 = vmatpush.msra.mxu0 %v4068_v31  ;;  %v4064_v43 = vld [vmem:[%s5764_s22 + $0x2d8] sm:$0xff] }
 0xaab   : > { %v7874_v23 = vmul.f32 %v3921_v44, %v3697_v13  ;;  %5319 = vtanh.f32 %v3866_v59  ;;  %v3778_v16 = vmul.f32 %v3746_v37, %v7856_v19  ;;  %v4100_v13 = vld [vmem:[%s5764_s22 + $0x3f8] sm:$0xff]  ;;  %4577 = vmatpush.msrb.mxu1 %v4132_v55  ;;  %4606 = vmatpush.msrb.mxu3 %v4164_v2  ;;  %v4094_v55 = vld [vmem:[%s5764_s22 + $0x3c8] sm:$0xff] }
 0xaac   : > { %v7879_v39 = vmul.f32 %v3922_v45, %v3698_v60  ;;  %v3809_v54 = vmul.f32 %v3777_v15, %v7847_v63  ;;  %4548 = vmatpush.msra.mxu2 %v4100_v13  ;;  %v4130_v60 = vld [vmem:[%s5764_s22 + $0x4e8] sm:$0xff]  ;;  %4520 = vmatpush.msra.mxu0 %v4066_v62 }
 0xaad   : > { %v3615_v5 = vpop.f32.mrf.mxu3  ;;  %4364 = vmatmul.f32.gmra.mxu1 %v7874_v23  ;;  %v3810_v17 = vmul.f32 %v3778_v16, %v7856_v19  ;;  %v4162_v45 = vld [vmem:[%s5764_s22 + $0x5e8] sm:$0xff]  ;;  %v3706_v16 = vmul.f32 0.5, %v7816_v4  ;;  %v4128_v4 = vld [vmem:[%s5764_s22 + $0x4d8] sm:$0xff] }
 0xaae   : > { %v7889_v24 = vadd.f32 %v3615_v5, %v3587_v35  ;;  %v3673_v6 = vpop.f32.mrf.mxu2  ;;  %4393 = vmatmul.f32.gmra.mxu3 %v7879_v39  ;;  %v3841_v1 = vadd.f32 %v3809_v54, %v7847_v63  ;;  %v4096_v35 = vld [vmem:[%s5764_s22 + $0x3d8] sm:$0xff]  ;;  %4549 = vmatpush.msra.mxu2 %v4098_v34  ;;  %v4158_v62 = vld [vmem:[%s5764_s22 + $0x5c8] sm:$0xff] }
 0xaaf   : > { %v7895_v29 = vadd.f32 %v3673_v6, %v3645_v50  ;;  %v3589_v49 = vpop.f32.mrf.mxu1  ;;  %v3842_v18 = vadd.f32 %v3810_v17, %v7856_v19  ;;  %v4160_v50 = vld [vmem:[%s5764_s22 + $0x5d8] sm:$0xff]  ;;  %4578 = vmatpush.msrb.mxu1 %v4130_v60  ;;  %4607 = vmatpush.msrb.mxu3 %v4162_v45 }
 0xab0   : > { %v5318_v37 = vpop.eup %5317  ;;  %v3723_v44 = vmul.f32 0.044715, %v7889_v24  ;;  %v3647_v59 = vpop.f32.mrf.mxu0  ;;  %v3873_v3 = vmul.f32 0.7978846, %v3841_v1  ;;  %v3590_v13 = vadd.f32 %v3589_v49, %v7851_v52  ;;  %4521 = vmatpush.msra.mxu0 %v4064_v43  ;;  %4550 = vmatpush.msra.mxu2 %v4096_v35  ;;  %v4062_v1 = vld [vmem:[%s5764_s22 + $0x2c8] sm:$0xff] }
 0xab1   : > { %v5320_v15 = vpop.eup %5319  ;;  %v3724_v32 = vmul.f32 0.044715, %v7895_v29  ;;  %v3929_v53 = vadd.f32 1.0, %v5318_v37  ;;  %v3874_v48 = vmul.f32 0.7978846, %v3842_v18  ;;  %4608 = vmatpush.msrb.mxu3 %v4160_v50  ;;  %v4126_v49 = vld [vmem:[%s5764_s22 + $0x4c8] sm:$0xff]  ;;  %4579 = vmatpush.msrb.mxu1 %v4128_v4 }
 0xab2   : > { %v3755_v54 = vmul.f32 %v3723_v44, %v7889_v24  ;;  %v3930_v7 = vadd.f32 1.0, %v5320_v15  ;;  %5321 = vtanh.f32 %v3873_v3  ;;  %v4060_v3 = vld [vmem:[%s5764_s22 + $0x2b8] sm:$0xff]  ;;  %v3713_v15 = vmul.f32 0.5, %v7847_v63  ;;  %4522 = vmatpush.msra.mxu0 %v4062_v1  ;;  %4551 = vmatpush.msra.mxu2 %v4094_v55  ;;  %v4122_v50 = vld [vmem:[%s5764_s22 + $0x4a8] sm:$0xff] }
 0xab3   : > { %v3756_v5 = vmul.f32 %v3724_v32, %v7895_v29  ;;  %v7911_v17 = vmul.f32 %v3929_v53, %v3705_v56  ;;  %5323 = vtanh.f32 %v3874_v48  ;;  %v3648_v56 = vadd.f32 %v3647_v59, %v7859_v8  ;;  %v4092_v59 = vld [vmem:[%s5764_s22 + $0x3b8] sm:$0xff]  ;;  %4580 = vmatpush.msrb.mxu1 %v4126_v49  ;;  %4609 = vmatpush.msrb.mxu3 %v4158_v62  ;;  %v4090_v48 = vld [vmem:[%s5764_s22 + $0x3a8] sm:$0xff] }
 0xab4   : > { %v3787_v31 = vmul.f32 %v3755_v54, %v7889_v24  ;;  %v7916_v6 = vmul.f32 %v3930_v7, %v3706_v16  ;;  %v4124_v32 = vld [vmem:[%s5764_s22 + $0x4b8] sm:$0xff]  ;;  %v4058_v16 = vld [vmem:[%s5764_s22 + $0x2a8] sm:$0xff]  ;;  %4523 = vmatpush.msra.mxu0 %v4060_v3  ;;  %4552 = vmatpush.msra.mxu2 %v4092_v59  ;;  %v3714_v55 = vmul.f32 0.5, %v7856_v19 }
 0xab5   : > { %v3788_v2 = vmul.f32 %v3756_v5, %v7895_v29  ;;  %v3618_v18 = vpop.f32.mrf.mxu3  ;;  %4367 = vmatmul.f32.gmra.mxu1 %v7911_v17  ;;  %v4156_v53 = vld [vmem:[%s5764_s22 + $0x5b8] sm:$0xff]  ;;  %v4054_v59 = vld [vmem:[%s5764_s22 + $0x288] sm:$0xff] }
 0xab6   : > { %v3819_v34 = vadd.f32 %v3787_v31, %v7889_v24  ;;  %v7926_v37 = vadd.f32 %v3618_v18, %v3590_v13  ;;  %v3676_v44 = vpop.f32.mrf.mxu2  ;;  %4396 = vmatmul.f32.gmra.mxu3 %v7916_v6  ;;  %v4154_v13 = vld [vmem:[%s5764_s22 + $0x5a8] sm:$0xff]  ;;  %4581 = vmatpush.msrb.mxu1 %v4124_v32 }
 0xab7   : > { %v3820_v60 = vadd.f32 %v3788_v2, %v7895_v29  ;;  %v7932_v45 = vadd.f32 %v3676_v44, %v3648_v56  ;;  %v3592_v7 = vpop.f32.mrf.mxu1  ;;  %4610 = vmatpush.msrb.mxu3 %v4156_v53  ;;  %v4056_v56 = vld [vmem:[%s5764_s22 + $0x298] sm:$0xff]  ;;  %4524 = vmatpush.msra.mxu0 %v4058_v16 }
 0xab8   : > { %v5322_v43 = vpop.eup %5321  ;;  %v3851_v35 = vmul.f32 0.7978846, %v3819_v34  ;;  %v3731_v54 = vmul.f32 0.044715, %v7926_v37  ;;  %v3650_v63 = vpop.f32.mrf.mxu0  ;;  %4553 = vmatpush.msra.mxu2 %v4090_v48  ;;  %v4088_v34 = vld [vmem:[%s5764_s22 + $0x398] sm:$0xff]  ;;  %v3593_v19 = vadd.f32 %v3592_v7, %v7851_v52  ;;  %4582 = vmatpush.msrb.mxu1 %v4122_v50  ;;  %v4118_v48 = vld [vmem:[%s5764_s22 + $0x488] sm:$0xff] }
 0xab9   : > { %v3852_v5 = vmul.f32 0.7978846, %v3820_v60  ;;  %v3732_v4 = vmul.f32 0.044715, %v7932_v45  ;;  %v3937_v31 = vadd.f32 1.0, %v5322_v43  ;;  %v5324_v1 = vpop.eup %5323  ;;  %v4120_v44 = vld [vmem:[%s5764_s22 + $0x498] sm:$0xff]  ;;  %4611 = vmatpush.msrb.mxu3 %v4154_v13  ;;  %v3651_v60 = vadd.f32 %v3650_v63, %v7859_v8  ;;  %4525 = vmatpush.msra.mxu0 %v4056_v56 }
 0xaba   : > { %5325 = vtanh.f32 %v3851_v35  ;;  %v3763_v2 = vmul.f32 %v3731_v54, %v7926_v37  ;;  %v3938_v49 = vadd.f32 1.0, %v5324_v1  ;;  %v4152_v16 = vld [vmem:[%s5764_s22 + $0x598] sm:$0xff]  ;;  %v4086_v43 = vld [vmem:[%s5764_s22 + $0x388] sm:$0xff]  ;;  %4554 = vmatpush.msra.mxu2 %v4088_v34  ;;  %4583 = vmatpush.msrb.mxu1 %v4120_v44 }
 0xabb   : > { %5327 = vtanh.f32 %v3852_v5  ;;  %v7946_v18 = vmul.f32 %v3937_v31, %v3713_v15  ;;  %v3764_v62 = vmul.f32 %v3732_v4, %v7932_v45  ;;  %v4052_v50 = vld [vmem:[%s5764_s22 + $0x278] sm:$0xff]  ;;  %v3691_v5 = vmul.f32 0.5, %v7889_v24  ;;  %4526 = vmatpush.msra.mxu0 %v4054_v59  ;;  %v4150_v31 = vld [vmem:[%s5764_s22 + $0x588] sm:$0xff]  ;;  %4612 = vmatpush.msrb.mxu3 %v4152_v16 }
 0xabc   : > { %v3795_v3 = vmul.f32 %v3763_v2, %v7926_v37  ;;  %v7956_v32 = vmul.f32 %v3938_v49, %v3714_v55  ;;  %v4084_v13 = vld [vmem:[%s5764_s22 + $0x378] sm:$0xff]  ;;  %4555 = vmatpush.msra.mxu2 %v4086_v43  ;;  %4584 = vmatpush.msrb.mxu1 %v4118_v48  ;;  %v3692_v59 = vmul.f32 0.5, %v7895_v29 }
 0xabd   : > { %v3621_v15 = vpop.f32.mrf.mxu3  ;;  %4370 = vmatmul.f32.gmra.mxu1 %v7946_v18  ;;  %v3796_v53 = vmul.f32 %v3764_v62, %v7932_v45  ;;  %v4116_v1 = vld [vmem:[%s5764_s22 + $0x478] sm:$0xff]  ;;  %v4050_v62 = vld [vmem:[%s5764_s22 + $0x268] sm:$0xff]  ;;  %4527 = vmatpush.msra.mxu0 %v4052_v50 }
 0xabe   : > { %v7961_v35 = vadd.f32 %v3621_v15, %v3593_v19  ;;  %v3679_v54 = vpop.f32.mrf.mxu2  ;;  %v3827_v7 = vadd.f32 %v3795_v3, %v7926_v37  ;;  %4399 = vmatmul.f32.gmra.mxu3 %v7956_v32  ;;  %v4148_v49 = vld [vmem:[%s5764_s22 + $0x578] sm:$0xff]  ;;  %v4082_v3 = vld [vmem:[%s5764_s22 + $0x368] sm:$0xff]  ;;  %4556 = vmatpush.msra.mxu2 %v4084_v13 }
 0xabf   : > { %v7967_v4 = vadd.f32 %v3679_v54, %v3651_v60  ;;  %v3828_v63 = vadd.f32 %v3796_v53, %v7932_v45  ;;  %v3595_v60 = vpop.f32.mrf.mxu1  ;;  %4613 = vmatpush.msrb.mxu3 %v4150_v31  ;;  %4585 = vmatpush.msrb.mxu1 %v4116_v1  ;;  %v4048_v50 = vld [vmem:[%s5764_s22 + $0x258] sm:$0xff]  ;;  %v4146_v31 = vld [vmem:[%s5764_s22 + $0x568] sm:$0xff] }
 0xac0   : > { %v5326_v55 = vpop.eup %5325  ;;  %v3739_v2 = vmul.f32 0.044715, %v7961_v35  ;;  %v3859_v56 = vmul.f32 0.7978846, %v3827_v7  ;;  %v3653_v16 = vpop.f32.mrf.mxu0  ;;  %4528 = vmatpush.msra.mxu0 %v4050_v62  ;;  %v4114_v7 = vld [vmem:[%s5764_s22 + $0x468] sm:$0xff]  ;;  %4557 = vmatpush.msra.mxu2 %v4082_v3  ;;  %v4080_v13 = vld [vmem:[%s5764_s22 + $0x358] sm:$0xff] }
 0xac1   : > { %v5328_v24 = vpop.eup %5327  ;;  %v3740_v34 = vmul.f32 0.044715, %v7967_v4  ;;  %v3915_v44 = vadd.f32 1.0, %v5326_v55  ;;  %v3860_v19 = vmul.f32 0.7978846, %v3828_v63  ;;  %4614 = vmatpush.msrb.mxu3 %v4148_v49  ;;  %v3596_v63 = vadd.f32 %v3595_v60, %v7851_v52  ;;  %4586 = vmatpush.msrb.mxu1 %v4114_v7  ;;  %v4112_v52 = vld [vmem:[%s5764_s22 + $0x458] sm:$0xff] }
 0xac2   : > { %v3916_v15 = vadd.f32 1.0, %v5328_v24  ;;  %5329 = vtanh.f32 %v3859_v56  ;;  %v3771_v53 = vmul.f32 %v3739_v2, %v7961_v35  ;;  %v3654_v1 = vadd.f32 %v3653_v16, %v7859_v8  ;;  %v4046_v56 = vld [vmem:[%s5764_s22 + $0x248] sm:$0xff]  ;;  %4529 = vmatpush.msra.mxu0 %v4048_v50  ;;  %v4144_v8 = vld [vmem:[%s5764_s22 + $0x558] sm:$0xff]  ;;  %4558 = vmatpush.msra.mxu2 %v4080_v13 }
 0xac3   : > { %v7981_v43 = vmul.f32 %v3915_v44, %v3691_v5  ;;  %5331 = vtanh.f32 %v3860_v19  ;;  %v3772_v54 = vmul.f32 %v3740_v34, %v7967_v4  ;;  %v4078_v24 = vld [vmem:[%s5764_s22 + $0x348] sm:$0xff]  ;;  %v3699_v19 = vmul.f32 0.5, %v7926_v37  ;;  %4615 = vmatpush.msrb.mxu3 %v4146_v31  ;;  %4587 = vmatpush.msrb.mxu1 %v4112_v52  ;;  %v4076_v7 = vld [vmem:[%s5764_s22 + $0x338] sm:$0xff] }
 0xac4   : > { %v7985_v29 = vmul.f32 %v3916_v15, %v3692_v59  ;;  %v3803_v48 = vmul.f32 %v3771_v53, %v7961_v35  ;;  %v4110_v59 = vld [vmem:[%s5764_s22 + $0x448] sm:$0xff]  ;;  %v4044_v15 = vld [vmem:[%s5764_s22 + $0x238] sm:$0xff]  ;;  %4530 = vmatpush.msra.mxu0 %v4046_v56  ;;  %v3700_v37 = vmul.f32 0.5, %v7932_v45  ;;  %4559 = vmatpush.msra.mxu2 %v4078_v24 }
 0xac5   : > { %4419 = vmatmul.f32.vlgmr.msrb.gmra.mxu0 %v7981_v43  ;;  %4477 = vmatmul.f32.vlgmr.msra.gmra.mxu1 %v7512_v38  ;;  %v3804_v5 = vmul.f32 %v3772_v54, %v7967_v4  ;;  %v3624_v55 = vpop.f32.mrf.mxu3  ;;  %v4142_v60 = vld [vmem:[%s5764_s22 + $0x548] sm:$0xff]  ;;  %v4108_v31 = vld [vmem:[%s5764_s22 + $0x438] sm:$0xff] }
 0xac6   : > { %4448 = vmatmul.f32.vlgmr.msrb.gmra.mxu2 %v7985_v29  ;;  %v3835_v2 = vadd.f32 %v3803_v48, %v7961_v35  ;;  %v8000_v38 = vadd.f32 %v3624_v55, %v3596_v63  ;;  %v3682_v49 = vpop.f32.mrf.mxu2  ;;  %4506 = vmatmul.f32.vlgmr.msra.gmra.mxu3 %v7514_v10  ;;  %v4074_v52 = vld [vmem:[%s5764_s22 + $0x328] sm:$0xff]  ;;  %v4072_v24 = vld [vmem:[%s5764_s22 + $0x318] sm:$0xff] }
 0xac7   : > { %v3836_v62 = vadd.f32 %v3804_v5, %v7967_v4  ;;  %v8006_v44 = vadd.f32 %v3682_v49, %v3654_v1  ;;  %4616 = vmatpush.msrb.mxu3 %v4144_v8  ;;  %4588 = vmatpush.msrb.mxu1 %v4110_v59  ;;  %v4042_v1 = vld [vmem:[%s5764_s22 + $0x228] sm:$0xff] }
 0xac8   : > { %v5330_v34 = vpop.eup %5329  ;;  %v3867_v3 = vmul.f32 0.7978846, %v3835_v2  ;;  %v3747_v10 = vmul.f32 0.044715, %v8000_v38  ;;  %4531 = vmatpush.msra.mxu0 %v4044_v15  ;;  %4560 = vmatpush.msra.mxu2 %v4076_v7  ;;  %v4140_v2 = vld [vmem:[%s5764_s22 + $0x538] sm:$0xff]  ;;  %v4106_v49 = vld [vmem:[%s5764_s22 + $0x428] sm:$0xff] }
 0xac9   : > { %v5332_v53 = vpop.eup %5331  ;;  %v3923_v16 = vadd.f32 1.0, %v5330_v34  ;;  %v3868_v54 = vmul.f32 0.7978846, %v3836_v62  ;;  %v3748_v48 = vmul.f32 0.044715, %v8006_v44  ;;  %4617 = vmatpush.msrb.mxu3 %v4142_v60  ;;  %4589 = vmatpush.msrb.mxu1 %v4108_v31  ;;  %v4040_v62 = vld [vmem:[%s5764_s22 + $0x218] sm:$0xff] }
 0xaca   : > { %v3924_v50 = vadd.f32 1.0, %v5332_v53  ;;  %5333 = vtanh.f32 %v3867_v3  ;;  %v3779_v5 = vmul.f32 %v3747_v10, %v8000_v38  ;;  %4532 = vmatpush.msra.mxu0 %v4042_v1  ;;  %4561 = vmatpush.msra.mxu2 %v4074_v52  ;;  %v4104_v3 = vld [vmem:[%s5764_s22 + $0x418] sm:$0xff]  ;;  %v4038_v59 = vld [vmem:[%s5764_s22 + $0x208] sm:$0xff]  ;;  %v3707_v15 = vmul.f32 0.5, %v7961_v35 }
 0xacb   : > { %v8016_v63 = vmul.f32 %v3923_v16, %v3699_v19  ;;  %5335 = vtanh.f32 %v3868_v54  ;;  %v3780_v45 = vmul.f32 %v3748_v48, %v8006_v44  ;;  %4618 = vmatpush.msrb.mxu3 %v4140_v2  ;;  %4590 = vmatpush.msrb.mxu1 %v4106_v49  ;;  %v4136_v10 = vld [vmem:[%s5764_s22 + $0x518] sm:$0xff]  ;;  %v4070_v16 = vld [vmem:[%s5764_s22 + $0x308] sm:$0xff]  ;;  %v3708_v54 = vmul.f32 0.5, %v7967_v4 }
 0xacc   : > { %v8020_v13 = vmul.f32 %v3924_v50, %v3700_v37  ;;  %v3811_v55 = vmul.f32 %v3779_v5, %v8000_v38  ;;  %4533 = vmatpush.msra.mxu0 %v4040_v62  ;;  %4562 = vmatpush.msra.mxu2 %v4072_v24  ;;  %v4102_v35 = vld [vmem:[%s5764_s22 + $0x408] sm:$0xff]  ;;  %v4196_v4 = vld [vmem:[%s5764_s22 + $0x6f8] sm:$0xff] }
 0xacd   : > { %4422 = vmatmul.f32.gmra.mxu0 %v8016_v63  ;;  %4480 = vmatmul.f32.gmra.mxu1 %v7592_v0  ;;  %v3812_v56 = vmul.f32 %v3780_v45, %v8006_v44  ;;  %v4138_v0 = vld [vmem:[%s5764_s22 + $0x528] sm:$0xff]  ;;  %v4228_v31 = vld [vmem:[%s5764_s22 + $0x7f8] sm:$0xff] }
 0xace   : > { %4451 = vmatmul.f32.gmra.mxu2 %v8020_v13  ;;  %4509 = vmatmul.f32.gmra.mxu3 %v7597_v41  ;;  %v3843_v8 = vadd.f32 %v3811_v55, %v8000_v38  ;;  %v4134_v5 = vld [vmem:[%s5764_s22 + $0x508] sm:$0xff]  ;;  %v4192_v2 = vld [vmem:[%s5764_s22 + $0x6d8] sm:$0xff] }
 0xacf   : > { %v3844_v19 = vadd.f32 %v3812_v56, %v8006_v44  ;;  %4619 = vmatpush.msrb.mxu3 %v4138_v0  ;;  %4591 = vmatpush.msrb.mxu1 %v4104_v3  ;;  %v4194_v45 = vld [vmem:[%s5764_s22 + $0x6e8] sm:$0xff]  ;;  %v4224_v49 = vld [vmem:[%s5764_s22 + $0x7d8] sm:$0xff] }
 0xad0   : > { %v5334_v34 = vpop.eup %5333  ;;  %v3875_v41 = vmul.f32 0.7978846, %v3843_v8  ;;  %4534 = vmatpush.msra.mxu0 %v4038_v59  ;;  %4563 = vmatpush.msra.mxu2 %v4070_v16  ;;  %v4226_v1 = vld [vmem:[%s5764_s22 + $0x7e8] sm:$0xff]  ;;  %v4188_v24 = vld [vmem:[%s5764_s22 + $0x6b8] sm:$0xff] }
 0xad1   : > { %v5336_v60 = vpop.eup %5335  ;;  %v3931_v53 = vadd.f32 1.0, %v5334_v34  ;;  %v3876_v48 = vmul.f32 0.7978846, %v3844_v19  ;;  %4620 = vmatpush.msrb.mxu3 %v4136_v10  ;;  %4592 = vmatpush.msrb.mxu1 %v4102_v35  ;;  %v4220_v34 = vld [vmem:[%s5764_s22 + $0x7b8] sm:$0xff]  ;;  %v4218_v19 = vld [vmem:[%s5764_s22 + $0x7a8] sm:$0xff] }
 0xad2   : > { %v3932_v7 = vadd.f32 1.0, %v5336_v60  ;;  %5337 = vtanh.f32 %v3875_v41  ;;  %4635 = vmatpush.msrb.mxu0 %v4196_v4  ;;  %4664 = vmatpush.msrb.mxu2 %v4228_v31  ;;  %v4216_v3 = vld [vmem:[%s5764_s22 + $0x798] sm:$0xff]  ;;  %v4182_v59 = vld [vmem:[%s5764_s22 + $0x688] sm:$0xff] }
 0xad3   : > { %v8044_v37 = vmul.f32 %v3931_v53, %v3707_v15  ;;  %5339 = vtanh.f32 %v3876_v48  ;;  %4621 = vmatpush.msrb.mxu3 %v4134_v5  ;;  %5078 = vmatpush.msra.mxu1 %v4196_v4  ;;  %v4214_v60 = vld [vmem:[%s5764_s22 + $0x788] sm:$0xff]  ;;  %v4212_v15 = vld [vmem:[%s5764_s22 + $0x778] sm:$0xff] }
 0xad4   : > { %v8047_v50 = vmul.f32 %v3932_v7, %v3708_v54  ;;  %4636 = vmatpush.msrb.mxu0 %v4194_v45  ;;  %4665 = vmatpush.msrb.mxu2 %v4226_v1  ;;  %v4208_v53 = vld [vmem:[%s5764_s22 + $0x758] sm:$0xff]  ;;  %v4206_v41 = vld [vmem:[%s5764_s22 + $0x748] sm:$0xff] }
 0xad5   : > { %4425 = vmatmul.f32.gmra.mxu0 %v8044_v37  ;;  %4483 = vmatmul.f32.gmra.mxu1 %v7622_v12  ;;  %v3715_v12 = vmul.f32 0.5, %v8000_v38  ;;  %v4190_v38 = vld [vmem:[%s5764_s22 + $0x6c8] sm:$0xff]  ;;  %v4200_v16 = vld [vmem:[%s5764_s22 + $0x718] sm:$0xff] }
 0xad6   : > { %4454 = vmatmul.f32.gmra.mxu2 %v8047_v50  ;;  %4512 = vmatmul.f32.gmra.mxu3 %v7625_v51  ;;  %v3716_v51 = vmul.f32 0.5, %v8006_v44  ;;  %v4222_v44 = vld [vmem:[%s5764_s22 + $0x7c8] sm:$0xff] }
 0xad7   : > { %5094 = vmatpush.msra.mxu3 %v4228_v31  ;;  %5079 = vmatpush.msra.mxu1 %v4194_v45  ;;  %v4202_v10 = vld [vmem:[%s5764_s22 + $0x728] sm:$0xff] }
 0xad8   : > { %v5338_v55 = vpop.eup %5337  ;;  %4637 = vmatpush.msrb.mxu0 %v4192_v2  ;;  %4666 = vmatpush.msrb.mxu2 %v4224_v49 }
 0xad9   : > { %v5340_v52 = vpop.eup %5339  ;;  %v3939_v56 = vadd.f32 1.0, %v5338_v55  ;;  %5095 = vmatpush.msra.mxu3 %v4226_v1  ;;  %5080 = vmatpush.msra.mxu1 %v4192_v2 }
 0xada   : > { %v3940_v62 = vadd.f32 1.0, %v5340_v52  ;;  %4638 = vmatpush.msrb.mxu0 %v4190_v38  ;;  %4667 = vmatpush.msrb.mxu2 %v4222_v44 }
 0xadb   : > { %v8062_v8 = vmul.f32 %v3939_v56, %v3715_v12  ;;  %5096 = vmatpush.msra.mxu3 %v4224_v49  ;;  %5081 = vmatpush.msra.mxu1 %v4190_v38 }
 0xadc   : > { %v8064_v0 = vmul.f32 %v3940_v62, %v3716_v51  ;;  %4639 = vmatpush.msrb.mxu0 %v4188_v24  ;;  %4668 = vmatpush.msrb.mxu2 %v4220_v34 }
 0xadd   : > { %4486 = vmatmul.f32.gmra.mxu1 %v7655_v20  ;;  %4428 = vmatmul.f32.gmra.mxu0 %v8062_v8  ;;  %v4186_v20 = vld [vmem:[%s5764_s22 + $0x6a8] sm:$0xff] }
 0xade   : > { %4457 = vmatmul.f32.gmra.mxu2 %v8064_v0  ;;  %4515 = vmatmul.f32.gmra.mxu3 %v7660_v36  ;;  %v4184_v36 = vld [vmem:[%s5764_s22 + $0x698] sm:$0xff] }
 0xadf   : > { %5097 = vmatpush.msra.mxu3 %v4222_v44  ;;  %5082 = vmatpush.msra.mxu1 %v4188_v24 }
 0xae0   : > { %4640 = vmatpush.msrb.mxu0 %v4186_v20  ;;  %4669 = vmatpush.msrb.mxu2 %v4218_v19 }
 0xae1   : > { %5098 = vmatpush.msra.mxu3 %v4220_v34  ;;  %5083 = vmatpush.msra.mxu1 %v4186_v20 }
 0xae2   : > { %4641 = vmatpush.msrb.mxu0 %v4184_v36  ;;  %4670 = vmatpush.msrb.mxu2 %v4216_v3 }
 0xae3   : > { %5099 = vmatpush.msra.mxu3 %v4218_v19  ;;  %5084 = vmatpush.msra.mxu1 %v4184_v36 }
 0xae4   : > { %4642 = vmatpush.msrb.mxu0 %v4182_v59  ;;  %4671 = vmatpush.msrb.mxu2 %v4214_v60 }
 0xae5   : > { %4593 = vmatmul.f32.vlgmr.msrb.gmra.mxu1 %v7832_v11  ;;  %4535 = vmatmul.f32.vlgmr.msra.gmra.mxu0 %v7685_v40  ;;  %v4180_v11 = vld [vmem:[%s5764_s22 + $0x678] sm:$0xff]  ;;  %v4178_v40 = vld [vmem:[%s5764_s22 + $0x668] sm:$0xff] }
 0xae6   : > { %4564 = vmatmul.f32.vlgmr.msra.gmra.mxu2 %v7690_v25  ;;  %4622 = vmatmul.f32.vlgmr.msrb.gmra.mxu3 %v7837_v21  ;;  %v4210_v25 = vld [vmem:[%s5764_s22 + $0x768] sm:$0xff]  ;;  %v4176_v21 = vld [vmem:[%s5764_s22 + $0x658] sm:$0xff] }
 0xae7   : > { %5100 = vmatpush.msra.mxu3 %v4216_v3  ;;  %5085 = vmatpush.msra.mxu1 %v4182_v59  ;;  %v5357_v3 = vld [vmem:[%s5775_s14 + $0x10] sm:$0xff] }
 0xae8   : > { %4643 = vmatpush.msrb.mxu0 %v4180_v11  ;;  %4672 = vmatpush.msrb.mxu2 %v4212_v15  ;;  %v4701_v59 = vperm.slane %v5357_v3, 2 }
 0xae9   : > { %5101 = vmatpush.msra.mxu3 %v4214_v60  ;;  %5086 = vmatpush.msra.mxu1 %v4180_v11 }
 0xaea   : > { %4644 = vmatpush.msrb.mxu0 %v4178_v40  ;;  %4673 = vmatpush.msrb.mxu2 %v4210_v25 }
 0xaeb   : > { %5102 = vmatpush.msra.mxu3 %v4212_v15  ;;  %5087 = vmatpush.msra.mxu1 %v4178_v40 }
 0xaec   : > { %4645 = vmatpush.msrb.mxu0 %v4176_v21  ;;  %4674 = vmatpush.msrb.mxu2 %v4208_v53 }
 0xaed   : > { %4596 = vmatmul.f32.gmra.mxu1 %v7874_v23  ;;  %4538 = vmatmul.f32.gmra.mxu0 %v7723_v61  ;;  %v4174_v23 = vld [vmem:[%s5764_s22 + $0x648] sm:$0xff]  ;;  %v4172_v61 = vld [vmem:[%s5764_s22 + $0x638] sm:$0xff] }
 0xaee   : > { %4567 = vmatmul.f32.gmra.mxu2 %v7729_v26  ;;  %4625 = vmatmul.f32.gmra.mxu3 %v7879_v39  ;;  %v4204_v26 = vld [vmem:[%s5764_s22 + $0x738] sm:$0xff]  ;;  %v4170_v39 = vld [vmem:[%s5764_s22 + $0x628] sm:$0xff] }
 0xaef   : > { %5103 = vmatpush.msra.mxu3 %v4210_v25  ;;  %5088 = vmatpush.msra.mxu1 %v4176_v21 }
 0xaf0   : > { %4646 = vmatpush.msrb.mxu0 %v4174_v23  ;;  %4675 = vmatpush.msrb.mxu2 %v4206_v41 }
 0xaf1   : > { %5104 = vmatpush.msra.mxu3 %v4208_v53  ;;  %5089 = vmatpush.msra.mxu1 %v4174_v23 }
 0xaf2   : > { %4647 = vmatpush.msrb.mxu0 %v4172_v61  ;;  %4676 = vmatpush.msrb.mxu2 %v4204_v26 }
 0xaf3   : > { %5105 = vmatpush.msra.mxu3 %v4206_v41  ;;  %5090 = vmatpush.msra.mxu1 %v4172_v61 }
 0xaf4   : > { %4648 = vmatpush.msrb.mxu0 %v4170_v39  ;;  %4677 = vmatpush.msrb.mxu2 %v4202_v10 }
 0xaf5   : > { %4599 = vmatmul.f32.gmra.mxu1 %v7911_v17  ;;  %4541 = vmatmul.f32.gmra.mxu0 %v7761_v58  ;;  %v4168_v17 = vld [vmem:[%s5764_s22 + $0x618] sm:$0xff]  ;;  %v4166_v58 = vld [vmem:[%s5764_s22 + $0x608] sm:$0xff] }
 0xaf6   : > { %4570 = vmatmul.f32.gmra.mxu2 %v7766_v22  ;;  %4628 = vmatmul.f32.gmra.mxu3 %v7916_v6  ;;  %v4198_v22 = vld [vmem:[%s5764_s22 + $0x708] sm:$0xff]  ;;  %v4246_v6 = vpop.f32.mrf.mxu1 }
 0xaf7   : > { %5106 = vmatpush.msra.mxu3 %v4204_v26  ;;  %5091 = vmatpush.msra.mxu1 %v4170_v39 }
 0xaf8   : > { %4649 = vmatpush.msrb.mxu0 %v4168_v17  ;;  %4678 = vmatpush.msrb.mxu2 %v4200_v16 }
 0xaf9   : > { %5107 = vmatpush.msra.mxu3 %v4202_v10  ;;  %5092 = vmatpush.msra.mxu1 %v4168_v17 }
 0xafa   : > { %4650 = vmatpush.msrb.mxu0 %v4166_v58  ;;  %4679 = vmatpush.msrb.mxu2 %v4198_v22 }
 0xafb   : > { %5108 = vmatpush.msra.mxu3 %v4200_v16  ;;  %5093 = vmatpush.msra.mxu1 %v4166_v58 }
 0xafd   : > { %4602 = vmatmul.f32.gmra.mxu1 %v7946_v18  ;;  %4544 = vmatmul.f32.gmra.mxu0 %v7795_v27  ;;  %v4275_v18 = vpop.f32.mrf.mxu3 }
 0xafe   : > { %4573 = vmatmul.f32.gmra.mxu2 %v7806_v33  ;;  %4631 = vmatmul.f32.gmra.mxu3 %v7956_v32  ;;  %v4249_v27 = vpop.f32.mrf.mxu1 }
 0xaff   : > { %5109 = vmatpush.msra.mxu3 %v4198_v22 }
 0xb02   : > { %v4304_v48 = vpop.f32.mrf.mxu0 }
 0xb05   : > { %4660 = vmatmul.f32.vlgmr.msra.gmra.mxu1 %v8062_v8  ;;  %4651 = vmatmul.f32.vlgmr.msrb.gmra.mxu0 %v7981_v43  ;;  %v4278_v33 = vpop.f32.mrf.mxu3 }
 0xb06   : > { %4680 = vmatmul.f32.vlgmr.msrb.gmra.mxu2 %v7985_v29  ;;  %4689 = vmatmul.f32.vlgmr.msra.gmra.mxu3 %v8064_v0  ;;  %v4252_v32 = vpop.f32.mrf.mxu1  ;;  %v4279_v38 = vadd.f32 %v4278_v33, %v4249_v27 }
 0xb09   : > { %v4333_v4 = vpop.f32.mrf.mxu2 }
 0xb0a   : > { %v4307_v29 = vpop.f32.mrf.mxu0 }
 0xb0b   : > { %v4308_v24 = vadd.f32 %v4307_v29, %v4279_v38 }
 0xb0d   : > { %4654 = vmatmul.f32.gmra.mxu0 %v8016_v63  ;;  %v4281_v54 = vpop.f32.mrf.mxu3 }
 0xb0e   : > { %4683 = vmatmul.f32.gmra.mxu2 %v8020_v13  ;;  %v4255_v7 = vpop.f32.mrf.mxu1  ;;  %v4282_v21 = vadd.f32 %v4281_v54, %v4252_v32 }
 0xb11   : > { %v4336_v45 = vpop.f32.mrf.mxu2 }
 0xb12   : > { %v4310_v1 = vpop.f32.mrf.mxu0  ;;  %v4337_v19 = vadd.f32 %v4336_v45, %v4308_v24 }
 0xb13   : > { %v4311_v41 = vadd.f32 %v4310_v1, %v4282_v21 }
 0xb15   : > { %4657 = vmatmul.f32.gmra.mxu0 %v8044_v37  ;;  %v4284_v43 = vpop.f32.mrf.mxu3  ;;  %v4276_v37 = vadd.f32 %v4275_v18, %v4246_v6 }
 0xb16   : > { %4686 = vmatmul.f32.gmra.mxu2 %v8047_v50 }
 0xb17   : > { %v4305_v50 = vadd.f32 %v4304_v48, %v4276_v37 }
 0xb19   : > { %v4339_v2 = vpop.f32.mrf.mxu2  ;;  %v4334_v49 = vadd.f32 %v4333_v4, %v4305_v50 }
 0xb1a   : > { %v4313_v52 = vpop.f32.mrf.mxu0  ;;  %v4340_v39 = vadd.f32 %v4339_v2, %v4311_v41 }
 0xb21   : > { %v4342_v56 = vpop.f32.mrf.mxu2 }
 0xb22   : > { %v4362_v35 = vpop.f32.mrf.mxu1 }
 0xb23   : > { %v4363_v0 = vadd.f32 %v4362_v35, %v4334_v49 }
 0xb29   : > { %v4391_v5 = vpop.f32.mrf.mxu3 }
 0xb2a   : > { %v4365_v31 = vpop.f32.mrf.mxu1  ;;  %v4392_v44 = vadd.f32 %v4391_v5, %v4363_v0 }
 0xb2b   : > { %v4366_v40 = vadd.f32 %v4365_v31, %v4337_v19 }
 0xb31   : > { %v4394_v63 = vpop.f32.mrf.mxu3 }
 0xb32   : > { %v4368_v55 = vpop.f32.mrf.mxu1  ;;  %v4395_v53 = vadd.f32 %v4394_v63, %v4366_v40 }
 0xb33   : > { %v4369_v22 = vadd.f32 %v4368_v55, %v4340_v39 }
 0xb39   : > { %v4397_v13 = vpop.f32.mrf.mxu3 }
 0xb3a   : > { %v4371_v12 = vpop.f32.mrf.mxu1  ;;  %v4398_v18 = vadd.f32 %v4397_v13, %v4369_v22 }
 0xb41   : > { %v4400_v51 = vpop.f32.mrf.mxu3 }
 0xb42   : > { %v4420_v62 = vpop.f32.mrf.mxu0  ;;  %v8120_v8 = vpop.f32.mrf.mxu1 }
 0xb43   : > { %v4421_v34 = vadd.f32 %v4420_v62, %v4392_v44 }
 0xb49   : > { %v4449_v20 = vpop.f32.mrf.mxu2  ;;  %v4507_v60 = vpop.f32.mrf.mxu3 }
 0xb4a   : > { %v4450_v36 = vadd.f32 %v4449_v20, %v4421_v34  ;;  %v4423_v11 = vpop.f32.mrf.mxu0  ;;  %v4481_v15 = vpop.f32.mrf.mxu1  ;;  %v4508_v24 = vadd.f32 %v4507_v60, %v8120_v8 }
 0xb4b   : > { %v4424_v61 = vadd.f32 %v4423_v11, %v4395_v53 }
 0xb4c   : > { %v4693_v25 = vadd.f32 %v4450_v36, %v6968_v46  ;;  %v4285_v46 = vadd.f32 %v4284_v43, %v4255_v7 }
 0xb4e   : > { %v8124_v23 = vadd.f32 %v4701_v59, %v4693_v25  ;;  %v4314_v32 = vadd.f32 %v4313_v52, %v4285_v46 }
 0xb50   : > { %4711 = vst [vmem:[#allocation2 + $0x30] sm:$0xff] %v8124_v23  ;;  %v4343_v4 = vadd.f32 %v4342_v56, %v4314_v32  ;;  %v5358_v32 = vld [vmem:[%s5775_s14 + $0x18] sm:$0xff] }
 0xb51   : > { %v4452_v26 = vpop.f32.mrf.mxu2  ;;  %v4510_v17 = vpop.f32.mrf.mxu3 }
 0xb52   : > { %v4453_v10 = vadd.f32 %v4452_v26, %v4424_v61  ;;  %v4426_v16 = vpop.f32.mrf.mxu0  ;;  %v4484_v58 = vpop.f32.mrf.mxu1  ;;  %v4372_v45 = vadd.f32 %v4371_v12, %v4343_v4  ;;  %v4511_v40 = vadd.f32 %v4510_v17, %v4481_v15 }
 0xb53   : > { %v4427_v33 = vadd.f32 %v4426_v16, %v4398_v18 }
 0xb54   : > { %v4695_v6 = vadd.f32 %v4453_v10, %v6974_v47  ;;  %v4401_v47 = vadd.f32 %v4400_v51, %v4372_v45 }
 0xb56   : > { %v8128_v27 = vadd.f32 %v4701_v59, %v4695_v6 }
 0xb58   : > { %4713 = vst [vmem:[#allocation2 + $0x18] sm:$0xff] %v8128_v27 }
 0xb59   : > { %v4455_v54 = vpop.f32.mrf.mxu2  ;;  %v4513_v35 = vpop.f32.mrf.mxu3 }
 0xb5a   : > { %v4456_v48 = vadd.f32 %v4455_v54, %v4427_v33  ;;  %v4429_v29 = vpop.f32.mrf.mxu0  ;;  %v4487_v5 = vpop.f32.mrf.mxu1  ;;  %v4514_v22 = vadd.f32 %v4513_v35, %v4484_v58  ;;  %v4702_v54 = vperm.slane %v5358_v32, 2 }
 0xb5b   : > { %v4430_v63 = vadd.f32 %v4429_v29, %v4401_v47 }
 0xb5c   : > { %v4697_v31 = vadd.f32 %v4456_v48, %v6980_v28 }
 0xb5e   : > { %v8132_v1 = vadd.f32 %v4701_v59, %v4697_v31 }
 0xb60   : > { %4715 = vst [vmem:[#allocation2 + $0x8] sm:$0xff] %v8132_v1 }
 0xb61   : > { %v4458_v7 = vpop.f32.mrf.mxu2  ;;  %v4516_v43 = vpop.f32.mrf.mxu3 }
 0xb62   : > { %v4459_v55 = vadd.f32 %v4458_v7, %v4430_v63  ;;  %v4536_v2 = vpop.f32.mrf.mxu0  ;;  %v4594_v13 = vpop.f32.mrf.mxu1 }
 0xb63   : > { %v4537_v20 = vadd.f32 %v4536_v2, %v4508_v24 }
 0xb64   : > { %v4699_v52 = vadd.f32 %v4459_v55, %v6993_v57  ;;  %v4517_v57 = vadd.f32 %v4516_v43, %v4487_v5 }
 0xb66   : > { %v8136_v37 = vadd.f32 %v4701_v59, %v4699_v52 }
 0xb68   : > { %4717 = vst [vmem:[#allocation2 + $0x28] sm:$0xf] %v8136_v37 }
 0xb69   : > { %v4565_v50 = vpop.f32.mrf.mxu2  ;;  %v4623_v28 = vpop.f32.mrf.mxu3 }
 0xb6a   : > { %v4539_v12 = vpop.f32.mrf.mxu0  ;;  %v4597_v56 = vpop.f32.mrf.mxu1  ;;  %v4566_v36 = vadd.f32 %v4565_v50, %v4537_v20 }
 0xb6b   : > { %v4540_v41 = vadd.f32 %v4539_v12, %v4511_v40 }
 0xb6c   : > { %v4595_v25 = vadd.f32 %v4594_v13, %v4566_v36 }
 0xb6e   : > { %v4624_v26 = vadd.f32 %v4623_v28, %v4595_v25 }
 0xb71   : > { %v4568_v49 = vpop.f32.mrf.mxu2  ;;  %v4626_v51 = vpop.f32.mrf.mxu3 }
 0xb72   : > { %v4542_v62 = vpop.f32.mrf.mxu0  ;;  %v4600_v0 = vpop.f32.mrf.mxu1  ;;  %v4569_v39 = vadd.f32 %v4568_v49, %v4540_v41 }
 0xb73   : > { %v4543_v48 = vadd.f32 %v4542_v62, %v4514_v22 }
 0xb74   : > { %v4598_v46 = vadd.f32 %v4597_v56, %v4569_v39 }
 0xb76   : > { %v4627_v5 = vadd.f32 %v4626_v51, %v4598_v46 }
 0xb79   : > { %v4571_v38 = vpop.f32.mrf.mxu2  ;;  %v4629_v44 = vpop.f32.mrf.mxu3 }
 0xb7a   : > { %v4545_v34 = vpop.f32.mrf.mxu0  ;;  %v4603_v19 = vpop.f32.mrf.mxu1  ;;  %v4572_v31 = vadd.f32 %v4571_v38, %v4543_v48 }
 0xb7b   : > { %v4546_v3 = vadd.f32 %v4545_v34, %v4517_v57 }
 0xb7c   : > { %v4601_v35 = vadd.f32 %v4600_v0, %v4572_v31 }
 0xb7e   : > { %v4630_v2 = vadd.f32 %v4629_v44, %v4601_v35 }
 0xb81   : > { %v4574_v59 = vpop.f32.mrf.mxu2  ;;  %v4632_v11 = vpop.f32.mrf.mxu3 }
 0xb82   : > { %v4575_v21 = vadd.f32 %v4574_v59, %v4546_v3  ;;  %v4652_v53 = vpop.f32.mrf.mxu0  ;;  %v4661_v16 = vpop.f32.mrf.mxu1 }
 0xb83   : > { %v4653_v8 = vadd.f32 %v4652_v53, %v4624_v26 }
 0xb84   : > { %v4604_v61 = vadd.f32 %v4603_v19, %v4575_v21 }
 0xb86   : > { %v4633_v10 = vadd.f32 %v4632_v11, %v4604_v61 }
 0xb88   : > { %v4662_v60 = vadd.f32 %v4661_v16, %v4633_v10 }
 0xb89   : > { %v4681_v6 = vpop.f32.mrf.mxu2  ;;  %v4690_v18 = vpop.f32.mrf.mxu3 }
 0xb8a   : > { %v4682_v33 = vadd.f32 %v4681_v6, %v4653_v8  ;;  %v4691_v15 = vadd.f32 %v4690_v18, %v4662_v60  ;;  %v4655_v17 = vpop.f32.mrf.mxu0 }
 0xb8b   : > { %v4656_v63 = vadd.f32 %v4655_v17, %v4627_v5 }
 0xb8c   : > { %v4694_v4 = vadd.f32 %v4682_v33, %v6970_v42  ;;  %v4700_v29 = vadd.f32 %v4691_v15, %v6999_v30 }
 0xb8e   : > { %v4704_v45 = vadd.f32 %v4702_v54, %v4694_v4  ;;  %v4710_v47 = vadd.f32 %v4702_v54, %v4700_v29 }
 0xb90   : > { %4712 = vst [vmem:[#allocation2] sm:$0xff] %v4704_v45 }
 0xb91   : > { %4718 = vst [vmem:[#allocation2 + $0x38] sm:$0xf] %v4710_v47  ;;  %v4684_v58 = vpop.f32.mrf.mxu2 }
 0xb92   : > { %v4685_v7 = vadd.f32 %v4684_v58, %v4656_v63  ;;  %v4658_v55 = vpop.f32.mrf.mxu0 }
 0xb93   : > { %v4659_v52 = vadd.f32 %v4658_v55, %v4630_v2 }
 0xb94   : > { %v4696_v43 = vadd.f32 %v4685_v7, %v6976_v14 }
 0xb96   : > { %v4706_v13 = vadd.f32 %v4702_v54, %v4696_v43 }
 0xb98   : > { %4714 = vst [vmem:[#allocation2 + $0x10] sm:$0xff] %v4706_v13 }
 0xb99   : > { %v4687_v42 = vpop.f32.mrf.mxu2 }
 0xb9a   : > { %v4688_v50 = vadd.f32 %v4687_v42, %v4659_v52 }
 0xb9c   : > { %v4698_v30 = vadd.f32 %v4688_v50, %v6982_v9  ;;  %4722 = sbr.rel (%p5037_p7) target bundleno = 3003 (0xbbb), region = 80 }
 0xb9e   : > { %v4708_v28 = vadd.f32 %v4702_v54, %v4698_v30 }
 0xba0   : > { %4716 = vst [vmem:[#allocation2 + $0x20] sm:$0xff] %v4708_v28 }
 0xba1   : > { %v4723_v12 = vsel %vm1435_vm7, %v8128_v27, 0.0  ;;  %v4731_v56 = vsel %vm1435_vm7, %v4706_v13, 0.0  ;;  %v5564_v51 = vmov 14.0   ;;  %v4765_v62 = vrot.slane %v8128_v27, 6 }
 0xba2   : > { %v4724_v14 = vadd.f32 %v4723_v12, %v8124_v23  ;;  %v4732_v49 = vadd.f32 %v4731_v56, %v4704_v45  ;;  %5359 = vrcp.f32 %v5564_v51  ;;  %v4766_v0 = vrot.slane %v8132_v1, 6 }
 0xba3   : > { %v4768_v9 = vrot.slane %v4706_v13, 6  ;;  %v4769_v38 = vrot.slane %v4708_v28, 6  ;;  %v4771_v34 = vrot.slane %v8136_v37, 6  ;;  %v4773_v19 = vrot.slane %v4710_v47, 6 }
 0xba4   : > { %v4725_v44 = vrot.slane %v4724_v14, 4  ;;  %v4733_v24 = vrot.slane %v4732_v49, 4  ;;  %v4767_v20 = vsel %vm2049_vm14, %v4765_v62, %v4766_v0  ;;  %v4754_v15 = vlaneseq }
 0xba5   : > { %v4770_v23 = vsel %vm2049_vm14, %v4768_v9, %v4769_v38  ;;  %v4772_v3 = vsel %vm2049_vm14, %v4766_v0, %v4771_v34  ;;  %v4774_v59 = vsel %vm2049_vm14, %v4769_v38, %v4773_v19 }
 0xba6   : > { %v4726_v57 = vadd.f32 %v4725_v44, %v4724_v14  ;;  %v4734_v36 = vadd.f32 %v4733_v24, %v4732_v49  ;;  %v4779_v27 = vsel %vm1435_vm7, %v4772_v3, 0.0  ;;  %v4787_v21 = vsel %vm1435_vm7, %v4774_v59, 0.0 }
 0xba7   : > { %v4780_v25 = vadd.f32 %v4779_v27, %v4767_v20  ;;  %v4788_v53 = vadd.f32 %v4787_v21, %v4770_v23  ;;  %vm4751_vm7 = vcmask 1040384   ;;  %vm4756_vm1 = vcmp.lt.s32.totalorder %v4754_v15, 256 }
 0xba8   : > { %v5360_v1 = vpop.eup %5359  ;;  %v4727_v11 = vrot.slane %v4726_v57, 2  ;;  %v4735_v40 = vrot.slane %v4734_v36, 2 }
 0xba9   : > { %v4740_v37 = vmul.f32 14.0, %v5360_v1  ;;  %v4781_v26 = vrot.slane %v4780_v25, 4  ;;  %v4789_v10 = vrot.slane %v4788_v53, 4  ;;  %vm4744_vm14 = vweird.f32 %v5360_v1 }
 0xbaa   : > { %v4728_v41 = vadd.f32 %v4727_v11, %v4726_v57  ;;  %v4736_v61 = vadd.f32 %v4735_v40, %v4734_v36 }
 0xbab   : > { %v4741_v39 = vsub.f32 1.0, %v4740_v37  ;;  %v4782_v60 = vadd.f32 %v4781_v26, %v4780_v25  ;;  %v4790_v6 = vadd.f32 %v4789_v10, %v4788_v53 }
 0xbac   : > { %v4729_v16 = vrot.slane %v4728_v41, 1  ;;  %v4737_v8 = vrot.slane %v4736_v61, 1 }
 0xbad   : > { %v4742_v22 = vmul.f32 %v5360_v1, %v4741_v39  ;;  %v4783_v33 = vrot.slane %v4782_v60, 2  ;;  %v4791_v54 = vrot.slane %v4790_v6, 2 }
 0xbae   : > { %v4730_v18 = vadd.f32 %v4729_v16, %v4728_v41  ;;  %v4738_v46 = vadd.f32 %v4737_v8, %v4736_v61 }
 0xbaf   : > { %v4743_v32 = vadd.f32 %v5360_v1, %v4742_v22  ;;  %v4784_v17 = vadd.f32 %v4783_v33, %v4782_v60  ;;  %v4792_v4 = vadd.f32 %v4791_v54, %v4790_v6 }
 0xbb1   : > { %v4745_v48 = vsel %vm4744_vm14, %v5360_v1, %v4743_v32  ;;  %v4785_v31 = vrot.slane %v4784_v17, 1  ;;  %v4793_v45 = vrot.slane %v4792_v4, 1 }
 0xbb2   : > { %v4746_v29 = vmul.f32 %v4745_v48, %v4730_v18  ;;  %v4747_v5 = vmul.f32 %v4745_v48, %v4738_v46 }
 0xbb3   : > { %v4786_v63 = vadd.f32 %v4785_v31, %v4784_v17  ;;  %v4794_v58 = vadd.f32 %v4793_v45, %v4792_v4 }
 0xbb4   : > { %v4750_v47 = vrot.slane %v4747_v5, 7 }
 0xbb5   : > { %v4795_v7 = vmul.f32 %v4786_v63, %v4745_v48  ;;  %v4796_v43 = vmul.f32 %v4794_v58, %v4745_v48 }
 0xbb6   : > { %v4752_v35 = vsel %vm4751_vm7, %v4746_v29, %v4750_v47 }
 0xbb7   : > { %4758 = vst.msk [vmem:[#allocation12] ss:$2 sm:$0x3] %vm4756_vm1, %v4752_v35  ;;  %v4799_v55 = vrot.slane %v4796_v43, 7 }
 0xbb9   : > { %v4800_v2 = vsel %vm4751_vm7, %v4795_v7, %v4799_v55 }
 0xbba   : > { %4803 = vst.msk [vmem:[#allocation12 + $0x1] ss:$2 sm:$0x3] %vm4756_vm1, %v4800_v2 }
 0xbbb PF: > { %p5139_p5 = scmp.eq.s32.totalorder %s5635_s13, 1  ;;  %s5565_s28 = smov [#allocation12]  }
 0xbbc   : > { %s4810_s11 = sshll.u32 %s5565_s28, 4  ;;  %s8226_s14 = sld [smem:[#allocation28_spill]]  ;;  %s4811_s11 = int_to_ptr.vmem [resolvable:$true] %s4810_s11 }
 0xbc2   : > { %s4812_s25 = sshll.u32 %s8226_s14, 4  ;;  %s4813_s25 = int_to_ptr.hbm [resolvable:$true] %s4812_s25 }
 0xbc3   : > { %5122 = dma.vmem_to_hbm [thread:$0]  (%p5139_p5), %s4811_s11, 64, %s4813_s25, [#allocation6]  }
 0xbc4   : > { %5538 = dma.done.wait (%p5139_p5), [#allocation6], 64  }
 0xbc5   : > { %5540 = vsyncadd (%p5139_p5), [#allocation6], 4294967232 }
 0xbc6 PF: > { %s8227_s12 = sld [smem:[#allocation18_spill]]  ;;  %s8230_s30 = smov %s5547_s10 }
 0xbc7   : > { %s8228_s5 = sld [smem:[#allocation17_spill]] }
 0xbc8   : > { %s8229_s11 = sld [smem:[#allocation19_spill]] }
 0xbcc   : > { %p26_p9 = scmp.ge.s32.totalorder %s8227_s12, 4  }
 0xbcd   : > { %s8231_s10 = smov %s8228_s5 }
 0xbce   :  { %28 = sbr.rel (!%p26_p9) target bundleno = 11 (0xb), region = 142 }
 0xbd3   :  { %4826 = vsyncpa [#allocation5], 1 }
 0xbd4   :  { %4828 = vsyncpa [#allocation5 + $0x1], 1 }
 0xbd5   :  { %4829 = vsyncpa [#allocation8], 1 }
 0xbd6   :  { %4831 = vsyncpa [#allocation8 + $0x1], 1 }
 0xbd7   :  { %4832 = vsyncpa [#allocation11], 1 }
 0xbd8   :  { %4834 = vsyncpa [#allocation11 + $0x1], 1 }
 0xbd9   :  { %4835 = vsyncpa [#allocation6], 1 }
 0xbda   :  { %4837 = vsyncpa [#allocation6 + $0x1], 1 }

</bundles_post_ra>
